<compile_context>
chip_gen: v7x
topology: tpu7x:2x2x1
jax: 0.10.0
libtpu: 0.0.40
codegen_flags: <defaults>
</compile_context>

<pallas_src>
import functools

import jax
import jax.numpy as jnp
from jax.experimental import pallas as pl
from jax.experimental.pallas import tpu as pltpu

EPS = 1e-5


# ----------------------------- planning helpers ------------------------------


def _vmem_plan(vmem_budget_bytes):
    """Return (planning budget for live block bytes, scoped vmem limit)."""
    cap = 64 * 1024 * 1024  # conservative fallback (v7x per-TC VMEM)
    try:
        info = pltpu.get_tpu_info()
        cap_q = int(getattr(info, "vmem_capacity_bytes", 0) or 0)
        if cap_q > 0:
            cap = cap_q
    except Exception:
        pass
    # Never exceed physical VMEM; leave >=25% headroom for compiler scratch.
    limit = min(cap * 3 // 4, 96 * 1024 * 1024)
    if vmem_budget_bytes is None:
        # ~24 MiB on v7x (64 MiB VMEM), ~48 MiB on v5e/v6e (128 MiB VMEM).
        budget = cap * 3 // 8
    else:
        budget = int(vmem_budget_bytes)
    budget = max(1, min(budget, limit))
    return budget, limit


def _channel_tiles(C):
    """Legal sublane channel tiles: divisors of C that are multiples of 8,
    plus C itself (a full-dim block is always legal).  Largest first."""
    tiles = {C}
    for d in range(8, C, 8):
        if C % d == 0:
            tiles.add(d)
    return sorted(tiles, reverse=True)


def _largest_divisor_leq(n, cap):
    cap = max(1, min(int(cap), n))
    for d in range(cap, 0, -1):
        if n % d == 0:
            return d
    return 1


# ----------------------------- kernels ---------------------------------------


def _bn_fused_kernel(x_ref, gamma_ref, beta_ref, o_ref, *, eps, inv_l):
    # x_ref: (N, Ct, HW) block -- channels on sublanes, whole reduction
    # (batch + spatial) in-block.  One sweep: sum and sum-of-squares, affine
    # folded into per-channel scale/shift (no second full-block temporary).
    x = x_ref[...].astype(jnp.float32)
    s = jnp.sum(jnp.sum(x, axis=2, keepdims=True), axis=0, keepdims=True)
    sq = jnp.sum(jnp.sum(x * x, axis=2, keepdims=True), axis=0, keepdims=True)
    mean = s * inv_l                                            # (1, Ct, 1)
    var = jnp.maximum(sq * inv_l - mean * mean, 0.0)            # (1, Ct, 1)
    scale = gamma_ref[...] * jax.lax.rsqrt(var + eps)           # (1, Ct, 1)
    shift = beta_ref[...] - mean * scale                        # (1, Ct, 1)
    o_ref[...] = (x * scale + shift).astype(o_ref.dtype)


def _bn_stats_kernel(x_ref, gamma_ref, beta_ref, scale_ref, shift_ref,
                     sum_sc, sq_sc, *, eps, inv_l):
    # Accumulate per-channel sum / sum-of-squares over the batch grid axis,
    # emit per-channel (scale, shift) on the last step.
    ni = pl.program_id(1)

    @pl.when(ni == 0)
    def _():
        sum_sc[...] = jnp.zeros_like(sum_sc)
        sq_sc[...] = jnp.zeros_like(sq_sc)

    x = x_ref[...].astype(jnp.float32)                          # (Nt, Ct, HW)
    sum_sc[...] += jnp.sum(jnp.sum(x, axis=2, keepdims=True), axis=0,
                           keepdims=True)
    sq_sc[...] += jnp.sum(jnp.sum(x * x, axis=2, keepdims=True), axis=0,
                          keepdims=True)

    @pl.when(ni == pl.num_programs(1) - 1)
    def _():
        mean = sum_sc[...] * inv_l
        var = jnp.maximum(sq_sc[...] * inv_l - mean * mean, 0.0)
        scale = gamma_ref[...] * jax.lax.rsqrt(var + eps)
        shift = beta_ref[...] - mean * scale
        scale_ref[...] = scale
        shift_ref[...] = shift


def _bn_apply_kernel(x_ref, scale_ref, shift_ref, o_ref):
    x = x_ref[...].astype(jnp.float32)
    o_ref[...] = (x * scale_ref[...] + shift_ref[...]).astype(o_ref.dtype)


# ----------------------------- wrapper ----------------------------------------


def batchnorm2d(x_nchw, gamma, beta, *, eps=EPS, vmem_budget_bytes=None):
    """Training-mode BatchNorm2d forward (batch statistics), NCHW input."""
    # TODO(synk): running_mean / running_var (momentum=0.1, unbiased variance)
    # buffer updates are not produced; only the normalized forward output is
    # computed (the module's forward return value).
    N, C, H, W = x_nchw.shape
    HW = H * W
    L = N * HW
    budget, vmem_limit = _vmem_plan(vmem_budget_bytes)

    # Native layout: (N, C, H, W) -> (N, C, H*W) is a free contiguous view.
    # Channels stay on the sublane axis; no transpose, no padding.
    x3d = x_nchw.reshape(N, C, HW)
    g3d = gamma.reshape(1, C, 1).astype(jnp.float32)
    b3d = beta.reshape(1, C, 1).astype(jnp.float32)

    tiles = _channel_tiles(C)

    # ---- fused single-pass plan (whole reduction in-block) ------------------
    # x in + x out, f32, double-buffered => x4 on the block bytes.
    fitting = [ct for ct in tiles if N * ct * HW * 4 * 4 <= budget]

    if fitting:
        # Prefer exactly 2 channel tiles (dual-TC on v7x, DMA/compute overlap
        # elsewhere); otherwise take the largest fitting tile.
        two = [ct for ct in fitting if C // ct == 2]
        Ct = two[0] if two else fitting[0]
        n_ct = C // Ct

        out3d = pl.pallas_call(
            functools.partial(_bn_fused_kernel, eps=eps, inv_l=1.0 / L),
            out_shape=jax.ShapeDtypeStruct((N, C, HW), x3d.dtype),
            grid_spec=pltpu.PrefetchScalarGridSpec(
                num_scalar_prefetch=0,
                grid=(n_ct,),
                in_specs=[
                    pl.BlockSpec((N, Ct, HW), lambda j: (0, j, 0)),
                    pl.BlockSpec((1, Ct, 1), lambda j: (0, j, 0)),
                    pl.BlockSpec((1, Ct, 1), lambda j: (0, j, 0)),
                ],
                out_specs=pl.BlockSpec((N, Ct, HW), lambda j: (0, j, 0)),
            ),
            compiler_params=pltpu.CompilerParams(
                dimension_semantics=("parallel",),
                vmem_limit_bytes=vmem_limit,
            ),
        )(x3d, g3d, b3d)
    else:
        # ---- two-pass path: tile the reduction over the batch axis ----------
        # Largest legal channel tile such that the apply pass (x in + x out,
        # double-buffered) fits with a single batch row per block.
        Ct = None
        for t in tiles:
            if t * HW * 4 * 4 <= budget:
                Ct = t
                break
        if Ct is None:
            # TODO(synk): per-channel spatial extents so large that even an
            # 8-channel block exceeds the VMEM budget would need lane-axis
            # (H*W) tiling; not implemented.
            Ct = tiles[-1]
        n_ct = C // Ct

        # Per-pass batch tiles: stats pass has no large output block (x2),
        # apply pass streams x in and out (x4).
        nt_stats = _largest_divisor_leq(N, max(1, budget // (Ct * HW * 4 * 2)))
        nt_apply = _largest_divisor_leq(N, max(1, budget // (Ct * HW * 4 * 4)))

        # pass 1: per-channel scale / shift
        scale, shift = pl.pallas_call(
            functools.partial(_bn_stats_kernel, eps=eps, inv_l=1.0 / L),
            out_shape=(jax.ShapeDtypeStruct((1, C, 1), jnp.float32),
                       jax.ShapeDtypeStruct((1, C, 1), jnp.float32)),
            grid_spec=pltpu.PrefetchScalarGridSpec(
                num_scalar_prefetch=0,
                grid=(n_ct, N // nt_stats),
                in_specs=[
                    pl.BlockSpec((nt_stats, Ct, HW), lambda j, n: (n, j, 0)),
                    pl.BlockSpec((1, Ct, 1), lambda j, n: (0, j, 0)),
                    pl.BlockSpec((1, Ct, 1), lambda j, n: (0, j, 0)),
                ],
                out_specs=[
                    pl.BlockSpec((1, Ct, 1), lambda j, n: (0, j, 0)),
                    pl.BlockSpec((1, Ct, 1), lambda j, n: (0, j, 0)),
                ],
                scratch_shapes=[
                    pltpu.VMEM((1, Ct, 1), jnp.float32),
                    pltpu.VMEM((1, Ct, 1), jnp.float32),
                ],
            ),
            compiler_params=pltpu.CompilerParams(
                dimension_semantics=("parallel", "arbitrary"),
                vmem_limit_bytes=vmem_limit,
            ),
        )(x3d, g3d, b3d)

        # pass 2: y = x * scale + shift (elementwise, native layout)
        out3d = pl.pallas_call(
            _bn_apply_kernel,
            out_shape=jax.ShapeDtypeStruct((N, C, HW), x3d.dtype),
            grid_spec=pltpu.PrefetchScalarGridSpec(
                num_scalar_prefetch=0,
                grid=(n_ct, N // nt_apply),
                in_specs=[
                    pl.BlockSpec((nt_apply, Ct, HW), lambda j, n: (n, j, 0)),
                    pl.BlockSpec((1, Ct, 1), lambda j, n: (0, j, 0)),
                    pl.BlockSpec((1, Ct, 1), lambda j, n: (0, j, 0)),
                ],
                out_specs=pl.BlockSpec((nt_apply, Ct, HW),
                                       lambda j, n: (n, j, 0)),
            ),
            compiler_params=pltpu.CompilerParams(
                dimension_semantics=("parallel", "parallel"),
                vmem_limit_bytes=vmem_limit,
            ),
        )(x3d, scale, shift)

    # (N, C, H*W) -> (N, C, H, W): free contiguous view, no transpose.
    return out3d.reshape(N, C, H, W)


# ----------------------------- reference & test -------------------------------


def batchnorm2d_ref(x_nchw, gamma, beta, eps=EPS):
    x = x_nchw.astype(jnp.float32)
    mean = jnp.mean(x, axis=(0, 2, 3), keepdims=True)
    var = jnp.mean((x - mean) ** 2, axis=(0, 2, 3), keepdims=True)
    g = gamma.reshape(1, -1, 1, 1)
    b = beta.reshape(1, -1, 1, 1)
    return ((x - mean) * jax.lax.rsqrt(var + eps) * g + b).astype(x_nchw.dtype)


if __name__ == "__main__":
    # Shapes match the module: BatchNorm2d(2064) applied to (1, 2064, 7, 7).
    N, C, H, W = 1, 2064, 7, 7
    key = jax.random.PRNGKey(0)
    kx, kg, kb = jax.random.split(key, 3)

    x = jax.random.normal(kx, (N, C, H, W), dtype=jnp.float32)
    gamma = 1.0 + 0.1 * jax.random.normal(kg, (C,), dtype=jnp.float32)
    beta = 0.1 * jax.random.normal(kb, (C,), dtype=jnp.float32)

    out = jax.block_until_ready(batchnorm2d(x, gamma, beta))
    ref = batchnorm2d_ref(x, gamma, beta)
    assert out.shape == (N, C, H, W)
    assert jnp.max(jnp.abs(out - ref)) < 1e-4, "mismatch vs reference (fused path)"

    # Exercise the two-pass (batch-tiled reduction) path with a tiny budget.
    N2, C2, H2, W2 = 4, 256, 16, 16
    k2x, k2g, k2b = jax.random.split(jax.random.PRNGKey(1), 3)
    x2 = jax.random.normal(k2x, (N2, C2, H2, W2), dtype=jnp.float32)
    g2 = 1.0 + 0.1 * jax.random.normal(k2g, (C2,), dtype=jnp.float32)
    b2 = 0.1 * jax.random.normal(k2b, (C2,), dtype=jnp.float32)
    out2 = jax.block_until_ready(
        batchnorm2d(x2, g2, b2, vmem_budget_bytes=96 * 1024)
    )
    ref2 = batchnorm2d_ref(x2, g2, b2)
    assert out2.shape == (N2, C2, H2, W2)
    assert jnp.max(jnp.abs(out2 - ref2)) < 1e-4, "mismatch vs reference (two-pass path)"

    print("KERNEL_OK")
</pallas_src>

<mosaic_0001>
module attributes {stable_mosaic.version = 11 : i64} {
  func.func @_bn_fused_kernel(%arg0: i32, %arg1: memref<1x1032x49xf32, #tpu.memory_space<vmem>>, %arg2: memref<1x1032x1xf32, #tpu.memory_space<vmem>>, %arg3: memref<1x1032x1xf32, #tpu.memory_space<vmem>>, %arg4: memref<1x1032x49xf32, #tpu.memory_space<vmem>>) attributes {dimension_semantics = [#tpu.dimension_semantics<parallel>], iteration_bounds = array<i64: 2>, scalar_prefetch = 0 : i64, scratch_operands = 0 : i64, tpu.core_type = #tpu.core_type<tc>, window_params = [{transform_indices = @transform_0, window_bounds = array<i64: 1, 1032, 49>}, {transform_indices = @transform_1, window_bounds = array<i64: 1, 1032, 1>}, {transform_indices = @transform_2, window_bounds = array<i64: 1, 1032, 1>}, {transform_indices = @transform_3, window_bounds = array<i64: 1, 1032, 49>}]} {
    %c0 = arith.constant 0 : index
    %c0_0 = arith.constant 0 : index
    %c0_1 = arith.constant 0 : index
    %0 = vector.load %arg1[%c0, %c0_0, %c0_1] : memref<1x1032x49xf32, #tpu.memory_space<vmem>>, vector<1x1032x49xf32>
    %cst = arith.constant dense<0.000000e+00> : vector<1x1032xf32>
    %1 = vector.multi_reduction <add>, %0, %cst [2] : vector<1x1032x49xf32> to vector<1x1032xf32>
    %2 = vector.shape_cast %1 : vector<1x1032xf32> to vector<1x1032x1xf32>
    %cst_2 = arith.constant dense<0.000000e+00> : vector<1032x1xf32>
    %3 = vector.multi_reduction <add>, %2, %cst_2 [0] : vector<1x1032x1xf32> to vector<1032x1xf32>
    %4 = vector.shape_cast %3 : vector<1032x1xf32> to vector<1x1032x1xf32>
    %5 = arith.mulf %0, %0 : vector<1x1032x49xf32>
    %cst_3 = arith.constant dense<0.000000e+00> : vector<1x1032xf32>
    %6 = vector.multi_reduction <add>, %5, %cst_3 [2] : vector<1x1032x49xf32> to vector<1x1032xf32>
    %7 = vector.shape_cast %6 : vector<1x1032xf32> to vector<1x1032x1xf32>
    %cst_4 = arith.constant dense<0.000000e+00> : vector<1032x1xf32>
    %8 = vector.multi_reduction <add>, %7, %cst_4 [0] : vector<1x1032x1xf32> to vector<1032x1xf32>
    %9 = vector.shape_cast %8 : vector<1032x1xf32> to vector<1x1032x1xf32>
    %cst_5 = arith.constant 0.0204081628 : f32
    %10 = vector.broadcast %cst_5 : f32 to vector<1x1032x1xf32>
    %11 = arith.mulf %4, %10 : vector<1x1032x1xf32>
    %cst_6 = arith.constant 0.0204081628 : f32
    %12 = vector.broadcast %cst_6 : f32 to vector<1x1032x1xf32>
    %13 = arith.mulf %9, %12 : vector<1x1032x1xf32>
    %14 = arith.mulf %11, %11 : vector<1x1032x1xf32>
    %15 = arith.subf %13, %14 : vector<1x1032x1xf32>
    %cst_7 = arith.constant 0.000000e+00 : f32
    %16 = vector.broadcast %cst_7 : f32 to vector<1x1032x1xf32>
    %17 = arith.maximumf %15, %16 : vector<1x1032x1xf32>
    %c0_8 = arith.constant 0 : index
    %c0_9 = arith.constant 0 : index
    %c0_10 = arith.constant 0 : index
    %18 = vector.load %arg2[%c0_8, %c0_9, %c0_10] : memref<1x1032x1xf32, #tpu.memory_space<vmem>>, vector<1x1032x1xf32>
    %cst_11 = arith.constant 9.99999974E-6 : f32
    %19 = vector.broadcast %cst_11 : f32 to vector<1x1032x1xf32>
    %20 = arith.addf %17, %19 : vector<1x1032x1xf32>
    %21 = math.rsqrt %20 : vector<1x1032x1xf32>
    %22 = arith.mulf %18, %21 : vector<1x1032x1xf32>
    %c0_12 = arith.constant 0 : index
    %c0_13 = arith.constant 0 : index
    %c0_14 = arith.constant 0 : index
    %23 = vector.load %arg3[%c0_12, %c0_13, %c0_14] : memref<1x1032x1xf32, #tpu.memory_space<vmem>>, vector<1x1032x1xf32>
    %24 = arith.mulf %11, %22 : vector<1x1032x1xf32>
    %25 = arith.subf %23, %24 : vector<1x1032x1xf32>
    %26 = vector.broadcast %22 : vector<1x1032x1xf32> to vector<1x1032x49xf32>
    %27 = arith.mulf %0, %26 : vector<1x1032x49xf32>
    %28 = vector.broadcast %25 : vector<1x1032x1xf32> to vector<1x1032x49xf32>
    %29 = arith.addf %27, %28 : vector<1x1032x49xf32>
    %c0_15 = arith.constant 0 : index
    %c0_16 = arith.constant 0 : index
    %c0_17 = arith.constant 0 : index
    %30 = vector.load %arg4[%c0_15, %c0_16, %c0_17] : memref<1x1032x49xf32, #tpu.memory_space<vmem>>, vector<1x1032x49xf32>
    tpu.vector_store %arg4[%c0_15, %c0_16, %c0_17], %29 {strides = array<i32>} : memref<1x1032x49xf32, #tpu.memory_space<vmem>>, vector<1x1032x49xf32>,
    return
  }
  func.func @transform_0(%arg0: i32) -> (i32, i32, i32) {
    %c0_i32 = arith.constant 0 : i32
    %c0_i32_0 = arith.constant 0 : i32
    %c0_i32_1 = arith.constant 0 : i32
    return %c0_i32, %arg0, %c0_i32_0 : i32, i32, i32
  }
  func.func @transform_1(%arg0: i32) -> (i32, i32, i32) {
    %c0_i32 = arith.constant 0 : i32
    %c0_i32_0 = arith.constant 0 : i32
    %c0_i32_1 = arith.constant 0 : i32
    return %c0_i32, %arg0, %c0_i32_0 : i32, i32, i32
  }
  func.func @transform_2(%arg0: i32) -> (i32, i32, i32) {
    %c0_i32 = arith.constant 0 : i32
    %c0_i32_0 = arith.constant 0 : i32
    %c0_i32_1 = arith.constant 0 : i32
    return %c0_i32, %arg0, %c0_i32_0 : i32, i32, i32
  }
  func.func @transform_3(%arg0: i32) -> (i32, i32, i32) {
    %c0_i32 = arith.constant 0 : i32
    %c0_i32_0 = arith.constant 0 : i32
    %c0_i32_1 = arith.constant 0 : i32
    return %c0_i32, %arg0, %c0_i32_0 : i32, i32, i32
  }
}

</mosaic_0001>

<bundles_post_ra>
// kernel: tpu_custom_call.1
= control target key start
LH: loop header
LB: loop body
LE: loop exit
PB: predicated region body
PF: predicated region fallthrough
CT: control target
= control target key end

     0   :  { %s5310_s12 = smov 0   ;;  %s9171_s0 = inlined_call_operand.vmem [shape: f32[1,2064,49], index: 0, kind: input, shape index: {}]   ;;  %s9172_s1 = inlined_call_operand.vmem [shape: f32[1,2064,1], index: 1, kind: input, shape index: {}]   ;;  %s9173_s2 = inlined_call_operand.vmem [shape: f32[1,2064,1], index: 2, kind: input, shape index: {}]   ;;  %s9174_s3 = inlined_call_operand.vmem [shape: f32[1,2064,49], index: 3, kind: output, shape index: {}]  }
   0x1 LB: > { %s4814_s13 = sadd.s32 4294967295, %s5287_s12   ;;  %p4818_p0 = scmp.ge.s32.totalorder %s5287_s12, 1  ;;  %s5287_s12 = sphi %s5310_s12, %s13_s12  }
   0x2   : > { %p160_p1 = scmp.lt.s32.totalorder %s5287_s12, 3 }
   0x4   : > { %p161_p2 = pnand %p4818_p0, %p160_p1 }
   0x6   : > { %164 = sbr.rel (%p161_p2) target bundleno = 1207 (0x4b7), region = 32 }
   0xd   : > { %s194_s14 = smul.u32 129, %s4814_s13  ;;  %vm347_vm0 = vcmask 400384  }
   0xf   : > { %p195_p3 = scmp.lt.s32.totalorder %s194_s14, 257 }
  0x11   : > { %s10451_s14 = smov (!%p195_p3, %s194_s14), 257 }
  0x12   : > { %s5318_s15 = sshll.u32 %s10451_s14, 3 }
  0x13   : > { %s5324_s18 = scalar_lea.vmem %s9171_s0, %s5318_s15  ;;  %s6592_s21 = scalar_lea.vmem %s9172_s1, %s5318_s15 }
  0x14   : > { %v5327_v0 = vld [vmem:[%s5324_s18 + $0x10] sm:$0xff]  ;;  %v5330_v1 = vld [vmem:[%s5324_s18] sm:$0xff]  ;;  %v5333_v2 = vld [vmem:[%s5324_s18 + $0x18] sm:$0xff]  ;;  %s8083_s24 = scalar_lea.vmem %s9173_s2, %s5318_s15  ;;  %s8440_s27 = scalar_lea.vmem %s9174_s3, %s5318_s15 }
  0x15   : > { %v354_v3 = vsel %vm347_vm0, %v5327_v0, 0.0  ;;  %v348_v4 = vsel %vm347_vm0, %v5330_v1, 0.0  ;;  %v5340_v5 = vld [vmem:[%s5324_s18 + $0x8] sm:$0xff]  ;;  %v357_v6 = vsel %vm347_vm0, %v5333_v2, 0.0  ;;  %v5350_v9 = vld [vmem:[%s5324_s18 + $0x20] sm:$0xff]  ;;  %v5357_v12 = vld [vmem:[%s5324_s18 + $0x38] sm:$0xff] }
  0x16   : > { %355 = vadd.xlane.f32.xlu1 %v354_v3  ;;  %349 = vadd.xlane.f32.xlu0 %v348_v4  ;;  %v351_v7 = vsel %vm347_vm0, %v5340_v5, 0.0  ;;  %v5347_v8 = vld [vmem:[%s5324_s18 + $0x28] sm:$0xff]  ;;  %v360_v11 = vsel %vm347_vm0, %v5350_v9, 0.0  ;;  %v5360_v13 = vld [vmem:[%s5324_s18 + $0x30] sm:$0xff]  ;;  %v369_v14 = vsel %vm347_vm0, %v5357_v12, 0.0  ;;  %v5370_v17 = vld [vmem:[%s5324_s18 + $0x40] sm:$0xff] }
  0x17   : > { %v363_v10 = vsel %vm347_vm0, %v5347_v8, 0.0  ;;  %v366_v15 = vsel %vm347_vm0, %v5360_v13, 0.0  ;;  %v5367_v16 = vld [vmem:[%s5324_s18 + $0x48] sm:$0xff]  ;;  %v372_v19 = vsel %vm347_vm0, %v5370_v17, 0.0  ;;  %v5377_v20 = vld [vmem:[%s5324_s18 + $0x58] sm:$0xff]  ;;  %v5380_v21 = vld [vmem:[%s5324_s18 + $0x50] sm:$0xff] }
  0x18   : > { %v375_v18 = vsel %vm347_vm0, %v5367_v16, 0.0  ;;  %v381_v22 = vsel %vm347_vm0, %v5377_v20, 0.0  ;;  %v378_v23 = vsel %vm347_vm0, %v5380_v21, 0.0  ;;  %v5387_v24 = vld [vmem:[%s5324_s18 + $0x68] sm:$0xff]  ;;  %v5390_v25 = vld [vmem:[%s5324_s18 + $0x60] sm:$0xff]  ;;  %v5397_v28 = vld [vmem:[%s5324_s18 + $0x78] sm:$0xff] }
  0x19   : > { %v387_v26 = vsel %vm347_vm0, %v5387_v24, 0.0  ;;  %v384_v27 = vsel %vm347_vm0, %v5390_v25, 0.0  ;;  %v5400_v29 = vld [vmem:[%s5324_s18 + $0x70] sm:$0xff]  ;;  %v393_v30 = vsel %vm347_vm0, %v5397_v28, 0.0  ;;  %v5407_v32 = vld [vmem:[%s5324_s18 + $0x88] sm:$0xff]  ;;  %v5410_v33 = vld [vmem:[%s5324_s18 + $0x80] sm:$0xff] }
  0x1a   : > { %358 = vadd.xlane.f32.xlu1 %v357_v6  ;;  %352 = vadd.xlane.f32.xlu0 %v351_v7  ;;  %v390_v31 = vsel %vm347_vm0, %v5400_v29, 0.0  ;;  %v399_v34 = vsel %vm347_vm0, %v5407_v32, 0.0  ;;  %v396_v35 = vsel %vm347_vm0, %v5410_v33, 0.0  ;;  %v5417_v36 = vld [vmem:[%s5324_s18 + $0x98] sm:$0xff]  ;;  %v5420_v37 = vld [vmem:[%s5324_s18 + $0x90] sm:$0xff]  ;;  %v5427_v40 = vld [vmem:[%s5324_s18 + $0xa8] sm:$0xff] }
  0x1b   : > { %v405_v38 = vsel %vm347_vm0, %v5417_v36, 0.0  ;;  %v402_v39 = vsel %vm347_vm0, %v5420_v37, 0.0  ;;  %v5430_v41 = vld [vmem:[%s5324_s18 + $0xa0] sm:$0xff]  ;;  %v411_v42 = vsel %vm347_vm0, %v5427_v40, 0.0  ;;  %v5437_v44 = vld [vmem:[%s5324_s18 + $0xb8] sm:$0xff]  ;;  %v5440_v45 = vld [vmem:[%s5324_s18 + $0xb0] sm:$0xff] }
  0x1c   : > { %v408_v43 = vsel %vm347_vm0, %v5430_v41, 0.0  ;;  %v417_v46 = vsel %vm347_vm0, %v5437_v44, 0.0  ;;  %v414_v47 = vsel %vm347_vm0, %v5440_v45, 0.0  ;;  %v5447_v48 = vld [vmem:[%s5324_s18 + $0xc8] sm:$0xff]  ;;  %v5450_v49 = vld [vmem:[%s5324_s18 + $0xc0] sm:$0xff]  ;;  %v5457_v52 = vld [vmem:[%s5324_s18 + $0xd8] sm:$0xff] }
  0x1d   : > { %v423_v50 = vsel %vm347_vm0, %v5447_v48, 0.0  ;;  %v420_v51 = vsel %vm347_vm0, %v5450_v49, 0.0  ;;  %v5460_v53 = vld [vmem:[%s5324_s18 + $0xd0] sm:$0xff]  ;;  %v429_v54 = vsel %vm347_vm0, %v5457_v52, 0.0  ;;  %v5467_v56 = vld [vmem:[%s5324_s18 + $0xe8] sm:$0xff]  ;;  %v5470_v57 = vld [vmem:[%s5324_s18 + $0xe0] sm:$0xff] }
  0x1e   : > { %364 = vadd.xlane.f32.xlu1 %v363_v10  ;;  %361 = vadd.xlane.f32.xlu0 %v360_v11  ;;  %v426_v55 = vsel %vm347_vm0, %v5460_v53, 0.0  ;;  %v435_v58 = vsel %vm347_vm0, %v5467_v56, 0.0  ;;  %v432_v59 = vsel %vm347_vm0, %v5470_v57, 0.0  ;;  %v5477_v60 = vld [vmem:[%s5324_s18 + $0xf8] sm:$0xff]  ;;  %v5480_v61 = vld [vmem:[%s5324_s18 + $0xf0] sm:$0xff]  ;;  %v5487_v3 = vld [vmem:[%s5324_s18 + $0x108] sm:$0xff] }
  0x1f   : > { %v441_v62 = vsel %vm347_vm0, %v5477_v60, 0.0  ;;  %v438_v63 = vsel %vm347_vm0, %v5480_v61, 0.0  ;;  %v5490_v4 = vld [vmem:[%s5324_s18 + $0x100] sm:$0xff]  ;;  %v447_v6 = vsel %vm347_vm0, %v5487_v3, 0.0  ;;  %v5497_v10 = vld [vmem:[%s5324_s18 + $0x118] sm:$0xff]  ;;  %v5500_v11 = vld [vmem:[%s5324_s18 + $0x110] sm:$0xff] }
  0x20   : > { %v444_v7 = vsel %vm347_vm0, %v5490_v4, 0.0 }
  0x22   : > { %370 = vadd.xlane.f32.xlu1 %v369_v14  ;;  %367 = vadd.xlane.f32.xlu0 %v366_v15  ;;  %v453_v14 = vsel %vm347_vm0, %v5497_v10, 0.0  ;;  %v450_v15 = vsel %vm347_vm0, %v5500_v11, 0.0 }
  0x26   : > { %376 = vadd.xlane.f32.xlu1 %v375_v18  ;;  %373 = vadd.xlane.f32.xlu0 %v372_v19  ;;  %v5507_v18 = vld [vmem:[%s5324_s18 + $0x128] sm:$0xff]  ;;  %v5510_v19 = vld [vmem:[%s5324_s18 + $0x120] sm:$0xff] }
  0x2a   : > { %382 = vadd.xlane.f32.xlu1 %v381_v22  ;;  %379 = vadd.xlane.f32.xlu0 %v378_v23  ;;  %v459_v22 = vsel %vm347_vm0, %v5507_v18, 0.0  ;;  %v456_v23 = vsel %vm347_vm0, %v5510_v19, 0.0 }
  0x2e   : > { %388 = vadd.xlane.f32.xlu1 %v387_v26  ;;  %385 = vadd.xlane.f32.xlu0 %v384_v27  ;;  %v5517_v26 = vld [vmem:[%s5324_s18 + $0x138] sm:$0xff]  ;;  %v5520_v27 = vld [vmem:[%s5324_s18 + $0x130] sm:$0xff] }
  0x32   : > { %394 = vadd.xlane.f32.xlu1 %v393_v30  ;;  %391 = vadd.xlane.f32.xlu0 %v390_v31  ;;  %v465_v30 = vsel %vm347_vm0, %v5517_v26, 0.0  ;;  %v462_v31 = vsel %vm347_vm0, %v5520_v27, 0.0 }
  0x36   : > { %400 = vadd.xlane.f32.xlu1 %v399_v34  ;;  %397 = vadd.xlane.f32.xlu0 %v396_v35  ;;  %v5527_v34 = vld [vmem:[%s5324_s18 + $0x148] sm:$0xff]  ;;  %v5530_v35 = vld [vmem:[%s5324_s18 + $0x140] sm:$0xff] }
  0x3a   : > { %406 = vadd.xlane.f32.xlu1 %v405_v38  ;;  %403 = vadd.xlane.f32.xlu0 %v402_v39  ;;  %v471_v38 = vsel %vm347_vm0, %v5527_v34, 0.0  ;;  %v468_v39 = vsel %vm347_vm0, %v5530_v35, 0.0 }
  0x3e   : > { %412 = vadd.xlane.f32.xlu1 %v411_v42  ;;  %409 = vadd.xlane.f32.xlu0 %v408_v43  ;;  %v5537_v42 = vld [vmem:[%s5324_s18 + $0x158] sm:$0xff]  ;;  %v5540_v43 = vld [vmem:[%s5324_s18 + $0x150] sm:$0xff] }
  0x42   : > { %418 = vadd.xlane.f32.xlu1 %v417_v46  ;;  %415 = vadd.xlane.f32.xlu0 %v414_v47  ;;  %v477_v46 = vsel %vm347_vm0, %v5537_v42, 0.0  ;;  %v474_v47 = vsel %vm347_vm0, %v5540_v43, 0.0 }
  0x46   : > { %424 = vadd.xlane.f32.xlu1 %v423_v50  ;;  %421 = vadd.xlane.f32.xlu0 %v420_v51  ;;  %v5547_v50 = vld [vmem:[%s5324_s18 + $0x168] sm:$0xff]  ;;  %v5550_v51 = vld [vmem:[%s5324_s18 + $0x160] sm:$0xff] }
  0x4a   : > { %430 = vadd.xlane.f32.xlu1 %v429_v54  ;;  %427 = vadd.xlane.f32.xlu0 %v426_v55  ;;  %v483_v54 = vsel %vm347_vm0, %v5547_v50, 0.0  ;;  %v480_v55 = vsel %vm347_vm0, %v5550_v51, 0.0 }
  0x4e   : > { %436 = vadd.xlane.f32.xlu1 %v435_v58  ;;  %433 = vadd.xlane.f32.xlu0 %v432_v59  ;;  %v5557_v58 = vld [vmem:[%s5324_s18 + $0x178] sm:$0xff]  ;;  %v5560_v59 = vld [vmem:[%s5324_s18 + $0x170] sm:$0xff] }
  0x52   : > { %442 = vadd.xlane.f32.xlu1 %v441_v62  ;;  %439 = vadd.xlane.f32.xlu0 %v438_v63  ;;  %v489_v62 = vsel %vm347_vm0, %v5557_v58, 0.0  ;;  %v486_v63 = vsel %vm347_vm0, %v5560_v59, 0.0 }
  0x56   : > { %448 = vadd.xlane.f32.xlu1 %v447_v6  ;;  %445 = vadd.xlane.f32.xlu0 %v444_v7  ;;  %v5567_v6 = vld [vmem:[%s5324_s18 + $0x188] sm:$0xff]  ;;  %v5570_v7 = vld [vmem:[%s5324_s18 + $0x180] sm:$0xff] }
  0x5a   : > { %454 = vadd.xlane.f32.xlu1 %v453_v14  ;;  %451 = vadd.xlane.f32.xlu0 %v450_v15  ;;  %v495_v14 = vsel %vm347_vm0, %v5567_v6, 0.0  ;;  %v492_v15 = vsel %vm347_vm0, %v5570_v7, 0.0 }
  0x5e   : > { %460 = vadd.xlane.f32.xlu1 %v459_v22  ;;  %457 = vadd.xlane.f32.xlu0 %v456_v23  ;;  %v5577_v22 = vld [vmem:[%s5324_s18 + $0x198] sm:$0xff]  ;;  %v5580_v23 = vld [vmem:[%s5324_s18 + $0x190] sm:$0xff] }
  0x5f   : > { %9426 = vst [vmem:[#allocation2_spill] sm:$0xff] %v5577_v22 }
  0x62   : > { %466 = vadd.xlane.f32.xlu1 %v465_v30  ;;  %463 = vadd.xlane.f32.xlu0 %v462_v31  ;;  %v501_v30 = vsel %vm347_vm0, %v5577_v22, 0.0  ;;  %v498_v31 = vsel %vm347_vm0, %v5580_v23, 0.0 }
  0x66   : > { %472 = vadd.xlane.f32.xlu1 %v471_v38  ;;  %469 = vadd.xlane.f32.xlu0 %v468_v39  ;;  %v5587_v38 = vld [vmem:[%s5324_s18 + $0x1a8] sm:$0xff]  ;;  %v5590_v39 = vld [vmem:[%s5324_s18 + $0x1a0] sm:$0xff] }
  0x67   : > { %9427 = vst [vmem:[#allocation3_spill] sm:$0xff] %v5587_v38  ;;  %9428 = vst [vmem:[#allocation4_spill] sm:$0xff] %v5590_v39 }
  0x6a   : > { %478 = vadd.xlane.f32.xlu1 %v477_v46  ;;  %475 = vadd.xlane.f32.xlu0 %v474_v47  ;;  %v507_v46 = vsel %vm347_vm0, %v5587_v38, 0.0  ;;  %v504_v47 = vsel %vm347_vm0, %v5590_v39, 0.0  ;;  %v5648_v38 = vld [vmem:[%s5324_s18 + $0x200] sm:$0xff] }
  0x6b   : > { %9439 = vst [vmem:[#allocation15_spill] sm:$0xff] %v5648_v38 }
  0x6e   : > { %484 = vadd.xlane.f32.xlu1 %v483_v54  ;;  %481 = vadd.xlane.f32.xlu0 %v480_v55  ;;  %v5597_v54 = vld [vmem:[%s5324_s18 + $0x1b8] sm:$0xff]  ;;  %v5600_v55 = vld [vmem:[%s5324_s18 + $0x1b0] sm:$0xff] }
  0x6f   : > { %9429 = vst [vmem:[#allocation5_spill] sm:$0xff] %v5597_v54  ;;  %9430 = vst [vmem:[#allocation6_spill] sm:$0xff] %v5600_v55 }
  0x72   : > { %490 = vadd.xlane.f32.xlu1 %v489_v62  ;;  %487 = vadd.xlane.f32.xlu0 %v486_v63  ;;  %v513_v62 = vsel %vm347_vm0, %v5597_v54, 0.0  ;;  %v510_v63 = vsel %vm347_vm0, %v5600_v55, 0.0  ;;  %v5627_v54 = vld [vmem:[%s5324_s18 + $0x1e8] sm:$0xff] }
  0x73   : > { %9435 = vst [vmem:[#allocation11_spill] sm:$0xff] %v5627_v54  ;;  %v291_v55 = vld [vmem:[%s5324_s18 + $0x248] sm:$0xff] }
  0x76   : > { %496 = vadd.xlane.f32.xlu1 %v495_v14  ;;  %493 = vadd.xlane.f32.xlu0 %v492_v15  ;;  %v5607_v14 = vld [vmem:[%s5324_s18 + $0x1c8] sm:$0xff]  ;;  %v5610_v15 = vld [vmem:[%s5324_s18 + $0x1c0] sm:$0xff] }
  0x77   : > { %9431 = vst [vmem:[#allocation7_spill] sm:$0xff] %v5607_v14  ;;  %9432 = vst [vmem:[#allocation8_spill] sm:$0xff] %v5610_v15 }
  0x7a   : > { %502 = vadd.xlane.f32.xlu1 %v501_v30  ;;  %499 = vadd.xlane.f32.xlu0 %v498_v31  ;;  %v519_v30 = vsel %vm347_vm0, %v5607_v14, 0.0  ;;  %v516_v31 = vsel %vm347_vm0, %v5610_v15, 0.0  ;;  %v5630_v14 = vld [vmem:[%s5324_s18 + $0x1e0] sm:$0xff]  ;;  %v5637_v15 = vld [vmem:[%s5324_s18 + $0x1f8] sm:$0xff] }
  0x7b   : > { %9436 = vst [vmem:[#allocation12_spill] sm:$0xff] %v5630_v14  ;;  %9437 = vst [vmem:[#allocation13_spill] sm:$0xff] %v5637_v15 }
  0x7e   : > { %508 = vadd.xlane.f32.xlu1 %v507_v46  ;;  %505 = vadd.xlane.f32.xlu0 %v504_v47  ;;  %v5617_v46 = vld [vmem:[%s5324_s18 + $0x1d8] sm:$0xff]  ;;  %v5620_v47 = vld [vmem:[%s5324_s18 + $0x1d0] sm:$0xff] }
  0x7f   : > { %9433 = vst [vmem:[#allocation9_spill] sm:$0xff] %v5617_v46  ;;  %9434 = vst [vmem:[#allocation10_spill] sm:$0xff] %v5620_v47 }
  0x82   : > { %514 = vadd.xlane.f32.xlu1 %v513_v62  ;;  %511 = vadd.xlane.f32.xlu0 %v510_v63  ;;  %v525_v62 = vsel %vm347_vm0, %v5617_v46, 0.0  ;;  %v522_v63 = vsel %vm347_vm0, %v5620_v47, 0.0  ;;  %v5640_v46 = vld [vmem:[%s5324_s18 + $0x1f0] sm:$0xff]  ;;  %v283_v47 = vld [vmem:[%s5324_s18 + $0x208] sm:$0xff] }
  0x83   : > { %9438 = vst [vmem:[#allocation14_spill] sm:$0xff] %v5640_v46 }
  0x86   : > { %520 = vadd.xlane.f32.xlu1 %v519_v30  ;;  %517 = vadd.xlane.f32.xlu0 %v516_v31  ;;  %v531_v30 = vsel %vm347_vm0, %v5627_v54, 0.0  ;;  %v528_v31 = vsel %vm347_vm0, %v5630_v14, 0.0  ;;  %v543_v54 = vsel %vm347_vm0, %v283_v47, 0.0  ;;  %v5655_v14 = vld [vmem:[%s5324_s18 + $0x210] sm:$0xff] }
  0x87   : > { %9440 = vst [vmem:[#allocation16_spill] sm:$0xff] %v5655_v14 }
  0x8a   : > { %526 = vadd.xlane.f32.xlu1 %v525_v62  ;;  %523 = vadd.xlane.f32.xlu0 %v522_v63  ;;  %v537_v62 = vsel %vm347_vm0, %v5637_v15, 0.0  ;;  %v534_v63 = vsel %vm347_vm0, %v5640_v46, 0.0  ;;  %v287_v46 = vld [vmem:[%s5324_s18 + $0x228] sm:$0xff] }
  0x8b   : > { %v555_v47 = vsel %vm347_vm0, %v287_v46, 0.0 }
  0x8e   : > { %532 = vadd.xlane.f32.xlu1 %v531_v30  ;;  %529 = vadd.xlane.f32.xlu0 %v528_v31  ;;  %v540_v30 = vsel %vm347_vm0, %v5648_v38, 0.0  ;;  %v285_v31 = vld [vmem:[%s5324_s18 + $0x218] sm:$0xff] }
  0x8f   : > { %v549_v15 = vsel %vm347_vm0, %v285_v31, 0.0 }
  0x92   : > { %538 = vadd.xlane.f32.xlu1 %v537_v62  ;;  %535 = vadd.xlane.f32.xlu0 %v534_v63  ;;  %v546_v62 = vsel %vm347_vm0, %v5655_v14, 0.0  ;;  %v5662_v63 = vld [vmem:[%s5324_s18 + $0x220] sm:$0xff] }
  0x93   : > { %9441 = vst [vmem:[#allocation17_spill] sm:$0xff] %v5662_v63  ;;  %v552_v38 = vsel %vm347_vm0, %v5662_v63, 0.0  ;;  %v567_v63 = vsel %vm347_vm0, %v291_v55, 0.0  ;;  %v295_v55 = vld [vmem:[%s5324_s18 + $0x268] sm:$0xff] }
  0x96   : > { %544 = vadd.xlane.f32.xlu1 %v543_v54  ;;  %541 = vadd.xlane.f32.xlu0 %v540_v30  ;;  %v289_v54 = vld [vmem:[%s5324_s18 + $0x238] sm:$0xff]  ;;  %v5669_v30 = vld [vmem:[%s5324_s18 + $0x230] sm:$0xff] }
  0x97   : > { %9442 = vst [vmem:[#allocation18_spill] sm:$0xff] %v5669_v30  ;;  %v561_v31 = vsel %vm347_vm0, %v289_v54, 0.0  ;;  %v558_v14 = vsel %vm347_vm0, %v5669_v30, 0.0  ;;  %v5687_v54 = vld [vmem:[%s5324_s18 + $0x250] sm:$0xff] }
  0x98   : > { %9446 = vst [vmem:[#allocation22_spill] sm:$0xff] %v5687_v54 }
  0x9a   : > { %550 = vadd.xlane.f32.xlu1 %v549_v15  ;;  %547 = vadd.xlane.f32.xlu0 %v546_v62  ;;  %v5676_v15 = vld [vmem:[%s5324_s18 + $0x240] sm:$0xff] }
  0x9b   : > { %9443 = vst [vmem:[#allocation19_spill] sm:$0xff] %v5676_v15 }
  0x9e   : > { %556 = vadd.xlane.f32.xlu1 %v555_v47  ;;  %553 = vadd.xlane.f32.xlu0 %v552_v38  ;;  %v564_v38 = vsel %vm347_vm0, %v5676_v15, 0.0  ;;  %v293_v47 = vld [vmem:[%s5324_s18 + $0x258] sm:$0xff] }
  0xa2   : > { %562 = vadd.xlane.f32.xlu1 %v561_v31  ;;  %559 = vadd.xlane.f32.xlu0 %v558_v14  ;;  %v573_v14 = vsel %vm347_vm0, %v293_v47, 0.0  ;;  %v296_v47 = vld [vmem:[%s5324_s18 + $0x270] sm:$0xff] }
  0xa3   : > { %v5678_v46 = vpop.xlane.xlu1 %355  ;;  %v5680_v62 = vpop.xlane.xlu0 %349 }
  0xa4   : > { %9444 = vst [vmem:[#allocation20_spill] sm:$0xff] %v5678_v46  ;;  %9445 = vst [vmem:[#allocation21_spill] sm:$0xff] %v5680_v62  ;;  %v570_v62 = vsel %vm347_vm0, %v5687_v54, 0.0  ;;  %v294_v46 = vld [vmem:[%s5324_s18 + $0x260] sm:$0xff] }
  0xa6   : > { %568 = vadd.xlane.f32.xlu1 %v567_v63  ;;  %565 = vadd.xlane.f32.xlu0 %v564_v38  ;;  %v579_v63 = vsel %vm347_vm0, %v295_v55, 0.0  ;;  %v576_v38 = vsel %vm347_vm0, %v294_v46, 0.0 }
  0xa7   : > { %v5689_v30 = vpop.xlane.xlu1 %358  ;;  %v5691_v31 = vpop.xlane.xlu0 %352 }
  0xa8   : > { %9447 = vst [vmem:[#allocation23_spill] sm:$0xff] %v5689_v30  ;;  %9448 = vst [vmem:[#allocation24_spill] sm:$0xff] %v5691_v31  ;;  %v297_v30 = vld [vmem:[%s5324_s18 + $0x278] sm:$0xff] }
  0xaa   : > { %574 = vadd.xlane.f32.xlu1 %v573_v14  ;;  %571 = vadd.xlane.f32.xlu0 %v570_v62  ;;  %v585_v62 = vsel %vm347_vm0, %v297_v30, 0.0  ;;  %v582_v14 = vsel %vm347_vm0, %v296_v47, 0.0 }
  0xab   : > { %v5698_v15 = vpop.xlane.xlu1 %364  ;;  %v5700_v22 = vpop.xlane.xlu0 %361 }
  0xac   : > { %9449 = vst [vmem:[#allocation25_spill] sm:$0xff] %v5698_v15  ;;  %9450 = vst [vmem:[#allocation26_spill] sm:$0xff] %v5700_v22  ;;  %v299_v15 = vld [vmem:[%s5324_s18 + $0x288] sm:$0xff]  ;;  %v298_v22 = vld [vmem:[%s5324_s18 + $0x280] sm:$0xff] }
  0xae   : > { %580 = vadd.xlane.f32.xlu1 %v579_v63  ;;  %577 = vadd.xlane.f32.xlu0 %v576_v38  ;;  %v591_v63 = vsel %vm347_vm0, %v299_v15, 0.0  ;;  %v588_v38 = vsel %vm347_vm0, %v298_v22, 0.0 }
  0xaf   : > { %v5706_v31 = vpop.xlane.xlu1 %370  ;;  %v5708_v54 = vpop.xlane.xlu0 %367 }
  0xb0   : > { %9451 = vst [vmem:[#allocation27_spill] sm:$0xff] %v5706_v31  ;;  %9452 = vst [vmem:[#allocation28_spill] sm:$0xff] %v5708_v54  ;;  %v301_v31 = vld [vmem:[%s5324_s18 + $0x298] sm:$0xff]  ;;  %v300_v54 = vld [vmem:[%s5324_s18 + $0x290] sm:$0xff] }
  0xb2   : > { %586 = vadd.xlane.f32.xlu1 %v585_v62  ;;  %583 = vadd.xlane.f32.xlu0 %v582_v14  ;;  %v597_v62 = vsel %vm347_vm0, %v301_v31, 0.0  ;;  %v594_v14 = vsel %vm347_vm0, %v300_v54, 0.0 }
  0xb3   : > { %v5714_v46 = vpop.xlane.xlu1 %376  ;;  %v5716_v55 = vpop.xlane.xlu0 %373 }
  0xb4   : > { %9453 = vst [vmem:[#allocation29_spill] sm:$0xff] %v5714_v46  ;;  %9454 = vst [vmem:[#allocation30_spill] sm:$0xff] %v5716_v55  ;;  %v303_v46 = vld [vmem:[%s5324_s18 + $0x2a8] sm:$0xff]  ;;  %v302_v55 = vld [vmem:[%s5324_s18 + $0x2a0] sm:$0xff] }
  0xb6   : > { %592 = vadd.xlane.f32.xlu1 %v591_v63  ;;  %589 = vadd.xlane.f32.xlu0 %v588_v38  ;;  %v603_v63 = vsel %vm347_vm0, %v303_v46, 0.0  ;;  %v600_v38 = vsel %vm347_vm0, %v302_v55, 0.0 }
  0xb7   : > { %v5722_v30 = vpop.xlane.xlu1 %382  ;;  %v5724_v47 = vpop.xlane.xlu0 %379 }
  0xb8   : > { %9455 = vst [vmem:[#allocation31_spill] sm:$0xff] %v5722_v30  ;;  %9456 = vst [vmem:[#allocation32_spill] sm:$0xff] %v5724_v47  ;;  %v305_v30 = vld [vmem:[%s5324_s18 + $0x2b8] sm:$0xff]  ;;  %v304_v47 = vld [vmem:[%s5324_s18 + $0x2b0] sm:$0xff] }
  0xba   : > { %598 = vadd.xlane.f32.xlu1 %v597_v62  ;;  %595 = vadd.xlane.f32.xlu0 %v594_v14  ;;  %v609_v62 = vsel %vm347_vm0, %v305_v30, 0.0  ;;  %v606_v14 = vsel %vm347_vm0, %v304_v47, 0.0 }
  0xbb   : > { %v5730_v22 = vpop.xlane.xlu1 %388  ;;  %v5732_v15 = vpop.xlane.xlu0 %385 }
  0xbc   : > { %9457 = vst [vmem:[#allocation33_spill] sm:$0xff] %v5730_v22  ;;  %9458 = vst [vmem:[#allocation34_spill] sm:$0xff] %v5732_v15  ;;  %v307_v22 = vld [vmem:[%s5324_s18 + $0x2c8] sm:$0xff]  ;;  %v306_v15 = vld [vmem:[%s5324_s18 + $0x2c0] sm:$0xff] }
  0xbe   : > { %604 = vadd.xlane.f32.xlu1 %v603_v63  ;;  %601 = vadd.xlane.f32.xlu0 %v600_v38  ;;  %v615_v63 = vsel %vm347_vm0, %v307_v22, 0.0  ;;  %v612_v38 = vsel %vm347_vm0, %v306_v15, 0.0 }
  0xbf   : > { %v5738_v54 = vpop.xlane.xlu1 %394  ;;  %v5740_v31 = vpop.xlane.xlu0 %391 }
  0xc0   : > { %9459 = vst [vmem:[#allocation35_spill] sm:$0xff] %v5738_v54  ;;  %9460 = vst [vmem:[#allocation36_spill] sm:$0xff] %v5740_v31  ;;  %v309_v54 = vld [vmem:[%s5324_s18 + $0x2d8] sm:$0xff]  ;;  %v308_v31 = vld [vmem:[%s5324_s18 + $0x2d0] sm:$0xff] }
  0xc2   : > { %610 = vadd.xlane.f32.xlu1 %v609_v62  ;;  %607 = vadd.xlane.f32.xlu0 %v606_v14  ;;  %v621_v62 = vsel %vm347_vm0, %v309_v54, 0.0  ;;  %v618_v14 = vsel %vm347_vm0, %v308_v31, 0.0 }
  0xc3   : > { %v5746_v46 = vpop.xlane.xlu1 %400  ;;  %v5748_v55 = vpop.xlane.xlu0 %397 }
  0xc4   : > { %9461 = vst [vmem:[#allocation37_spill] sm:$0xff] %v5746_v46  ;;  %9462 = vst [vmem:[#allocation38_spill] sm:$0xff] %v5748_v55  ;;  %v311_v46 = vld [vmem:[%s5324_s18 + $0x2e8] sm:$0xff]  ;;  %v310_v55 = vld [vmem:[%s5324_s18 + $0x2e0] sm:$0xff] }
  0xc6   : > { %616 = vadd.xlane.f32.xlu1 %v615_v63  ;;  %613 = vadd.xlane.f32.xlu0 %v612_v38  ;;  %v627_v63 = vsel %vm347_vm0, %v311_v46, 0.0  ;;  %v624_v38 = vsel %vm347_vm0, %v310_v55, 0.0 }
  0xc7   : > { %v5754_v30 = vpop.xlane.xlu1 %406  ;;  %v5756_v47 = vpop.xlane.xlu0 %403 }
  0xc8   : > { %9463 = vst [vmem:[#allocation39_spill] sm:$0xff] %v5754_v30  ;;  %9464 = vst [vmem:[#allocation40_spill] sm:$0xff] %v5756_v47  ;;  %v313_v30 = vld [vmem:[%s5324_s18 + $0x2f8] sm:$0xff]  ;;  %v312_v47 = vld [vmem:[%s5324_s18 + $0x2f0] sm:$0xff] }
  0xca   : > { %622 = vadd.xlane.f32.xlu1 %v621_v62  ;;  %619 = vadd.xlane.f32.xlu0 %v618_v14  ;;  %v633_v62 = vsel %vm347_vm0, %v313_v30, 0.0  ;;  %v630_v14 = vsel %vm347_vm0, %v312_v47, 0.0 }
  0xcb   : > { %v5762_v22 = vpop.xlane.xlu1 %412  ;;  %v5764_v15 = vpop.xlane.xlu0 %409 }
  0xcc   : > { %9465 = vst [vmem:[#allocation41_spill] sm:$0xff] %v5762_v22  ;;  %9466 = vst [vmem:[#allocation42_spill] sm:$0xff] %v5764_v15  ;;  %v315_v22 = vld [vmem:[%s5324_s18 + $0x308] sm:$0xff]  ;;  %v314_v15 = vld [vmem:[%s5324_s18 + $0x300] sm:$0xff] }
  0xce   : > { %628 = vadd.xlane.f32.xlu1 %v627_v63  ;;  %625 = vadd.xlane.f32.xlu0 %v624_v38  ;;  %v639_v63 = vsel %vm347_vm0, %v315_v22, 0.0  ;;  %v636_v38 = vsel %vm347_vm0, %v314_v15, 0.0 }
  0xcf   : > { %v5770_v54 = vpop.xlane.xlu1 %418  ;;  %v5772_v31 = vpop.xlane.xlu0 %415 }
  0xd0   : > { %9467 = vst [vmem:[#allocation43_spill] sm:$0xff] %v5770_v54  ;;  %9468 = vst [vmem:[#allocation44_spill] sm:$0xff] %v5772_v31  ;;  %v317_v54 = vld [vmem:[%s5324_s18 + $0x318] sm:$0xff]  ;;  %v316_v31 = vld [vmem:[%s5324_s18 + $0x310] sm:$0xff] }
  0xd2   : > { %634 = vadd.xlane.f32.xlu1 %v633_v62  ;;  %631 = vadd.xlane.f32.xlu0 %v630_v14  ;;  %v645_v62 = vsel %vm347_vm0, %v317_v54, 0.0  ;;  %v642_v14 = vsel %vm347_vm0, %v316_v31, 0.0 }
  0xd3   : > { %v5778_v46 = vpop.xlane.xlu1 %424  ;;  %v5780_v55 = vpop.xlane.xlu0 %421 }
  0xd4   : > { %9469 = vst [vmem:[#allocation45_spill] sm:$0xff] %v5778_v46  ;;  %9470 = vst [vmem:[#allocation46_spill] sm:$0xff] %v5780_v55  ;;  %v319_v46 = vld [vmem:[%s5324_s18 + $0x328] sm:$0xff]  ;;  %v318_v55 = vld [vmem:[%s5324_s18 + $0x320] sm:$0xff] }
  0xd6   : > { %640 = vadd.xlane.f32.xlu1 %v639_v63  ;;  %637 = vadd.xlane.f32.xlu0 %v636_v38  ;;  %v651_v63 = vsel %vm347_vm0, %v319_v46, 0.0  ;;  %v648_v38 = vsel %vm347_vm0, %v318_v55, 0.0 }
  0xd7   : > { %v5786_v30 = vpop.xlane.xlu1 %430  ;;  %v5788_v47 = vpop.xlane.xlu0 %427 }
  0xd8   : > { %9471 = vst [vmem:[#allocation47_spill] sm:$0xff] %v5786_v30  ;;  %9472 = vst [vmem:[#allocation48_spill] sm:$0xff] %v5788_v47  ;;  %v321_v30 = vld [vmem:[%s5324_s18 + $0x338] sm:$0xff]  ;;  %v320_v47 = vld [vmem:[%s5324_s18 + $0x330] sm:$0xff] }
  0xda   : > { %646 = vadd.xlane.f32.xlu1 %v645_v62  ;;  %643 = vadd.xlane.f32.xlu0 %v642_v14  ;;  %v657_v62 = vsel %vm347_vm0, %v321_v30, 0.0  ;;  %v654_v14 = vsel %vm347_vm0, %v320_v47, 0.0 }
  0xdb   : > { %v5794_v22 = vpop.xlane.xlu1 %436  ;;  %v5796_v15 = vpop.xlane.xlu0 %433 }
  0xdc   : > { %9473 = vst [vmem:[#allocation49_spill] sm:$0xff] %v5794_v22  ;;  %9474 = vst [vmem:[#allocation50_spill] sm:$0xff] %v5796_v15  ;;  %v323_v22 = vld [vmem:[%s5324_s18 + $0x348] sm:$0xff]  ;;  %v322_v15 = vld [vmem:[%s5324_s18 + $0x340] sm:$0xff] }
  0xde   : > { %652 = vadd.xlane.f32.xlu1 %v651_v63  ;;  %649 = vadd.xlane.f32.xlu0 %v648_v38  ;;  %v663_v63 = vsel %vm347_vm0, %v323_v22, 0.0  ;;  %v660_v38 = vsel %vm347_vm0, %v322_v15, 0.0 }
  0xdf   : > { %v5802_v54 = vpop.xlane.xlu1 %442  ;;  %v5804_v31 = vpop.xlane.xlu0 %439 }
  0xe0   : > { %9475 = vst [vmem:[#allocation51_spill] sm:$0xff] %v5802_v54  ;;  %9476 = vst [vmem:[#allocation52_spill] sm:$0xff] %v5804_v31  ;;  %v325_v54 = vld [vmem:[%s5324_s18 + $0x358] sm:$0xff]  ;;  %v324_v31 = vld [vmem:[%s5324_s18 + $0x350] sm:$0xff] }
  0xe2   : > { %658 = vadd.xlane.f32.xlu1 %v657_v62  ;;  %655 = vadd.xlane.f32.xlu0 %v654_v14  ;;  %v669_v62 = vsel %vm347_vm0, %v325_v54, 0.0  ;;  %v666_v14 = vsel %vm347_vm0, %v324_v31, 0.0 }
  0xe3   : > { %v5810_v46 = vpop.xlane.xlu1 %448  ;;  %v5812_v55 = vpop.xlane.xlu0 %445 }
  0xe4   : > { %9477 = vst [vmem:[#allocation53_spill] sm:$0xff] %v5810_v46  ;;  %9478 = vst [vmem:[#allocation54_spill] sm:$0xff] %v5812_v55  ;;  %v327_v46 = vld [vmem:[%s5324_s18 + $0x368] sm:$0xff]  ;;  %v326_v55 = vld [vmem:[%s5324_s18 + $0x360] sm:$0xff] }
  0xe6   : > { %664 = vadd.xlane.f32.xlu1 %v663_v63  ;;  %661 = vadd.xlane.f32.xlu0 %v660_v38  ;;  %v675_v63 = vsel %vm347_vm0, %v327_v46, 0.0  ;;  %v672_v38 = vsel %vm347_vm0, %v326_v55, 0.0 }
  0xe7   : > { %v5818_v30 = vpop.xlane.xlu1 %454  ;;  %v5820_v47 = vpop.xlane.xlu0 %451 }
  0xe8   : > { %9479 = vst [vmem:[#allocation55_spill] sm:$0xff] %v5818_v30  ;;  %9480 = vst [vmem:[#allocation56_spill] sm:$0xff] %v5820_v47  ;;  %v329_v30 = vld [vmem:[%s5324_s18 + $0x378] sm:$0xff]  ;;  %v328_v47 = vld [vmem:[%s5324_s18 + $0x370] sm:$0xff] }
  0xea   : > { %670 = vadd.xlane.f32.xlu1 %v669_v62  ;;  %667 = vadd.xlane.f32.xlu0 %v666_v14  ;;  %v681_v62 = vsel %vm347_vm0, %v329_v30, 0.0  ;;  %v678_v14 = vsel %vm347_vm0, %v328_v47, 0.0 }
  0xeb   : > { %v5826_v22 = vpop.xlane.xlu1 %460  ;;  %v5828_v15 = vpop.xlane.xlu0 %457 }
  0xec   : > { %9481 = vst [vmem:[#allocation57_spill] sm:$0xff] %v5826_v22  ;;  %9482 = vst [vmem:[#allocation58_spill] sm:$0xff] %v5828_v15  ;;  %v331_v22 = vld [vmem:[%s5324_s18 + $0x388] sm:$0xff]  ;;  %v330_v15 = vld [vmem:[%s5324_s18 + $0x380] sm:$0xff] }
  0xee   : > { %676 = vadd.xlane.f32.xlu1 %v675_v63  ;;  %673 = vadd.xlane.f32.xlu0 %v672_v38  ;;  %v687_v63 = vsel %vm347_vm0, %v331_v22, 0.0  ;;  %v684_v38 = vsel %vm347_vm0, %v330_v15, 0.0 }
  0xef   : > { %v5834_v54 = vpop.xlane.xlu1 %466  ;;  %v5836_v31 = vpop.xlane.xlu0 %463 }
  0xf0   : > { %9483 = vst [vmem:[#allocation59_spill] sm:$0xff] %v5834_v54  ;;  %9484 = vst [vmem:[#allocation60_spill] sm:$0xff] %v5836_v31  ;;  %v333_v54 = vld [vmem:[%s5324_s18 + $0x398] sm:$0xff]  ;;  %v332_v31 = vld [vmem:[%s5324_s18 + $0x390] sm:$0xff] }
  0xf2   : > { %682 = vadd.xlane.f32.xlu1 %v681_v62  ;;  %679 = vadd.xlane.f32.xlu0 %v678_v14  ;;  %v693_v62 = vsel %vm347_vm0, %v333_v54, 0.0  ;;  %v690_v14 = vsel %vm347_vm0, %v332_v31, 0.0 }
  0xf3   : > { %v5842_v46 = vpop.xlane.xlu1 %472  ;;  %v5844_v55 = vpop.xlane.xlu0 %469 }
  0xf4   : > { %9485 = vst [vmem:[#allocation61_spill] sm:$0xff] %v5842_v46  ;;  %9486 = vst [vmem:[#allocation62_spill] sm:$0xff] %v5844_v55  ;;  %v335_v46 = vld [vmem:[%s5324_s18 + $0x3a8] sm:$0xff]  ;;  %v334_v55 = vld [vmem:[%s5324_s18 + $0x3a0] sm:$0xff] }
  0xf6   : > { %688 = vadd.xlane.f32.xlu1 %v687_v63  ;;  %685 = vadd.xlane.f32.xlu0 %v684_v38  ;;  %v699_v63 = vsel %vm347_vm0, %v335_v46, 0.0  ;;  %v696_v38 = vsel %vm347_vm0, %v334_v55, 0.0 }
  0xf7   : > { %v5850_v30 = vpop.xlane.xlu1 %478  ;;  %v5852_v47 = vpop.xlane.xlu0 %475 }
  0xf8   : > { %9487 = vst [vmem:[#allocation63_spill] sm:$0xff] %v5850_v30  ;;  %9488 = vst [vmem:[#allocation64_spill] sm:$0xff] %v5852_v47  ;;  %v337_v30 = vld [vmem:[%s5324_s18 + $0x3b8] sm:$0xff]  ;;  %v336_v47 = vld [vmem:[%s5324_s18 + $0x3b0] sm:$0xff] }
  0xfa   : > { %694 = vadd.xlane.f32.xlu1 %v693_v62  ;;  %691 = vadd.xlane.f32.xlu0 %v690_v14  ;;  %v705_v62 = vsel %vm347_vm0, %v337_v30, 0.0  ;;  %v702_v14 = vsel %vm347_vm0, %v336_v47, 0.0 }
  0xfb   : > { %v5858_v22 = vpop.xlane.xlu1 %484  ;;  %v5860_v15 = vpop.xlane.xlu0 %481 }
  0xfc   : > { %9489 = vst [vmem:[#allocation65_spill] sm:$0xff] %v5858_v22  ;;  %9490 = vst [vmem:[#allocation66_spill] sm:$0xff] %v5860_v15  ;;  %v339_v22 = vld [vmem:[%s5324_s18 + $0x3c8] sm:$0xff]  ;;  %v338_v15 = vld [vmem:[%s5324_s18 + $0x3c0] sm:$0xff] }
  0xfe   : > { %700 = vadd.xlane.f32.xlu1 %v699_v63  ;;  %697 = vadd.xlane.f32.xlu0 %v696_v38  ;;  %v711_v63 = vsel %vm347_vm0, %v339_v22, 0.0  ;;  %v708_v38 = vsel %vm347_vm0, %v338_v15, 0.0  ;;  %v342_v22 = vld [vmem:[%s5324_s18 + $0x3e0] sm:$0xff] }
  0xff   : > { %v5866_v54 = vpop.xlane.xlu1 %490  ;;  %v5868_v31 = vpop.xlane.xlu0 %487 }
 0x100   : > { %9491 = vst [vmem:[#allocation67_spill] sm:$0xff] %v5866_v54  ;;  %9492 = vst [vmem:[#allocation68_spill] sm:$0xff] %v5868_v31  ;;  %v341_v54 = vld [vmem:[%s5324_s18 + $0x3d8] sm:$0xff]  ;;  %v5882_v31 = vld [vmem:[%s5324_s18 + $0x3d0] sm:$0xff] }
 0x101   : > { %9495 = vst [vmem:[#allocation71_spill] sm:$0xff] %v5882_v31 }
 0x102   : > { %706 = vadd.xlane.f32.xlu1 %v705_v62  ;;  %703 = vadd.xlane.f32.xlu0 %v702_v14  ;;  %v717_v62 = vsel %vm347_vm0, %v341_v54, 0.0  ;;  %v714_v14 = vsel %vm347_vm0, %v5882_v31, 0.0 }
 0x103   : > { %v5874_v46 = vpop.xlane.xlu1 %496  ;;  %v5876_v55 = vpop.xlane.xlu0 %493 }
 0x104   : > { %9493 = vst [vmem:[#allocation69_spill] sm:$0xff] %v5874_v46  ;;  %9494 = vst [vmem:[#allocation70_spill] sm:$0xff] %v5876_v55  ;;  %v343_v55 = vld [vmem:[%s5324_s18 + $0x3e8] sm:$0xff] }
 0x106   : > { %712 = vadd.xlane.f32.xlu1 %v711_v63  ;;  %709 = vadd.xlane.f32.xlu0 %v708_v38  ;;  %v723_v63 = vsel %vm347_vm0, %v343_v55, 0.0  ;;  %v720_v38 = vsel %vm347_vm0, %v342_v22, 0.0 }
 0x107   : > { %v5884_v30 = vpop.xlane.xlu1 %502  ;;  %v5886_v47 = vpop.xlane.xlu0 %499 }
 0x108   : > { %9496 = vst [vmem:[#allocation72_spill] sm:$0xff] %v5884_v30  ;;  %9497 = vst [vmem:[#allocation73_spill] sm:$0xff] %v5886_v47  ;;  %v345_v30 = vld [vmem:[%s5324_s18 + $0x3f8] sm:$0xff]  ;;  %v344_v47 = vld [vmem:[%s5324_s18 + $0x3f0] sm:$0xff] }
 0x109   : > { %v729_v39 = vsel %vm347_vm0, %v345_v30, 0.0  ;;  %v865_v30 = vmul.f32 %v5340_v5, %v5340_v5 }
 0x10a   : > { %718 = vadd.xlane.f32.xlu1 %v717_v62  ;;  %715 = vadd.xlane.f32.xlu0 %v714_v14  ;;  %v726_v62 = vsel %vm347_vm0, %v344_v47, 0.0  ;;  %v864_v14 = vmul.f32 %v5330_v1, %v5330_v1 }
 0x10b   : > { %v5893_v15 = vpop.xlane.xlu1 %508  ;;  %v5895_v46 = vpop.xlane.xlu0 %505 }
 0x10c   : > { %9498 = vst [vmem:[#allocation74_spill] sm:$0xff] %v5893_v15  ;;  %9499 = vst [vmem:[#allocation75_spill] sm:$0xff] %v5895_v46  ;;  %v346_v46 = vld [vmem:[%s5324_s18 + $0x400] sm:$0xff] }
 0x10e   : > { %724 = vadd.xlane.f32.xlu1 %v723_v63  ;;  %721 = vadd.xlane.f32.xlu0 %v720_v38  ;;  %v993_v63 = vsel %vm347_vm0, %v864_v14, 0.0  ;;  %v732_v38 = vsel %vm347_vm0, %v346_v46, 0.0  ;;  %v868_v14 = vmul.f32 %v5350_v9, %v5350_v9  ;;  %v867_v46 = vmul.f32 %v5333_v2, %v5333_v2 }
 0x10f   : > { %v5901_v54 = vpop.xlane.xlu1 %514  ;;  %v5903_v31 = vpop.xlane.xlu0 %511 }
 0x110   : > { %9500 = vst [vmem:[#allocation76_spill] sm:$0xff] %v5901_v54  ;;  %9501 = vst [vmem:[#allocation77_spill] sm:$0xff] %v5903_v31  ;;  %v866_v31 = vmul.f32 %v5327_v0, %v5327_v0  ;;  %v5149_v54 = vld [vmem:[%s5324_s18 + $0x3e8] sm:$0xff] }
 0x112   : > { %730 = vadd.xlane.f32.xlu1 %v729_v39  ;;  %727 = vadd.xlane.f32.xlu0 %v726_v62  ;;  %v999_v47 = vsel %vm347_vm0, %v866_v31, 0.0  ;;  %v996_v62 = vsel %vm347_vm0, %v865_v30, 0.0  ;;  %v870_v31 = vmul.f32 %v5360_v13, %v5360_v13  ;;  %v869_v30 = vmul.f32 %v5347_v8, %v5347_v8 }
 0x113   : > { %v5910_v55 = vpop.xlane.xlu1 %520  ;;  %v5912_v22 = vpop.xlane.xlu0 %517 }
 0x114   : > { %9502 = vst [vmem:[#allocation78_spill] sm:$0xff] %v5910_v55  ;;  %9503 = vst [vmem:[#allocation79_spill] sm:$0xff] %v5912_v22  ;;  %v5142_v22 = vld [vmem:[%s5324_s18 + $0x3a8] sm:$0xff] }
 0x116   : > { %994 = vadd.xlane.f32.xlu1 %v993_v63  ;;  %733 = vadd.xlane.f32.xlu0 %v732_v38  ;;  %v1005_v63 = vsel %vm347_vm0, %v868_v14, 0.0  ;;  %v1002_v38 = vsel %vm347_vm0, %v867_v46, 0.0  ;;  %v872_v14 = vmul.f32 %v5370_v17, %v5370_v17  ;;  %v871_v46 = vmul.f32 %v5357_v12, %v5357_v12 }
 0x117   : > { %v5920_v1 = vpop.xlane.xlu1 %526  ;;  %v5922_v39 = vpop.xlane.xlu0 %523 }
 0x118   : > { %9504 = vst [vmem:[#allocation80_spill] sm:$0xff] %v5920_v1  ;;  %9505 = vst [vmem:[#allocation81_spill] sm:$0xff] %v5922_v39  ;;  %v5141_v39 = vld [vmem:[%s5324_s18 + $0x3b0] sm:$0xff] }
 0x11a   : > { %1000 = vadd.xlane.f32.xlu1 %v999_v47  ;;  %997 = vadd.xlane.f32.xlu0 %v996_v62  ;;  %v1011_v47 = vsel %vm347_vm0, %v870_v31, 0.0  ;;  %v1008_v62 = vsel %vm347_vm0, %v869_v30, 0.0  ;;  %v874_v31 = vmul.f32 %v5380_v21, %v5380_v21  ;;  %v873_v30 = vmul.f32 %v5367_v16, %v5367_v16 }
 0x11b   : > { %v5930_v0 = vpop.xlane.xlu1 %532  ;;  %v5932_v5 = vpop.xlane.xlu0 %529 }
 0x11c   : > { %9506 = vst [vmem:[#allocation82_spill] sm:$0xff] %v5930_v0  ;;  %9507 = vst [vmem:[#allocation83_spill] sm:$0xff] %v5932_v5  ;;  %v5138_v5 = vld [vmem:[%s5324_s18 + $0x388] sm:$0xff] }
 0x11e   : > { %1006 = vadd.xlane.f32.xlu1 %v1005_v63  ;;  %1003 = vadd.xlane.f32.xlu0 %v1002_v38  ;;  %v1017_v63 = vsel %vm347_vm0, %v872_v14, 0.0  ;;  %v1014_v38 = vsel %vm347_vm0, %v871_v46, 0.0  ;;  %v876_v14 = vmul.f32 %v5390_v25, %v5390_v25  ;;  %v875_v46 = vmul.f32 %v5377_v20, %v5377_v20 }
 0x11f   : > { %v5940_v9 = vpop.xlane.xlu1 %538  ;;  %v5942_v2 = vpop.xlane.xlu0 %535 }
 0x120   : > { %9508 = vst [vmem:[#allocation84_spill] sm:$0xff] %v5940_v9  ;;  %9509 = vst [vmem:[#allocation85_spill] sm:$0xff] %v5942_v2  ;;  %v5137_v2 = vld [vmem:[%s5324_s18 + $0x390] sm:$0xff] }
 0x122   : > { %1012 = vadd.xlane.f32.xlu1 %v1011_v47  ;;  %1009 = vadd.xlane.f32.xlu0 %v1008_v62  ;;  %v1023_v47 = vsel %vm347_vm0, %v874_v31, 0.0  ;;  %v1020_v62 = vsel %vm347_vm0, %v873_v30, 0.0  ;;  %v878_v31 = vmul.f32 %v5400_v29, %v5400_v29  ;;  %v877_v30 = vmul.f32 %v5387_v24, %v5387_v24 }
 0x123   : > { %v5950_v13 = vpop.xlane.xlu1 %544  ;;  %v5952_v8 = vpop.xlane.xlu0 %541 }
 0x124   : > { %9510 = vst [vmem:[#allocation86_spill] sm:$0xff] %v5950_v13  ;;  %9511 = vst [vmem:[#allocation87_spill] sm:$0xff] %v5952_v8  ;;  %v5134_v8 = vld [vmem:[%s5324_s18 + $0x368] sm:$0xff]  ;;  %v5143_v13 = vld [vmem:[%s5324_s18 + $0x3c0] sm:$0xff] }
 0x125   : > { %v984_v9 = vmul.f32 %v5143_v13, %v5143_v13  ;;  %v9601_v13 = vld [vmem:[#allocation24_spill] sm:$0xff] }
 0x126   : > { %1018 = vadd.xlane.f32.xlu1 %v1017_v63  ;;  %1015 = vadd.xlane.f32.xlu0 %v1014_v38  ;;  %v1029_v63 = vsel %vm347_vm0, %v876_v14, 0.0  ;;  %v1026_v38 = vsel %vm347_vm0, %v875_v46, 0.0  ;;  %v880_v14 = vmul.f32 %v5410_v33, %v5410_v33  ;;  %v879_v46 = vmul.f32 %v5397_v28, %v5397_v28 }
 0x127   : > { %v5960_v17 = vpop.xlane.xlu1 %550  ;;  %v5962_v12 = vpop.xlane.xlu0 %547 }
 0x128   : > { %9512 = vst [vmem:[#allocation88_spill] sm:$0xff] %v5960_v17  ;;  %9513 = vst [vmem:[#allocation89_spill] sm:$0xff] %v5962_v12  ;;  %v5133_v12 = vld [vmem:[%s5324_s18 + $0x370] sm:$0xff]  ;;  %v5140_v17 = vld [vmem:[%s5324_s18 + $0x398] sm:$0xff] }
 0x12a   : > { %1024 = vadd.xlane.f32.xlu1 %v1023_v47  ;;  %1021 = vadd.xlane.f32.xlu0 %v1020_v62  ;;  %v1035_v47 = vsel %vm347_vm0, %v878_v31, 0.0  ;;  %v1032_v62 = vsel %vm347_vm0, %v877_v30, 0.0  ;;  %v882_v31 = vmul.f32 %v5420_v37, %v5420_v37  ;;  %v881_v30 = vmul.f32 %v5407_v32, %v5407_v32 }
 0x12b   : > { %v5970_v21 = vpop.xlane.xlu1 %556  ;;  %v5972_v16 = vpop.xlane.xlu0 %553 }
 0x12c   : > { %9514 = vst [vmem:[#allocation90_spill] sm:$0xff] %v5970_v21  ;;  %9515 = vst [vmem:[#allocation91_spill] sm:$0xff] %v5972_v16  ;;  %v5130_v16 = vld [vmem:[%s5324_s18 + $0x348] sm:$0xff]  ;;  %v5139_v21 = vld [vmem:[%s5324_s18 + $0x3a0] sm:$0xff] }
 0x12e   : > { %1030 = vadd.xlane.f32.xlu1 %v1029_v63  ;;  %1027 = vadd.xlane.f32.xlu0 %v1026_v38  ;;  %v1041_v63 = vsel %vm347_vm0, %v880_v14, 0.0  ;;  %v1038_v38 = vsel %vm347_vm0, %v879_v46, 0.0  ;;  %v884_v14 = vmul.f32 %v5430_v41, %v5430_v41  ;;  %v883_v46 = vmul.f32 %v5417_v36, %v5417_v36 }
 0x12f   : > { %v5980_v25 = vpop.xlane.xlu1 %562  ;;  %v5982_v20 = vpop.xlane.xlu0 %559 }
 0x130   : > { %9516 = vst [vmem:[#allocation92_spill] sm:$0xff] %v5980_v25  ;;  %9517 = vst [vmem:[#allocation93_spill] sm:$0xff] %v5982_v20  ;;  %v5129_v20 = vld [vmem:[%s5324_s18 + $0x350] sm:$0xff]  ;;  %v5136_v25 = vld [vmem:[%s5324_s18 + $0x378] sm:$0xff] }
 0x132   : > { %1036 = vadd.xlane.f32.xlu1 %v1035_v47  ;;  %1033 = vadd.xlane.f32.xlu0 %v1032_v62  ;;  %v1047_v47 = vsel %vm347_vm0, %v882_v31, 0.0  ;;  %v1044_v62 = vsel %vm347_vm0, %v881_v30, 0.0  ;;  %v886_v31 = vmul.f32 %v5440_v45, %v5440_v45  ;;  %v885_v30 = vmul.f32 %v5427_v40, %v5427_v40 }
 0x133   : > { %v5990_v29 = vpop.xlane.xlu1 %568  ;;  %v5992_v24 = vpop.xlane.xlu0 %565 }
 0x134   : > { %9518 = vst [vmem:[#allocation94_spill] sm:$0xff] %v5990_v29  ;;  %9519 = vst [vmem:[#allocation95_spill] sm:$0xff] %v5992_v24  ;;  %v5126_v24 = vld [vmem:[%s5324_s18 + $0x328] sm:$0xff]  ;;  %v5135_v29 = vld [vmem:[%s5324_s18 + $0x380] sm:$0xff] }
 0x136   : > { %1042 = vadd.xlane.f32.xlu1 %v1041_v63  ;;  %1039 = vadd.xlane.f32.xlu0 %v1038_v38  ;;  %v1053_v63 = vsel %vm347_vm0, %v884_v14, 0.0  ;;  %v1050_v38 = vsel %vm347_vm0, %v883_v46, 0.0  ;;  %v888_v14 = vmul.f32 %v5450_v49, %v5450_v49  ;;  %v887_v46 = vmul.f32 %v5437_v44, %v5437_v44 }
 0x137   : > { %v6000_v33 = vpop.xlane.xlu1 %574  ;;  %v6002_v28 = vpop.xlane.xlu0 %571 }
 0x138   : > { %9520 = vst [vmem:[#allocation96_spill] sm:$0xff] %v6000_v33  ;;  %9521 = vst [vmem:[#allocation97_spill] sm:$0xff] %v6002_v28  ;;  %v5125_v28 = vld [vmem:[%s5324_s18 + $0x330] sm:$0xff]  ;;  %v5132_v33 = vld [vmem:[%s5324_s18 + $0x358] sm:$0xff] }
 0x13a   : > { %1048 = vadd.xlane.f32.xlu1 %v1047_v47  ;;  %1045 = vadd.xlane.f32.xlu0 %v1044_v62  ;;  %v1059_v47 = vsel %vm347_vm0, %v886_v31, 0.0  ;;  %v1056_v62 = vsel %vm347_vm0, %v885_v30, 0.0  ;;  %v890_v31 = vmul.f32 %v5460_v53, %v5460_v53  ;;  %v889_v30 = vmul.f32 %v5447_v48, %v5447_v48 }
 0x13b   : > { %v6010_v37 = vpop.xlane.xlu1 %580  ;;  %v6012_v32 = vpop.xlane.xlu0 %577 }
 0x13c   : > { %9522 = vst [vmem:[#allocation98_spill] sm:$0xff] %v6010_v37  ;;  %9523 = vst [vmem:[#allocation99_spill] sm:$0xff] %v6012_v32  ;;  %v5122_v32 = vld [vmem:[%s5324_s18 + $0x308] sm:$0xff]  ;;  %v5131_v37 = vld [vmem:[%s5324_s18 + $0x360] sm:$0xff] }
 0x13e   : > { %1054 = vadd.xlane.f32.xlu1 %v1053_v63  ;;  %1051 = vadd.xlane.f32.xlu0 %v1050_v38  ;;  %v1065_v63 = vsel %vm347_vm0, %v888_v14, 0.0  ;;  %v1062_v38 = vsel %vm347_vm0, %v887_v46, 0.0  ;;  %v892_v14 = vmul.f32 %v5470_v57, %v5470_v57  ;;  %v891_v46 = vmul.f32 %v5457_v52, %v5457_v52 }
 0x13f   : > { %v6020_v41 = vpop.xlane.xlu1 %586  ;;  %v6022_v36 = vpop.xlane.xlu0 %583 }
 0x140   : > { %9524 = vst [vmem:[#allocation100_spill] sm:$0xff] %v6020_v41  ;;  %9525 = vst [vmem:[#allocation101_spill] sm:$0xff] %v6022_v36  ;;  %v5121_v36 = vld [vmem:[%s5324_s18 + $0x310] sm:$0xff]  ;;  %v5128_v41 = vld [vmem:[%s5324_s18 + $0x338] sm:$0xff] }
 0x142   : > { %1060 = vadd.xlane.f32.xlu1 %v1059_v47  ;;  %1057 = vadd.xlane.f32.xlu0 %v1056_v62  ;;  %v1071_v47 = vsel %vm347_vm0, %v890_v31, 0.0  ;;  %v1068_v62 = vsel %vm347_vm0, %v889_v30, 0.0  ;;  %v894_v31 = vmul.f32 %v5480_v61, %v5480_v61  ;;  %v893_v30 = vmul.f32 %v5467_v56, %v5467_v56 }
 0x143   : > { %v6030_v45 = vpop.xlane.xlu1 %592  ;;  %v6032_v40 = vpop.xlane.xlu0 %589 }
 0x144   : > { %9526 = vst [vmem:[#allocation102_spill] sm:$0xff] %v6030_v45  ;;  %9527 = vst [vmem:[#allocation103_spill] sm:$0xff] %v6032_v40  ;;  %v5118_v40 = vld [vmem:[%s5324_s18 + $0x2e8] sm:$0xff]  ;;  %v5127_v45 = vld [vmem:[%s5324_s18 + $0x340] sm:$0xff] }
 0x146   : > { %1066 = vadd.xlane.f32.xlu1 %v1065_v63  ;;  %1063 = vadd.xlane.f32.xlu0 %v1062_v38  ;;  %v1077_v63 = vsel %vm347_vm0, %v892_v14, 0.0  ;;  %v1074_v38 = vsel %vm347_vm0, %v891_v46, 0.0  ;;  %v896_v14 = vmul.f32 %v5490_v4, %v5490_v4  ;;  %v895_v46 = vmul.f32 %v5477_v60, %v5477_v60 }
 0x147   : > { %v6040_v49 = vpop.xlane.xlu1 %598  ;;  %v6042_v44 = vpop.xlane.xlu0 %595 }
 0x148   : > { %9528 = vst [vmem:[#allocation104_spill] sm:$0xff] %v6040_v49  ;;  %9529 = vst [vmem:[#allocation105_spill] sm:$0xff] %v6042_v44  ;;  %v5117_v44 = vld [vmem:[%s5324_s18 + $0x2f0] sm:$0xff]  ;;  %v5124_v49 = vld [vmem:[%s5324_s18 + $0x318] sm:$0xff] }
 0x14a   : > { %1072 = vadd.xlane.f32.xlu1 %v1071_v47  ;;  %1069 = vadd.xlane.f32.xlu0 %v1068_v62  ;;  %v1083_v47 = vsel %vm347_vm0, %v894_v31, 0.0  ;;  %v1080_v62 = vsel %vm347_vm0, %v893_v30, 0.0  ;;  %v898_v31 = vmul.f32 %v5500_v11, %v5500_v11  ;;  %v897_v30 = vmul.f32 %v5487_v3, %v5487_v3 }
 0x14b   : > { %v6050_v53 = vpop.xlane.xlu1 %604  ;;  %v6052_v48 = vpop.xlane.xlu0 %601 }
 0x14c   : > { %9530 = vst [vmem:[#allocation106_spill] sm:$0xff] %v6050_v53  ;;  %9531 = vst [vmem:[#allocation107_spill] sm:$0xff] %v6052_v48  ;;  %v5114_v48 = vld [vmem:[%s5324_s18 + $0x2c8] sm:$0xff]  ;;  %v5123_v53 = vld [vmem:[%s5324_s18 + $0x320] sm:$0xff] }
 0x14e   : > { %1078 = vadd.xlane.f32.xlu1 %v1077_v63  ;;  %1075 = vadd.xlane.f32.xlu0 %v1074_v38  ;;  %v1089_v63 = vsel %vm347_vm0, %v896_v14, 0.0  ;;  %v1086_v38 = vsel %vm347_vm0, %v895_v46, 0.0  ;;  %v900_v14 = vmul.f32 %v5510_v19, %v5510_v19  ;;  %v899_v46 = vmul.f32 %v5497_v10, %v5497_v10 }
 0x14f   : > { %v6060_v57 = vpop.xlane.xlu1 %610  ;;  %v6062_v52 = vpop.xlane.xlu0 %607 }
 0x150   : > { %9532 = vst [vmem:[#allocation108_spill] sm:$0xff] %v6060_v57  ;;  %9533 = vst [vmem:[#allocation109_spill] sm:$0xff] %v6062_v52  ;;  %v5113_v52 = vld [vmem:[%s5324_s18 + $0x2d0] sm:$0xff]  ;;  %v5120_v57 = vld [vmem:[%s5324_s18 + $0x2f8] sm:$0xff] }
 0x152   : > { %1084 = vadd.xlane.f32.xlu1 %v1083_v47  ;;  %1081 = vadd.xlane.f32.xlu0 %v1080_v62  ;;  %v1095_v47 = vsel %vm347_vm0, %v898_v31, 0.0  ;;  %v1092_v62 = vsel %vm347_vm0, %v897_v30, 0.0  ;;  %v902_v31 = vmul.f32 %v5520_v27, %v5520_v27  ;;  %v901_v30 = vmul.f32 %v5507_v18, %v5507_v18 }
 0x153   : > { %v6070_v61 = vpop.xlane.xlu1 %616  ;;  %v6072_v56 = vpop.xlane.xlu0 %613 }
 0x154   : > { %9534 = vst [vmem:[#allocation110_spill] sm:$0xff] %v6070_v61  ;;  %9535 = vst [vmem:[#allocation111_spill] sm:$0xff] %v6072_v56  ;;  %v5110_v56 = vld [vmem:[%s5324_s18 + $0x2a8] sm:$0xff]  ;;  %v5119_v61 = vld [vmem:[%s5324_s18 + $0x300] sm:$0xff] }
 0x156   : > { %1090 = vadd.xlane.f32.xlu1 %v1089_v63  ;;  %1087 = vadd.xlane.f32.xlu0 %v1086_v38  ;;  %v1101_v63 = vsel %vm347_vm0, %v900_v14, 0.0  ;;  %v1098_v38 = vsel %vm347_vm0, %v899_v46, 0.0  ;;  %v904_v14 = vmul.f32 %v5530_v35, %v5530_v35  ;;  %v903_v46 = vmul.f32 %v5517_v26, %v5517_v26 }
 0x157   : > { %v6080_v4 = vpop.xlane.xlu1 %622  ;;  %v6082_v60 = vpop.xlane.xlu0 %619 }
 0x158   : > { %9536 = vst [vmem:[#allocation112_spill] sm:$0xff] %v6080_v4  ;;  %9537 = vst [vmem:[#allocation113_spill] sm:$0xff] %v6082_v60  ;;  %v5109_v60 = vld [vmem:[%s5324_s18 + $0x2b0] sm:$0xff]  ;;  %v5116_v4 = vld [vmem:[%s5324_s18 + $0x2d8] sm:$0xff] }
 0x15a   : > { %1096 = vadd.xlane.f32.xlu1 %v1095_v47  ;;  %1093 = vadd.xlane.f32.xlu0 %v1092_v62  ;;  %v1107_v47 = vsel %vm347_vm0, %v902_v31, 0.0  ;;  %v1104_v62 = vsel %vm347_vm0, %v901_v30, 0.0  ;;  %v906_v31 = vmul.f32 %v5540_v43, %v5540_v43  ;;  %v905_v30 = vmul.f32 %v5527_v34, %v5527_v34 }
 0x15b   : > { %v6090_v11 = vpop.xlane.xlu1 %628  ;;  %v6092_v3 = vpop.xlane.xlu0 %625 }
 0x15c   : > { %9538 = vst [vmem:[#allocation114_spill] sm:$0xff] %v6090_v11  ;;  %9539 = vst [vmem:[#allocation115_spill] sm:$0xff] %v6092_v3  ;;  %v5106_v3 = vld [vmem:[%s5324_s18 + $0x288] sm:$0xff]  ;;  %v5115_v11 = vld [vmem:[%s5324_s18 + $0x2e0] sm:$0xff] }
 0x15e   : > { %1102 = vadd.xlane.f32.xlu1 %v1101_v63  ;;  %1099 = vadd.xlane.f32.xlu0 %v1098_v38  ;;  %v1113_v63 = vsel %vm347_vm0, %v904_v14, 0.0  ;;  %v1110_v38 = vsel %vm347_vm0, %v903_v46, 0.0  ;;  %v908_v14 = vmul.f32 %v5550_v51, %v5550_v51  ;;  %v907_v46 = vmul.f32 %v5537_v42, %v5537_v42 }
 0x15f   : > { %v6100_v19 = vpop.xlane.xlu1 %634  ;;  %v6102_v10 = vpop.xlane.xlu0 %631 }
 0x160   : > { %9540 = vst [vmem:[#allocation116_spill] sm:$0xff] %v6100_v19  ;;  %9541 = vst [vmem:[#allocation117_spill] sm:$0xff] %v6102_v10  ;;  %v5105_v10 = vld [vmem:[%s5324_s18 + $0x290] sm:$0xff]  ;;  %v5112_v19 = vld [vmem:[%s5324_s18 + $0x2b8] sm:$0xff] }
 0x162   : > { %1108 = vadd.xlane.f32.xlu1 %v1107_v47  ;;  %1105 = vadd.xlane.f32.xlu0 %v1104_v62  ;;  %v1119_v47 = vsel %vm347_vm0, %v906_v31, 0.0  ;;  %v1116_v62 = vsel %vm347_vm0, %v905_v30, 0.0  ;;  %v910_v31 = vmul.f32 %v5560_v59, %v5560_v59  ;;  %v909_v30 = vmul.f32 %v5547_v50, %v5547_v50 }
 0x163   : > { %v6110_v27 = vpop.xlane.xlu1 %640  ;;  %v6112_v18 = vpop.xlane.xlu0 %637 }
 0x164   : > { %9542 = vst [vmem:[#allocation118_spill] sm:$0xff] %v6110_v27  ;;  %9543 = vst [vmem:[#allocation119_spill] sm:$0xff] %v6112_v18  ;;  %v5111_v27 = vld [vmem:[%s5324_s18 + $0x2c0] sm:$0xff] }
 0x166   : > { %1114 = vadd.xlane.f32.xlu1 %v1113_v63  ;;  %1111 = vadd.xlane.f32.xlu0 %v1110_v38  ;;  %v1125_v63 = vsel %vm347_vm0, %v908_v14, 0.0  ;;  %v1122_v38 = vsel %vm347_vm0, %v907_v46, 0.0  ;;  %v912_v14 = vmul.f32 %v5570_v7, %v5570_v7  ;;  %v911_v46 = vmul.f32 %v5557_v58, %v5557_v58 }
 0x167   : > { %v6120_v35 = vpop.xlane.xlu1 %646  ;;  %v6122_v26 = vpop.xlane.xlu0 %643 }
 0x168   : > { %9544 = vst [vmem:[#allocation120_spill] sm:$0xff] %v6120_v35  ;;  %9545 = vst [vmem:[#allocation121_spill] sm:$0xff] %v6122_v26  ;;  %v5289_v26 = vmov 0   ;;  %v5108_v35 = vld [vmem:[%s5324_s18 + $0x298] sm:$0xff] }
 0x169   : > { %4835 = vset.pattern.permute.xlu1 %v5289_v26  ;;  %4834 = vset.pattern.permute.xlu0 %v5289_v26 }
 0x16a   : > { %1120 = vadd.xlane.f32.xlu1 %v1119_v47  ;;  %1117 = vadd.xlane.f32.xlu0 %v1116_v62  ;;  %v1131_v47 = vsel %vm347_vm0, %v910_v31, 0.0  ;;  %v1128_v62 = vsel %vm347_vm0, %v909_v30, 0.0  ;;  %v914_v31 = vmul.f32 %v5580_v23, %v5580_v23  ;;  %v913_v30 = vmul.f32 %v5567_v6, %v5567_v6 }
 0x16b   : > { %v6130_v43 = vpop.xlane.xlu1 %652  ;;  %v6132_v34 = vpop.xlane.xlu0 %649 }
 0x16c   : > { %9546 = vst [vmem:[#allocation122_spill] sm:$0xff] %v6130_v43  ;;  %9547 = vst [vmem:[#allocation123_spill] sm:$0xff] %v6132_v34  ;;  %v5107_v43 = vld [vmem:[%s5324_s18 + $0x2a0] sm:$0xff] }
 0x16e   : > { %1126 = vadd.xlane.f32.xlu1 %v1125_v63  ;;  %1123 = vadd.xlane.f32.xlu0 %v1122_v38  ;;  %v1137_v63 = vsel %vm347_vm0, %v912_v14, 0.0  ;;  %v1134_v38 = vsel %vm347_vm0, %v911_v46, 0.0  ;;  %v9555_v46 = vld [vmem:[#allocation2_spill] sm:$0xff] }
 0x16f   : > { %v6140_v51 = vpop.xlane.xlu1 %658  ;;  %v6142_v42 = vpop.xlane.xlu0 %655 }
 0x170   : > { %9548 = vst [vmem:[#allocation124_spill] sm:$0xff] %v6140_v51  ;;  %9549 = vst [vmem:[#allocation125_spill] sm:$0xff] %v6142_v42  ;;  %v915_v42 = vmul.f32 %v9555_v46, %v9555_v46  ;;  %v5104_v51 = vld [vmem:[%s5324_s18 + $0x278] sm:$0xff] }
 0x172   : > { %1132 = vadd.xlane.f32.xlu1 %v1131_v47  ;;  %1129 = vadd.xlane.f32.xlu0 %v1128_v62  ;;  %v1143_v47 = vsel %vm347_vm0, %v914_v31, 0.0  ;;  %v1140_v62 = vsel %vm347_vm0, %v913_v30, 0.0  ;;  %v9559_v30 = vld [vmem:[#allocation3_spill] sm:$0xff] }
 0x173   : > { %v6150_v59 = vpop.xlane.xlu1 %664  ;;  %v6152_v50 = vpop.xlane.xlu0 %661  ;;  %v917_v34 = vmul.f32 %v9559_v30, %v9559_v30 }
 0x174   : > { %9550 = vst [vmem:[#allocation126_spill] sm:$0xff] %v6150_v59  ;;  %9551 = vst [vmem:[#allocation127_spill] sm:$0xff] %v6152_v50  ;;  %v9554_v50 = vld [vmem:[#allocation4_spill] sm:$0xff]  ;;  %v5103_v59 = vld [vmem:[%s5324_s18 + $0x280] sm:$0xff] }
 0x175   : > { %v916_v14 = vmul.f32 %v9554_v50, %v9554_v50  ;;  %v1152_v46 = vsel %vm347_vm0, %v917_v34, 0.0  ;;  %v9567_v34 = vld [vmem:[#allocation7_spill] sm:$0xff] }
 0x176   : > { %1138 = vadd.xlane.f32.xlu1 %v1137_v63  ;;  %1135 = vadd.xlane.f32.xlu0 %v1134_v38  ;;  %v1146_v38 = vsel %vm347_vm0, %v915_v42, 0.0  ;;  %v9563_v42 = vld [vmem:[#allocation5_spill] sm:$0xff] }
 0x177   : > { %v6160_v7 = vpop.xlane.xlu1 %670  ;;  %v6162_v58 = vpop.xlane.xlu0 %667  ;;  %v1149_v63 = vsel %vm347_vm0, %v916_v14, 0.0 }
 0x178   : > { %9552 = vst [vmem:[#allocation128_spill] sm:$0xff] %v6160_v7  ;;  %9553 = vst [vmem:[#allocation129_spill] sm:$0xff] %v6162_v58  ;;  %v9558_v58 = vld [vmem:[#allocation6_spill] sm:$0xff] }
 0x179   : > { %v918_v31 = vmul.f32 %v9558_v58, %v9558_v58 }
 0x17a   : > { %1144 = vadd.xlane.f32.xlu1 %v1143_v47  ;;  %1141 = vadd.xlane.f32.xlu0 %v1140_v62 }
 0x17b   : > { %v6170_v23 = vpop.xlane.xlu1 %676  ;;  %v6172_v6 = vpop.xlane.xlu0 %673  ;;  %v1155_v62 = vsel %vm347_vm0, %v918_v31, 0.0 }
 0x17c   : > { %9556 = vst [vmem:[#allocation4_spill] sm:$0xff] %v6170_v23  ;;  %9557 = vst [vmem:[#allocation2_spill] sm:$0xff] %v6172_v6  ;;  %v9562_v6 = vld [vmem:[#allocation8_spill] sm:$0xff]  ;;  %v919_v23 = vmul.f32 %v9563_v42, %v9563_v42 }
 0x17d   : > { %v920_v14 = vmul.f32 %v9562_v6, %v9562_v6 }
 0x17e   : > { %1150 = vadd.xlane.f32.xlu1 %v1149_v63  ;;  %1147 = vadd.xlane.f32.xlu0 %v1146_v38  ;;  %v1158_v30 = vsel %vm347_vm0, %v919_v23, 0.0  ;;  %v9571_v23 = vld [vmem:[#allocation9_spill] sm:$0xff] }
 0x17f   : > { %v6180_v50 = vpop.xlane.xlu1 %682  ;;  %v6182_v47 = vpop.xlane.xlu0 %679  ;;  %v1161_v38 = vsel %vm347_vm0, %v920_v14, 0.0 }
 0x180   : > { %9560 = vst [vmem:[#allocation6_spill] sm:$0xff] %v6180_v50  ;;  %9561 = vst [vmem:[#allocation3_spill] sm:$0xff] %v6182_v47  ;;  %v9566_v47 = vld [vmem:[#allocation10_spill] sm:$0xff]  ;;  %v921_v50 = vmul.f32 %v9567_v34, %v9567_v34 }
 0x181   : > { %v922_v31 = vmul.f32 %v9566_v47, %v9566_v47 }
 0x182   : > { %1156 = vadd.xlane.f32.xlu1 %v1155_v62  ;;  %1153 = vadd.xlane.f32.xlu0 %v1152_v46  ;;  %v1164_v42 = vsel %vm347_vm0, %v921_v50, 0.0  ;;  %v9575_v50 = vld [vmem:[#allocation11_spill] sm:$0xff] }
 0x183   : > { %v6190_v58 = vpop.xlane.xlu1 %688  ;;  %v6192_v63 = vpop.xlane.xlu0 %685  ;;  %v1167_v46 = vsel %vm347_vm0, %v922_v31, 0.0 }
 0x184   : > { %9564 = vst [vmem:[#allocation8_spill] sm:$0xff] %v6190_v58  ;;  %9565 = vst [vmem:[#allocation5_spill] sm:$0xff] %v6192_v63  ;;  %v9570_v63 = vld [vmem:[#allocation12_spill] sm:$0xff]  ;;  %v923_v58 = vmul.f32 %v9571_v23, %v9571_v23 }
 0x185   : > { %v924_v14 = vmul.f32 %v9570_v63, %v9570_v63 }
 0x186   : > { %1162 = vadd.xlane.f32.xlu1 %v1161_v38  ;;  %1159 = vadd.xlane.f32.xlu0 %v1158_v30  ;;  %v1170_v34 = vsel %vm347_vm0, %v923_v58, 0.0 }
 0x187   : > { %v6200_v6 = vpop.xlane.xlu1 %694  ;;  %v6202_v62 = vpop.xlane.xlu0 %691  ;;  %v1173_v30 = vsel %vm347_vm0, %v924_v14, 0.0  ;;  %v9578_v14 = vld [vmem:[#allocation15_spill] sm:$0xff] }
 0x188   : > { %9568 = vst [vmem:[#allocation10_spill] sm:$0xff] %v6200_v6  ;;  %9569 = vst [vmem:[#allocation7_spill] sm:$0xff] %v6202_v62  ;;  %v9574_v62 = vld [vmem:[#allocation14_spill] sm:$0xff]  ;;  %v925_v6 = vmul.f32 %v9575_v50, %v9575_v50  ;;  %v928_v58 = vmul.f32 %v9578_v14, %v9578_v14 }
 0x189   : > { %v926_v31 = vmul.f32 %v9574_v62, %v9574_v62 }
 0x18a   : > { %1168 = vadd.xlane.f32.xlu1 %v1167_v46  ;;  %1165 = vadd.xlane.f32.xlu0 %v1164_v42  ;;  %v1176_v23 = vsel %vm347_vm0, %v925_v6, 0.0 }
 0x18b   : > { %v6210_v47 = vpop.xlane.xlu1 %700  ;;  %v6212_v38 = vpop.xlane.xlu0 %697  ;;  %v1179_v42 = vsel %vm347_vm0, %v926_v31, 0.0  ;;  %v9582_v31 = vld [vmem:[#allocation16_spill] sm:$0xff] }
 0x18c   : > { %9572 = vst [vmem:[#allocation12_spill] sm:$0xff] %v6210_v47  ;;  %9573 = vst [vmem:[#allocation9_spill] sm:$0xff] %v6212_v38  ;;  %v9579_v38 = vld [vmem:[#allocation13_spill] sm:$0xff]  ;;  %v930_v6 = vmul.f32 %v9582_v31, %v9582_v31 }
 0x18d   : > { %v927_v62 = vmul.f32 %v9579_v38, %v9579_v38 }
 0x18e   : > { %1174 = vadd.xlane.f32.xlu1 %v1173_v30  ;;  %1171 = vadd.xlane.f32.xlu0 %v1170_v34  ;;  %v1185_v34 = vsel %vm347_vm0, %v928_v58, 0.0 }
 0x18f   : > { %v6220_v63 = vpop.xlane.xlu1 %706  ;;  %v6222_v46 = vpop.xlane.xlu0 %703 }
 0x190   : > { %9576 = vst [vmem:[#allocation14_spill] sm:$0xff] %v6220_v63  ;;  %9577 = vst [vmem:[#allocation11_spill] sm:$0xff] %v6222_v46  ;;  %v1182_v46 = vsel %vm347_vm0, %v927_v62, 0.0  ;;  %v5094_v63 = vld [vmem:[%s5324_s18 + $0x208] sm:$0xff]  ;;  %v5095_v62 = vld [vmem:[%s5324_s18 + $0x218] sm:$0xff] }
 0x191   : > { %v929_v47 = vmul.f32 %v5094_v63, %v5094_v63 }
 0x192   : > { %1180 = vadd.xlane.f32.xlu1 %v1179_v42  ;;  %1177 = vadd.xlane.f32.xlu0 %v1176_v23  ;;  %v1191_v23 = vsel %vm347_vm0, %v930_v6, 0.0 }
 0x193   : > { %v6230_v50 = vpop.xlane.xlu1 %712  ;;  %v6232_v30 = vpop.xlane.xlu0 %709  ;;  %v1188_v14 = vsel %vm347_vm0, %v929_v47, 0.0  ;;  %v5096_v47 = vld [vmem:[%s5324_s18 + $0x228] sm:$0xff] }
 0x194   : > { %9580 = vst [vmem:[#allocation15_spill] sm:$0xff] %v6230_v50  ;;  %9581 = vst [vmem:[#allocation13_spill] sm:$0xff] %v6232_v30  ;;  %v9585_v30 = vld [vmem:[#allocation17_spill] sm:$0xff]  ;;  %v931_v50 = vmul.f32 %v5095_v62, %v5095_v62 }
 0x195   : > { %v932_v58 = vmul.f32 %v9585_v30, %v9585_v30 }
 0x196   : > { %1186 = vadd.xlane.f32.xlu1 %v1185_v34  ;;  %1183 = vadd.xlane.f32.xlu0 %v1182_v46  ;;  %v1194_v31 = vsel %vm347_vm0, %v931_v50, 0.0  ;;  %v5097_v50 = vld [vmem:[%s5324_s18 + $0x238] sm:$0xff] }
 0x197   : > { %v6239_v38 = vpop.xlane.xlu1 %718  ;;  %v6241_v42 = vpop.xlane.xlu0 %715  ;;  %v1197_v46 = vsel %vm347_vm0, %v932_v58, 0.0 }
 0x198   : > { %9583 = vst [vmem:[#allocation16_spill] sm:$0xff] %v6239_v38  ;;  %9584 = vst [vmem:[#allocation130_spill] sm:$0xff] %v6241_v42  ;;  %v9588_v42 = vld [vmem:[#allocation18_spill] sm:$0xff]  ;;  %v933_v38 = vmul.f32 %v5096_v47, %v5096_v47 }
 0x199   : > { %v934_v6 = vmul.f32 %v9588_v42, %v9588_v42 }
 0x19a   : > { %1192 = vadd.xlane.f32.xlu1 %v1191_v23  ;;  %1189 = vadd.xlane.f32.xlu0 %v1188_v14  ;;  %v1200_v62 = vsel %vm347_vm0, %v933_v38, 0.0 }
 0x19b   : > { %v6248_v63 = vpop.xlane.xlu1 %724  ;;  %v6250_v34 = vpop.xlane.xlu0 %721  ;;  %v1203_v14 = vsel %vm347_vm0, %v934_v6, 0.0  ;;  %v9593_v6 = vld [vmem:[#allocation22_spill] sm:$0xff] }
 0x19c   : > { %9586 = vst [vmem:[#allocation17_spill] sm:$0xff] %v6248_v63  ;;  %9587 = vst [vmem:[#allocation131_spill] sm:$0xff] %v6250_v34  ;;  %v9591_v34 = vld [vmem:[#allocation19_spill] sm:$0xff]  ;;  %v935_v63 = vmul.f32 %v5097_v50, %v5097_v50  ;;  %v938_v38 = vmul.f32 %v9593_v6, %v9593_v6  ;;  %v5101_v6 = vld [vmem:[%s5324_s18 + $0x270] sm:$0xff] }
 0x19d   : > { %v936_v58 = vmul.f32 %v9591_v34, %v9591_v34 }
 0x19e   : > { %1198 = vadd.xlane.f32.xlu1 %v1197_v46  ;;  %1195 = vadd.xlane.f32.xlu0 %v1194_v31  ;;  %v1206_v47 = vsel %vm347_vm0, %v935_v63, 0.0  ;;  %v5100_v63 = vld [vmem:[%s5324_s18 + $0x258] sm:$0xff] }
 0x19f   : > { %v6257_v30 = vpop.xlane.xlu1 %730  ;;  %v6259_v23 = vpop.xlane.xlu0 %727  ;;  %v1209_v31 = vsel %vm347_vm0, %v936_v58, 0.0  ;;  %v5099_v58 = vld [vmem:[%s5324_s18 + $0x260] sm:$0xff]  ;;  %v939_v7 = vmul.f32 %v5100_v63, %v5100_v63 }
 0x1a0   : > { %9589 = vst [vmem:[#allocation18_spill] sm:$0xff] %v6257_v30  ;;  %9590 = vst [vmem:[#allocation132_spill] sm:$0xff] %v6259_v23  ;;  %v5098_v23 = vld [vmem:[%s5324_s18 + $0x248] sm:$0xff] }
 0x1a1   : > { %v937_v30 = vmul.f32 %v5098_v23, %v5098_v23 }
 0x1a2   : > { %1204 = vadd.xlane.f32.xlu1 %v1203_v14  ;;  %1201 = vadd.xlane.f32.xlu0 %v1200_v62  ;;  %v1215_v62 = vsel %vm347_vm0, %v938_v38, 0.0  ;;  %v942_v38 = vmul.f32 %v5101_v6, %v5101_v6 }
 0x1a3   : > { %v6266_v42 = vpop.xlane.xlu1 %994  ;;  %v6268_v46 = vpop.xlane.xlu0 %733  ;;  %v1212_v50 = vsel %vm347_vm0, %v937_v30, 0.0  ;;  %v1218_v30 = vsel %vm347_vm0, %v939_v7, 0.0  ;;  %v943_v7 = vmul.f32 %v5104_v51, %v5104_v51 }
 0x1a4   : > { %9592 = vst [vmem:[#allocation19_spill] sm:$0xff] %v6268_v46  ;;  %v940_v46 = vmul.f32 %v5099_v58, %v5099_v58  ;;  %v5102_v58 = vld [vmem:[%s5324_s18 + $0x268] sm:$0xff] }
 0x1a5   : > { %v941_v18 = vmul.f32 %v5102_v58, %v5102_v58  ;;  %v1230_v58 = vsel %vm347_vm0, %v943_v7, 0.0  ;;  %v947_v7 = vmul.f32 %v5108_v35, %v5108_v35 }
 0x1a6   : > { %1210 = vadd.xlane.f32.xlu1 %v1209_v31  ;;  %1207 = vadd.xlane.f32.xlu0 %v1206_v47  ;;  %v1221_v47 = vsel %vm347_vm0, %v940_v46, 0.0  ;;  %v944_v46 = vmul.f32 %v5103_v59, %v5103_v59 }
 0x1a7   : > { %v6275_v34 = vpop.xlane.xlu1 %1000  ;;  %v6277_v14 = vpop.xlane.xlu0 %997  ;;  %v1224_v63 = vsel %vm347_vm0, %v941_v18, 0.0  ;;  %v945_v18 = vmul.f32 %v5106_v3, %v5106_v3 }
 0x1aa   : > { %1216 = vadd.xlane.f32.xlu1 %v1215_v62  ;;  %1213 = vadd.xlane.f32.xlu0 %v1212_v50  ;;  %v1227_v50 = vsel %vm347_vm0, %v942_v38, 0.0  ;;  %v946_v38 = vmul.f32 %v5105_v10, %v5105_v10 }
 0x1ab   : > { %v6283_v23 = vpop.xlane.xlu1 %1006  ;;  %v6285_v31 = vpop.xlane.xlu0 %1003 }
 0x1ae   : > { %1222 = vadd.xlane.f32.xlu1 %v1221_v47  ;;  %1219 = vadd.xlane.f32.xlu0 %v1218_v30  ;;  %v1233_v30 = vsel %vm347_vm0, %v944_v46, 0.0  ;;  %v948_v46 = vmul.f32 %v5107_v43, %v5107_v43 }
 0x1af   : > { %v6291_v26 = vpop.xlane.xlu1 %1012  ;;  %v6293_v62 = vpop.xlane.xlu0 %1009 }
 0x1b2   : > { %1228 = vadd.xlane.f32.xlu1 %v1227_v50  ;;  %1225 = vadd.xlane.f32.xlu0 %v1224_v63  ;;  %v1239_v50 = vsel %vm347_vm0, %v946_v38, 0.0  ;;  %v1236_v63 = vsel %vm347_vm0, %v945_v18, 0.0  ;;  %v950_v38 = vmul.f32 %v5109_v60, %v5109_v60  ;;  %v949_v18 = vmul.f32 %v5110_v56, %v5110_v56 }
 0x1b3   : > { %v6299_v6 = vpop.xlane.xlu1 %1018  ;;  %v6301_v47 = vpop.xlane.xlu0 %1015 }
 0x1b6   : > { %1234 = vadd.xlane.f32.xlu1 %v1233_v30  ;;  %1231 = vadd.xlane.f32.xlu0 %v1230_v58  ;;  %v1245_v30 = vsel %vm347_vm0, %v948_v46, 0.0  ;;  %v1242_v58 = vsel %vm347_vm0, %v947_v7, 0.0  ;;  %v952_v46 = vmul.f32 %v5111_v27, %v5111_v27  ;;  %v951_v7 = vmul.f32 %v5112_v19, %v5112_v19 }
 0x1b7   : > { %v6307_v51 = vpop.xlane.xlu1 %1024  ;;  %v6309_v59 = vpop.xlane.xlu0 %1021 }
 0x1ba   : > { %1240 = vadd.xlane.f32.xlu1 %v1239_v50  ;;  %1237 = vadd.xlane.f32.xlu0 %v1236_v63  ;;  %v1251_v50 = vsel %vm347_vm0, %v950_v38, 0.0  ;;  %v1248_v63 = vsel %vm347_vm0, %v949_v18, 0.0  ;;  %v954_v38 = vmul.f32 %v5113_v52, %v5113_v52  ;;  %v953_v18 = vmul.f32 %v5114_v48, %v5114_v48 }
 0x1bb   : > { %v6315_v3 = vpop.xlane.xlu1 %1030  ;;  %v6317_v10 = vpop.xlane.xlu0 %1027 }
 0x1be   : > { %1246 = vadd.xlane.f32.xlu1 %v1245_v30  ;;  %1243 = vadd.xlane.f32.xlu0 %v1242_v58  ;;  %v1257_v30 = vsel %vm347_vm0, %v952_v46, 0.0  ;;  %v1254_v58 = vsel %vm347_vm0, %v951_v7, 0.0  ;;  %v956_v46 = vmul.f32 %v5115_v11, %v5115_v11  ;;  %v955_v7 = vmul.f32 %v5116_v4, %v5116_v4 }
 0x1bf   : > { %v6323_v35 = vpop.xlane.xlu1 %1036  ;;  %v6325_v43 = vpop.xlane.xlu0 %1033 }
 0x1c2   : > { %1252 = vadd.xlane.f32.xlu1 %v1251_v50  ;;  %1249 = vadd.xlane.f32.xlu0 %v1248_v63  ;;  %v1263_v50 = vsel %vm347_vm0, %v954_v38, 0.0  ;;  %v1260_v63 = vsel %vm347_vm0, %v953_v18, 0.0  ;;  %v958_v38 = vmul.f32 %v5117_v44, %v5117_v44  ;;  %v957_v18 = vmul.f32 %v5118_v40, %v5118_v40 }
 0x1c3   : > { %v6331_v56 = vpop.xlane.xlu1 %1042  ;;  %v6333_v60 = vpop.xlane.xlu0 %1039 }
 0x1c6   : > { %1258 = vadd.xlane.f32.xlu1 %v1257_v30  ;;  %1255 = vadd.xlane.f32.xlu0 %v1254_v58  ;;  %v1269_v30 = vsel %vm347_vm0, %v956_v46, 0.0  ;;  %v1266_v58 = vsel %vm347_vm0, %v955_v7, 0.0  ;;  %v960_v46 = vmul.f32 %v5119_v61, %v5119_v61  ;;  %v959_v7 = vmul.f32 %v5120_v57, %v5120_v57 }
 0x1c7   : > { %v6339_v19 = vpop.xlane.xlu1 %1048  ;;  %v6341_v27 = vpop.xlane.xlu0 %1045 }
 0x1ca   : > { %1264 = vadd.xlane.f32.xlu1 %v1263_v50  ;;  %1261 = vadd.xlane.f32.xlu0 %v1260_v63  ;;  %v1275_v50 = vsel %vm347_vm0, %v958_v38, 0.0  ;;  %v1272_v63 = vsel %vm347_vm0, %v957_v18, 0.0  ;;  %v962_v38 = vmul.f32 %v5121_v36, %v5121_v36  ;;  %v961_v18 = vmul.f32 %v5122_v32, %v5122_v32 }
 0x1cb   : > { %v6347_v48 = vpop.xlane.xlu1 %1054  ;;  %v6349_v52 = vpop.xlane.xlu0 %1051 }
 0x1ce   : > { %1270 = vadd.xlane.f32.xlu1 %v1269_v30  ;;  %1267 = vadd.xlane.f32.xlu0 %v1266_v58  ;;  %v1281_v30 = vsel %vm347_vm0, %v960_v46, 0.0  ;;  %v1278_v58 = vsel %vm347_vm0, %v959_v7, 0.0  ;;  %v964_v46 = vmul.f32 %v5123_v53, %v5123_v53  ;;  %v963_v7 = vmul.f32 %v5124_v49, %v5124_v49 }
 0x1cf   : > { %v6355_v4 = vpop.xlane.xlu1 %1060  ;;  %v6357_v11 = vpop.xlane.xlu0 %1057 }
 0x1d2   : > { %1276 = vadd.xlane.f32.xlu1 %v1275_v50  ;;  %1273 = vadd.xlane.f32.xlu0 %v1272_v63  ;;  %v1287_v50 = vsel %vm347_vm0, %v962_v38, 0.0  ;;  %v1284_v63 = vsel %vm347_vm0, %v961_v18, 0.0  ;;  %v966_v38 = vmul.f32 %v5125_v28, %v5125_v28  ;;  %v965_v18 = vmul.f32 %v5126_v24, %v5126_v24 }
 0x1d3   : > { %v6363_v40 = vpop.xlane.xlu1 %1066  ;;  %v6365_v44 = vpop.xlane.xlu0 %1063 }
 0x1d6   : > { %1282 = vadd.xlane.f32.xlu1 %v1281_v30  ;;  %1279 = vadd.xlane.f32.xlu0 %v1278_v58  ;;  %v1293_v30 = vsel %vm347_vm0, %v964_v46, 0.0  ;;  %v1290_v58 = vsel %vm347_vm0, %v963_v7, 0.0  ;;  %v968_v46 = vmul.f32 %v5127_v45, %v5127_v45  ;;  %v967_v7 = vmul.f32 %v5128_v41, %v5128_v41 }
 0x1d7   : > { %v6371_v57 = vpop.xlane.xlu1 %1072  ;;  %v6373_v61 = vpop.xlane.xlu0 %1069 }
 0x1da   : > { %1288 = vadd.xlane.f32.xlu1 %v1287_v50  ;;  %1285 = vadd.xlane.f32.xlu0 %v1284_v63  ;;  %v1299_v50 = vsel %vm347_vm0, %v966_v38, 0.0  ;;  %v1296_v63 = vsel %vm347_vm0, %v965_v18, 0.0  ;;  %v970_v38 = vmul.f32 %v5129_v20, %v5129_v20  ;;  %v969_v18 = vmul.f32 %v5130_v16, %v5130_v16 }
 0x1db   : > { %v6379_v32 = vpop.xlane.xlu1 %1078  ;;  %v6381_v36 = vpop.xlane.xlu0 %1075 }
 0x1de   : > { %1294 = vadd.xlane.f32.xlu1 %v1293_v30  ;;  %1291 = vadd.xlane.f32.xlu0 %v1290_v58  ;;  %v1305_v30 = vsel %vm347_vm0, %v968_v46, 0.0  ;;  %v1302_v58 = vsel %vm347_vm0, %v967_v7, 0.0  ;;  %v972_v46 = vmul.f32 %v5131_v37, %v5131_v37  ;;  %v971_v7 = vmul.f32 %v5132_v33, %v5132_v33 }
 0x1df   : > { %v6387_v49 = vpop.xlane.xlu1 %1084  ;;  %v6389_v53 = vpop.xlane.xlu0 %1081 }
 0x1e2   : > { %1300 = vadd.xlane.f32.xlu1 %v1299_v50  ;;  %1297 = vadd.xlane.f32.xlu0 %v1296_v63  ;;  %v1311_v50 = vsel %vm347_vm0, %v970_v38, 0.0  ;;  %v1308_v63 = vsel %vm347_vm0, %v969_v18, 0.0  ;;  %v974_v38 = vmul.f32 %v5133_v12, %v5133_v12  ;;  %v973_v18 = vmul.f32 %v5134_v8, %v5134_v8 }
 0x1e3   : > { %v6395_v24 = vpop.xlane.xlu1 %1090  ;;  %v6397_v28 = vpop.xlane.xlu0 %1087 }
 0x1e6   : > { %1306 = vadd.xlane.f32.xlu1 %v1305_v30  ;;  %1303 = vadd.xlane.f32.xlu0 %v1302_v58  ;;  %v1317_v30 = vsel %vm347_vm0, %v972_v46, 0.0  ;;  %v1314_v58 = vsel %vm347_vm0, %v971_v7, 0.0  ;;  %v976_v46 = vmul.f32 %v5135_v29, %v5135_v29  ;;  %v975_v7 = vmul.f32 %v5136_v25, %v5136_v25 }
 0x1e7   : > { %v6403_v41 = vpop.xlane.xlu1 %1096  ;;  %v6405_v45 = vpop.xlane.xlu0 %1093 }
 0x1ea   : > { %1312 = vadd.xlane.f32.xlu1 %v1311_v50  ;;  %1309 = vadd.xlane.f32.xlu0 %v1308_v63  ;;  %v1323_v50 = vsel %vm347_vm0, %v974_v38, 0.0  ;;  %v1320_v63 = vsel %vm347_vm0, %v973_v18, 0.0  ;;  %v978_v38 = vmul.f32 %v5137_v2, %v5137_v2  ;;  %v977_v18 = vmul.f32 %v5138_v5, %v5138_v5 }
 0x1eb   : > { %v6411_v16 = vpop.xlane.xlu1 %1102  ;;  %v6413_v20 = vpop.xlane.xlu0 %1099 }
 0x1ee   : > { %1318 = vadd.xlane.f32.xlu1 %v1317_v30  ;;  %1315 = vadd.xlane.f32.xlu0 %v1314_v58  ;;  %v1329_v30 = vsel %vm347_vm0, %v976_v46, 0.0  ;;  %v1326_v58 = vsel %vm347_vm0, %v975_v7, 0.0  ;;  %v980_v46 = vmul.f32 %v5139_v21, %v5139_v21  ;;  %v979_v7 = vmul.f32 %v5140_v17, %v5140_v17 }
 0x1ef   : > { %v6419_v33 = vpop.xlane.xlu1 %1108  ;;  %v6421_v37 = vpop.xlane.xlu0 %1105 }
 0x1f0   : > { %9594 = vst [vmem:[#allocation22_spill] sm:$0xff] %v6419_v33 }
 0x1f2   : > { %1324 = vadd.xlane.f32.xlu1 %v1323_v50  ;;  %1321 = vadd.xlane.f32.xlu0 %v1320_v63  ;;  %v1335_v50 = vsel %vm347_vm0, %v978_v38, 0.0  ;;  %v1332_v63 = vsel %vm347_vm0, %v977_v18, 0.0  ;;  %v982_v38 = vmul.f32 %v5141_v39, %v5141_v39  ;;  %v981_v18 = vmul.f32 %v5142_v22, %v5142_v22  ;;  %v9599_v39 = vld [vmem:[#allocation71_spill] sm:$0xff] }
 0x1f3   : > { %v6427_v8 = vpop.xlane.xlu1 %1114  ;;  %v6429_v12 = vpop.xlane.xlu0 %1111  ;;  %v986_v22 = vmul.f32 %v9599_v39, %v9599_v39 }
 0x1f4   : > { %9595 = vst [vmem:[#allocation133_spill] sm:$0xff] %v6427_v8 }
 0x1f6   : > { %1330 = vadd.xlane.f32.xlu1 %v1329_v30  ;;  %1327 = vadd.xlane.f32.xlu0 %v1326_v58  ;;  %v1341_v30 = vsel %vm347_vm0, %v980_v46, 0.0  ;;  %v1338_v58 = vsel %vm347_vm0, %v979_v7, 0.0  ;;  %v5144_v46 = vld [vmem:[%s5324_s18 + $0x3b8] sm:$0xff] }
 0x1f7   : > { %v6435_v25 = vpop.xlane.xlu1 %1120  ;;  %v6437_v29 = vpop.xlane.xlu0 %1117  ;;  %v983_v0 = vmul.f32 %v5144_v46, %v5144_v46 }
 0x1f8   : > { %9596 = vst [vmem:[#allocation134_spill] sm:$0xff] %v6435_v25  ;;  %v989_v25 = vmul.f32 %v5149_v54, %v5149_v54  ;;  %v9611_v54 = vld [vmem:[#allocation23_spill] sm:$0xff] }
 0x1fa   : > { %1336 = vadd.xlane.f32.xlu1 %v1335_v50  ;;  %1333 = vadd.xlane.f32.xlu0 %v1332_v63  ;;  %v1347_v50 = vsel %vm347_vm0, %v982_v38, 0.0  ;;  %v1344_v63 = vsel %vm347_vm0, %v981_v18, 0.0  ;;  %v1350_v38 = vsel %vm347_vm0, %v983_v0, 0.0  ;;  %v5145_v18 = vld [vmem:[%s5324_s18 + $0x3c8] sm:$0xff]  ;;  %v5146_v0 = vld [vmem:[%s5324_s18 + $0x3e0] sm:$0xff] }
 0x1fb   : > { %v6443_v5 = vpop.xlane.xlu1 %1126  ;;  %v6445_v2 = vpop.xlane.xlu0 %1123  ;;  %v985_v1 = vmul.f32 %v5145_v18, %v5145_v18  ;;  %v5147_v18 = vld [vmem:[%s5324_s18 + $0x3d8] sm:$0xff] }
 0x1fc   : > { %9597 = vst [vmem:[#allocation135_spill] sm:$0xff] %v6443_v5  ;;  %v987_v55 = vmul.f32 %v5147_v18, %v5147_v18 }
 0x1fe   : > { %1342 = vadd.xlane.f32.xlu1 %v1341_v30  ;;  %1339 = vadd.xlane.f32.xlu0 %v1338_v58  ;;  %v1353_v58 = vsel %vm347_vm0, %v984_v9, 0.0  ;;  %v1356_v9 = vsel %vm347_vm0, %v985_v1, 0.0  ;;  %v1640_v1 = vmul.f32 0.020408163, %v6275_v34  ;;  %v1362_v15 = vsel %vm347_vm0, %v987_v55, 0.0 }
 0x1ff   : > { %v6451_v17 = vpop.xlane.xlu1 %1132  ;;  %v6453_v21 = vpop.xlane.xlu0 %1129  ;;  %v1638_v34 = vmul.f32 0.020408163, %v6266_v42  ;;  %v1368_v55 = vsel %vm347_vm0, %v989_v25, 0.0  ;;  %v5151_v42 = vld [vmem:[%s5324_s18 + $0x3f8] sm:$0xff] }
 0x200   : > { %9598 = vst [vmem:[#allocation136_spill] sm:$0xff] %v6451_v17  ;;  %v6469_v17 = vmul.f32 0.020408163, %v9601_v13  ;;  %v9605_v13 = vld [vmem:[#allocation20_spill] sm:$0xff] }
 0x201   : > { %v6481_v5 = vmul.f32 0.020408163, %v9605_v13 }
 0x202   : > { %1348 = vadd.xlane.f32.xlu1 %v1347_v50  ;;  %1345 = vadd.xlane.f32.xlu0 %v1344_v63  ;;  %9602 = vst [vmem:[#allocation24_spill] sm:$0xff] %v6469_v17  ;;  %v1359_v50 = vsel %vm347_vm0, %v986_v22, 0.0  ;;  %v1639_v63 = vmul.f32 0.020408163, %v6277_v14  ;;  %v1768_v22 = vmul.f32 %v6469_v17, %v6469_v17  ;;  %v5148_v14 = vld [vmem:[%s5324_s18 + $0x3f0] sm:$0xff]  ;;  %v5150_v17 = vld [vmem:[%s5324_s18 + $0x400] sm:$0xff] }
 0x203   : > { %v6461_v7 = vpop.xlane.xlu1 %1138  ;;  %v6463_v30 = vpop.xlane.xlu0 %1135  ;;  %9606 = vst [vmem:[#allocation20_spill] sm:$0xff] %v6481_v5 }
 0x204   : > { %9600 = vst [vmem:[#allocation71_spill] sm:$0xff] %v6461_v7  ;;  %v988_v7 = vmul.f32 %v5146_v0, %v5146_v0  ;;  %v1897_v0 = vsub.f32 %v1639_v63, %v1768_v22  ;;  %v9613_v63 = vld [vmem:[#allocation29_spill] sm:$0xff] }
 0x205   : > { %v6506_v22 = vmul.f32 0.020408163, %v9613_v63  ;;  %v9616_v63 = vld [vmem:[#allocation26_spill] sm:$0xff] }
 0x206   : > { %1354 = vadd.xlane.f32.xlu1 %v1353_v58  ;;  %1351 = vadd.xlane.f32.xlu0 %v1350_v38  ;;  %v9607_v58 = vld [vmem:[#allocation21_spill] sm:$0xff]  ;;  %v6518_v33 = vmul.f32 0.020408163, %v9616_v63 }
 0x207   : > { %v6473_v46 = vpop.xlane.xlu1 %1144  ;;  %v6475_v39 = vpop.xlane.xlu0 %1141  ;;  %v6484_v38 = vmul.f32 0.020408163, %v9607_v58  ;;  %v1365_v58 = vsel %vm347_vm0, %v988_v7, 0.0  ;;  %9614 = vst [vmem:[#allocation29_spill] sm:$0xff] %v6506_v22 }
 0x208   : > { %9603 = vst [vmem:[#allocation137_spill] sm:$0xff] %v6473_v46  ;;  %9604 = vst [vmem:[#allocation138_spill] sm:$0xff] %v6475_v39  ;;  %v990_v46 = vmul.f32 %v5148_v14, %v5148_v14  ;;  %v6502_v14 = vmul.f32 0.020408163, %v9611_v54  ;;  %v991_v39 = vmul.f32 %v5151_v42, %v5151_v42 }
 0x209   : > { %9608 = vst [vmem:[#allocation21_spill] sm:$0xff] %v6484_v38  ;;  %9617 = vst [vmem:[#allocation26_spill] sm:$0xff] %v6518_v33 }
 0x20a   : > { %1360 = vadd.xlane.f32.xlu1 %v1359_v50  ;;  %1357 = vadd.xlane.f32.xlu0 %v1356_v9  ;;  %v1769_v50 = vmul.f32 %v6481_v5, %v6481_v5  ;;  %v1767_v9 = vmul.f32 %v6484_v38, %v6484_v38  ;;  %9612 = vst [vmem:[#allocation23_spill] sm:$0xff] %v6502_v14  ;;  %v1371_v7 = vsel %vm347_vm0, %v990_v46, 0.0  ;;  %v1641_v38 = vmul.f32 0.020408163, %v6285_v31 }
 0x20b   : > { %v6491_v18 = vpop.xlane.xlu1 %1150  ;;  %v6493_v13 = vpop.xlane.xlu0 %1147  ;;  %v992_v5 = vmul.f32 %v5150_v17, %v5150_v17  ;;  %v1770_v25 = vmul.f32 %v6502_v14, %v6502_v14  ;;  %v1776_v17 = vmul.f32 %v6506_v22, %v6506_v22  ;;  %v9621_v22 = vld [vmem:[#allocation25_spill] sm:$0xff] }
 0x20c   : > { %9609 = vst [vmem:[#allocation139_spill] sm:$0xff] %v6491_v18  ;;  %9610 = vst [vmem:[#allocation140_spill] sm:$0xff] %v6493_v13  ;;  %v1898_v18 = vsub.f32 %v1640_v1, %v1769_v50  ;;  %v2026_v13 = vmax.f32 %v1897_v0, 0.0  ;;  %v1896_v46 = vsub.f32 %v1638_v34, %v1767_v9  ;;  %v9618_v1 = vld [vmem:[#allocation31_spill] sm:$0xff]  ;;  %v1642_v0 = vmul.f32 0.020408163, %v6283_v23 }
 0x20d   : > { %v6526_v31 = vmul.f32 0.020408163, %v9618_v1  ;;  %v1899_v63 = vsub.f32 %v1641_v38, %v1770_v25  ;;  %v1374_v9 = vsel %vm347_vm0, %v991_v39, 0.0  ;;  %v1771_v34 = vmul.f32 %v6518_v33, %v6518_v33  ;;  %v9623_v38 = vld [vmem:[#allocation33_spill] sm:$0xff] }
 0x20e   : > { %1366 = vadd.xlane.f32.xlu1 %v1365_v58  ;;  %1363 = vadd.xlane.f32.xlu0 %v1362_v15  ;;  %v1647_v15 = vmul.f32 0.020408163, %v6309_v59  ;;  %v1377_v58 = vsel %vm347_vm0, %v992_v5, 0.0  ;;  %v2027_v50 = vmax.f32 %v1898_v18, 0.0  ;;  %v2284_v42 = vadd.f32 1e-05, %v2026_v13 }
 0x20f   : > { %v6512_v8 = vpop.xlane.xlu1 %1156  ;;  %v6514_v54 = vpop.xlane.xlu0 %1153  ;;  %9619 = vst [vmem:[#allocation31_spill] sm:$0xff] %v6526_v31  ;;  %v6538_v14 = vmul.f32 0.020408163, %v9621_v22  ;;  %v2025_v23 = vmax.f32 %v1896_v46, 0.0  ;;  %v1778_v5 = vmul.f32 %v6526_v31, %v6526_v31  ;;  %v6544_v18 = vmul.f32 0.020408163, %v9623_v38 }
 0x210   : > { %9615 = vst [vmem:[#allocation141_spill] sm:$0xff] %v6512_v8  ;;  %v1905_v1 = vsub.f32 %v1647_v15, %v1776_v17  ;;  %v1900_v13 = vsub.f32 %v1642_v0, %v1771_v34  ;;  %v2285_v39 = vadd.f32 1e-05, %v2027_v50  ;;  %4836 = vrsqrt.f32 %v2284_v42  ;;  %v9626_v46 = vld [vmem:[#allocation28_spill] sm:$0xff]  ;;  %v9628_v42 = vld [vmem:[#allocation35_spill] sm:$0xff] }
 0x211   : > { %9622 = vst [vmem:[#allocation25_spill] sm:$0xff] %v6538_v14  ;;  %9624 = vst [vmem:[#allocation33_spill] sm:$0xff] %v6544_v18  ;;  %v1643_v15 = vmul.f32 0.020408163, %v6293_v62  ;;  %v1772_v38 = vmul.f32 %v6538_v14, %v6538_v14  ;;  %v2283_v31 = vadd.f32 1e-05, %v2025_v23  ;;  %v1780_v50 = vmul.f32 %v6544_v18, %v6544_v18 }
 0x212   : > { %1372 = vadd.xlane.f32.xlu1 %v1371_v7  ;;  %1369 = vadd.xlane.f32.xlu0 %v1368_v55  ;;  %v1649_v7 = vmul.f32 0.020408163, %v6317_v10  ;;  %v2028_v55 = vmax.f32 %v1899_v63, 0.0  ;;  %v6552_v10 = vmul.f32 0.020408163, %v9626_v46  ;;  %v2034_v17 = vmax.f32 %v1905_v1, 0.0 }
 0x213   : > { %v6530_v59 = vpop.xlane.xlu1 %1162  ;;  %v6532_v8 = vpop.xlane.xlu0 %1159  ;;  %v6560_v62 = vmul.f32 0.020408163, %v9628_v42  ;;  %v2029_v63 = vmax.f32 %v1900_v13, 0.0  ;;  %4838 = vrsqrt.f32 %v2285_v39  ;;  %v1644_v34 = vmul.f32 0.020408163, %v6291_v26  ;;  %v9631_v23 = vld [vmem:[#allocation27_spill] sm:$0xff] }
 0x214   : > { %9620 = vst [vmem:[#allocation142_spill] sm:$0xff] %v6530_v59  ;;  %9627 = vst [vmem:[#allocation28_spill] sm:$0xff] %v6552_v10  ;;  %v1907_v0 = vsub.f32 %v1649_v7, %v1778_v5  ;;  %v1901_v46 = vsub.f32 %v1643_v15, %v1772_v38  ;;  %v6568_v7 = vmul.f32 0.020408163, %v9631_v23  ;;  %v2292_v5 = vadd.f32 1e-05, %v2034_v17 }
 0x215   : > { %9629 = vst [vmem:[#allocation35_spill] sm:$0xff] %v6560_v62  ;;  %4840 = vrsqrt.f32 %v2283_v31  ;;  %v1653_v39 = vmul.f32 0.020408163, %v6333_v60  ;;  %v1782_v26 = vmul.f32 %v6560_v62, %v6560_v62  ;;  %v2287_v38 = vadd.f32 1e-05, %v2029_v63  ;;  %v9636_v60 = vld [vmem:[#allocation30_spill] sm:$0xff] }
 0x216   : > { %1378 = vadd.xlane.f32.xlu1 %v1377_v58  ;;  %1375 = vadd.xlane.f32.xlu0 %v1374_v9  ;;  %v1651_v58 = vmul.f32 0.020408163, %v6325_v43  ;;  %v2286_v9 = vadd.f32 1e-05, %v2028_v55  ;;  %9632 = vst [vmem:[#allocation27_spill] sm:$0xff] %v6568_v7  ;;  %v1773_v43 = vmul.f32 %v6552_v10, %v6552_v10  ;;  %v2036_v42 = vmax.f32 %v1907_v0, 0.0 }
 0x217   : > { %v6547_v25 = vpop.xlane.xlu1 %1168  ;;  %v6549_v22 = vpop.xlane.xlu0 %1165  ;;  %v9633_v55 = vld [vmem:[#allocation37_spill] sm:$0xff]  ;;  %v2030_v18 = vmax.f32 %v1901_v46, 0.0  ;;  %v1645_v14 = vmul.f32 0.020408163, %v6301_v47  ;;  %v1774_v17 = vmul.f32 %v6568_v7, %v6568_v7  ;;  %v6586_v0 = vmul.f32 0.020408163, %v9636_v60 }
 0x218   : > { %9625 = vst [vmem:[#allocation143_spill] sm:$0xff] %v6547_v25  ;;  %v1909_v13 = vsub.f32 %v1651_v58, %v1780_v50  ;;  %v6576_v15 = vmul.f32 0.020408163, %v9633_v55  ;;  %4842 = vrsqrt.f32 %v2286_v9  ;;  %v1902_v23 = vsub.f32 %v1644_v34, %v1773_v43  ;;  %v2155_v34 = vld [vmem:[%s6592_s21 + $0x8] sm:$0xff]  ;;  %v9638_v46 = vld [vmem:[#allocation32_spill] sm:$0xff] }
 0x219   : > { %9637 = vst [vmem:[#allocation30_spill] sm:$0xff] %v6586_v0  ;;  %4844 = vrsqrt.f32 %v2292_v5  ;;  %v2294_v50 = vadd.f32 1e-05, %v2036_v42  ;;  %v1911_v63 = vsub.f32 %v1653_v39, %v1782_v26  ;;  %v1655_v9 = vmul.f32 0.020408163, %v6341_v27  ;;  %v9640_v5 = vld [vmem:[#allocation39_spill] sm:$0xff] }
 0x21a   : > { %9634 = vst [vmem:[#allocation37_spill] sm:$0xff] %v6576_v15  ;;  %v4837_v58 = vpop.eup %4836  ;;  %v2038_v47 = vmax.f32 %v1909_v13, 0.0  ;;  %v6597_v43 = vmul.f32 0.020408163, %v9638_v46  ;;  %v1784_v55 = vmul.f32 %v6576_v15, %v6576_v15  ;;  %v6602_v60 = vmul.f32 0.020408163, %v9640_v5 }
 0x21b   : > { %v6563_v1 = vpop.xlane.xlu1 %1174  ;;  %v6565_v33 = vpop.xlane.xlu0 %1171  ;;  %4846 = vrsqrt.f32 %v2287_v38  ;;  %v2031_v62 = vmax.f32 %v1902_v23, 0.0  ;;  %v2288_v7 = vadd.f32 1e-05, %v2030_v18  ;;  %v1646_v42 = vmul.f32 0.020408163, %v6299_v6  ;;  %v2156_v23 = vld [vmem:[%s6592_s21 + $0x10] sm:$0xff] }
 0x21c   : > { %9630 = vst [vmem:[#allocation144_spill] sm:$0xff] %v6563_v1  ;;  %9639 = vst [vmem:[#allocation32_spill] sm:$0xff] %v6597_v43  ;;  %v1903_v13 = vsub.f32 %v1645_v14, %v1774_v17  ;;  %v1775_v26 = vmul.f32 %v6586_v0, %v6586_v0  ;;  %v1657_v46 = vmul.f32 0.020408163, %v6349_v52  ;;  %v6612_v15 = vmul.f32 %v4837_v58, %v2155_v34  ;;  %v9644_v17 = vld [vmem:[#allocation41_spill] sm:$0xff] }
 0x21d   : > { %9641 = vst [vmem:[#allocation39_spill] sm:$0xff] %v6602_v60  ;;  %v4839_v5 = vpop.eup %4838  ;;  %4848 = vrsqrt.f32 %v2294_v50  ;;  %v2040_v38 = vmax.f32 %v1911_v63, 0.0  ;;  %v1913_v18 = vsub.f32 %v1655_v9, %v1784_v55  ;;  %v1777_v6 = vmul.f32 %v6597_v43, %v6597_v43  ;;  %v2154_v55 = vld [vmem:[%s6592_s21] sm:$0xff] }
 0x21e   : > { %9643 = vst [vmem:[#allocation147_spill] sm:$0xff] %v6612_v15  ;;  %v1786_v14 = vmul.f32 %v6602_v60, %v6602_v60  ;;  %v1648_v52 = vmul.f32 0.020408163, %v6307_v51  ;;  %v2289_v34 = vadd.f32 1e-05, %v2031_v62  ;;  %4850 = vrsqrt.f32 %v2288_v7  ;;  %v9647_v43 = vld [vmem:[#allocation34_spill] sm:$0xff] }
 0x21f   : > { %v6579_v10 = vpop.xlane.xlu1 %1180  ;;  %v6581_v31 = vpop.xlane.xlu0 %1177  ;;  %v1904_v50 = vsub.f32 %v1646_v42, %v1775_v26  ;;  %v6630_v60 = vmul.f32 0.020408163, %v9647_v43  ;;  %v6635_v1 = vmul.f32 %v4839_v5, %v2156_v23  ;;  %v2298_v7 = vadd.f32 1e-05, %v2040_v38  ;;  %v2157_v26 = vld [vmem:[%s6592_s21 + $0x18] sm:$0xff]  ;;  %v9652_v43 = vld [vmem:[#allocation43_spill] sm:$0xff] }
 0x220   : > { %9635 = vst [vmem:[#allocation145_spill] sm:$0xff] %v6579_v10  ;;  %v2296_v10 = vadd.f32 1e-05, %v2038_v47  ;;  %v4841_v58 = vpop.eup %4840  ;;  %v2032_v47 = vmax.f32 %v1903_v13, 0.0  ;;  %v1915_v51 = vsub.f32 %v1657_v46, %v1786_v14  ;;  %v2042_v42 = vmax.f32 %v1913_v18, 0.0  ;;  %v2163_v18 = vld [vmem:[%s6592_s21 + $0x48] sm:$0xff] }
 0x221   : > { %9648 = vst [vmem:[#allocation34_spill] sm:$0xff] %v6630_v60  ;;  %9651 = vst [vmem:[#allocation149_spill] sm:$0xff] %v6635_v1  ;;  %v1659_v13 = vmul.f32 0.020408163, %v6357_v11  ;;  %v6642_v25 = vmul.f32 0.020408163, %v9652_v43  ;;  %v6644_v59 = vmul.f32 %v4841_v58, %v2154_v55  ;;  %v1779_v14 = vmul.f32 %v6630_v60, %v6630_v60 }
 0x222   : > { %v4843_v62 = vpop.eup %4842  ;;  %4852 = vrsqrt.f32 %v2296_v10  ;;  %v2033_v46 = vmax.f32 %v1904_v50, 0.0  ;;  %v2290_v5 = vadd.f32 1e-05, %v2032_v47  ;;  %v1650_v10 = vmul.f32 0.020408163, %v6315_v3  ;;  %v2158_v47 = vld [vmem:[%s6592_s21 + $0x20] sm:$0xff] }
 0x223   : > { %v6605_v39 = vpop.xlane.xlu1 %1186  ;;  %v6607_v27 = vpop.xlane.xlu0 %1183  ;;  %9653 = vst [vmem:[#allocation43_spill] sm:$0xff] %v6642_v25  ;;  %9654 = vst [vmem:[#allocation150_spill] sm:$0xff] %v6644_v59  ;;  %4854 = vrsqrt.f32 %v2289_v34  ;;  %v6660_v58 = vmul.f32 %v4843_v62, %v2157_v26  ;;  %v2300_v3 = vadd.f32 1e-05, %v2042_v42  ;;  %v1661_v50 = vmul.f32 0.020408163, %v6365_v44 }
 0x224   : > { %9642 = vst [vmem:[#allocation146_spill] sm:$0xff] %v6605_v39  ;;  %v6620_v39 = vmul.f32 0.020408163, %v9644_v17  ;;  %v9649_v17 = vld [vmem:[#allocation36_spill] sm:$0xff]  ;;  %4856 = vrsqrt.f32 %v2298_v7  ;;  %v1790_v55 = vmul.f32 %v6642_v25, %v6642_v25  ;;  %v9656_v43 = vld [vmem:[#allocation45_spill] sm:$0xff]  ;;  %v1908_v62 = vsub.f32 %v1650_v10, %v1779_v14  ;;  %v9664_v25 = vld [vmem:[#allocation47_spill] sm:$0xff] }
 0x225   : > { %v6633_v0 = vmul.f32 0.020408163, %v9649_v17  ;;  %v1906_v17 = vsub.f32 %v1648_v52, %v1777_v6  ;;  %v2044_v52 = vmax.f32 %v1915_v51, 0.0  ;;  %9655 = vst [vmem:[#allocation151_spill] sm:$0xff] %v6660_v58  ;;  %4858 = vrsqrt.f32 %v2290_v5  ;;  %v2165_v42 = vld [vmem:[%s6592_s21 + $0x58] sm:$0xff] }
 0x226   : > { %9645 = vst [vmem:[#allocation41_spill] sm:$0xff] %v6620_v39  ;;  %v1652_v7 = vmul.f32 0.020408163, %v6323_v35  ;;  %4860 = vrsqrt.f32 %v2300_v3  ;;  %v1919_v10 = vsub.f32 %v1661_v50, %v1790_v55  ;;  %v1663_v14 = vmul.f32 0.020408163, %v6373_v61 }
 0x227   : > { %v6623_v63 = vpop.xlane.xlu1 %1192  ;;  %3064 = vperm.xlu1 %4835, %v6612_v15   ;;  %v6626_v9 = vpop.xlane.xlu0 %1189  ;;  %9650 = vst [vmem:[#allocation36_spill] sm:$0xff] %v6633_v0  ;;  %v6657_v6 = vmul.f32 %v6633_v0, %v6633_v0  ;;  %v2035_v0 = vmax.f32 %v1906_v17, 0.0  ;;  %v9661_v17 = vld [vmem:[#allocation40_spill] sm:$0xff] }
 0x228   : > { %9646 = vst [vmem:[#allocation148_spill] sm:$0xff] %v6623_v63  ;;  %v4845_v15 = vpop.eup %4844  ;;  %v1788_v63 = vmul.f32 %v6620_v39, %v6620_v39  ;;  %v6667_v39 = vmul.f32 0.020408163, %v9656_v43  ;;  %v2159_v43 = vld [vmem:[%s6592_s21 + $0x28] sm:$0xff]  ;;  %v2048_v55 = vmax.f32 %v1919_v10, 0.0 }
 0x229   : > { %v4847_v23 = vpop.eup %4846  ;;  %v6669_v60 = vmul.f32 %v4845_v15, %v2163_v18  ;;  %v6682_v15 = vmul.f32 0.020408163, %v9661_v17  ;;  %v2302_v18 = vadd.f32 1e-05, %v2044_v52  ;;  %v2293_v17 = vadd.f32 1e-05, %v2035_v0 }
 0x22a   : > { %v1917_v34 = vsub.f32 %v1659_v13, %v1788_v63  ;;  %9657 = vst [vmem:[#allocation45_spill] sm:$0xff] %v6667_v39  ;;  %v4849_v51 = vpop.eup %4848  ;;  %v9659_v13 = vld [vmem:[#allocation38_spill] sm:$0xff]  ;;  %v1910_v3 = vsub.f32 %v1652_v7, %v6657_v6  ;;  %v2160_v7 = vld [vmem:[%s6592_s21 + $0x30] sm:$0xff] }
 0x22b   : > { %v6647_v38 = vpop.xlane.xlu1 %1198  ;;  %3069 = vperm.xlu1 %4835, %v6635_v1   ;;  %v6650_v11 = vpop.xlane.xlu0 %1195  ;;  %9658 = vst [vmem:[#allocation152_spill] sm:$0xff] %v6669_v60  ;;  %v2291_v1 = vadd.f32 1e-05, %v2033_v46  ;;  %v6679_v26 = vmul.f32 0.020408163, %v9659_v13  ;;  %9662 = vst [vmem:[#allocation40_spill] sm:$0xff] %v6682_v15  ;;  %v6685_v46 = vmul.f32 %v4847_v23, %v2158_v47  ;;  %v1792_v13 = vmul.f32 %v6667_v39, %v6667_v39 }
 0x22c   : > { %3059 = vperm.xlu0 %4834, %v6644_v59   ;;  %v4851_v5 = vpop.eup %4850  ;;  %v2046_v35 = vmax.f32 %v1917_v34, 0.0  ;;  %v6694_v52 = vmul.f32 %v4849_v51, %v2165_v42  ;;  %v2037_v23 = vmax.f32 %v1908_v62, 0.0  ;;  %v1654_v34 = vmul.f32 0.020408163, %v6331_v56  ;;  %v2167_v47 = vld [vmem:[%s6592_s21 + $0x68] sm:$0xff]  ;;  %v9668_v39 = vld [vmem:[#allocation49_spill] sm:$0xff] }
 0x22d   : > { %9660 = vst [vmem:[#allocation38_spill] sm:$0xff] %v6679_v26  ;;  %9663 = vst [vmem:[#allocation153_spill] sm:$0xff] %v6685_v46  ;;  %4862 = vrsqrt.f32 %v2291_v1  ;;  %v6708_v0 = vmul.f32 %v6682_v15, %v6682_v15  ;;  %v6711_v1 = vmul.f32 %v4851_v5, %v2159_v43  ;;  %v1921_v51 = vsub.f32 %v1663_v14, %v1792_v13  ;;  %v2169_v14 = vld [vmem:[%s6592_s21 + $0x78] sm:$0xff]  ;;  %v9671_v13 = vld [vmem:[#allocation42_spill] sm:$0xff] }
 0x22e   : > { %9666 = vst [vmem:[#allocation154_spill] sm:$0xff] %v6694_v52  ;;  %4864 = vrsqrt.f32 %v2302_v18  ;;  %v2304_v6 = vadd.f32 1e-05, %v2046_v35  ;;  %v1665_v62 = vmul.f32 0.020408163, %v6381_v36  ;;  %v2039_v43 = vmax.f32 %v1910_v3, 0.0 }
 0x22f   : > { %v6672_v63 = vpop.xlane.xlu1 %1204  ;;  %3074 = vperm.xlu1 %4835, %v6660_v58   ;;  %v6675_v44 = vpop.xlane.xlu0 %1201  ;;  %v6692_v58 = vmul.f32 0.020408163, %v9664_v25  ;;  %v1783_v25 = vmul.f32 %v6679_v26, %v6679_v26  ;;  %9667 = vst [vmem:[#allocation155_spill] sm:$0xff] %v6711_v1  ;;  %v6718_v26 = vmul.f32 0.020408163, %v9668_v39  ;;  %4866 = vrsqrt.f32 %v2293_v17  ;;  %v9673_v17 = vld [vmem:[#allocation44_spill] sm:$0xff] }
 0x230   : > { %3104 = vperm.xlu0 %4834, %v6669_v60   ;;  %v4853_v60 = vpop.eup %4852  ;;  %v2295_v5 = vadd.f32 1e-05, %v2037_v23  ;;  %v1656_v35 = vmul.f32 0.020408163, %v6339_v19  ;;  %v6730_v39 = vmul.f32 0.020408163, %v9671_v13  ;;  %4868 = vrsqrt.f32 %v2304_v6 }
 0x231   : > { %9665 = vst [vmem:[#allocation47_spill] sm:$0xff] %v6692_v58  ;;  %v4855_v56 = vpop.eup %4854  ;;  %v1794_v42 = vmul.f32 %v6692_v58, %v6692_v58  ;;  %9669 = vst [vmem:[#allocation49_spill] sm:$0xff] %v6718_v26  ;;  %v6720_v18 = vmul.f32 %v4853_v60, %v2167_v47  ;;  %v1912_v15 = vsub.f32 %v1654_v34, %v1783_v25  ;;  %v6733_v60 = vmul.f32 0.020408163, %v9673_v17  ;;  %v2161_v58 = vld [vmem:[%s6592_s21 + $0x38] sm:$0xff] }
 0x232   : > { %9672 = vst [vmem:[#allocation42_spill] sm:$0xff] %v6730_v39  ;;  %v1667_v23 = vmul.f32 0.020408163, %v6389_v53  ;;  %v6737_v3 = vmul.f32 %v4855_v56, %v2160_v7  ;;  %v2306_v34 = vadd.f32 1e-05, %v2048_v55  ;;  %v2050_v47 = vmax.f32 %v1921_v51, 0.0 }
 0x233   : > { %v6698_v50 = vpop.xlane.xlu1 %1210  ;;  %3079 = vperm.xlu1 %4835, %v6685_v46   ;;  %v6701_v61 = vpop.xlane.xlu0 %1207  ;;  %9670 = vst [vmem:[#allocation156_spill] sm:$0xff] %v6720_v18  ;;  %9674 = vst [vmem:[#allocation44_spill] sm:$0xff] %v6733_v60  ;;  %v1923_v25 = vsub.f32 %v1665_v62, %v1794_v42  ;;  %v1796_v13 = vmul.f32 %v6718_v26, %v6718_v26  ;;  %v1658_v17 = vmul.f32 0.020408163, %v6347_v48  ;;  %4870 = vrsqrt.f32 %v2295_v5  ;;  %v2171_v62 = vld [vmem:[%s6592_s21 + $0x88] sm:$0xff] }
 0x234   : > { %3114 = vperm.xlu0 %4834, %v6694_v52   ;;  %v4857_v52 = vpop.eup %4856  ;;  %9675 = vst [vmem:[#allocation157_spill] sm:$0xff] %v6737_v3  ;;  %v2297_v56 = vadd.f32 1e-05, %v2039_v43  ;;  %v2041_v7 = vmax.f32 %v1912_v15, 0.0  ;;  %v1914_v6 = vsub.f32 %v1656_v35, %v6708_v0  ;;  %v6759_v48 = vmul.f32 %v6733_v60, %v6733_v60  ;;  %v2162_v35 = vld [vmem:[%s6592_s21 + $0x40] sm:$0xff] }
 0x235   : > { %v4859_v19 = vpop.eup %4858  ;;  %v6746_v53 = vmul.f32 %v4857_v52, %v2169_v14  ;;  %v1925_v52 = vsub.f32 %v1667_v23, %v1796_v13  ;;  %4872 = vrsqrt.f32 %v2306_v34  ;;  %v2308_v42 = vadd.f32 1e-05, %v2050_v47 }
 0x236   : > { %v6762_v15 = vmul.f32 %v4859_v19, %v2161_v58  ;;  %v2052_v5 = vmax.f32 %v1923_v25, 0.0  ;;  %v1669_v43 = vmul.f32 0.020408163, %v6397_v28  ;;  %4874 = vrsqrt.f32 %v2297_v56  ;;  %v2173_v25 = vld [vmem:[%s6592_s21 + $0x98] sm:$0xff] }
 0x237   : > { %v6723_v10 = vpop.xlane.xlu1 %1216  ;;  %3084 = vperm.xlu1 %4835, %v6711_v1   ;;  %v6726_v36 = vpop.xlane.xlu0 %1213  ;;  %v9676_v1 = vld [vmem:[#allocation51_spill] sm:$0xff]  ;;  %9678 = vst [vmem:[#allocation158_spill] sm:$0xff] %v6746_v53  ;;  %v2299_v58 = vadd.f32 1e-05, %v2041_v7  ;;  %v2043_v19 = vmax.f32 %v1914_v6, 0.0  ;;  %v2054_v56 = vmax.f32 %v1925_v52, 0.0  ;;  %4876 = vrsqrt.f32 %v2308_v42 }
 0x238   : > { %3124 = vperm.xlu0 %4834, %v6720_v18   ;;  %v6743_v46 = vmul.f32 0.020408163, %v9676_v1  ;;  %v4861_v18 = vpop.eup %4860  ;;  %v1787_v1 = vmul.f32 %v6730_v39, %v6730_v39  ;;  %9679 = vst [vmem:[#allocation159_spill] sm:$0xff] %v6762_v15  ;;  %v9680_v39 = vld [vmem:[#allocation53_spill] sm:$0xff]  ;;  %v1660_v34 = vmul.f32 0.020408163, %v6355_v4 }
 0x239   : > { %v4863_v0 = vpop.eup %4862  ;;  %v6769_v60 = vmul.f32 0.020408163, %v9680_v39  ;;  %v6771_v13 = vmul.f32 %v4861_v18, %v2171_v62  ;;  %v2310_v4 = vadd.f32 1e-05, %v2052_v5  ;;  %v1671_v62 = vmul.f32 0.020408163, %v6405_v45 }
 0x23a   : > { %9677 = vst [vmem:[#allocation51_spill] sm:$0xff] %v6743_v46  ;;  %v4865_v14 = vpop.eup %4864  ;;  %v1798_v26 = vmul.f32 %v6743_v46, %v6743_v46  ;;  %v1916_v23 = vsub.f32 %v1658_v17, %v1787_v1  ;;  %v9685_v17 = vld [vmem:[#allocation48_spill] sm:$0xff]  ;;  %v6787_v7 = vmul.f32 %v4863_v0, %v2162_v35  ;;  %4878 = vrsqrt.f32 %v2299_v58 }
 0x23b   : > { %v6749_v55 = vpop.xlane.xlu1 %1222  ;;  %3089 = vperm.xlu1 %4835, %v6737_v3   ;;  %v6752_v51 = vpop.xlane.xlu0 %1219  ;;  %9681 = vst [vmem:[#allocation53_spill] sm:$0xff] %v6769_v60  ;;  %9682 = vst [vmem:[#allocation160_spill] sm:$0xff] %v6771_v13  ;;  %v6784_v18 = vmul.f32 0.020408163, %v9685_v17  ;;  %v2164_v1 = vld [vmem:[%s6592_s21 + $0x50] sm:$0xff]  ;;  %v6796_v59 = vmul.f32 %v4865_v14, %v2173_v25  ;;  %v1918_v42 = vsub.f32 %v1660_v34, %v6759_v48  ;;  %4880 = vrsqrt.f32 %v2310_v4  ;;  %v2166_v25 = vld [vmem:[%s6592_s21 + $0x60] sm:$0xff] }
 0x23c   : > { %3134 = vperm.xlu0 %4834, %v6746_v53   ;;  %v4867_v46 = vpop.eup %4866  ;;  %v9683_v53 = vld [vmem:[#allocation46_spill] sm:$0xff]  ;;  %9687 = vst [vmem:[#allocation161_spill] sm:$0xff] %v6787_v7  ;;  %v1927_v6 = vsub.f32 %v1669_v43, %v1798_v26  ;;  %v2045_v17 = vmax.f32 %v1916_v23, 0.0  ;;  %v2301_v0 = vadd.f32 1e-05, %v2043_v19  ;;  %v2175_v43 = vld [vmem:[%s6592_s21 + $0xa8] sm:$0xff] }
 0x23d   : > { %v6781_v39 = vmul.f32 0.020408163, %v9683_v53  ;;  %9686 = vst [vmem:[#allocation48_spill] sm:$0xff] %v6784_v18  ;;  %v9688_v53 = vld [vmem:[#allocation55_spill] sm:$0xff]  ;;  %9690 = vst [vmem:[#allocation162_spill] sm:$0xff] %v6796_v59  ;;  %v4869_v52 = vpop.eup %4868  ;;  %v6810_v14 = vmul.f32 %v6784_v18, %v6784_v18  ;;  %v6813_v48 = vmul.f32 %v4867_v46, %v2164_v1  ;;  %v2047_v46 = vmax.f32 %v1918_v42, 0.0 }
 0x23e   : > { %v6794_v3 = vmul.f32 0.020408163, %v9688_v53  ;;  %v1662_v26 = vmul.f32 0.020408163, %v6363_v40  ;;  %v2312_v23 = vadd.f32 1e-05, %v2054_v56  ;;  %v4871_v40 = vpop.eup %4870  ;;  %v6822_v56 = vmul.f32 %v4869_v52, %v2175_v43 }
 0x23f   : > { %v6774_v47 = vpop.xlane.xlu1 %1228  ;;  %3094 = vperm.xlu1 %4835, %v6762_v15   ;;  %v6777_v28 = vpop.xlane.xlu0 %1225  ;;  %9684 = vst [vmem:[#allocation46_spill] sm:$0xff] %v6781_v39  ;;  %v1800_v15 = vmul.f32 %v6769_v60, %v6769_v60  ;;  %v1791_v35 = vmul.f32 %v6781_v39, %v6781_v39  ;;  %9691 = vst [vmem:[#allocation163_spill] sm:$0xff] %v6813_v48  ;;  %v2056_v58 = vmax.f32 %v1927_v6, 0.0  ;;  %v1673_v34 = vmul.f32 0.020408163, %v6413_v20  ;;  %v9692_v60 = vld [vmem:[#allocation57_spill] sm:$0xff] }
 0x240   : > { %3144 = vperm.xlu0 %4834, %v6771_v13   ;;  %9689 = vst [vmem:[#allocation55_spill] sm:$0xff] %v6794_v3  ;;  %v1802_v53 = vmul.f32 %v6794_v3, %v6794_v3  ;;  %v6820_v13 = vmul.f32 0.020408163, %v9692_v60  ;;  %v2303_v18 = vadd.f32 1e-05, %v2045_v17  ;;  %9694 = vst [vmem:[#allocation164_spill] sm:$0xff] %v6822_v56  ;;  %4882 = vrsqrt.f32 %v2301_v0 }
 0x241   : > { %v1929_v19 = vsub.f32 %v1671_v62, %v1800_v15  ;;  %v1920_v1 = vsub.f32 %v1662_v26, %v1791_v35  ;;  %v1664_v4 = vmul.f32 0.020408163, %v6371_v57  ;;  %v2177_v6 = vld [vmem:[%s6592_s21 + $0xb8] sm:$0xff]  ;;  %v9695_v62 = vld [vmem:[#allocation50_spill] sm:$0xff]  ;;  %v9697_v17 = vld [vmem:[#allocation52_spill] sm:$0xff]  ;;  %4884 = vrsqrt.f32 %v2312_v23 }
 0x242   : > { %9693 = vst [vmem:[#allocation57_spill] sm:$0xff] %v6820_v13  ;;  %v6832_v60 = vmul.f32 0.020408163, %v9695_v62  ;;  %v6835_v52 = vmul.f32 0.020408163, %v9697_v17  ;;  %v6838_v0 = vmul.f32 %v4871_v40, %v2166_v25  ;;  %v1931_v43 = vsub.f32 %v1673_v34, %v1802_v53  ;;  %v2168_v3 = vld [vmem:[%s6592_s21 + $0x70] sm:$0xff] }
 0x243   : > { %v6800_v5 = vpop.xlane.xlu1 %1234  ;;  %3099 = vperm.xlu1 %4835, %v6787_v7   ;;  %v6803_v45 = vpop.xlane.xlu0 %1231  ;;  %v2314_v57 = vadd.f32 1e-05, %v2056_v58  ;;  %v2058_v26 = vmax.f32 %v1929_v19, 0.0  ;;  %v1675_v35 = vmul.f32 0.020408163, %v6421_v37  ;;  %v1804_v62 = vmul.f32 %v6820_v13, %v6820_v13  ;;  %v9700_v39 = vld [vmem:[#allocation59_spill] sm:$0xff] }
 0x244   : > { %3154 = vperm.xlu0 %4834, %v6796_v59   ;;  %v4873_v59 = vpop.eup %4872  ;;  %9696 = vst [vmem:[#allocation50_spill] sm:$0xff] %v6832_v60  ;;  %9698 = vst [vmem:[#allocation52_spill] sm:$0xff] %v6835_v52  ;;  %4886 = vrsqrt.f32 %v2303_v18  ;;  %v2305_v40 = vadd.f32 1e-05, %v2047_v46  ;;  %v2049_v25 = vmax.f32 %v1920_v1, 0.0  ;;  %v1922_v58 = vsub.f32 %v1664_v4, %v6810_v14  ;;  %v2179_v53 = vld [vmem:[%s6592_s21 + $0xc8] sm:$0xff] }
 0x245   : > { %9699 = vst [vmem:[#allocation165_spill] sm:$0xff] %v6838_v0  ;;  %v4875_v42 = vpop.eup %4874  ;;  %v6847_v23 = vmul.f32 %v4873_v59, %v2177_v6  ;;  %v1666_v19 = vmul.f32 0.020408163, %v6379_v32  ;;  %v1797_v59 = vmul.f32 %v6835_v52, %v6835_v52  ;;  %v1677_v18 = vmul.f32 0.020408163, %v6429_v12  ;;  %v2170_v6 = vld [vmem:[%s6592_s21 + $0x80] sm:$0xff] }
 0x246   : > { %v4877_v17 = vpop.eup %4876  ;;  %v6863_v14 = vmul.f32 %v4875_v42, %v2168_v3  ;;  %4888 = vrsqrt.f32 %v2314_v57  ;;  %v2316_v46 = vadd.f32 1e-05, %v2058_v26  ;;  %v2060_v1 = vmax.f32 %v1931_v43, 0.0  ;;  %v9741_v7 = vld [vmem:[#allocation72_spill] sm:$0xff] }
 0x247   : > { %v6825_v15 = vpop.xlane.xlu1 %1240  ;;  %3109 = vperm.xlu1 %4835, %v6813_v48   ;;  %v6828_v20 = vpop.xlane.xlu0 %1237  ;;  %v6845_v48 = vmul.f32 0.020408163, %v9700_v39  ;;  %9702 = vst [vmem:[#allocation166_spill] sm:$0xff] %v6847_v23  ;;  %v1795_v39 = vmul.f32 %v6832_v60, %v6832_v60  ;;  %v1933_v4 = vsub.f32 %v1675_v35, %v1804_v62  ;;  %v1668_v52 = vmul.f32 0.020408163, %v6387_v49  ;;  %v2181_v35 = vld [vmem:[%s6592_s21 + $0xd8] sm:$0xff] }
 0x248   : > { %3164 = vperm.xlu0 %4834, %v6822_v56   ;;  %9703 = vst [vmem:[#allocation167_spill] sm:$0xff] %v6863_v14  ;;  %v4879_v32 = vpop.eup %4878  ;;  %v9704_v56 = vld [vmem:[#allocation61_spill] sm:$0xff]  ;;  %v6872_v12 = vmul.f32 %v4877_v17, %v2179_v53  ;;  %4890 = vrsqrt.f32 %v2305_v40  ;;  %v2307_v3 = vadd.f32 1e-05, %v2049_v25  ;;  %v2051_v42 = vmax.f32 %v1922_v58, 0.0  ;;  %v9707_v62 = vld [vmem:[#allocation54_spill] sm:$0xff] }
 0x249   : > { %9701 = vst [vmem:[#allocation59_spill] sm:$0xff] %v6845_v48  ;;  %v1806_v13 = vmul.f32 %v6845_v48, %v6845_v48  ;;  %v6869_v60 = vmul.f32 0.020408163, %v9704_v56  ;;  %v1924_v57 = vsub.f32 %v1666_v19, %v1795_v39  ;;  %v6881_v56 = vmul.f32 0.020408163, %v9707_v62  ;;  %v9709_v48 = vld [vmem:[#allocation56_spill] sm:$0xff] }
 0x24a   : > { %9706 = vst [vmem:[#allocation168_spill] sm:$0xff] %v6872_v12  ;;  %v6884_v49 = vmul.f32 0.020408163, %v9709_v48  ;;  %v6887_v40 = vmul.f32 %v4879_v32, %v2170_v6  ;;  %4892 = vrsqrt.f32 %v2316_v46  ;;  %v2318_v58 = vadd.f32 1e-05, %v2060_v1  ;;  %v2172_v39 = vld [vmem:[%s6592_s21 + $0x90] sm:$0xff] }
 0x24b   : > { %v6851_v34 = vpop.xlane.xlu1 %1246  ;;  %3119 = vperm.xlu1 %4835, %v6838_v0   ;;  %v6854_v37 = vpop.xlane.xlu0 %1243  ;;  %9705 = vst [vmem:[#allocation61_spill] sm:$0xff] %v6869_v60  ;;  %9708 = vst [vmem:[#allocation54_spill] sm:$0xff] %v6881_v56  ;;  %v1935_v17 = vsub.f32 %v1677_v18, %v1806_v13  ;;  %v2062_v19 = vmax.f32 %v1933_v4, 0.0  ;;  %v1679_v53 = vmul.f32 0.020408163, %v6437_v29  ;;  %v1808_v62 = vmul.f32 %v6869_v60, %v6869_v60  ;;  %v9712_v0 = vld [vmem:[#allocation63_spill] sm:$0xff] }
 0x24c   : > { %3174 = vperm.xlu0 %4834, %v6847_v23   ;;  %v4881_v23 = vpop.eup %4880  ;;  %9710 = vst [vmem:[#allocation56_spill] sm:$0xff] %v6884_v49  ;;  %9711 = vst [vmem:[#allocation169_spill] sm:$0xff] %v6887_v40  ;;  %v6894_v48 = vmul.f32 0.020408163, %v9712_v0  ;;  %v1926_v13 = vsub.f32 %v1668_v52, %v1797_v59  ;;  %4894 = vrsqrt.f32 %v2307_v3  ;;  %v2309_v32 = vadd.f32 1e-05, %v2051_v42 }
 0x24d   : > { %v4883_v25 = vpop.eup %4882  ;;  %v6896_v18 = vmul.f32 %v4881_v23, %v2181_v35  ;;  %v2053_v6 = vmax.f32 %v1924_v57, 0.0  ;;  %v1670_v46 = vmul.f32 0.020408163, %v6395_v24  ;;  %v2183_v4 = vld [vmem:[%s6592_s21 + $0xe8] sm:$0xff]  ;;  %v1799_v0 = vmul.f32 %v6881_v56, %v6881_v56  ;;  %v2174_v57 = vld [vmem:[%s6592_s21 + $0xa0] sm:$0xff] }
 0x24e   : > { %9713 = vst [vmem:[#allocation63_spill] sm:$0xff] %v6894_v48  ;;  %v6909_v52 = vmul.f32 %v6884_v49, %v6884_v49  ;;  %v2064_v23 = vmax.f32 %v1935_v17, 0.0  ;;  %v6912_v59 = vmul.f32 %v4883_v25, %v2172_v39  ;;  %4896 = vrsqrt.f32 %v2318_v58 }
 0x24f   : > { %v6874_v26 = vpop.xlane.xlu1 %1252  ;;  %3129 = vperm.xlu1 %4835, %v6863_v14   ;;  %v6877_v43 = vpop.xlane.xlu0 %1249  ;;  %9714 = vst [vmem:[#allocation170_spill] sm:$0xff] %v6896_v18  ;;  %v2320_v24 = vadd.f32 1e-05, %v2062_v19  ;;  %v1937_v3 = vsub.f32 %v1679_v53, %v1808_v62  ;;  %v1681_v42 = vmul.f32 0.020408163, %v6445_v2  ;;  %v1810_v35 = vmul.f32 %v6894_v48, %v6894_v48  ;;  %v2185_v53 = vld [vmem:[%s6592_s21 + $0xf8] sm:$0xff] }
 0x250   : > { %3184 = vperm.xlu0 %4834, %v6872_v12   ;;  %v4885_v14 = vpop.eup %4884  ;;  %9715 = vst [vmem:[#allocation171_spill] sm:$0xff] %v6912_v59  ;;  %v9716_v12 = vld [vmem:[#allocation65_spill] sm:$0xff]  ;;  %v2055_v49 = vmax.f32 %v1926_v13, 0.0  ;;  %4898 = vrsqrt.f32 %v2309_v32  ;;  %v2311_v25 = vadd.f32 1e-05, %v2053_v6  ;;  %v1928_v39 = vsub.f32 %v1670_v46, %v1799_v0  ;;  %v9720_v62 = vld [vmem:[#allocation58_spill] sm:$0xff] }
 0x251   : > { %v4887_v60 = vpop.eup %4886  ;;  %v6919_v56 = vmul.f32 0.020408163, %v9716_v12  ;;  %v1672_v58 = vmul.f32 0.020408163, %v6403_v41  ;;  %v6931_v12 = vmul.f32 0.020408163, %v9720_v62  ;;  %4900 = vrsqrt.f32 %v2320_v24 }
 0x252   : > { %v4889_v17 = vpop.eup %4888  ;;  %v9722_v13 = vld [vmem:[#allocation60_spill] sm:$0xff]  ;;  %v6937_v32 = vmul.f32 %v4887_v60, %v2174_v57  ;;  %v2066_v41 = vmax.f32 %v1937_v3, 0.0  ;;  %v1939_v46 = vsub.f32 %v1681_v42, %v1810_v35  ;;  %v1683_v0 = vmul.f32 0.020408163, %v6453_v21  ;;  %v2187_v57 = vld [vmem:[%s6592_s21 + $0x108] sm:$0xff] }
 0x253   : > { %v6899_v1 = vpop.xlane.xlu1 %1258  ;;  %3139 = vperm.xlu1 %4835, %v6887_v40   ;;  %v6902_v29 = vpop.xlane.xlu0 %1255  ;;  %9717 = vst [vmem:[#allocation65_spill] sm:$0xff] %v6919_v56  ;;  %v6921_v40 = vmul.f32 %v4885_v14, %v2183_v4  ;;  %9721 = vst [vmem:[#allocation58_spill] sm:$0xff] %v6931_v12  ;;  %v6934_v14 = vmul.f32 0.020408163, %v9722_v13  ;;  %v2322_v4 = vadd.f32 1e-05, %v2064_v23  ;;  %v1812_v62 = vmul.f32 %v6919_v56, %v6919_v56 }
 0x254   : > { %3194 = vperm.xlu0 %4834, %v6896_v18   ;;  %9724 = vst [vmem:[#allocation174_spill] sm:$0xff] %v6937_v32  ;;  %v4891_v6 = vpop.eup %4890  ;;  %v2176_v48 = vld [vmem:[%s6592_s21 + $0xb0] sm:$0xff]  ;;  %v9725_v18 = vld [vmem:[#allocation67_spill] sm:$0xff]  ;;  %v2313_v13 = vadd.f32 1e-05, %v2055_v49  ;;  %v6946_v23 = vmul.f32 %v4889_v17, %v2185_v53  ;;  %4902 = vrsqrt.f32 %v2311_v25  ;;  %v2057_v60 = vmax.f32 %v1928_v39, 0.0 }
 0x255   : > { %9718 = vst [vmem:[#allocation172_spill] sm:$0xff] %v6921_v40  ;;  %9723 = vst [vmem:[#allocation60_spill] sm:$0xff] %v6934_v14  ;;  %v1930_v24 = vsub.f32 %v1672_v58, %v6909_v52  ;;  %v1674_v3 = vmul.f32 0.020408163, %v6411_v16  ;;  %v1803_v49 = vmul.f32 %v6931_v12, %v6931_v12  ;;  %4904 = vrsqrt.f32 %v2322_v4  ;;  %v2178_v58 = vld [vmem:[%s6592_s21 + $0xc0] sm:$0xff]  ;;  %v9730_v56 = vld [vmem:[#allocation69_spill] sm:$0xff] }
 0x256   : > { %9727 = vst [vmem:[#allocation175_spill] sm:$0xff] %v6946_v23  ;;  %v6963_v52 = vmul.f32 %v4891_v6, %v2176_v48  ;;  %v2324_v35 = vadd.f32 1e-05, %v2066_v41  ;;  %v2068_v17 = vmax.f32 %v1939_v46, 0.0  ;;  %v1941_v25 = vsub.f32 %v1683_v0, %v1812_v62  ;;  %v9733_v41 = vld [vmem:[#allocation22_spill] sm:$0xff]  ;;  %v2189_v62 = vld [vmem:[%s6592_s21 + $0x118] sm:$0xff] }
 0x257   : > { %v6924_v19 = vpop.xlane.xlu1 %1264  ;;  %3149 = vperm.xlu1 %4835, %v6912_v59   ;;  %v6927_v2 = vpop.xlane.xlu0 %1261  ;;  %v6944_v59 = vmul.f32 0.020408163, %v9725_v18  ;;  %v6960_v18 = vmul.f32 %v6934_v14, %v6934_v14  ;;  %v1685_v39 = vmul.f32 0.020408163, %v6463_v30  ;;  %v6970_v12 = vmul.f32 0.020408163, %v9730_v56 }
 0x258   : > { %9719 = vst [vmem:[#allocation173_spill] sm:$0xff] %v6924_v19  ;;  %3204 = vperm.xlu0 %4834, %v6921_v40   ;;  %v4893_v40 = vpop.eup %4892  ;;  %9729 = vst [vmem:[#allocation177_spill] sm:$0xff] %v6963_v52  ;;  %4906 = vrsqrt.f32 %v2313_v13  ;;  %v2315_v48 = vadd.f32 1e-05, %v2057_v60  ;;  %v2059_v6 = vmax.f32 %v1930_v24, 0.0  ;;  %v1932_v14 = vsub.f32 %v1674_v3, %v1803_v49  ;;  %v9737_v13 = vld [vmem:[#allocation64_spill] sm:$0xff] }
 0x259   : > { %9726 = vst [vmem:[#allocation67_spill] sm:$0xff] %v6944_v59  ;;  %v4895_v16 = vpop.eup %4894  ;;  %v1814_v53 = vmul.f32 %v6944_v59, %v6944_v59  ;;  %9731 = vst [vmem:[#allocation69_spill] sm:$0xff] %v6970_v12  ;;  %v6972_v4 = vmul.f32 %v4893_v40, %v2187_v57  ;;  %v1676_v46 = vmul.f32 0.020408163, %v9733_v41  ;;  %v9735_v59 = vld [vmem:[#allocation62_spill] sm:$0xff]  ;;  %4908 = vrsqrt.f32 %v2324_v35 }
 0x25a   : > { %v6982_v56 = vmul.f32 0.020408163, %v9735_v59  ;;  %v6985_v40 = vmul.f32 0.020408163, %v9737_v13  ;;  %v9739_v57 = vld [vmem:[#allocation138_spill] sm:$0xff]  ;;  %v6989_v24 = vmul.f32 %v4895_v16, %v2178_v58  ;;  %v2070_v41 = vmax.f32 %v1941_v25, 0.0 }
 0x25b   : > { %v6950_v42 = vpop.xlane.xlu1 %1270  ;;  %3159 = vperm.xlu1 %4835, %v6937_v32   ;;  %v6953_v21 = vpop.xlane.xlu0 %1267  ;;  %9732 = vst [vmem:[#allocation178_spill] sm:$0xff] %v6972_v4  ;;  %v1687_v60 = vmul.f32 0.020408163, %v9739_v57  ;;  %v2326_v49 = vadd.f32 1e-05, %v2068_v17  ;;  %v2180_v32 = vld [vmem:[%s6592_s21 + $0xd0] sm:$0xff]  ;;  %v1816_v59 = vmul.f32 %v6970_v12, %v6970_v12  ;;  %4910 = vrsqrt.f32 %v2315_v48 }
 0x25c   : > { %9728 = vst [vmem:[#allocation176_spill] sm:$0xff] %v6950_v42  ;;  %3214 = vperm.xlu0 %4834, %v6946_v23   ;;  %v4897_v23 = vpop.eup %4896  ;;  %9736 = vst [vmem:[#allocation62_spill] sm:$0xff] %v6982_v56  ;;  %v9743_v13 = vld [vmem:[#allocation133_spill] sm:$0xff]  ;;  %v2317_v16 = vadd.f32 1e-05, %v2059_v6  ;;  %v2061_v58 = vmax.f32 %v1932_v14, 0.0  ;;  %v1934_v35 = vsub.f32 %v1676_v46, %v6960_v18 }
 0x25d   : > { %9738 = vst [vmem:[#allocation64_spill] sm:$0xff] %v6985_v40  ;;  %9740 = vst [vmem:[#allocation138_spill] sm:$0xff] %v6989_v24  ;;  %v4899_v3 = vpop.eup %4898  ;;  %v1678_v42 = vmul.f32 0.020408163, %v9743_v13  ;;  %v6998_v57 = vmul.f32 %v4897_v23, %v2189_v62  ;;  %v7011_v23 = vmul.f32 %v6985_v40, %v6985_v40  ;;  %4912 = vrsqrt.f32 %v2326_v49  ;;  %v9747_v46 = vld [vmem:[#allocation140_spill] sm:$0xff]  ;;  %v2182_v13 = vld [vmem:[%s6592_s21 + $0xe0] sm:$0xff] }
 0x25e   : > { %v7014_v14 = vmul.f32 %v4899_v3, %v2180_v32  ;;  %v2328_v48 = vadd.f32 1e-05, %v2070_v41  ;;  %v1689_v62 = vmul.f32 0.020408163, %v9747_v46  ;;  %4914 = vrsqrt.f32 %v2317_v16  ;;  %v9751_v49 = vld [vmem:[#allocation134_spill] sm:$0xff] }
 0x25f   : > { %v6975_v0 = vpop.xlane.xlu1 %1276  ;;  %3169 = vperm.xlu1 %4835, %v6963_v52   ;;  %v6978_v30 = vpop.xlane.xlu0 %1273  ;;  %v1943_v52 = vsub.f32 %v1685_v39, %v1814_v53  ;;  %9744 = vst [vmem:[#allocation133_spill] sm:$0xff] %v6998_v57  ;;  %v2191_v39 = vld [vmem:[%s6592_s21 + $0x128] sm:$0xff]  ;;  %v1945_v53 = vsub.f32 %v1687_v60, %v1816_v59  ;;  %v2319_v32 = vadd.f32 1e-05, %v2061_v58  ;;  %v2063_v3 = vmax.f32 %v1934_v35, 0.0 }
 0x260   : > { %9734 = vst [vmem:[#allocation22_spill] sm:$0xff] %v6975_v0  ;;  %3224 = vperm.xlu0 %4834, %v6972_v4   ;;  %v6995_v0 = vmul.f32 0.020408163, %v9741_v7  ;;  %v4901_v4 = vpop.eup %4900  ;;  %v1807_v7 = vmul.f32 %v6982_v56, %v6982_v56  ;;  %9746 = vst [vmem:[#allocation180_spill] sm:$0xff] %v7014_v14  ;;  %v1680_v41 = vmul.f32 0.020408163, %v9751_v49  ;;  %4916 = vrsqrt.f32 %v2328_v48 }
 0x261   : > { %v4903_v18 = vpop.eup %4902  ;;  %v2072_v6 = vmax.f32 %v1943_v52, 0.0  ;;  %v7023_v59 = vmul.f32 %v4901_v4, %v2191_v39  ;;  %v2074_v16 = vmax.f32 %v1945_v53, 0.0  ;;  %v2184_v49 = vld [vmem:[%s6592_s21 + $0xf0] sm:$0xff]  ;;  %4918 = vrsqrt.f32 %v2319_v32 }
 0x262   : > { %9742 = vst [vmem:[#allocation72_spill] sm:$0xff] %v6995_v0  ;;  %v4905_v12 = vpop.eup %4904  ;;  %v1818_v56 = vmul.f32 %v6995_v0, %v6995_v0  ;;  %v1936_v60 = vsub.f32 %v1678_v42, %v1807_v7  ;;  %v9755_v42 = vld [vmem:[#allocation68_spill] sm:$0xff]  ;;  %v7039_v58 = vmul.f32 %v4903_v18, %v2182_v13  ;;  %v1691_v7 = vmul.f32 0.020408163, %v6514_v54  ;;  %v2195_v13 = vld [vmem:[%s6592_s21 + $0x148] sm:$0xff] }
 0x263   : > { %v7001_v17 = vpop.xlane.xlu1 %1282  ;;  %3179 = vperm.xlu1 %4835, %v6989_v24   ;;  %v7004_v25 = vpop.xlane.xlu0 %1279  ;;  %v9748_v24 = vld [vmem:[#allocation74_spill] sm:$0xff]  ;;  %v7036_v4 = vmul.f32 0.020408163, %v9755_v42  ;;  %v2330_v35 = vadd.f32 1e-05, %v2072_v6  ;;  %v1938_v48 = vsub.f32 %v1680_v41, %v7011_v23  ;;  %v9761_v6 = vld [vmem:[#allocation135_spill] sm:$0xff] }
 0x264   : > { %9745 = vst [vmem:[#allocation179_spill] sm:$0xff] %v7001_v17  ;;  %3234 = vperm.xlu0 %4834, %v6998_v57   ;;  %v7021_v40 = vmul.f32 0.020408163, %v9748_v24  ;;  %9750 = vst [vmem:[#allocation74_spill] sm:$0xff] %v7023_v59  ;;  %v2193_v57 = vld [vmem:[%s6592_s21 + $0x138] sm:$0xff]  ;;  %v4907_v0 = vpop.eup %4906  ;;  %v9753_v17 = vld [vmem:[#allocation66_spill] sm:$0xff]  ;;  %v1947_v39 = vsub.f32 %v1689_v62, %v1818_v56 }
 0x265   : > { %v7033_v24 = vmul.f32 0.020408163, %v9753_v17  ;;  %9756 = vst [vmem:[#allocation68_spill] sm:$0xff] %v7036_v4  ;;  %9757 = vst [vmem:[#allocation181_spill] sm:$0xff] %v7039_v58  ;;  %v9758_v17 = vld [vmem:[#allocation76_spill] sm:$0xff]  ;;  %v2065_v42 = vmax.f32 %v1936_v60, 0.0  ;;  %v7048_v19 = vmul.f32 %v4905_v12, %v2193_v57  ;;  %v4909_v53 = vpop.eup %4908  ;;  %v7062_v12 = vmul.f32 %v7036_v4, %v7036_v4 }
 0x266   : > { %9749 = vst [vmem:[#allocation140_spill] sm:$0xff] %v7021_v40  ;;  %v2321_v18 = vadd.f32 1e-05, %v2063_v3  ;;  %v1682_v56 = vmul.f32 0.020408163, %v9761_v6  ;;  %v7065_v23 = vmul.f32 %v4907_v0, %v2184_v49  ;;  %v4911_v32 = vpop.eup %4910  ;;  %4920 = vrsqrt.f32 %v2330_v35  ;;  %v2186_v6 = vld [vmem:[%s6592_s21 + $0x100] sm:$0xff] }
 0x267   : > { %v7026_v52 = vpop.xlane.xlu1 %1288  ;;  %3189 = vperm.xlu1 %4835, %v7014_v14   ;;  %v7029_v46 = vpop.xlane.xlu0 %1285  ;;  %9754 = vst [vmem:[#allocation66_spill] sm:$0xff] %v7033_v24  ;;  %v1820_v14 = vmul.f32 %v7021_v40, %v7021_v40  ;;  %9760 = vst [vmem:[#allocation182_spill] sm:$0xff] %v7048_v19  ;;  %v1811_v60 = vmul.f32 %v7033_v24, %v7033_v24  ;;  %v2332_v57 = vadd.f32 1e-05, %v2074_v16  ;;  %v2076_v3 = vmax.f32 %v1947_v39, 0.0  ;;  %v9766_v35 = vld [vmem:[#allocation136_spill] sm:$0xff] }
 0x268   : > { %9752 = vst [vmem:[#allocation134_spill] sm:$0xff] %v7026_v52  ;;  %3244 = vperm.xlu0 %4834, %v7023_v59   ;;  %v7046_v52 = vmul.f32 0.020408163, %v9758_v17  ;;  %9762 = vst [vmem:[#allocation135_spill] sm:$0xff] %v7065_v23  ;;  %v1693_v17 = vmul.f32 0.020408163, %v6532_v8  ;;  %v7074_v16 = vmul.f32 %v4909_v53, %v2195_v13  ;;  %4922 = vrsqrt.f32 %v2321_v18 }
 0x269   : > { %v1949_v41 = vsub.f32 %v1691_v7, %v1820_v14  ;;  %v9763_v59 = vld [vmem:[#allocation78_spill] sm:$0xff]  ;;  %v2323_v4 = vadd.f32 1e-05, %v2065_v42  ;;  %v2067_v0 = vmax.f32 %v1938_v48, 0.0  ;;  %v1940_v49 = vsub.f32 %v1682_v56, %v1811_v60  ;;  %v2197_v7 = vld [vmem:[%s6592_s21 + $0x158] sm:$0xff] }
 0x26a   : > { %9759 = vst [vmem:[#allocation76_spill] sm:$0xff] %v7046_v52  ;;  %v1822_v40 = vmul.f32 %v7046_v52, %v7046_v52  ;;  %v7072_v24 = vmul.f32 0.020408163, %v9763_v59  ;;  %9765 = vst [vmem:[#allocation183_spill] sm:$0xff] %v7074_v16  ;;  %v1684_v39 = vmul.f32 0.020408163, %v9766_v35  ;;  %4924 = vrsqrt.f32 %v2332_v57 }
 0x26b   : > { %v7052_v62 = vpop.xlane.xlu1 %1294  ;;  %3199 = vperm.xlu1 %4835, %v7039_v58   ;;  %v7055_v54 = vpop.xlane.xlu0 %1291  ;;  %v9768_v52 = vld [vmem:[#allocation70_spill] sm:$0xff]  ;;  %v9770_v42 = vld [vmem:[#allocation73_spill] sm:$0xff]  ;;  %v7090_v18 = vmul.f32 %v4911_v32, %v2186_v6  ;;  %v2334_v56 = vadd.f32 1e-05, %v2076_v3  ;;  %v2078_v13 = vmax.f32 %v1949_v41, 0.0  ;;  %v9773_v58 = vld [vmem:[#allocation80_spill] sm:$0xff]  ;;  %4926 = vrsqrt.f32 %v2323_v4 }
 0x26c   : > { %3254 = vperm.xlu0 %4834, %v7048_v19   ;;  %9764 = vst [vmem:[#allocation78_spill] sm:$0xff] %v7072_v24  ;;  %v4913_v19 = vpop.eup %4912  ;;  %v7084_v59 = vmul.f32 0.020408163, %v9768_v52  ;;  %v7087_v53 = vmul.f32 0.020408163, %v9770_v42  ;;  %v1951_v60 = vsub.f32 %v1693_v17, %v1822_v40  ;;  %v1824_v52 = vmul.f32 %v7072_v24, %v7072_v24  ;;  %v9776_v41 = vld [vmem:[#allocation71_spill] sm:$0xff] }
 0x26d   : > { %9772 = vst [vmem:[#allocation184_spill] sm:$0xff] %v7090_v18  ;;  %v4915_v48 = vpop.eup %4914  ;;  %v1695_v35 = vmul.f32 0.020408163, %v6549_v22  ;;  %v7099_v57 = vmul.f32 %v4913_v19, %v2197_v7  ;;  %v2325_v32 = vadd.f32 1e-05, %v2067_v0  ;;  %v2069_v6 = vmax.f32 %v1940_v49, 0.0 }
 0x26e   : > { %9769 = vst [vmem:[#allocation70_spill] sm:$0xff] %v7084_v59  ;;  %9771 = vst [vmem:[#allocation73_spill] sm:$0xff] %v7087_v53  ;;  %v4917_v42 = vpop.eup %4916  ;;  %v1942_v3 = vsub.f32 %v1684_v39, %v7062_v12  ;;  %v1686_v40 = vmul.f32 0.020408163, %v9776_v41  ;;  %v2199_v24 = vld [vmem:[%s6592_s21 + $0x168] sm:$0xff]  ;;  %v1815_v4 = vmul.f32 %v7084_v59, %v7084_v59  ;;  %v1817_v19 = vmul.f32 %v7087_v53, %v7087_v53  ;;  %v2190_v41 = vld [vmem:[%s6592_s21 + $0x120] sm:$0xff] }
 0x26f   : > { %v7077_v14 = vpop.xlane.xlu1 %1300  ;;  %3209 = vperm.xlu1 %4835, %v7065_v23   ;;  %v7080_v8 = vpop.xlane.xlu0 %1297  ;;  %v2188_v23 = vld [vmem:[%s6592_s21 + $0x110] sm:$0xff]  ;;  %9775 = vst [vmem:[#allocation185_spill] sm:$0xff] %v7099_v57  ;;  %4928 = vrsqrt.f32 %v2334_v56  ;;  %v2336_v49 = vadd.f32 1e-05, %v2078_v13  ;;  %v2080_v39 = vmax.f32 %v1951_v60, 0.0  ;;  %v1953_v7 = vsub.f32 %v1695_v35, %v1824_v52  ;;  %v9779_v59 = vld [vmem:[#allocation82_spill] sm:$0xff] }
 0x270   : > { %9767 = vst [vmem:[#allocation136_spill] sm:$0xff] %v7077_v14  ;;  %3264 = vperm.xlu0 %4834, %v7074_v16   ;;  %v7097_v14 = vmul.f32 0.020408163, %v9773_v58  ;;  %v1697_v58 = vmul.f32 0.020408163, %v6565_v33  ;;  %v7115_v12 = vmul.f32 %v4915_v48, %v2188_v23  ;;  %v4919_v0 = vpop.eup %4918  ;;  %v9781_v53 = vld [vmem:[#allocation137_spill] sm:$0xff]  ;;  %v7124_v33 = vmul.f32 %v4917_v42, %v2199_v24 }
 0x271   : > { %4930 = vrsqrt.f32 %v2325_v32  ;;  %v2327_v23 = vadd.f32 1e-05, %v2069_v6  ;;  %v2071_v48 = vmax.f32 %v1942_v3, 0.0  ;;  %v1944_v56 = vsub.f32 %v1686_v40, %v1815_v4  ;;  %v2201_v35 = vld [vmem:[%s6592_s21 + $0x178] sm:$0xff]  ;;  %v9784_v52 = vld [vmem:[#allocation75_spill] sm:$0xff]  ;;  %v2192_v4 = vld [vmem:[%s6592_s21 + $0x130] sm:$0xff] }
 0x272   : > { %9774 = vst [vmem:[#allocation80_spill] sm:$0xff] %v7097_v14  ;;  %9778 = vst [vmem:[#allocation186_spill] sm:$0xff] %v7115_v12  ;;  %v1826_v16 = vmul.f32 %v7097_v14, %v7097_v14  ;;  %v9786_v14 = vld [vmem:[#allocation77_spill] sm:$0xff]  ;;  %v7139_v42 = vmul.f32 %v4919_v0, %v2190_v41  ;;  %4932 = vrsqrt.f32 %v2336_v49  ;;  %v2338_v6 = vadd.f32 1e-05, %v2080_v39  ;;  %v9792_v49 = vld [vmem:[#allocation139_spill] sm:$0xff] }
 0x273   : > { %v7103_v17 = vpop.xlane.xlu1 %1306  ;;  %3219 = vperm.xlu1 %4835, %v7090_v18   ;;  %v7106_v22 = vpop.xlane.xlu0 %1303  ;;  %v7121_v18 = vmul.f32 0.020408163, %v9779_v59  ;;  %9782 = vst [vmem:[#allocation137_spill] sm:$0xff] %v7124_v33  ;;  %v7133_v59 = vmul.f32 0.020408163, %v9784_v52  ;;  %v2082_v3 = vmax.f32 %v1953_v7, 0.0  ;;  %4934 = vrsqrt.f32 %v2327_v23 }
 0x274   : > { %9777 = vst [vmem:[#allocation71_spill] sm:$0xff] %v7103_v17  ;;  %3274 = vperm.xlu0 %4834, %v7099_v57   ;;  %v1688_v17 = vmul.f32 0.020408163, %v9781_v53  ;;  %v4921_v57 = vpop.eup %4920  ;;  %v7136_v53 = vmul.f32 0.020408163, %v9786_v14  ;;  %v1955_v24 = vsub.f32 %v1697_v58, %v1826_v16  ;;  %9788 = vst [vmem:[#allocation188_spill] sm:$0xff] %v7139_v42  ;;  %4936 = vrsqrt.f32 %v2338_v6 }
 0x275   : > { %9780 = vst [vmem:[#allocation82_spill] sm:$0xff] %v7121_v18  ;;  %9785 = vst [vmem:[#allocation75_spill] sm:$0xff] %v7133_v59  ;;  %v4923_v32 = vpop.eup %4922  ;;  %v1699_v40 = vmul.f32 0.020408163, %v6581_v31  ;;  %v1828_v52 = vmul.f32 %v7121_v18, %v7121_v18  ;;  %v7148_v58 = vmul.f32 %v4921_v57, %v2201_v35  ;;  %v2329_v0 = vadd.f32 1e-05, %v2071_v48 }
 0x276   : > { %9787 = vst [vmem:[#allocation77_spill] sm:$0xff] %v7136_v53  ;;  %v1946_v16 = vsub.f32 %v1688_v17, %v1817_v19  ;;  %v2073_v41 = vmax.f32 %v1944_v56, 0.0  ;;  %v1690_v39 = vmul.f32 0.020408163, %v9792_v49  ;;  %v7161_v57 = vmul.f32 %v7136_v53, %v7136_v53  ;;  %v2194_v35 = vld [vmem:[%s6592_s21 + $0x140] sm:$0xff]  ;;  %v9798_v6 = vld [vmem:[#allocation141_spill] sm:$0xff] }
 0x277   : > { %v7126_v13 = vpop.xlane.xlu1 %1312  ;;  %3229 = vperm.xlu1 %4835, %v7115_v12   ;;  %v7129_v60 = vpop.xlane.xlu0 %1309  ;;  %9791 = vst [vmem:[#allocation189_spill] sm:$0xff] %v7148_v58  ;;  %v2084_v17 = vmax.f32 %v1955_v24, 0.0  ;;  %v7164_v19 = vmul.f32 %v4923_v32, %v2192_v4  ;;  %v2340_v23 = vadd.f32 1e-05, %v2082_v3  ;;  %v1957_v48 = vsub.f32 %v1699_v40, %v1828_v52  ;;  %v2205_v52 = vld [vmem:[%s6592_s21 + $0x198] sm:$0xff] }
 0x278   : > { %9783 = vst [vmem:[#allocation187_spill] sm:$0xff] %v7126_v13  ;;  %3284 = vperm.xlu0 %4834, %v7124_v33   ;;  %v4925_v12 = vpop.eup %4924  ;;  %v9789_v13 = vld [vmem:[#allocation84_spill] sm:$0xff]  ;;  %v2203_v33 = vld [vmem:[%s6592_s21 + $0x188] sm:$0xff]  ;;  %v1701_v56 = vmul.f32 0.020408163, %v6607_v27  ;;  %v2075_v53 = vmax.f32 %v1946_v16, 0.0  ;;  %4938 = vrsqrt.f32 %v2329_v0 }
 0x279   : > { %v7146_v14 = vmul.f32 0.020408163, %v9789_v13  ;;  %v4927_v18 = vpop.eup %4926  ;;  %v1819_v13 = vmul.f32 %v7133_v59, %v7133_v59  ;;  %9794 = vst [vmem:[#allocation190_spill] sm:$0xff] %v7164_v19  ;;  %v9795_v59 = vld [vmem:[#allocation86_spill] sm:$0xff]  ;;  %v2331_v32 = vadd.f32 1e-05, %v2073_v41  ;;  %4940 = vrsqrt.f32 %v2340_v23 }
 0x27a   : > { %v4929_v24 = vpop.eup %4928  ;;  %v1692_v3 = vmul.f32 0.020408163, %v9798_v6  ;;  %v9802_v16 = vld [vmem:[#allocation81_spill] sm:$0xff]  ;;  %v7189_v0 = vmul.f32 %v4927_v18, %v2194_v35  ;;  %v1703_v6 = vmul.f32 0.020408163, %v6626_v9 }
 0x27b   : > { %9790 = vst [vmem:[#allocation84_spill] sm:$0xff] %v7146_v14  ;;  %v7151_v7 = vpop.xlane.xlu1 %1318  ;;  %3239 = vperm.xlu1 %4835, %v7139_v42   ;;  %v7154_v31 = vpop.xlane.xlu0 %1315  ;;  %v1830_v49 = vmul.f32 %v7146_v14, %v7146_v14  ;;  %v7171_v42 = vmul.f32 0.020408163, %v9795_v59  ;;  %v1948_v4 = vsub.f32 %v1690_v39, %v1819_v13  ;;  %v9800_v14 = vld [vmem:[#allocation79_spill] sm:$0xff]  ;;  %v2086_v39 = vmax.f32 %v1957_v48, 0.0  ;;  %v9808_v48 = vld [vmem:[#allocation142_spill] sm:$0xff] }
 0x27c   : > { %9793 = vst [vmem:[#allocation139_spill] sm:$0xff] %v7151_v7  ;;  %3294 = vperm.xlu0 %4834, %v7148_v58   ;;  %v7173_v7 = vmul.f32 %v4925_v12, %v2203_v33  ;;  %v7183_v59 = vmul.f32 0.020408163, %v9800_v14  ;;  %v7186_v12 = vmul.f32 0.020408163, %v9802_v16  ;;  %9804 = vst [vmem:[#allocation192_spill] sm:$0xff] %v7189_v0  ;;  %v4931_v41 = vpop.eup %4930  ;;  %4942 = vrsqrt.f32 %v2331_v32 }
 0x27d   : > { %9796 = vst [vmem:[#allocation86_spill] sm:$0xff] %v7171_v42  ;;  %v2342_v33 = vadd.f32 1e-05, %v2084_v17  ;;  %v1959_v13 = vsub.f32 %v1701_v56, %v1830_v49  ;;  %v2196_v58 = vld [vmem:[%s6592_s21 + $0x150] sm:$0xff]  ;;  %v1832_v14 = vmul.f32 %v7171_v42, %v7171_v42  ;;  %v2333_v16 = vadd.f32 1e-05, %v2075_v53 }
 0x27e   : > { %9797 = vst [vmem:[#allocation191_spill] sm:$0xff] %v7173_v7  ;;  %9801 = vst [vmem:[#allocation79_spill] sm:$0xff] %v7183_v59  ;;  %v7198_v17 = vmul.f32 %v4929_v24, %v2205_v52  ;;  %v2077_v18 = vmax.f32 %v1948_v4, 0.0  ;;  %v1950_v23 = vsub.f32 %v1692_v3, %v7161_v57  ;;  %v1694_v56 = vmul.f32 0.020408163, %v9808_v48  ;;  %v2207_v49 = vld [vmem:[%s6592_s21 + $0x1a8] sm:$0xff] }
 0x27f   : > { %v7176_v40 = vpop.xlane.xlu1 %1324  ;;  %3249 = vperm.xlu1 %4835, %v7164_v19   ;;  %v7179_v27 = vpop.xlane.xlu0 %1321  ;;  %9803 = vst [vmem:[#allocation81_spill] sm:$0xff] %v7186_v12  ;;  %v9805_v19 = vld [vmem:[#allocation88_spill] sm:$0xff]  ;;  %v1823_v53 = vmul.f32 %v7183_v59, %v7183_v59  ;;  %4944 = vrsqrt.f32 %v2342_v33  ;;  %v7215_v57 = vmul.f32 %v4931_v41, %v2196_v58  ;;  %v2344_v32 = vadd.f32 1e-05, %v2086_v39  ;;  %v2198_v48 = vld [vmem:[%s6592_s21 + $0x160] sm:$0xff]  ;;  %v9814_v39 = vld [vmem:[#allocation143_spill] sm:$0xff] }
 0x280   : > { %9799 = vst [vmem:[#allocation141_spill] sm:$0xff] %v7176_v40  ;;  %3304 = vperm.xlu0 %4834, %v7173_v7   ;;  %v7196_v40 = vmul.f32 0.020408163, %v9805_v19  ;;  %9807 = vst [vmem:[#allocation193_spill] sm:$0xff] %v7198_v17  ;;  %v4933_v7 = vpop.eup %4932  ;;  %v7212_v19 = vmul.f32 %v7186_v12, %v7186_v12  ;;  %v2088_v4 = vmax.f32 %v1959_v13, 0.0  ;;  %v1961_v3 = vsub.f32 %v1703_v6, %v1832_v14  ;;  %v9811_v59 = vld [vmem:[#allocation90_spill] sm:$0xff] }
 0x281   : > { %9810 = vst [vmem:[#allocation194_spill] sm:$0xff] %v7215_v57  ;;  %v4935_v24 = vpop.eup %4934  ;;  %v1705_v52 = vmul.f32 0.020408163, %v6650_v11  ;;  %4946 = vrsqrt.f32 %v2333_v16  ;;  %v7224_v33 = vmul.f32 %v4933_v7, %v2207_v49  ;;  %v2335_v58 = vadd.f32 1e-05, %v2077_v18  ;;  %v2209_v14 = vld [vmem:[%s6592_s21 + $0x1b8] sm:$0xff] }
 0x282   : > { %9806 = vst [vmem:[#allocation88_spill] sm:$0xff] %v7196_v40  ;;  %v1834_v42 = vmul.f32 %v7196_v40, %v7196_v40  ;;  %v2079_v41 = vmax.f32 %v1950_v23, 0.0  ;;  %v1952_v12 = vsub.f32 %v1694_v56, %v1823_v53  ;;  %v1696_v13 = vmul.f32 0.020408163, %v9814_v39  ;;  %v9817_v40 = vld [vmem:[#allocation83_spill] sm:$0xff]  ;;  %v9819_v16 = vld [vmem:[#allocation85_spill] sm:$0xff] }
 0x283   : > { %v7202_v35 = vpop.xlane.xlu1 %1330  ;;  %3259 = vperm.xlu1 %4835, %v7189_v0   ;;  %v7205_v9 = vpop.xlane.xlu0 %1327  ;;  %v7222_v0 = vmul.f32 0.020408163, %v9811_v59  ;;  %9813 = vst [vmem:[#allocation195_spill] sm:$0xff] %v7224_v33  ;;  %v7234_v59 = vmul.f32 0.020408163, %v9817_v40  ;;  %v7241_v23 = vmul.f32 %v4935_v24, %v2198_v48  ;;  %4948 = vrsqrt.f32 %v2344_v32 }
 0x284   : > { %9809 = vst [vmem:[#allocation142_spill] sm:$0xff] %v7202_v35  ;;  %3314 = vperm.xlu0 %4834, %v7198_v17   ;;  %v4937_v17 = vpop.eup %4936  ;;  %v7237_v7 = vmul.f32 0.020408163, %v9819_v16  ;;  %v1707_v18 = vmul.f32 0.020408163, %v6675_v44  ;;  %v2090_v53 = vmax.f32 %v1961_v3, 0.0  ;;  %v1963_v39 = vsub.f32 %v1705_v52, %v1834_v42 }
 0x285   : > { %9812 = vst [vmem:[#allocation90_spill] sm:$0xff] %v7222_v0  ;;  %9818 = vst [vmem:[#allocation83_spill] sm:$0xff] %v7234_v59  ;;  %v4939_v56 = vpop.eup %4938  ;;  %v2346_v49 = vadd.f32 1e-05, %v2088_v4  ;;  %v1836_v40 = vmul.f32 %v7222_v0, %v7222_v0  ;;  %v9824_v16 = vld [vmem:[#allocation144_spill] sm:$0xff]  ;;  %v7250_v44 = vmul.f32 %v4937_v17, %v2209_v14  ;;  %4950 = vrsqrt.f32 %v2335_v58  ;;  %v2211_v3 = vld [vmem:[%s6592_s21 + $0x1c8] sm:$0xff] }
 0x286   : > { %9820 = vst [vmem:[#allocation85_spill] sm:$0xff] %v7237_v7  ;;  %9821 = vst [vmem:[#allocation197_spill] sm:$0xff] %v7241_v23  ;;  %v2337_v24 = vadd.f32 1e-05, %v2079_v41  ;;  %v2081_v48 = vmax.f32 %v1952_v12, 0.0  ;;  %v1954_v32 = vsub.f32 %v1696_v13, %v7212_v19  ;;  %v1827_v52 = vmul.f32 %v7234_v59, %v7234_v59  ;;  %v2202_v14 = vld [vmem:[%s6592_s21 + $0x180] sm:$0xff] }
 0x287   : > { %v7227_v6 = vpop.xlane.xlu1 %1336  ;;  %3269 = vperm.xlu1 %4835, %v7215_v57   ;;  %v7230_v11 = vpop.xlane.xlu0 %1333  ;;  %v2200_v57 = vld [vmem:[%s6592_s21 + $0x170] sm:$0xff]  ;;  %9825 = vst [vmem:[#allocation144_spill] sm:$0xff] %v7250_v44  ;;  %v7263_v17 = vmul.f32 %v7237_v7, %v7237_v7  ;;  %v1965_v58 = vsub.f32 %v1707_v18, %v1836_v40  ;;  %4952 = vrsqrt.f32 %v2346_v49  ;;  %v2348_v41 = vadd.f32 1e-05, %v2090_v53  ;;  %v9828_v59 = vld [vmem:[#allocation94_spill] sm:$0xff]  ;;  %v9831_v49 = vld [vmem:[#allocation145_spill] sm:$0xff] }
 0x288   : > { %9815 = vst [vmem:[#allocation143_spill] sm:$0xff] %v7227_v6  ;;  %9816 = vst [vmem:[#allocation196_spill] sm:$0xff] %v7230_v11  ;;  %3324 = vperm.xlu0 %4834, %v7224_v33   ;;  %v9822_v6 = vld [vmem:[#allocation92_spill] sm:$0xff]  ;;  %v1698_v11 = vmul.f32 0.020408163, %v9824_v16  ;;  %v4941_v33 = vpop.eup %4940  ;;  %v7266_v12 = vmul.f32 %v4939_v56, %v2200_v57  ;;  %v2092_v13 = vmax.f32 %v1963_v39, 0.0  ;;  %4954 = vrsqrt.f32 %v2337_v24 }
 0x289   : > { %v7247_v35 = vmul.f32 0.020408163, %v9822_v6  ;;  %v4943_v19 = vpop.eup %4942  ;;  %v1709_v6 = vmul.f32 0.020408163, %v6701_v61  ;;  %v7273_v7 = vmul.f32 0.020408163, %v9828_v59  ;;  %v7275_v40 = vmul.f32 %v4941_v33, %v2211_v3 }
 0x28a   : > { %9827 = vst [vmem:[#allocation199_spill] sm:$0xff] %v7266_v12  ;;  %v4945_v16 = vpop.eup %4944  ;;  %v1956_v18 = vsub.f32 %v1698_v11, %v1827_v52  ;;  %v2339_v57 = vadd.f32 1e-05, %v2081_v48  ;;  %v2083_v56 = vmax.f32 %v1954_v32, 0.0  ;;  %v1700_v53 = vmul.f32 0.020408163, %v9831_v49 }
 0x28b   : > { %9823 = vst [vmem:[#allocation92_spill] sm:$0xff] %v7247_v35  ;;  %v7253_v4 = vpop.xlane.xlu1 %1342  ;;  %3279 = vperm.xlu1 %4835, %v7241_v23   ;;  %v7256_v42 = vpop.xlane.xlu0 %1339  ;;  %v1838_v0 = vmul.f32 %v7247_v35, %v7247_v35  ;;  %9829 = vst [vmem:[#allocation94_spill] sm:$0xff] %v7273_v7  ;;  %v9833_v23 = vld [vmem:[#allocation87_spill] sm:$0xff]  ;;  %v9835_v11 = vld [vmem:[#allocation89_spill] sm:$0xff]  ;;  %v2094_v24 = vmax.f32 %v1965_v58, 0.0  ;;  %v7291_v48 = vmul.f32 %v4943_v19, %v2202_v14  ;;  %4956 = vrsqrt.f32 %v2348_v41 }
 0x28c   : > { %9826 = vst [vmem:[#allocation198_spill] sm:$0xff] %v7253_v4  ;;  %3334 = vperm.xlu0 %4834, %v7250_v44   ;;  %9830 = vst [vmem:[#allocation200_spill] sm:$0xff] %v7275_v40  ;;  %v2213_v44 = vld [vmem:[%s6592_s21 + $0x1d8] sm:$0xff]  ;;  %v4947_v35 = vpop.eup %4946  ;;  %v7285_v59 = vmul.f32 0.020408163, %v9833_v23  ;;  %v2204_v49 = vld [vmem:[%s6592_s21 + $0x190] sm:$0xff]  ;;  %4958 = vrsqrt.f32 %v2339_v57  ;;  %v1958_v41 = vsub.f32 %v1700_v53, %v7263_v17 }
 0x28d   : > { %v7288_v33 = vmul.f32 0.020408163, %v9835_v11  ;;  %9837 = vst [vmem:[#allocation201_spill] sm:$0xff] %v7291_v48  ;;  %v2350_v32 = vadd.f32 1e-05, %v2092_v13  ;;  %v1967_v3 = vsub.f32 %v1709_v6, %v1838_v0  ;;  %v9838_v23 = vld [vmem:[#allocation96_spill] sm:$0xff]  ;;  %v7300_v4 = vmul.f32 %v4945_v16, %v2213_v44  ;;  %v4949_v58 = vpop.eup %4948 }
 0x28e   : > { %9834 = vst [vmem:[#allocation87_spill] sm:$0xff] %v7285_v59  ;;  %v1711_v52 = vmul.f32 0.020408163, %v6726_v36  ;;  %v2085_v11 = vmax.f32 %v1956_v18, 0.0  ;;  %v2341_v19 = vadd.f32 1e-05, %v2083_v56  ;;  %v1831_v18 = vmul.f32 %v7285_v59, %v7285_v59 }
 0x28f   : > { %v7278_v39 = vpop.xlane.xlu1 %1348  ;;  %3289 = vperm.xlu1 %4835, %v7266_v12   ;;  %v7281_v61 = vpop.xlane.xlu0 %1345  ;;  %9836 = vst [vmem:[#allocation89_spill] sm:$0xff] %v7288_v33  ;;  %v1840_v12 = vmul.f32 %v7273_v7, %v7273_v7  ;;  %9840 = vst [vmem:[#allocation202_spill] sm:$0xff] %v7300_v4  ;;  %v9841_v13 = vld [vmem:[#allocation146_spill] sm:$0xff]  ;;  %v2215_v14 = vld [vmem:[%s6592_s21 + $0x1e8] sm:$0xff]  ;;  %v7314_v44 = vmul.f32 %v7288_v33, %v7288_v33  ;;  %v2352_v16 = vadd.f32 1e-05, %v2094_v24  ;;  %4960 = vrsqrt.f32 %v2350_v32 }
 0x290   : > { %9832 = vst [vmem:[#allocation145_spill] sm:$0xff] %v7278_v39  ;;  %3344 = vperm.xlu0 %4834, %v7275_v40   ;;  %v7298_v39 = vmul.f32 0.020408163, %v9838_v23  ;;  %v1702_v0 = vmul.f32 0.020408163, %v9841_v13  ;;  %v7317_v17 = vmul.f32 %v4947_v35, %v2204_v49  ;;  %v4951_v57 = vpop.eup %4950  ;;  %v2096_v56 = vmax.f32 %v1967_v3, 0.0 }
 0x291   : > { %v1969_v53 = vsub.f32 %v1711_v52, %v1840_v12  ;;  %v1713_v23 = vmul.f32 0.020408163, %v6752_v51  ;;  %v2206_v13 = vld [vmem:[%s6592_s21 + $0x1a0] sm:$0xff]  ;;  %v2343_v33 = vadd.f32 1e-05, %v2085_v11  ;;  %v7326_v24 = vmul.f32 %v4949_v58, %v2215_v14  ;;  %v9846_v32 = vld [vmem:[#allocation148_spill] sm:$0xff] }
 0x292   : > { %9839 = vst [vmem:[#allocation96_spill] sm:$0xff] %v7298_v39  ;;  %9842 = vst [vmem:[#allocation146_spill] sm:$0xff] %v7317_v17  ;;  %v1842_v7 = vmul.f32 %v7298_v39, %v7298_v39  ;;  %v9843_v40 = vld [vmem:[#allocation98_spill] sm:$0xff]  ;;  %4962 = vrsqrt.f32 %v2341_v19  ;;  %v2087_v35 = vmax.f32 %v1958_v41, 0.0  ;;  %v1960_v49 = vsub.f32 %v1702_v0, %v1831_v18  ;;  %v2217_v52 = vld [vmem:[%s6592_s21 + $0x1f8] sm:$0xff] }
 0x293   : > { %v7304_v6 = vpop.xlane.xlu1 %1354  ;;  %3299 = vperm.xlu1 %4835, %v7291_v48   ;;  %v7307_v36 = vpop.xlane.xlu0 %1351  ;;  %v7324_v59 = vmul.f32 0.020408163, %v9843_v40  ;;  %9845 = vst [vmem:[#allocation203_spill] sm:$0xff] %v7326_v24  ;;  %v1704_v3 = vmul.f32 0.020408163, %v9846_v32  ;;  %v9848_v39 = vld [vmem:[#allocation91_spill] sm:$0xff]  ;;  %4964 = vrsqrt.f32 %v2352_v16  ;;  %v7342_v19 = vmul.f32 %v4951_v57, %v2206_v13 }
 0x294   : > { %3354 = vperm.xlu0 %4834, %v7300_v4   ;;  %v4953_v4 = vpop.eup %4952  ;;  %v7336_v40 = vmul.f32 0.020408163, %v9848_v39  ;;  %v9850_v11 = vld [vmem:[#allocation93_spill] sm:$0xff]  ;;  %v2354_v0 = vadd.f32 1e-05, %v2096_v56  ;;  %v2098_v14 = vmax.f32 %v1969_v53, 0.0  ;;  %v1971_v18 = vsub.f32 %v1713_v23, %v1842_v7 }
 0x295   : > { %9844 = vst [vmem:[#allocation98_spill] sm:$0xff] %v7324_v59  ;;  %v7339_v58 = vmul.f32 0.020408163, %v9850_v11  ;;  %v4955_v41 = vpop.eup %4954  ;;  %v1715_v32 = vmul.f32 0.020408163, %v6777_v28  ;;  %v1844_v39 = vmul.f32 %v7324_v59, %v7324_v59  ;;  %v9852_v48 = vld [vmem:[#allocation100_spill] sm:$0xff]  ;;  %4966 = vrsqrt.f32 %v2343_v33 }
 0x296   : > { %9849 = vst [vmem:[#allocation91_spill] sm:$0xff] %v7336_v40  ;;  %v7351_v16 = vmul.f32 %v4953_v4, %v2217_v52  ;;  %v4957_v11 = vpop.eup %4956  ;;  %v2345_v57 = vadd.f32 1e-05, %v2087_v35  ;;  %v2089_v13 = vmax.f32 %v1960_v49, 0.0  ;;  %v1962_v56 = vsub.f32 %v1704_v3, %v7314_v44  ;;  %v2219_v23 = vld [vmem:[%s6592_s21 + $0x208] sm:$0xff]  ;;  %v2210_v52 = vld [vmem:[%s6592_s21 + $0x1c0] sm:$0xff] }
 0x297   : > { %v7329_v12 = vpop.xlane.xlu1 %1360  ;;  %3309 = vperm.xlu1 %4835, %v7317_v17   ;;  %v7332_v51 = vpop.xlane.xlu0 %1357  ;;  %9851 = vst [vmem:[#allocation93_spill] sm:$0xff] %v7339_v58  ;;  %v2208_v17 = vld [vmem:[%s6592_s21 + $0x1b0] sm:$0xff]  ;;  %v1706_v7 = vmul.f32 0.020408163, %v6647_v38  ;;  %v1835_v33 = vmul.f32 %v7336_v40, %v7336_v40  ;;  %v1837_v4 = vmul.f32 %v7339_v58, %v7339_v58  ;;  %4968 = vrsqrt.f32 %v2354_v0 }
 0x298   : > { %9847 = vst [vmem:[#allocation148_spill] sm:$0xff] %v7329_v12  ;;  %3364 = vperm.xlu0 %4834, %v7326_v24   ;;  %v7349_v12 = vmul.f32 0.020408163, %v9852_v48  ;;  %9854 = vst [vmem:[#allocation204_spill] sm:$0xff] %v7351_v16  ;;  %v1717_v48 = vmul.f32 0.020408163, %v6803_v45  ;;  %v7367_v44 = vmul.f32 %v4955_v41, %v2208_v17  ;;  %v4959_v38 = vpop.eup %4958  ;;  %v1973_v3 = vsub.f32 %v1715_v32, %v1844_v39 }
 0x299   : > { %v2356_v35 = vadd.f32 1e-05, %v2098_v14  ;;  %v2100_v49 = vmax.f32 %v1971_v18, 0.0  ;;  %v9856_v24 = vld [vmem:[#allocation102_spill] sm:$0xff]  ;;  %v1708_v58 = vmul.f32 0.020408163, %v6672_v63  ;;  %v7376_v45 = vmul.f32 %v4957_v11, %v2219_v23 }
 0x29a   : > { %9853 = vst [vmem:[#allocation100_spill] sm:$0xff] %v7349_v12  ;;  %9855 = vst [vmem:[#allocation205_spill] sm:$0xff] %v7367_v44  ;;  %v1846_v59 = vmul.f32 %v7349_v12, %v7349_v12  ;;  %v7373_v40 = vmul.f32 0.020408163, %v9856_v24  ;;  %4970 = vrsqrt.f32 %v2345_v57  ;;  %v2347_v17 = vadd.f32 1e-05, %v2089_v13 }
 0x29b   : > { %v7355_v53 = vpop.xlane.xlu1 %1366  ;;  %3319 = vperm.xlu1 %4835, %v7342_v19   ;;  %v7358_v28 = vpop.xlane.xlu0 %1363  ;;  %9858 = vst [vmem:[#allocation206_spill] sm:$0xff] %v7376_v45  ;;  %v2091_v41 = vmax.f32 %v1962_v56, 0.0  ;;  %v1964_v0 = vsub.f32 %v1706_v7, %v1835_v33  ;;  %v2221_v18 = vld [vmem:[%s6592_s21 + $0x218] sm:$0xff]  ;;  %v9859_v32 = vld [vmem:[#allocation95_spill] sm:$0xff]  ;;  %v7389_v11 = vmul.f32 %v4959_v38, %v2210_v52  ;;  %4972 = vrsqrt.f32 %v2356_v35  ;;  %v2212_v33 = vld [vmem:[%s6592_s21 + $0x1d0] sm:$0xff] }
 0x29c   : > { %3374 = vperm.xlu0 %4834, %v7351_v16   ;;  %9857 = vst [vmem:[#allocation102_spill] sm:$0xff] %v7373_v40  ;;  %v4961_v16 = vpop.eup %4960  ;;  %v7383_v39 = vmul.f32 0.020408163, %v9859_v32  ;;  %v9861_v24 = vld [vmem:[#allocation97_spill] sm:$0xff]  ;;  %v1975_v63 = vsub.f32 %v1717_v48, %v1846_v59  ;;  %v2358_v13 = vadd.f32 1e-05, %v2100_v49  ;;  %v1966_v48 = vsub.f32 %v1708_v58, %v1837_v4 }
 0x29d   : > { %v7386_v12 = vmul.f32 0.020408163, %v9861_v24  ;;  %9863 = vst [vmem:[#allocation207_spill] sm:$0xff] %v7389_v11  ;;  %v4963_v57 = vpop.eup %4962  ;;  %v2102_v56 = vmax.f32 %v1973_v3, 0.0  ;;  %v1719_v7 = vmul.f32 0.020408163, %v6828_v20  ;;  %v1848_v24 = vmul.f32 %v7373_v40, %v7373_v40 }
 0x29e   : > { %9860 = vst [vmem:[#allocation95_spill] sm:$0xff] %v7383_v39  ;;  %v4965_v32 = vpop.eup %4964  ;;  %v7400_v38 = vmul.f32 %v4961_v16, %v2221_v18  ;;  %4974 = vrsqrt.f32 %v2347_v17  ;;  %v2349_v35 = vadd.f32 1e-05, %v2091_v41  ;;  %v2093_v49 = vmax.f32 %v1964_v0, 0.0  ;;  %v2223_v52 = vld [vmem:[%s6592_s21 + $0x228] sm:$0xff]  ;;  %v2214_v41 = vld [vmem:[%s6592_s21 + $0x1e0] sm:$0xff] }
 0x29f   : > { %v7378_v14 = vpop.xlane.xlu1 %1372  ;;  %3329 = vperm.xlu1 %4835, %v7367_v44   ;;  %9862 = vst [vmem:[#allocation97_spill] sm:$0xff] %v7386_v12  ;;  %v7392_v23 = vpop.xlane.xlu0 %1369  ;;  %v9864_v44 = vld [vmem:[#allocation104_spill] sm:$0xff]  ;;  %v1710_v3 = vmul.f32 0.020408163, %v6698_v50  ;;  %v1839_v40 = vmul.f32 %v7383_v39, %v7383_v39  ;;  %v7411_v58 = vmul.f32 %v7386_v12, %v7386_v12  ;;  %v2104_v16 = vmax.f32 %v1975_v63, 0.0  ;;  %v9867_v18 = vld [vmem:[#allocation106_spill] sm:$0xff] }
 0x2a0   : > { %3384 = vperm.xlu0 %4834, %v7376_v45   ;;  %v7398_v59 = vmul.f32 0.020408163, %v9864_v44  ;;  %9866 = vst [vmem:[#allocation208_spill] sm:$0xff] %v7400_v38  ;;  %v4967_v45 = vpop.eup %4966  ;;  %v7414_v4 = vmul.f32 %v4963_v57, %v2212_v33  ;;  %4976 = vrsqrt.f32 %v2358_v13  ;;  %v2360_v50 = vadd.f32 1e-05, %v2102_v56 }
 0x2a1   : > { %v1977_v44 = vsub.f32 %v1719_v7, %v1848_v24  ;;  %v1721_v17 = vmul.f32 0.020408163, %v6854_v37  ;;  %v7421_v39 = vmul.f32 0.020408163, %v9867_v18  ;;  %v2095_v12 = vmax.f32 %v1966_v48, 0.0  ;;  %v4969_v63 = vpop.eup %4968  ;;  %v2225_v7 = vld [vmem:[%s6592_s21 + $0x238] sm:$0xff] }
 0x2a2   : > { %9865 = vst [vmem:[#allocation104_spill] sm:$0xff] %v7398_v59  ;;  %v1850_v0 = vmul.f32 %v7398_v59, %v7398_v59  ;;  %4978 = vrsqrt.f32 %v2349_v35  ;;  %v2351_v57 = vadd.f32 1e-05, %v2093_v49  ;;  %v1968_v33 = vsub.f32 %v1710_v3, %v1839_v40  ;;  %v9871_v24 = vld [vmem:[#allocation99_spill] sm:$0xff]  ;;  %v9873_v48 = vld [vmem:[#allocation101_spill] sm:$0xff]  ;;  %v2216_v59 = vld [vmem:[%s6592_s21 + $0x1f0] sm:$0xff] }
 0x2a3   : > { %v7403_v20 = vpop.xlane.xlu1 %1378  ;;  %3339 = vperm.xlu1 %4835, %v7389_v11   ;;  %9868 = vst [vmem:[#allocation106_spill] sm:$0xff] %v7421_v39  ;;  %v7423_v11 = vmul.f32 %v4965_v32, %v2223_v52  ;;  %v1712_v13 = vmul.f32 0.020408163, %v6723_v10  ;;  %v7426_v56 = vpop.xlane.xlu0 %1375  ;;  %v7433_v18 = vmul.f32 0.020408163, %v9871_v24  ;;  %v7439_v40 = vmul.f32 %v4967_v45, %v2214_v41  ;;  %v2227_v41 = vld [vmem:[%s6592_s21 + $0x248] sm:$0xff] }
 0x2a4   : > { %3394 = vperm.xlu0 %4834, %v7400_v38   ;;  %v7436_v32 = vmul.f32 0.020408163, %v9873_v48  ;;  %v2362_v52 = vadd.f32 1e-05, %v2104_v16  ;;  %v4971_v35 = vpop.eup %4970  ;;  %4980 = vrsqrt.f32 %v2360_v50  ;;  %v2106_v10 = vmax.f32 %v1977_v44, 0.0 }
 0x2a5   : > { %9869 = vst [vmem:[#allocation209_spill] sm:$0xff] %v7423_v11  ;;  %9872 = vst [vmem:[#allocation99_spill] sm:$0xff] %v7433_v18  ;;  %v1979_v49 = vsub.f32 %v1721_v17, %v1850_v0  ;;  %v1723_v3 = vmul.f32 0.020408163, %v6877_v43  ;;  %v1852_v24 = vmul.f32 %v7421_v39, %v7421_v39  ;;  %v2353_v48 = vadd.f32 1e-05, %v2095_v12 }
 0x2a6   : > { %9874 = vst [vmem:[#allocation101_spill] sm:$0xff] %v7436_v32  ;;  %v7448_v16 = vmul.f32 %v4969_v63, %v2225_v7  ;;  %4982 = vrsqrt.f32 %v2351_v57  ;;  %v2097_v45 = vmax.f32 %v1968_v33, 0.0  ;;  %v1970_v50 = vsub.f32 %v1712_v13, %v7411_v58  ;;  %v9878_v39 = vld [vmem:[#allocation110_spill] sm:$0xff] }
 0x2a7   : > { %v7428_v37 = vpop.permute.xlu1 %3064  ;;  %3349 = vperm.xlu1 %4835, %v7414_v4   ;;  %v1714_v44 = vmul.f32 0.020408163, %v6749_v55  ;;  %v1843_v12 = vmul.f32 %v7433_v18, %v7433_v18  ;;  %v7462_v0 = vmul.f32 %v7436_v32, %v7436_v32  ;;  %4984 = vrsqrt.f32 %v2362_v52 }
 0x2a8   : > { %9870 = vst [vmem:[#allocation210_spill] sm:$0xff] %v7428_v37  ;;  %3404 = vperm.xlu0 %4834, %v7423_v11   ;;  %v9875_v37 = vld [vmem:[#allocation108_spill] sm:$0xff]  ;;  %9877 = vst [vmem:[#allocation211_spill] sm:$0xff] %v7448_v16  ;;  %v4973_v11 = vpop.eup %4972  ;;  %v7465_v58 = vmul.f32 %v4971_v35, %v2216_v59  ;;  %v2364_v63 = vadd.f32 1e-05, %v2106_v10  ;;  %v2108_v57 = vmax.f32 %v1979_v49, 0.0  ;;  %v1981_v33 = vsub.f32 %v1723_v3, %v1852_v24 }
 0x2a9   : > { %v7446_v38 = vmul.f32 0.020408163, %v9875_v37  ;;  %v4975_v55 = vpop.eup %4974  ;;  %v1725_v13 = vmul.f32 0.020408163, %v6902_v29  ;;  %v2218_v37 = vld [vmem:[%s6592_s21 + $0x200] sm:$0xff]  ;;  %4986 = vrsqrt.f32 %v2353_v48  ;;  %v7474_v52 = vmul.f32 %v4973_v11, %v2227_v41  ;;  %v2229_v3 = vld [vmem:[%s6592_s21 + $0x258] sm:$0xff] }
 0x2aa   : > { %v7472_v18 = vmul.f32 0.020408163, %v9878_v39  ;;  %v2355_v59 = vadd.f32 1e-05, %v2097_v45  ;;  %v2099_v35 = vmax.f32 %v1970_v50, 0.0  ;;  %v1972_v32 = vsub.f32 %v1714_v44, %v1843_v12  ;;  %v9883_v24 = vld [vmem:[#allocation103_spill] sm:$0xff] }
 0x2ab   : > { %9876 = vst [vmem:[#allocation108_spill] sm:$0xff] %v7446_v38  ;;  %v7452_v17 = vpop.permute.xlu1 %3069  ;;  %3359 = vperm.xlu1 %4835, %v7439_v40   ;;  %v7455_v43 = vpop.permute.xlu0 %3059  ;;  %v1854_v7 = vmul.f32 %v7446_v38, %v7446_v38  ;;  %9880 = vst [vmem:[#allocation212_spill] sm:$0xff] %v7474_v52  ;;  %v1716_v10 = vmul.f32 0.020408163, %v6774_v47  ;;  %v7484_v39 = vmul.f32 0.020408163, %v9883_v24  ;;  %v7491_v50 = vmul.f32 %v4975_v55, %v2218_v37 }
 0x2ac   : > { %3414 = vperm.xlu0 %4834, %v7448_v16   ;;  %9879 = vst [vmem:[#allocation110_spill] sm:$0xff] %v7472_v18  ;;  %v4977_v16 = vpop.eup %4976  ;;  %v9885_v48 = vld [vmem:[#allocation105_spill] sm:$0xff]  ;;  %v1727_v45 = vmul.f32 0.020408163, %v6927_v2  ;;  %4988 = vrsqrt.f32 %v2364_v63  ;;  %v2366_v44 = vadd.f32 1e-05, %v2108_v57  ;;  %v1856_v24 = vmul.f32 %v7472_v18, %v7472_v18 }
 0x2ad   : > { %9884 = vst [vmem:[#allocation103_spill] sm:$0xff] %v7484_v39  ;;  %v7487_v11 = vmul.f32 0.020408163, %v9885_v48  ;;  %v4979_v47 = vpop.eup %4978  ;;  %v2110_v41 = vmax.f32 %v1981_v33, 0.0  ;;  %v1983_v12 = vsub.f32 %v1725_v13, %v1854_v7  ;;  %v2220_v38 = vld [vmem:[%s6592_s21 + $0x210] sm:$0xff]  ;;  %v7500_v2 = vmul.f32 %v4977_v16, %v2229_v3  ;;  %v2231_v13 = vld [vmem:[%s6592_s21 + $0x268] sm:$0xff] }
 0x2ae   : > { %v1718_v48 = vmul.f32 0.020408163, %v6800_v5  ;;  %4990 = vrsqrt.f32 %v2355_v59  ;;  %v2357_v55 = vadd.f32 1e-05, %v2099_v35  ;;  %v2101_v37 = vmax.f32 %v1972_v32, 0.0 }
 0x2af   : > { %v7477_v49 = vpop.permute.xlu1 %3074  ;;  %3369 = vperm.xlu1 %4835, %v7465_v58   ;;  %v7480_v29 = vpop.permute.xlu0 %3104  ;;  %9886 = vst [vmem:[#allocation105_spill] sm:$0xff] %v7487_v11  ;;  %9889 = vst [vmem:[#allocation215_spill] sm:$0xff] %v7500_v2  ;;  %v1974_v63 = vsub.f32 %v1716_v10, %v7462_v0  ;;  %v1847_v7 = vmul.f32 %v7484_v39, %v7484_v39  ;;  %v7513_v5 = vmul.f32 %v7487_v11, %v7487_v11 }
 0x2b0   : > { %9881 = vst [vmem:[#allocation213_spill] sm:$0xff] %v7477_v49  ;;  %9882 = vst [vmem:[#allocation214_spill] sm:$0xff] %v7480_v29  ;;  %3424 = vperm.xlu0 %4834, %v7474_v52   ;;  %v9887_v29 = vld [vmem:[#allocation112_spill] sm:$0xff]  ;;  %v4981_v52 = vpop.eup %4980  ;;  %v1985_v16 = vsub.f32 %v1727_v45, %v1856_v24  ;;  %v7516_v32 = vmul.f32 %v4979_v47, %v2220_v38  ;;  %4992 = vrsqrt.f32 %v2366_v44  ;;  %v2368_v59 = vadd.f32 1e-05, %v2110_v41 }
 0x2b1   : > { %v7497_v49 = vmul.f32 0.020408163, %v9887_v29  ;;  %v4983_v0 = vpop.eup %4982  ;;  %v2112_v35 = vmax.f32 %v1983_v12, 0.0  ;;  %v1729_v10 = vmul.f32 0.020408163, %v6953_v21  ;;  %v2222_v29 = vld [vmem:[%s6592_s21 + $0x220] sm:$0xff]  ;;  %v1976_v45 = vsub.f32 %v1718_v48, %v1847_v7 }
 0x2b2   : > { %v4985_v3 = vpop.eup %4984  ;;  %v7525_v24 = vmul.f32 %v4981_v52, %v2231_v13  ;;  %4994 = vrsqrt.f32 %v2357_v55  ;;  %v2359_v38 = vadd.f32 1e-05, %v2101_v37  ;;  %v2103_v47 = vmax.f32 %v1974_v63, 0.0  ;;  %v2233_v12 = vld [vmem:[%s6592_s21 + $0x278] sm:$0xff]  ;;  %v2224_v7 = vld [vmem:[%s6592_s21 + $0x230] sm:$0xff] }
 0x2b3   : > { %9888 = vst [vmem:[#allocation112_spill] sm:$0xff] %v7497_v49  ;;  %v7503_v57 = vpop.permute.xlu1 %3079  ;;  %3379 = vperm.xlu1 %4835, %v7491_v50   ;;  %v7506_v33 = vpop.permute.xlu0 %3114  ;;  %v1858_v18 = vmul.f32 %v7497_v49, %v7497_v49  ;;  %v1720_v44 = vmul.f32 0.020408163, %v6825_v15  ;;  %v9898_v48 = vld [vmem:[#allocation109_spill] sm:$0xff]  ;;  %v2114_v55 = vmax.f32 %v1985_v16, 0.0  ;;  %v7541_v37 = vmul.f32 %v4983_v0, %v2222_v29 }
 0x2b4   : > { %9890 = vst [vmem:[#allocation216_spill] sm:$0xff] %v7506_v33  ;;  %3434 = vperm.xlu0 %4834, %v7500_v2   ;;  %v9891_v33 = vld [vmem:[#allocation114_spill] sm:$0xff]  ;;  %9893 = vst [vmem:[#allocation217_spill] sm:$0xff] %v7525_v24  ;;  %v4987_v49 = vpop.eup %4986  ;;  %v9896_v2 = vld [vmem:[#allocation107_spill] sm:$0xff]  ;;  %v7538_v52 = vmul.f32 0.020408163, %v9898_v48  ;;  %4996 = vrsqrt.f32 %v2368_v59  ;;  %v7550_v39 = vmul.f32 %v4985_v3, %v2233_v12 }
 0x2b5   : > { %v7523_v11 = vmul.f32 0.020408163, %v9891_v33  ;;  %v7535_v33 = vmul.f32 0.020408163, %v9896_v2  ;;  %v2370_v15 = vadd.f32 1e-05, %v2112_v35  ;;  %v1987_v63 = vsub.f32 %v1729_v10, %v1858_v18 }
 0x2b6   : > { %9899 = vst [vmem:[#allocation109_spill] sm:$0xff] %v7538_v52  ;;  %v1731_v13 = vmul.f32 0.020408163, %v6978_v30  ;;  %v9900_v2 = vld [vmem:[#allocation116_spill] sm:$0xff]  ;;  %v2105_v48 = vmax.f32 %v1976_v45, 0.0  ;;  %9902 = vst [vmem:[#allocation220_spill] sm:$0xff] %v7550_v39  ;;  %v4989_v16 = vpop.eup %4988  ;;  %4998 = vrsqrt.f32 %v2359_v38  ;;  %v1978_v59 = vsub.f32 %v1720_v44, %v7513_v5 }
 0x2b7   : > { %9892 = vst [vmem:[#allocation114_spill] sm:$0xff] %v7523_v11  ;;  %v7528_v41 = vpop.permute.xlu1 %3084  ;;  %3389 = vperm.xlu1 %4835, %v7516_v32   ;;  %v7531_v21 = vpop.permute.xlu0 %3124  ;;  %9897 = vst [vmem:[#allocation107_spill] sm:$0xff] %v7535_v33  ;;  %v2361_v0 = vadd.f32 1e-05, %v2103_v47  ;;  %v1722_v18 = vmul.f32 0.020408163, %v6851_v34  ;;  %v1851_v29 = vmul.f32 %v7535_v33, %v7535_v33  ;;  %v7564_v3 = vmul.f32 %v7538_v52, %v7538_v52 }
 0x2b8   : > { %9894 = vst [vmem:[#allocation218_spill] sm:$0xff] %v7528_v41  ;;  %9895 = vst [vmem:[#allocation219_spill] sm:$0xff] %v7531_v21  ;;  %3444 = vperm.xlu0 %4834, %v7525_v24   ;;  %v1860_v21 = vmul.f32 %v7523_v11, %v7523_v11  ;;  %v7548_v41 = vmul.f32 0.020408163, %v9900_v2  ;;  %v2235_v10 = vld [vmem:[%s6592_s21 + $0x288] sm:$0xff]  ;;  %v7567_v5 = vmul.f32 %v4987_v49, %v2224_v7  ;;  %v4991_v34 = vpop.eup %4990  ;;  %5000 = vrsqrt.f32 %v2370_v15  ;;  %v2226_v12 = vld [vmem:[%s6592_s21 + $0x240] sm:$0xff] }
 0x2b9   : > { %v2372_v45 = vadd.f32 1e-05, %v2114_v55  ;;  %v2116_v38 = vmax.f32 %v1987_v63, 0.0  ;;  %v1733_v44 = vmul.f32 0.020408163, %v7004_v25  ;;  %v9904_v11 = vld [vmem:[#allocation118_spill] sm:$0xff]  ;;  %v7576_v55 = vmul.f32 %v4989_v16, %v2235_v10 }
 0x2ba   : > { %9901 = vst [vmem:[#allocation116_spill] sm:$0xff] %v7548_v41  ;;  %v1989_v47 = vsub.f32 %v1731_v13, %v1860_v21  ;;  %v1862_v2 = vmul.f32 %v7548_v41, %v7548_v41  ;;  %v2363_v24 = vadd.f32 1e-05, %v2105_v48  ;;  %5002 = vrsqrt.f32 %v2361_v0  ;;  %v2237_v63 = vld [vmem:[%s6592_s21 + $0x298] sm:$0xff]  ;;  %v9909_v13 = vld [vmem:[#allocation111_spill] sm:$0xff]  ;;  %v2228_v41 = vld [vmem:[%s6592_s21 + $0x250] sm:$0xff] }
 0x2bb   : > { %v7554_v35 = vpop.permute.xlu1 %3089  ;;  %3399 = vperm.xlu1 %4835, %v7541_v37   ;;  %v7557_v30 = vpop.permute.xlu0 %3134  ;;  %9906 = vst [vmem:[#allocation222_spill] sm:$0xff] %v7576_v55  ;;  %v2107_v49 = vmax.f32 %v1978_v59, 0.0  ;;  %v1980_v7 = vsub.f32 %v1722_v18, %v1851_v29  ;;  %v1724_v15 = vmul.f32 0.020408163, %v6874_v26  ;;  %v9911_v48 = vld [vmem:[#allocation113_spill] sm:$0xff]  ;;  %5004 = vrsqrt.f32 %v2372_v45  ;;  %v9926_v33 = vld [vmem:[#allocation124_spill] sm:$0xff] }
 0x2bc   : > { %9903 = vst [vmem:[#allocation221_spill] sm:$0xff] %v7557_v30  ;;  %3454 = vperm.xlu0 %4834, %v7550_v39   ;;  %v7574_v30 = vmul.f32 0.020408163, %v9904_v11  ;;  %v4993_v39 = vpop.eup %4992  ;;  %v7586_v11 = vmul.f32 0.020408163, %v9909_v13  ;;  %v7592_v0 = vmul.f32 %v4991_v34, %v2226_v12  ;;  %v2118_v18 = vmax.f32 %v1989_v47, 0.0 }
 0x2bd   : > { %v7589_v16 = vmul.f32 0.020408163, %v9911_v48  ;;  %v4995_v59 = vpop.eup %4994  ;;  %v2374_v26 = vadd.f32 1e-05, %v2116_v38  ;;  %v1991_v10 = vsub.f32 %v1733_v44, %v1862_v2  ;;  %v1735_v29 = vmul.f32 0.020408163, %v7029_v46 }
 0x2be   : > { %9905 = vst [vmem:[#allocation118_spill] sm:$0xff] %v7574_v30  ;;  %9910 = vst [vmem:[#allocation111_spill] sm:$0xff] %v7586_v11  ;;  %v1864_v13 = vmul.f32 %v7574_v30, %v7574_v30  ;;  %5006 = vrsqrt.f32 %v2363_v24  ;;  %v7601_v45 = vmul.f32 %v4993_v39, %v2237_v63  ;;  %v4997_v48 = vpop.eup %4996  ;;  %v2365_v34 = vadd.f32 1e-05, %v2107_v49  ;;  %v2239_v2 = vld [vmem:[%s6592_s21 + $0x2a8] sm:$0xff]  ;;  %v2230_v63 = vld [vmem:[%s6592_s21 + $0x260] sm:$0xff] }
 0x2bf   : > { %3409 = vperm.xlu1 %4835, %v7567_v5   ;;  %v7580_v25 = vpop.permute.xlu1 %3094  ;;  %v7582_v21 = vpop.permute.xlu0 %3144  ;;  %9912 = vst [vmem:[#allocation113_spill] sm:$0xff] %v7589_v16  ;;  %v2109_v12 = vmax.f32 %v1980_v7, 0.0  ;;  %v1982_v38 = vsub.f32 %v1724_v15, %v7564_v3  ;;  %v1726_v47 = vmul.f32 0.020408163, %v6899_v1  ;;  %v1855_v24 = vmul.f32 %v7586_v11, %v7586_v11 }
 0x2c0   : > { %9907 = vst [vmem:[#allocation223_spill] sm:$0xff] %v7580_v25  ;;  %9908 = vst [vmem:[#allocation224_spill] sm:$0xff] %v7582_v21  ;;  %3464 = vperm.xlu0 %4834, %v7576_v55   ;;  %v9913_v21 = vld [vmem:[#allocation120_spill] sm:$0xff]  ;;  %v1857_v39 = vmul.f32 %v7589_v16, %v7589_v16  ;;  %v1737_v49 = vmul.f32 0.020408163, %v7055_v54  ;;  %v7617_v3 = vmul.f32 %v4995_v59, %v2228_v41  ;;  %v4999_v1 = vpop.eup %4998  ;;  %5008 = vrsqrt.f32 %v2374_v26  ;;  %v9919_v16 = vld [vmem:[#allocation173_spill] sm:$0xff] }
 0x2c1   : > { %v7599_v52 = vmul.f32 0.020408163, %v9913_v21  ;;  %9915 = vst [vmem:[#allocation225_spill] sm:$0xff] %v7601_v45  ;;  %v2376_v7 = vadd.f32 1e-05, %v2118_v18  ;;  %v2120_v15 = vmax.f32 %v1991_v10, 0.0  ;;  %v1993_v21 = vsub.f32 %v1735_v29, %v1864_v13 }
 0x2c2   : > { %v1728_v11 = vmul.f32 0.020408163, %v9919_v16  ;;  %v7626_v54 = vmul.f32 %v4997_v48, %v2239_v2  ;;  %5010 = vrsqrt.f32 %v2365_v34  ;;  %v2367_v41 = vadd.f32 1e-05, %v2109_v12  ;;  %v2241_v29 = vld [vmem:[%s6592_s21 + $0x2b8] sm:$0xff]  ;;  %v9922_v13 = vld [vmem:[#allocation115_spill] sm:$0xff] }
 0x2c3   : > { %9914 = vst [vmem:[#allocation120_spill] sm:$0xff] %v7599_v52  ;;  %3419 = vperm.xlu1 %4835, %v7592_v0   ;;  %v7606_v46 = vpop.permute.xlu1 %3099  ;;  %v7608_v44 = vpop.permute.xlu0 %3154  ;;  %v1866_v30 = vmul.f32 %v7599_v52, %v7599_v52  ;;  %v2111_v59 = vmax.f32 %v1982_v38, 0.0  ;;  %v1984_v26 = vsub.f32 %v1726_v47, %v1855_v24  ;;  %v9924_v52 = vld [vmem:[#allocation117_spill] sm:$0xff]  ;;  %v7641_v34 = vmul.f32 %v4999_v1, %v2230_v63  ;;  %v2232_v24 = vld [vmem:[%s6592_s21 + $0x270] sm:$0xff] }
 0x2c4   : > { %9916 = vst [vmem:[#allocation226_spill] sm:$0xff] %v7608_v44  ;;  %3474 = vperm.xlu0 %4834, %v7601_v45   ;;  %v9917_v44 = vld [vmem:[#allocation122_spill] sm:$0xff]  ;;  %9920 = vst [vmem:[#allocation173_spill] sm:$0xff] %v7626_v54  ;;  %v5001_v45 = vpop.eup %5000  ;;  %v7638_v16 = vmul.f32 0.020408163, %v9924_v52  ;;  %5012 = vrsqrt.f32 %v2376_v7  ;;  %v2122_v47 = vmax.f32 %v1993_v21, 0.0 }
 0x2c5   : > { %v7623_v55 = vmul.f32 0.020408163, %v9917_v44  ;;  %v7635_v44 = vmul.f32 0.020408163, %v9922_v13  ;;  %v1995_v48 = vsub.f32 %v1737_v49, %v1866_v30  ;;  %v5003_v12 = vpop.eup %5002  ;;  %v2378_v38 = vadd.f32 1e-05, %v2120_v15 }
 0x2c6   : > { %9925 = vst [vmem:[#allocation117_spill] sm:$0xff] %v7638_v16  ;;  %v1739_v2 = vmul.f32 0.020408163, %v7080_v8  ;;  %v7648_v52 = vmul.f32 0.020408163, %v9926_v33  ;;  %v1986_v30 = vsub.f32 %v1728_v11, %v1857_v39  ;;  %v7650_v49 = vmul.f32 %v5001_v45, %v2241_v29  ;;  %v9929_v7 = vld [vmem:[#allocation176_spill] sm:$0xff] }
 0x2c7   : > { %9918 = vst [vmem:[#allocation122_spill] sm:$0xff] %v7623_v55  ;;  %3429 = vperm.xlu1 %4835, %v7617_v3   ;;  %v7629_v18 = vpop.permute.xlu1 %3109  ;;  %v7631_v10 = vpop.permute.xlu0 %3164  ;;  %9923 = vst [vmem:[#allocation115_spill] sm:$0xff] %v7635_v44  ;;  %v1868_v13 = vmul.f32 %v7623_v55, %v7623_v55  ;;  %5014 = vrsqrt.f32 %v2367_v41  ;;  %v2369_v1 = vadd.f32 1e-05, %v2111_v59  ;;  %v2113_v63 = vmax.f32 %v1984_v26, 0.0  ;;  %v2234_v29 = vld [vmem:[%s6592_s21 + $0x280] sm:$0xff] }
 0x2c8   : > { %9921 = vst [vmem:[#allocation227_spill] sm:$0xff] %v7631_v10  ;;  %3484 = vperm.xlu0 %4834, %v7626_v54   ;;  %v5005_v10 = vpop.eup %5004  ;;  %9927 = vst [vmem:[#allocation124_spill] sm:$0xff] %v7648_v52  ;;  %v1730_v15 = vmul.f32 0.020408163, %v9929_v7  ;;  %v2243_v54 = vld [vmem:[%s6592_s21 + $0x2c8] sm:$0xff]  ;;  %v1859_v33 = vmul.f32 %v7635_v44, %v7635_v44  ;;  %v7663_v11 = vmul.f32 %v7638_v16, %v7638_v16  ;;  %v2124_v45 = vmax.f32 %v1995_v48, 0.0 }
 0x2c9   : > { %9928 = vst [vmem:[#allocation228_spill] sm:$0xff] %v7650_v49  ;;  %v5007_v55 = vpop.eup %5006  ;;  %v7666_v39 = vmul.f32 %v5003_v12, %v2232_v24  ;;  %5016 = vrsqrt.f32 %v2378_v38  ;;  %v2380_v41 = vadd.f32 1e-05, %v2122_v47  ;;  %v1997_v59 = vsub.f32 %v1739_v2, %v1868_v13  ;;  %v9934_v38 = vld [vmem:[#allocation22_spill] sm:$0xff]  ;;  %v2245_v13 = vld [vmem:[%s6592_s21 + $0x2d8] sm:$0xff] }
 0x2ca   : > { %v1741_v26 = vmul.f32 0.020408163, %v7106_v22  ;;  %v1870_v7 = vmul.f32 %v7648_v52, %v7648_v52  ;;  %v2115_v16 = vmax.f32 %v1986_v30, 0.0  ;;  %v7675_v25 = vmul.f32 %v5005_v10, %v2243_v54  ;;  %v5009_v48 = vpop.eup %5008  ;;  %v9937_v52 = vld [vmem:[#allocation119_spill] sm:$0xff]  ;;  %v9939_v30 = vld [vmem:[#allocation121_spill] sm:$0xff] }
 0x2cb   : > { %3439 = vperm.xlu1 %4835, %v7641_v34   ;;  %v7654_v8 = vpop.permute.xlu1 %3119  ;;  %v7656_v21 = vpop.permute.xlu0 %3174  ;;  %5018 = vrsqrt.f32 %v2369_v1  ;;  %v2371_v12 = vadd.f32 1e-05, %v2113_v63  ;;  %v1988_v24 = vsub.f32 %v1730_v15, %v1859_v33  ;;  %v1732_v47 = vmul.f32 0.020408163, %v9934_v38 }
 0x2cc   : > { %9930 = vst [vmem:[#allocation176_spill] sm:$0xff] %v7656_v21  ;;  %3494 = vperm.xlu0 %4834, %v7650_v49   ;;  %v9931_v21 = vld [vmem:[#allocation126_spill] sm:$0xff]  ;;  %9933 = vst [vmem:[#allocation229_spill] sm:$0xff] %v7675_v25  ;;  %v7688_v54 = vmul.f32 0.020408163, %v9939_v30  ;;  %v7691_v1 = vmul.f32 %v5007_v55, %v2234_v29  ;;  %v5011_v63 = vpop.eup %5010  ;;  %5020 = vrsqrt.f32 %v2380_v41  ;;  %v2126_v15 = vmax.f32 %v1997_v59, 0.0 }
 0x2cd   : > { %v7673_v44 = vmul.f32 0.020408163, %v9931_v21  ;;  %v7685_v21 = vmul.f32 0.020408163, %v9937_v52  ;;  %v2382_v10 = vadd.f32 1e-05, %v2124_v45  ;;  %v1999_v33 = vsub.f32 %v1741_v26, %v1870_v7 }
 0x2ce   : > { %9940 = vst [vmem:[#allocation121_spill] sm:$0xff] %v7688_v54  ;;  %v1743_v38 = vmul.f32 0.020408163, %v7129_v60  ;;  %v9941_v49 = vld [vmem:[#allocation128_spill] sm:$0xff]  ;;  %v2373_v30 = vadd.f32 1e-05, %v2115_v16  ;;  %v7700_v45 = vmul.f32 %v5009_v48, %v2245_v13  ;;  %5022 = vrsqrt.f32 %v2371_v12 }
 0x2cf   : > { %9932 = vst [vmem:[#allocation126_spill] sm:$0xff] %v7673_v44  ;;  %3449 = vperm.xlu1 %4835, %v7666_v39   ;;  %v7679_v22 = vpop.permute.xlu1 %3129  ;;  %v7681_v2 = vpop.permute.xlu0 %3184  ;;  %9938 = vst [vmem:[#allocation119_spill] sm:$0xff] %v7685_v21  ;;  %v1872_v52 = vmul.f32 %v7673_v44, %v7673_v44  ;;  %v2117_v55 = vmax.f32 %v1988_v24, 0.0  ;;  %v1990_v41 = vsub.f32 %v1732_v47, %v7663_v11  ;;  %v9944_v59 = vld [vmem:[#allocation179_spill] sm:$0xff]  ;;  %5024 = vrsqrt.f32 %v2382_v10 }
 0x2d0   : > { %9935 = vst [vmem:[#allocation22_spill] sm:$0xff] %v7679_v22  ;;  %9936 = vst [vmem:[#allocation230_spill] sm:$0xff] %v7681_v2  ;;  %3504 = vperm.xlu0 %4834, %v7675_v25   ;;  %v2236_v2 = vld [vmem:[%s6592_s21 + $0x290] sm:$0xff]  ;;  %v7698_v22 = vmul.f32 0.020408163, %v9941_v49  ;;  %v5013_v25 = vpop.eup %5012  ;;  %v2247_v7 = vld [vmem:[%s6592_s21 + $0x2e8] sm:$0xff]  ;;  %v1863_v16 = vmul.f32 %v7685_v21, %v7685_v21  ;;  %v7714_v49 = vmul.f32 %v7688_v54, %v7688_v54  ;;  %5026 = vrsqrt.f32 %v2373_v30 }
 0x2d1   : > { %9943 = vst [vmem:[#allocation231_spill] sm:$0xff] %v7700_v45  ;;  %v1734_v26 = vmul.f32 0.020408163, %v9944_v59  ;;  %v7717_v11 = vmul.f32 %v5011_v63, %v2236_v2  ;;  %v5015_v48 = vpop.eup %5014  ;;  %v2384_v12 = vadd.f32 1e-05, %v2126_v15  ;;  %v2128_v24 = vmax.f32 %v1999_v33, 0.0 }
 0x2d2   : > { %9942 = vst [vmem:[#allocation128_spill] sm:$0xff] %v7698_v22  ;;  %v2001_v47 = vsub.f32 %v1743_v38, %v1872_v52  ;;  %v1745_v13 = vmul.f32 0.020408163, %v7154_v31  ;;  %v2238_v59 = vld [vmem:[%s6592_s21 + $0x2a0] sm:$0xff]  ;;  %v1874_v44 = vmul.f32 %v7698_v22, %v7698_v22  ;;  %v7726_v10 = vmul.f32 %v5013_v25, %v2247_v7  ;;  %v2249_v52 = vld [vmem:[%s6592_s21 + $0x2f8] sm:$0xff]  ;;  %v9953_v22 = vld [vmem:[#allocation123_spill] sm:$0xff] }
 0x2d3   : > { %3459 = vperm.xlu1 %4835, %v7691_v1   ;;  %v7705_v60 = vpop.permute.xlu1 %3139  ;;  %v7707_v29 = vpop.permute.xlu0 %3194  ;;  %9946 = vst [vmem:[#allocation232_spill] sm:$0xff] %v7717_v11  ;;  %v2375_v2 = vadd.f32 1e-05, %v2117_v55  ;;  %v2119_v63 = vmax.f32 %v1990_v41, 0.0  ;;  %v1992_v54 = vsub.f32 %v1734_v26, %v1863_v16  ;;  %v9950_v15 = vld [vmem:[#allocation134_spill] sm:$0xff]  ;;  %v9955_v30 = vld [vmem:[#allocation125_spill] sm:$0xff]  ;;  %v7743_v41 = vmul.f32 %v5015_v48, %v2238_v59 }
 0x2d4   : > { %9945 = vst [vmem:[#allocation179_spill] sm:$0xff] %v7707_v29  ;;  %3514 = vperm.xlu0 %4834, %v7700_v45   ;;  %v9947_v29 = vld [vmem:[#allocation4_spill] sm:$0xff]  ;;  %9949 = vst [vmem:[#allocation233_spill] sm:$0xff] %v7726_v10  ;;  %v5017_v45 = vpop.eup %5016  ;;  %v1736_v33 = vmul.f32 0.020408163, %v9950_v15  ;;  %5028 = vrsqrt.f32 %v2384_v12  ;;  %v2130_v16 = vmax.f32 %v2001_v47, 0.0  ;;  %v2003_v15 = vsub.f32 %v1745_v13, %v1874_v44 }
 0x2d5   : > { %v7724_v21 = vmul.f32 0.020408163, %v9947_v29  ;;  %v7736_v29 = vmul.f32 0.020408163, %v9953_v22  ;;  %v7739_v25 = vmul.f32 0.020408163, %v9955_v30  ;;  %v5019_v26 = vpop.eup %5018  ;;  %5030 = vrsqrt.f32 %v2375_v2 }
 0x2d6   : > { %v1747_v55 = vmul.f32 0.020408163, %v7179_v27  ;;  %9957 = vst [vmem:[#allocation235_spill] sm:$0xff] %v7743_v41  ;;  %v2386_v7 = vadd.f32 1e-05, %v2128_v24  ;;  %v7752_v27 = vmul.f32 %v5017_v45, %v2249_v52  ;;  %v2121_v59 = vmax.f32 %v1992_v54, 0.0 }
 0x2d7   : > { %9948 = vst [vmem:[#allocation4_spill] sm:$0xff] %v7724_v21  ;;  %3469 = vperm.xlu1 %4835, %v7717_v11   ;;  %v7730_v31 = vpop.permute.xlu1 %3149  ;;  %v7732_v38 = vpop.permute.xlu0 %3204  ;;  %9954 = vst [vmem:[#allocation123_spill] sm:$0xff] %v7736_v29  ;;  %v1876_v22 = vmul.f32 %v7724_v21, %v7724_v21  ;;  %v1738_v30 = vmul.f32 0.020408163, %v7052_v62  ;;  %v2377_v48 = vadd.f32 1e-05, %v2119_v63  ;;  %v1994_v12 = vsub.f32 %v1736_v33, %v7714_v49 }
 0x2d8   : > { %9951 = vst [vmem:[#allocation134_spill] sm:$0xff] %v7730_v31  ;;  %9952 = vst [vmem:[#allocation234_spill] sm:$0xff] %v7732_v38  ;;  %3524 = vperm.xlu0 %4834, %v7726_v10   ;;  %v2240_v38 = vld [vmem:[%s6592_s21 + $0x2b0] sm:$0xff]  ;;  %v9958_v31 = vld [vmem:[#allocation6_spill] sm:$0xff]  ;;  %v5021_v10 = vpop.eup %5020  ;;  %v1867_v13 = vmul.f32 %v7736_v29, %v7736_v29  ;;  %v1869_v62 = vmul.f32 %v7739_v25, %v7739_v25  ;;  %5032 = vrsqrt.f32 %v2386_v7  ;;  %v2388_v49 = vadd.f32 1e-05, %v2130_v16 }
 0x2d9   : > { %9956 = vst [vmem:[#allocation125_spill] sm:$0xff] %v7739_v25  ;;  %v7749_v11 = vmul.f32 0.020408163, %v9958_v31  ;;  %9960 = vst [vmem:[#allocation236_spill] sm:$0xff] %v7752_v27  ;;  %v2251_v47 = vld [vmem:[%s6592_s21 + $0x308] sm:$0xff]  ;;  %v2005_v45 = vsub.f32 %v1747_v55, %v1876_v22  ;;  %v7766_v54 = vmul.f32 %v5019_v26, %v2240_v38  ;;  %v5023_v2 = vpop.eup %5022  ;;  %v2132_v63 = vmax.f32 %v2003_v15, 0.0 }
 0x2da   : > { %v1749_v33 = vmul.f32 0.020408163, %v7205_v9  ;;  %v2242_v31 = vld [vmem:[%s6592_s21 + $0x2c0] sm:$0xff]  ;;  %v5025_v52 = vpop.eup %5024  ;;  %v9964_v29 = vld [vmem:[#allocation136_spill] sm:$0xff]  ;;  %v7773_v55 = vmul.f32 %v5021_v10, %v2251_v47  ;;  %5034 = vrsqrt.f32 %v2377_v48  ;;  %v2379_v26 = vadd.f32 1e-05, %v2121_v59 }
 0x2db   : > { %9959 = vst [vmem:[#allocation6_spill] sm:$0xff] %v7749_v11  ;;  %3479 = vperm.xlu1 %4835, %v7743_v41   ;;  %v7756_v44 = vpop.permute.xlu1 %3159  ;;  %v7758_v24 = vpop.permute.xlu0 %3214  ;;  %9963 = vst [vmem:[#allocation239_spill] sm:$0xff] %v7766_v54  ;;  %v1878_v21 = vmul.f32 %v7749_v11, %v7749_v11  ;;  %v1740_v25 = vmul.f32 0.020408163, %v9964_v29  ;;  %v9966_v22 = vld [vmem:[#allocation8_spill] sm:$0xff]  ;;  %v2123_v7 = vmax.f32 %v1994_v12, 0.0  ;;  %v7791_v48 = vmul.f32 %v5023_v2, %v2242_v31 }
 0x2dc   : > { %9961 = vst [vmem:[#allocation237_spill] sm:$0xff] %v7756_v44  ;;  %9962 = vst [vmem:[#allocation238_spill] sm:$0xff] %v7758_v24  ;;  %3534 = vperm.xlu0 %4834, %v7752_v27   ;;  %v1996_v24 = vsub.f32 %v1738_v30, %v1867_v13  ;;  %v7776_v38 = vmul.f32 0.020408163, %v9966_v22  ;;  %v2253_v15 = vld [vmem:[%s6592_s21 + $0x318] sm:$0xff]  ;;  %v5027_v11 = vpop.eup %5026  ;;  %v9970_v30 = vld [vmem:[#allocation127_spill] sm:$0xff]  ;;  %5036 = vrsqrt.f32 %v2388_v49 }
 0x2dd   : > { %9965 = vst [vmem:[#allocation136_spill] sm:$0xff] %v7773_v55  ;;  %v7785_v13 = vmul.f32 0.020408163, %v9970_v30  ;;  %v9972_v10 = vld [vmem:[#allocation129_spill] sm:$0xff]  ;;  %v2134_v47 = vmax.f32 %v2005_v45, 0.0  ;;  %v2007_v12 = vsub.f32 %v1749_v33, %v1878_v21  ;;  %v9974_v22 = vld [vmem:[#allocation196_spill] sm:$0xff]  ;;  %v7796_v41 = vmul.f32 %v5025_v52, %v2253_v15 }
 0x2de   : > { %9967 = vst [vmem:[#allocation8_spill] sm:$0xff] %v7776_v38  ;;  %v7788_v29 = vmul.f32 0.020408163, %v9972_v10  ;;  %v2390_v59 = vadd.f32 1e-05, %v2132_v63  ;;  %v9975_v44 = vld [vmem:[#allocation71_spill] sm:$0xff]  ;;  %v5029_v10 = vpop.eup %5028  ;;  %v1880_v45 = vmul.f32 %v7776_v38, %v7776_v38  ;;  %5038 = vrsqrt.f32 %v2379_v26 }
 0x2df   : > { %3489 = vperm.xlu1 %4835, %v7766_v54   ;;  %v7779_v9 = vpop.permute.xlu1 %3169  ;;  %v7781_v16 = vpop.permute.xlu0 %3224  ;;  %9971 = vst [vmem:[#allocation127_spill] sm:$0xff] %v7785_v13  ;;  %v1751_v27 = vmul.f32 0.020408163, %v9974_v22  ;;  %v1998_v54 = vsub.f32 %v1740_v25, %v1869_v62  ;;  %v1742_v30 = vmul.f32 0.020408163, %v9975_v44  ;;  %9976 = vst [vmem:[#allocation196_spill] sm:$0xff] %v7796_v41  ;;  %v1871_v44 = vmul.f32 %v7785_v13, %v7785_v13 }
 0x2e0   : > { %9968 = vst [vmem:[#allocation240_spill] sm:$0xff] %v7779_v9  ;;  %9969 = vst [vmem:[#allocation241_spill] sm:$0xff] %v7781_v16  ;;  %3544 = vperm.xlu0 %4834, %v7773_v55   ;;  %v2244_v16 = vld [vmem:[%s6592_s21 + $0x2d0] sm:$0xff]  ;;  %v2125_v9 = vmax.f32 %v1996_v24, 0.0  ;;  %v9977_v55 = vld [vmem:[#allocation10_spill] sm:$0xff]  ;;  %v7813_v62 = vmul.f32 %v7788_v29, %v7788_v29  ;;  %v5031_v31 = vpop.eup %5030  ;;  %5040 = vrsqrt.f32 %v2390_v59  ;;  %v2136_v52 = vmax.f32 %v2007_v12, 0.0 }
 0x2e1   : > { %9973 = vst [vmem:[#allocation129_spill] sm:$0xff] %v7788_v29  ;;  %v7801_v2 = vmul.f32 0.020408163, %v9977_v55  ;;  %v2381_v49 = vadd.f32 1e-05, %v2123_v7  ;;  %v2255_v25 = vld [vmem:[%s6592_s21 + $0x328] sm:$0xff]  ;;  %v7816_v33 = vmul.f32 %v5027_v11, %v2244_v16  ;;  %v2009_v55 = vsub.f32 %v1751_v27, %v1880_v45 }
 0x2e2   : > { %v2392_v63 = vadd.f32 1e-05, %v2134_v47  ;;  %v1753_v26 = vmul.f32 0.020408163, %v7256_v42  ;;  %v2246_v7 = vld [vmem:[%s6592_s21 + $0x2e0] sm:$0xff]  ;;  %v2127_v22 = vmax.f32 %v1998_v54, 0.0  ;;  %v2000_v38 = vsub.f32 %v1742_v30, %v1871_v44  ;;  %v5033_v29 = vpop.eup %5032 }
 0x2e3   : > { %9978 = vst [vmem:[#allocation71_spill] sm:$0xff] %v7801_v2  ;;  %3499 = vperm.xlu1 %4835, %v7791_v48   ;;  %v7804_v21 = vpop.permute.xlu1 %3179  ;;  %v7806_v24 = vpop.permute.xlu0 %3234  ;;  %v2383_v15 = vadd.f32 1e-05, %v2125_v9  ;;  %v9981_v13 = vld [vmem:[#allocation2_spill] sm:$0xff]  ;;  %v1882_v11 = vmul.f32 %v7801_v2, %v7801_v2  ;;  %v9983_v16 = vld [vmem:[#allocation12_spill] sm:$0xff]  ;;  %5042 = vrsqrt.f32 %v2381_v49  ;;  %v2257_v54 = vld [vmem:[%s6592_s21 + $0x338] sm:$0xff] }
 0x2e4   : > { %9979 = vst [vmem:[#allocation10_spill] sm:$0xff] %v7806_v24  ;;  %3554 = vperm.xlu0 %4834, %v7796_v41   ;;  %v7820_v24 = vmul.f32 %v5029_v10, %v2255_v25  ;;  %v7823_v47 = vmul.f32 0.020408163, %v9981_v13  ;;  %v7828_v59 = vmul.f32 0.020408163, %v9983_v16  ;;  %v9987_v9 = vld [vmem:[#allocation14_spill] sm:$0xff]  ;;  %5044 = vrsqrt.f32 %v2392_v63  ;;  %v5035_v45 = vpop.eup %5034 }
 0x2e5   : > { %v7837_v12 = vmul.f32 0.020408163, %v9987_v9  ;;  %v9989_v13 = vld [vmem:[#allocation187_spill] sm:$0xff]  ;;  %v7841_v10 = vmul.f32 %v5031_v31, %v2246_v7  ;;  %v2394_v25 = vadd.f32 1e-05, %v2136_v52  ;;  %v2138_v49 = vmax.f32 %v2009_v55, 0.0 }
 0x2e6   : > { %9980 = vst [vmem:[#allocation242_spill] sm:$0xff] %v7820_v24  ;;  %9982 = vst [vmem:[#allocation2_spill] sm:$0xff] %v7823_v47  ;;  %v1744_v30 = vmul.f32 0.020408163, %v9989_v13  ;;  %v2011_v44 = vsub.f32 %v1753_v26, %v1882_v11  ;;  %v1755_v16 = vmul.f32 0.020408163, %v7281_v61  ;;  %5046 = vrsqrt.f32 %v2383_v15 }
 0x2e7   : > { %9984 = vst [vmem:[#allocation12_spill] sm:$0xff] %v7828_v59  ;;  %3509 = vperm.xlu1 %4835, %v7816_v33   ;;  %v7831_v42 = vpop.permute.xlu1 %3189  ;;  %v7833_v27 = vpop.permute.xlu0 %3244  ;;  %9988 = vst [vmem:[#allocation14_spill] sm:$0xff] %v7837_v12  ;;  %v2248_v2 = vld [vmem:[%s6592_s21 + $0x2f0] sm:$0xff]  ;;  %v2129_v41 = vmax.f32 %v2000_v38, 0.0  ;;  %v7845_v9 = vmul.f32 %v5033_v29, %v2257_v54  ;;  %v1875_v63 = vmul.f32 %v7823_v47, %v7823_v47  ;;  %v9991_v7 = vld [vmem:[#allocation139_spill] sm:$0xff]  ;;  %5048 = vrsqrt.f32 %v2394_v25 }
 0x2e8   : > { %9985 = vst [vmem:[#allocation243_spill] sm:$0xff] %v7831_v42  ;;  %9986 = vst [vmem:[#allocation244_spill] sm:$0xff] %v7833_v27  ;;  %3564 = vperm.xlu0 %4834, %v7820_v24   ;;  %v2385_v27 = vadd.f32 1e-05, %v2127_v22  ;;  %v5037_v42 = vpop.eup %5036  ;;  %v1884_v31 = vmul.f32 %v7828_v59, %v7828_v59  ;;  %v1746_v52 = vmul.f32 0.020408163, %v9991_v7  ;;  %v2002_v15 = vsub.f32 %v1744_v30, %v7813_v62 }
 0x2e9   : > { %9990 = vst [vmem:[#allocation187_spill] sm:$0xff] %v7845_v9  ;;  %v2259_v26 = vld [vmem:[%s6592_s21 + $0x348] sm:$0xff]  ;;  %v1757_v22 = vmul.f32 0.020408163, %v7307_v36  ;;  %v7864_v11 = vmul.f32 %v5035_v45, %v2248_v2  ;;  %v5039_v54 = vpop.eup %5038  ;;  %v2396_v13 = vadd.f32 1e-05, %v2138_v49 }
 0x2ea   : > { %v9993_v38 = vld [vmem:[#allocation3_spill] sm:$0xff]  ;;  %v2140_v7 = vmax.f32 %v2011_v44, 0.0  ;;  %v2013_v59 = vsub.f32 %v1755_v16, %v1884_v31  ;;  %v2250_v24 = vld [vmem:[%s6592_s21 + $0x300] sm:$0xff]  ;;  %5050 = vrsqrt.f32 %v2385_v27  ;;  %v7869_v47 = vmul.f32 %v5037_v42, %v2259_v26  ;;  %v5041_v62 = vpop.eup %5040  ;;  %v9998_v45 = vld [vmem:[#allocation141_spill] sm:$0xff] }
 0x2eb   : > { %3519 = vperm.xlu1 %4835, %v7841_v10   ;;  %v7853_v55 = vpop.permute.xlu1 %3199  ;;  %v7855_v61 = vpop.permute.xlu0 %3254  ;;  %v7859_v29 = vmul.f32 0.020408163, %v9993_v38  ;;  %v2387_v38 = vadd.f32 1e-05, %v2129_v41  ;;  %v9996_v36 = vld [vmem:[#allocation15_spill] sm:$0xff]  ;;  %v2004_v2 = vsub.f32 %v1746_v52, %v1875_v63  ;;  %v2261_v16 = vld [vmem:[%s6592_s21 + $0x358] sm:$0xff]  ;;  %v7884_v31 = vmul.f32 %v5039_v54, %v2250_v24 }
 0x2ec   : > { %9992 = vst [vmem:[#allocation139_spill] sm:$0xff] %v7855_v61  ;;  %3574 = vperm.xlu0 %4834, %v7845_v9   ;;  %v1886_v61 = vmul.f32 %v7837_v12, %v7837_v12  ;;  %9995 = vst [vmem:[#allocation245_spill] sm:$0xff] %v7869_v47  ;;  %v7872_v30 = vmul.f32 0.020408163, %v9996_v36  ;;  %v1748_v25 = vmul.f32 0.020408163, %v9998_v45  ;;  %5052 = vrsqrt.f32 %v2396_v13 }
 0x2ed   : > { %9994 = vst [vmem:[#allocation3_spill] sm:$0xff] %v7859_v29  ;;  %v1877_v41 = vmul.f32 %v7859_v29, %v7859_v29  ;;  %v2131_v42 = vmax.f32 %v2002_v15, 0.0  ;;  %v5043_v63 = vpop.eup %5042  ;;  %v2398_v52 = vadd.f32 1e-05, %v2140_v7  ;;  %v2142_v26 = vmax.f32 %v2013_v59, 0.0  ;;  %v2252_v45 = vld [vmem:[%s6592_s21 + $0x310] sm:$0xff] }
 0x2ee   : > { %9997 = vst [vmem:[#allocation15_spill] sm:$0xff] %v7872_v30  ;;  %v2015_v27 = vsub.f32 %v1757_v22, %v1886_v61  ;;  %v1759_v36 = vmul.f32 0.020408163, %v7332_v51  ;;  %v5045_v12 = vpop.eup %5044  ;;  %5054 = vrsqrt.f32 %v2387_v38  ;;  %v7891_v15 = vmul.f32 %v5041_v62, %v2261_v16  ;;  %v10003_v61 = vld [vmem:[#allocation16_spill] sm:$0xff]  ;;  %v2263_v7 = vld [vmem:[%s6592_s21 + $0x368] sm:$0xff] }
 0x2ef   : > { %3529 = vperm.xlu1 %4835, %v7864_v11   ;;  %v7876_v49 = vpop.permute.xlu1 %3209  ;;  %v7878_v44 = vpop.permute.xlu0 %3264  ;;  %v1888_v24 = vmul.f32 %v7872_v30, %v7872_v30  ;;  %v7896_v22 = vmul.f32 0.020408163, %v10003_v61  ;;  %v2133_v54 = vmax.f32 %v2004_v2, 0.0  ;;  %v2006_v13 = vsub.f32 %v1748_v25, %v1877_v41  ;;  %v2254_v61 = vld [vmem:[%s6592_s21 + $0x320] sm:$0xff]  ;;  %v10008_v29 = vld [vmem:[#allocation7_spill] sm:$0xff] }
 0x2f0   : > { %9999 = vst [vmem:[#allocation141_spill] sm:$0xff] %v7878_v44  ;;  %3584 = vperm.xlu0 %4834, %v7869_v47   ;;  %v10000_v44 = vld [vmem:[#allocation5_spill] sm:$0xff]  ;;  %10002 = vst [vmem:[#allocation246_spill] sm:$0xff] %v7891_v15  ;;  %v2389_v38 = vadd.f32 1e-05, %v2131_v42  ;;  %v10007_v47 = vld [vmem:[#allocation142_spill] sm:$0xff]  ;;  %v7906_v30 = vmul.f32 %v5043_v63, %v2252_v45  ;;  %5056 = vrsqrt.f32 %v2398_v52 }
 0x2f1   : > { %v7889_v9 = vmul.f32 0.020408163, %v10000_v44  ;;  %10004 = vst [vmem:[#allocation16_spill] sm:$0xff] %v7896_v22  ;;  %v5047_v44 = vpop.eup %5046  ;;  %v1750_v62 = vmul.f32 0.020408163, %v10007_v47  ;;  %v2144_v16 = vmax.f32 %v2015_v27, 0.0  ;;  %v2017_v25 = vsub.f32 %v1759_v36, %v1888_v24 }
 0x2f2   : > { %v2400_v2 = vadd.f32 1e-05, %v2142_v26  ;;  %v1761_v41 = vmul.f32 0.020408163, %v7358_v28  ;;  %v10010_v42 = vld [vmem:[#allocation17_spill] sm:$0xff]  ;;  %v7918_v27 = vmul.f32 %v5045_v12, %v2263_v7  ;;  %v5049_v63 = vpop.eup %5048  ;;  %v1890_v52 = vmul.f32 %v7896_v22, %v7896_v22  ;;  %v10015_v7 = vld [vmem:[#allocation143_spill] sm:$0xff] }
 0x2f3   : > { %10001 = vst [vmem:[#allocation5_spill] sm:$0xff] %v7889_v9  ;;  %3539 = vperm.xlu1 %4835, %v7884_v31   ;;  %v7899_v51 = vpop.permute.xlu1 %3219  ;;  %v7901_v59 = vpop.permute.xlu0 %3274  ;;  %v7916_v47 = vmul.f32 0.020408163, %v10010_v42  ;;  %v2391_v26 = vadd.f32 1e-05, %v2133_v54  ;;  %v2135_v36 = vmax.f32 %v2006_v13, 0.0  ;;  %5058 = vrsqrt.f32 %v2389_v38 }
 0x2f4   : > { %10005 = vst [vmem:[#allocation247_spill] sm:$0xff] %v7899_v51  ;;  %10006 = vst [vmem:[#allocation248_spill] sm:$0xff] %v7901_v59  ;;  %3594 = vperm.xlu0 %4834, %v7891_v15   ;;  %v1879_v59 = vmul.f32 %v7889_v9, %v7889_v9  ;;  %v7913_v51 = vmul.f32 0.020408163, %v10008_v29  ;;  %v7927_v29 = vmul.f32 %v5047_v44, %v2254_v61  ;;  %v2265_v24 = vld [vmem:[%s6592_s21 + $0x378] sm:$0xff]  ;;  %v5051_v42 = vpop.eup %5050  ;;  %v2256_v22 = vld [vmem:[%s6592_s21 + $0x330] sm:$0xff]  ;;  %5060 = vrsqrt.f32 %v2400_v2 }
 0x2f5   : > { %10011 = vst [vmem:[#allocation7_spill] sm:$0xff] %v7916_v47  ;;  %10012 = vst [vmem:[#allocation17_spill] sm:$0xff] %v7918_v27  ;;  %v1752_v15 = vmul.f32 0.020408163, %v10015_v7  ;;  %v2402_v9 = vadd.f32 1e-05, %v2144_v16  ;;  %v2019_v13 = vsub.f32 %v1761_v41, %v1890_v52  ;;  %v7941_v38 = vmul.f32 %v5049_v63, %v2265_v24 }
 0x2f6   : > { %10009 = vst [vmem:[#allocation142_spill] sm:$0xff] %v7913_v51  ;;  %v2008_v12 = vsub.f32 %v1750_v62, %v1879_v59  ;;  %v2146_v54 = vmax.f32 %v2017_v25, 0.0  ;;  %v1881_v44 = vmul.f32 %v7913_v51, %v7913_v51  ;;  %v10016_v61 = vld [vmem:[#allocation9_spill] sm:$0xff]  ;;  %v1892_v59 = vmul.f32 %v7916_v47, %v7916_v47  ;;  %v5053_v62 = vpop.eup %5052  ;;  %v10019_v16 = vld [vmem:[#allocation18_spill] sm:$0xff]  ;;  %v2267_v7 = vld [vmem:[%s6592_s21 + $0x388] sm:$0xff] }
 0x2f7   : > { %3549 = vperm.xlu1 %4835, %v7906_v30   ;;  %v7923_v28 = vpop.permute.xlu1 %3229  ;;  %v7925_v45 = vpop.permute.xlu0 %3284  ;;  %10018 = vst [vmem:[#allocation9_spill] sm:$0xff] %v7941_v38  ;;  %v7944_v2 = vmul.f32 0.020408163, %v10019_v16  ;;  %5062 = vrsqrt.f32 %v2391_v26  ;;  %v2393_v25 = vadd.f32 1e-05, %v2135_v36  ;;  %v7951_v52 = vmul.f32 %v5051_v42, %v2256_v22  ;;  %v10023_v24 = vld [vmem:[#allocation198_spill] sm:$0xff] }
 0x2f8   : > { %10013 = vst [vmem:[#allocation249_spill] sm:$0xff] %v7923_v28  ;;  %10014 = vst [vmem:[#allocation250_spill] sm:$0xff] %v7925_v45  ;;  %3604 = vperm.xlu0 %4834, %v7918_v27   ;;  %v1763_v28 = vmul.f32 0.020408163, %v7392_v23  ;;  %v7937_v45 = vmul.f32 0.020408163, %v10016_v61  ;;  %v5055_v61 = vpop.eup %5054  ;;  %v2010_v63 = vsub.f32 %v1752_v15, %v1881_v44  ;;  %5064 = vrsqrt.f32 %v2402_v9 }
 0x2f9   : > { %10020 = vst [vmem:[#allocation18_spill] sm:$0xff] %v7944_v2  ;;  %v2137_v47 = vmax.f32 %v2008_v12, 0.0  ;;  %v1754_v27 = vmul.f32 0.020408163, %v10023_v24  ;;  %v2258_v16 = vld [vmem:[%s6592_s21 + $0x340] sm:$0xff]  ;;  %v2148_v36 = vmax.f32 %v2019_v13, 0.0  ;;  %v7963_v12 = vmul.f32 %v5053_v62, %v2267_v7 }
 0x2fa   : > { %10017 = vst [vmem:[#allocation143_spill] sm:$0xff] %v7937_v45  ;;  %v2404_v26 = vadd.f32 1e-05, %v2146_v54  ;;  %v2021_v51 = vsub.f32 %v1763_v28, %v1892_v59  ;;  %v1883_v22 = vmul.f32 %v7937_v45, %v7937_v45  ;;  %v10024_v42 = vld [vmem:[#allocation11_spill] sm:$0xff]  ;;  %v5057_v15 = vpop.eup %5056  ;;  %v10027_v44 = vld [vmem:[#allocation13_spill] sm:$0xff]  ;;  %v1894_v24 = vmul.f32 %v7944_v2, %v7944_v2 }
 0x2fb   : > { %3559 = vperm.xlu1 %4835, %v7927_v29   ;;  %v7947_v23 = vpop.permute.xlu1 %3239  ;;  %v7949_v41 = vpop.permute.xlu0 %3294  ;;  %10026 = vst [vmem:[#allocation11_spill] sm:$0xff] %v7963_v12  ;;  %v7966_v9 = vmul.f32 0.020408163, %v10027_v44  ;;  %5066 = vrsqrt.f32 %v2393_v25  ;;  %v7975_v54 = vmul.f32 %v5055_v61, %v2258_v16  ;;  %v2269_v13 = vld [vmem:[%s6592_s21 + $0x398] sm:$0xff]  ;;  %v2395_v59 = vadd.f32 1e-05, %v2137_v47 }
 0x2fc   : > { %10021 = vst [vmem:[#allocation251_spill] sm:$0xff] %v7947_v23  ;;  %10022 = vst [vmem:[#allocation252_spill] sm:$0xff] %v7949_v41  ;;  %3614 = vperm.xlu0 %4834, %v7941_v38   ;;  %v1765_v23 = vmul.f32 0.020408163, %v7426_v56  ;;  %v7961_v41 = vmul.f32 0.020408163, %v10024_v42  ;;  %v2012_v7 = vsub.f32 %v1754_v27, %v1883_v22  ;;  %5068 = vrsqrt.f32 %v2404_v26 }
 0x2fd   : > { %10028 = vst [vmem:[#allocation13_spill] sm:$0xff] %v7966_v9  ;;  %v2139_v62 = vmax.f32 %v2010_v63, 0.0  ;;  %v10031_v42 = vld [vmem:[#allocation145_spill] sm:$0xff]  ;;  %v2406_v25 = vadd.f32 1e-05, %v2148_v36  ;;  %v2150_v2 = vmax.f32 %v2021_v51, 0.0  ;;  %v5059_v45 = vpop.eup %5058  ;;  %v1887_v47 = vmul.f32 %v7966_v9, %v7966_v9 }
 0x2fe   : > { %10025 = vst [vmem:[#allocation198_spill] sm:$0xff] %v7961_v41  ;;  %v1756_v44 = vmul.f32 0.020408163, %v10031_v42  ;;  %v2023_v38 = vsub.f32 %v1765_v23, %v1894_v24  ;;  %v2260_v61 = vld [vmem:[%s6592_s21 + $0x350] sm:$0xff]  ;;  %v5061_v16 = vpop.eup %5060  ;;  %v1758_v27 = vmul.f32 0.020408163, %v7304_v6  ;;  %5070 = vrsqrt.f32 %v2395_v59 }
 0x2ff   : > { %3569 = vperm.xlu1 %4835, %v7951_v52   ;;  %v7971_v28 = vpop.permute.xlu1 %3249  ;;  %v7973_v56 = vpop.permute.xlu0 %3304  ;;  %v2271_v23 = vld [vmem:[%s6592_s21 + $0x3a8] sm:$0xff]  ;;  %v2397_v26 = vadd.f32 1e-05, %v2139_v62  ;;  %v2141_v36 = vmax.f32 %v2012_v7, 0.0  ;;  %5072 = vrsqrt.f32 %v2406_v25  ;;  %v2408_v24 = vadd.f32 1e-05, %v2150_v2 }
 0x300   : > { %10029 = vst [vmem:[#allocation253_spill] sm:$0xff] %v7971_v28  ;;  %10030 = vst [vmem:[#allocation254_spill] sm:$0xff] %v7973_v56  ;;  %3624 = vperm.xlu0 %4834, %v7963_v12   ;;  %v1885_v28 = vmul.f32 %v7961_v41, %v7961_v41  ;;  %v7982_v56 = vmul.f32 %v5057_v15, %v2269_v13  ;;  %v2152_v13 = vmax.f32 %v2023_v38, 0.0  ;;  %v10034_v12 = vld [vmem:[#allocation130_spill] sm:$0xff]  ;;  %v2273_v7 = vld [vmem:[%s6592_s21 + $0x3b8] sm:$0xff] }
 0x301   : > { %v5063_v15 = vpop.eup %5062  ;;  %v7995_v6 = vmul.f32 %v5059_v45, %v2260_v61  ;;  %v7998_v9 = vmul.f32 0.020408163, %v10034_v12  ;;  %v8000_v41 = vmul.f32 %v5061_v16, %v2271_v23  ;;  %v2016_v59 = vsub.f32 %v1758_v27, %v1887_v47  ;;  %v10038_v2 = vld [vmem:[#allocation148_spill] sm:$0xff]  ;;  %v10039_v47 = vld [vmem:[#allocation131_spill] sm:$0xff] }
 0x302   : > { %10032 = vst [vmem:[#allocation145_spill] sm:$0xff] %v7982_v56  ;;  %v2014_v22 = vsub.f32 %v1756_v44, %v1885_v28  ;;  %v5065_v42 = vpop.eup %5064  ;;  %5074 = vrsqrt.f32 %v2397_v26  ;;  %v2399_v38 = vadd.f32 1e-05, %v2141_v36  ;;  %v1760_v44 = vmul.f32 0.020408163, %v10038_v2  ;;  %v2264_v26 = vld [vmem:[%s6592_s21 + $0x370] sm:$0xff] }
 0x303   : > { %3579 = vperm.xlu1 %4835, %v7975_v54   ;;  %v7989_v63 = vpop.permute.xlu1 %3259  ;;  %v7991_v51 = vpop.permute.xlu0 %3314  ;;  %10035 = vst [vmem:[#allocation130_spill] sm:$0xff] %v7998_v9  ;;  %10036 = vst [vmem:[#allocation256_spill] sm:$0xff] %v8000_v41  ;;  %5076 = vrsqrt.f32 %v2408_v24  ;;  %v2410_v25 = vadd.f32 1e-05, %v2152_v13  ;;  %v1889_v16 = vmul.f32 %v7998_v9, %v7998_v9  ;;  %v8016_v27 = vmul.f32 0.020408163, %v10039_v47 }
 0x304   : > { %10033 = vst [vmem:[#allocation255_spill] sm:$0xff] %v7991_v51  ;;  %3634 = vperm.xlu0 %4834, %v7982_v56   ;;  %v2262_v51 = vld [vmem:[%s6592_s21 + $0x360] sm:$0xff]  ;;  %v2143_v45 = vmax.f32 %v2014_v22, 0.0  ;;  %v8018_v23 = vmul.f32 %v5065_v42, %v2273_v7  ;;  %v2145_v22 = vmax.f32 %v2016_v59, 0.0  ;;  %5078 = vrsqrt.f32 %v2399_v38 }
 0x305   : > { %v5067_v12 = vpop.eup %5066  ;;  %v8011_v61 = vmul.f32 %v5063_v15, %v2262_v51  ;;  %10040 = vst [vmem:[#allocation148_spill] sm:$0xff] %v8016_v27  ;;  %v2275_v51 = vld [vmem:[%s6592_s21 + $0x3c8] sm:$0xff]  ;;  %v2018_v13 = vsub.f32 %v1760_v44, %v1889_v16  ;;  %v1762_v47 = vmul.f32 0.020408163, %v7355_v53  ;;  %5080 = vrsqrt.f32 %v2410_v25  ;;  %v2266_v38 = vld [vmem:[%s6592_s21 + $0x380] sm:$0xff] }
 0x306   : > { %10041 = vst [vmem:[#allocation131_spill] sm:$0xff] %v8018_v23  ;;  %v5069_v36 = vpop.eup %5068  ;;  %v2401_v15 = vadd.f32 1e-05, %v2143_v45  ;;  %v8029_v42 = vmul.f32 %v5067_v12, %v2264_v26  ;;  %v1891_v7 = vmul.f32 %v8016_v27, %v8016_v27  ;;  %v2403_v44 = vadd.f32 1e-05, %v2145_v22  ;;  %v2277_v12 = vld [vmem:[%s6592_s21 + $0x3d8] sm:$0xff] }
 0x307   : > { %3589 = vperm.xlu1 %4835, %v7995_v6   ;;  %v8004_v28 = vpop.permute.xlu1 %3269  ;;  %v8006_v62 = vpop.permute.xlu0 %3324  ;;  %v2147_v16 = vmax.f32 %v2018_v13, 0.0 }
 0x308   : > { %10037 = vst [vmem:[#allocation257_spill] sm:$0xff] %v8006_v62  ;;  %3644 = vperm.xlu0 %4834, %v8000_v41   ;;  %v5071_v59 = vpop.eup %5070  ;;  %v10043_v62 = vld [vmem:[#allocation132_spill] sm:$0xff]  ;;  %5082 = vrsqrt.f32 %v2401_v15  ;;  %v2020_v26 = vsub.f32 %v1762_v47, %v1891_v7  ;;  %v2279_v47 = vld [vmem:[%s6592_s21 + $0x3e8] sm:$0xff] }
 0x309   : > { %v8034_v41 = vmul.f32 0.020408163, %v10043_v62  ;;  %v5073_v45 = vpop.eup %5072  ;;  %v1764_v62 = vmul.f32 0.020408163, %v7378_v14  ;;  %5084 = vrsqrt.f32 %v2403_v44 }
 0x30a   : > { %v8054_v27 = vmul.f32 %v5073_v45, %v2277_v12  ;;  %v2149_v7 = vmax.f32 %v2020_v26, 0.0 }
 0x30b   : > { %3599 = vperm.xlu1 %4835, %v8011_v61   ;;  %v8022_v2 = vpop.permute.xlu1 %3279  ;;  %v8024_v24 = vpop.permute.xlu0 %3334  ;;  %10044 = vst [vmem:[#allocation132_spill] sm:$0xff] %v8034_v41  ;;  %v1893_v22 = vmul.f32 %v8034_v41, %v8034_v41 }
 0x30c   : > { %10042 = vst [vmem:[#allocation258_spill] sm:$0xff] %v8024_v24  ;;  %3654 = vperm.xlu0 %4834, %v8018_v23   ;;  %v8036_v24 = vmul.f32 %v5069_v36, %v2275_v51  ;;  %v8047_v36 = vmul.f32 %v5071_v59, %v2266_v38  ;;  %v5075_v51 = vpop.eup %5074  ;;  %v10047_v23 = vld [vmem:[#allocation19_spill] sm:$0xff]  ;;  %10049 = vst [vmem:[#allocation261_spill] sm:$0xff] %v8054_v27  ;;  %v2405_v59 = vadd.f32 1e-05, %v2147_v16 }
 0x30d   : > { %v8052_v56 = vmul.f32 0.020408163, %v10047_v23  ;;  %v5077_v15 = vpop.eup %5076  ;;  %v2022_v38 = vsub.f32 %v1764_v62, %v1893_v22  ;;  %v1766_v23 = vmul.f32 0.020408163, %v7403_v20  ;;  %v2281_v20 = vld [vmem:[%s6592_s21 + $0x3f8] sm:$0xff] }
 0x30e   : > { %10045 = vst [vmem:[#allocation259_spill] sm:$0xff] %v8036_v24  ;;  %v5079_v12 = vpop.eup %5078  ;;  %5086 = vrsqrt.f32 %v2405_v59  ;;  %v2407_v62 = vadd.f32 1e-05, %v2149_v7  ;;  %v10056_v59 = vld [vmem:[#allocation150_spill] sm:$0xff] }
 0x30f   : > { %3609 = vperm.xlu1 %4835, %v8029_v42   ;;  %v8040_v53 = vpop.permute.xlu1 %3289  ;;  %v8042_v25 = vpop.permute.xlu0 %3344  ;;  %10048 = vst [vmem:[#allocation19_spill] sm:$0xff] %v8052_v56  ;;  %v1895_v44 = vmul.f32 %v8052_v56, %v8052_v56  ;;  %v2274_v56 = vld [vmem:[%s6592_s21 + $0x3c0] sm:$0xff] }
 0x310   : > { %10046 = vst [vmem:[#allocation260_spill] sm:$0xff] %v8042_v25  ;;  %3664 = vperm.xlu0 %4834, %v8036_v24   ;;  %v2268_v25 = vld [vmem:[%s6592_s21 + $0x390] sm:$0xff]  ;;  %v8069_v24 = vmul.f32 %v5077_v15, %v2279_v47  ;;  %v5081_v41 = vpop.eup %5080  ;;  %5088 = vrsqrt.f32 %v2407_v62 }
 0x311   : > { %v8065_v45 = vmul.f32 %v5075_v51, %v2268_v25  ;;  %v2151_v25 = vmax.f32 %v2022_v38, 0.0  ;;  %v2024_v51 = vsub.f32 %v1766_v23, %v1895_v44  ;;  %v8087_v47 = vmul.f32 %v5081_v41, %v2281_v20  ;;  %v2670_v44 = vld [vmem:[%s8083_s24] sm:$0xff]  ;;  %v2672_v62 = vld [vmem:[%s8083_s24 + $0x10] sm:$0xff] }
 0x312   : > { %10051 = vst [vmem:[#allocation263_spill] sm:$0xff] %v8069_v24  ;;  %v5083_v15 = vpop.eup %5082 }
 0x313   : > { %3619 = vperm.xlu1 %4835, %v8047_v36   ;;  %v8058_v14 = vpop.permute.xlu1 %3299  ;;  %v8060_v13 = vpop.permute.xlu0 %3354  ;;  %10054 = vst [vmem:[#allocation266_spill] sm:$0xff] %v8087_v47 }
 0x314   : > { %10050 = vst [vmem:[#allocation262_spill] sm:$0xff] %v8060_v13  ;;  %3674 = vperm.xlu0 %4834, %v8054_v27   ;;  %v2270_v13 = vld [vmem:[%s6592_s21 + $0x3a0] sm:$0xff]  ;;  %v10055_v27 = vld [vmem:[#allocation21_spill] sm:$0xff]  ;;  %v5085_v41 = vpop.eup %5084 }
 0x315   : > { %v8085_v22 = vmul.f32 %v5079_v12, %v2270_v13  ;;  %v2799_v7 = vmul.f32 %v10056_v59, %v10055_v27  ;;  %v2153_v13 = vmax.f32 %v2024_v51, 0.0  ;;  %v10060_v27 = vld [vmem:[#allocation20_spill] sm:$0xff]  ;;  %v10061_v59 = vld [vmem:[#allocation149_spill] sm:$0xff]  ;;  %v8110_v51 = vmul.f32 %v5085_v41, %v2274_v56 }
 0x316   : > { %v2801_v9 = vmul.f32 %v10061_v59, %v10060_v27  ;;  %v10070_v41 = vld [vmem:[#allocation28_spill] sm:$0xff] }
 0x317   : > { %3629 = vperm.xlu1 %4835, %v8065_v45   ;;  %v8073_v16 = vpop.permute.xlu1 %3309  ;;  %v8075_v26 = vpop.permute.xlu0 %3364  ;;  %10053 = vst [vmem:[#allocation265_spill] sm:$0xff] %v8085_v22  ;;  %v2928_v20 = vsub.f32 %v2670_v44, %v2799_v7  ;;  %10064 = vst [vmem:[#allocation268_spill] sm:$0xff] %v8110_v51  ;;  %v2276_v7 = vld [vmem:[%s6592_s21 + $0x3d0] sm:$0xff]  ;;  %v10065_v44 = vld [vmem:[#allocation26_spill] sm:$0xff] }
 0x318   : > { %10052 = vst [vmem:[#allocation264_spill] sm:$0xff] %v8075_v26  ;;  %3684 = vperm.xlu0 %4834, %v8069_v24   ;;  %v2272_v26 = vld [vmem:[%s6592_s21 + $0x3b0] sm:$0xff]  ;;  %v2409_v24 = vadd.f32 1e-05, %v2151_v25  ;;  %v2411_v25 = vadd.f32 1e-05, %v2153_v13 }
 0x319   : > { %v8099_v12 = vmul.f32 %v5083_v15, %v2272_v26  ;;  %v5087_v26 = vpop.eup %5086  ;;  %v2930_v15 = vsub.f32 %v2672_v62, %v2801_v9  ;;  %v2278_v9 = vld [vmem:[%s6592_s21 + $0x3e0] sm:$0xff] }
 0x31a   : > { %5090 = vrsqrt.f32 %v2409_v24  ;;  %v8121_v24 = vmul.f32 %v5087_v26, %v2276_v7  ;;  %v5089_v56 = vpop.eup %5088  ;;  %v10075_v7 = vld [vmem:[#allocation30_spill] sm:$0xff] }
 0x31b   : > { %3639 = vperm.xlu1 %4835, %v8085_v22   ;;  %v8093_v38 = vpop.permute.xlu1 %3319  ;;  %v8095_v23 = vpop.permute.xlu0 %3374  ;;  %10059 = vst [vmem:[#allocation267_spill] sm:$0xff] %v8099_v12  ;;  %5092 = vrsqrt.f32 %v2411_v25  ;;  %v8132_v25 = vmul.f32 %v5089_v56, %v2278_v9  ;;  %v10080_v9 = vld [vmem:[#allocation32_spill] sm:$0xff] }
 0x31c   : > { %10057 = vst [vmem:[#allocation21_spill] sm:$0xff] %v8093_v38  ;;  %10058 = vst [vmem:[#allocation150_spill] sm:$0xff] %v8095_v23  ;;  %3694 = vperm.xlu0 %4834, %v8087_v47   ;;  %v10066_v47 = vld [vmem:[#allocation153_spill] sm:$0xff] }
 0x31d   : > { %v2803_v27 = vmul.f32 %v10066_v47, %v10065_v44  ;;  %10069 = vst [vmem:[#allocation269_spill] sm:$0xff] %v8121_v24  ;;  %10074 = vst [vmem:[#allocation270_spill] sm:$0xff] %v8132_v25 }
 0x31f   : > { %3649 = vperm.xlu1 %4835, %v8099_v12   ;;  %v8105_v38 = vpop.permute.xlu1 %3329  ;;  %v8107_v23 = vpop.permute.xlu0 %3384 }
 0x320   : > { %10062 = vst [vmem:[#allocation20_spill] sm:$0xff] %v8105_v38  ;;  %10063 = vst [vmem:[#allocation149_spill] sm:$0xff] %v8107_v23  ;;  %3833 = vperm.xlu0 %4834, %v2928_v20   ;;  %v2674_v23 = vld [vmem:[%s8083_s24 + $0x20] sm:$0xff]  ;;  %v10071_v20 = vld [vmem:[#allocation157_spill] sm:$0xff] }
 0x321   : > { %v2932_v13 = vsub.f32 %v2674_v23, %v2803_v27  ;;  %v2805_v62 = vmul.f32 %v10071_v20, %v10070_v41  ;;  %v2280_v23 = vld [vmem:[%s6592_s21 + $0x3f0] sm:$0xff]  ;;  %v10076_v27 = vld [vmem:[#allocation161_spill] sm:$0xff] }
 0x323   : > { %3659 = vperm.xlu1 %4835, %v8110_v51   ;;  %v8116_v59 = vpop.permute.xlu1 %3339  ;;  %v8118_v38 = vpop.permute.xlu0 %3394  ;;  %v10088_v51 = vld [vmem:[#allocation165_spill] sm:$0xff] }
 0x324   : > { %10067 = vst [vmem:[#allocation26_spill] sm:$0xff] %v8116_v59  ;;  %10068 = vst [vmem:[#allocation153_spill] sm:$0xff] %v8118_v38  ;;  %3843 = vperm.xlu0 %4834, %v2930_v15   ;;  %v2676_v38 = vld [vmem:[%s8083_s24 + $0x30] sm:$0xff]  ;;  %v5091_v26 = vpop.eup %5090  ;;  %v2807_v59 = vmul.f32 %v10076_v27, %v10075_v7 }
 0x325   : > { %v2934_v15 = vsub.f32 %v2676_v38, %v2805_v62  ;;  %v5093_v56 = vpop.eup %5092  ;;  %v2282_v38 = vld [vmem:[%s6592_s21 + $0x400] sm:$0xff]  ;;  %v10081_v62 = vld [vmem:[#allocation163_spill] sm:$0xff] }
 0x327   : > { %3669 = vperm.xlu1 %4835, %v8121_v24   ;;  %v8127_v47 = vpop.permute.xlu1 %3349  ;;  %v8129_v44 = vpop.permute.xlu0 %3404  ;;  %v2809_v24 = vmul.f32 %v10081_v62, %v10080_v9 }
 0x328   : > { %10072 = vst [vmem:[#allocation28_spill] sm:$0xff] %v8127_v47  ;;  %10073 = vst [vmem:[#allocation157_spill] sm:$0xff] %v8129_v44  ;;  %3853 = vperm.xlu0 %4834, %v2932_v13   ;;  %v2678_v44 = vld [vmem:[%s8083_s24 + $0x40] sm:$0xff]  ;;  %v8143_v47 = vmul.f32 %v5091_v26, %v2280_v23  ;;  %v10085_v26 = vld [vmem:[#allocation24_spill] sm:$0xff] }
 0x329   : > { %v2936_v13 = vsub.f32 %v2678_v44, %v2807_v59  ;;  %v2671_v44 = vld [vmem:[%s8083_s24 + $0x8] sm:$0xff] }
 0x32a   : > { %10079 = vst [vmem:[#allocation271_spill] sm:$0xff] %v8143_v47 }
 0x32b   : > { %3679 = vperm.xlu1 %4835, %v8132_v25   ;;  %v8138_v41 = vpop.permute.xlu1 %3359  ;;  %v8140_v20 = vpop.permute.xlu0 %3414  ;;  %v10087_v25 = vld [vmem:[#allocation34_spill] sm:$0xff] }
 0x32c   : > { %10077 = vst [vmem:[#allocation30_spill] sm:$0xff] %v8138_v41  ;;  %10078 = vst [vmem:[#allocation161_spill] sm:$0xff] %v8140_v20  ;;  %3863 = vperm.xlu0 %4834, %v2934_v15   ;;  %v2680_v20 = vld [vmem:[%s8083_s24 + $0x50] sm:$0xff]  ;;  %v8154_v41 = vmul.f32 %v5093_v56, %v2282_v38  ;;  %v10086_v15 = vld [vmem:[#allocation147_spill] sm:$0xff]  ;;  %v2811_v9 = vmul.f32 %v10088_v51, %v10087_v25 }
 0x32d   : > { %v2800_v23 = vmul.f32 %v10086_v15, %v10085_v26  ;;  %v2938_v59 = vsub.f32 %v2680_v20, %v2809_v24  ;;  %v10092_v38 = vld [vmem:[#allocation151_spill] sm:$0xff]  ;;  %v2673_v24 = vld [vmem:[%s8083_s24 + $0x18] sm:$0xff]  ;;  %v10093_v20 = vld [vmem:[#allocation36_spill] sm:$0xff] }
 0x32e   : > { %10084 = vst [vmem:[#allocation272_spill] sm:$0xff] %v8154_v41  ;;  %v10094_v15 = vld [vmem:[#allocation167_spill] sm:$0xff] }
 0x32f   : > { %3689 = vperm.xlu1 %4835, %v8143_v47   ;;  %v8149_v7 = vpop.permute.xlu1 %3369  ;;  %v8151_v27 = vpop.permute.xlu0 %3424  ;;  %v2929_v56 = vsub.f32 %v2671_v44, %v2800_v23  ;;  %v2813_v12 = vmul.f32 %v10094_v15, %v10093_v20  ;;  %v10098_v23 = vld [vmem:[#allocation155_spill] sm:$0xff]  ;;  %v2686_v15 = vld [vmem:[%s8083_s24 + $0x80] sm:$0xff] }
 0x330   : > { %10082 = vst [vmem:[#allocation32_spill] sm:$0xff] %v8149_v7  ;;  %10083 = vst [vmem:[#allocation163_spill] sm:$0xff] %v8151_v27  ;;  %3873 = vperm.xlu0 %4834, %v2936_v13   ;;  %v2682_v27 = vld [vmem:[%s8083_s24 + $0x60] sm:$0xff]  ;;  %v10091_v13 = vld [vmem:[#allocation23_spill] sm:$0xff] }
 0x331   : > { %v2802_v47 = vmul.f32 %v10092_v38, %v10091_v13  ;;  %v2940_v26 = vsub.f32 %v2682_v27, %v2811_v9  ;;  %v2675_v27 = vld [vmem:[%s8083_s24 + $0x28] sm:$0xff]  ;;  %v10099_v9 = vld [vmem:[#allocation38_spill] sm:$0xff]  ;;  %v10100_v13 = vld [vmem:[#allocation169_spill] sm:$0xff] }
 0x332   : > { %v2815_v38 = vmul.f32 %v10100_v13, %v10099_v9  ;;  %v2688_v13 = vld [vmem:[%s8083_s24 + $0x90] sm:$0xff] }
 0x333   : > { %3699 = vperm.xlu1 %4835, %v8154_v41   ;;  %v8162_v62 = vpop.permute.xlu1 %3379  ;;  %v8164_v7 = vpop.permute.xlu0 %3434 }
 0x334   : > { %10089 = vst [vmem:[#allocation24_spill] sm:$0xff] %v8162_v62  ;;  %10090 = vst [vmem:[#allocation147_spill] sm:$0xff] %v8164_v7  ;;  %3883 = vperm.xlu0 %4834, %v2938_v59   ;;  %v2684_v7 = vld [vmem:[%s8083_s24 + $0x70] sm:$0xff]  ;;  %v2931_v62 = vsub.f32 %v2673_v24, %v2802_v47  ;;  %v10097_v59 = vld [vmem:[#allocation25_spill] sm:$0xff] }
 0x335   : > { %v2804_v44 = vmul.f32 %v10098_v23, %v10097_v59  ;;  %v2942_v41 = vsub.f32 %v2684_v7, %v2813_v12  ;;  %v10104_v47 = vld [vmem:[#allocation159_spill] sm:$0xff]  ;;  %v2677_v12 = vld [vmem:[%s8083_s24 + $0x38] sm:$0xff]  ;;  %v10105_v7 = vld [vmem:[#allocation40_spill] sm:$0xff] }
 0x336   : > { %v10106_v59 = vld [vmem:[#allocation171_spill] sm:$0xff] }
 0x337   : > { %3838 = vperm.xlu1 %4835, %v2929_v56   ;;  %v8172_v51 = vpop.permute.xlu1 %3389  ;;  %v8174_v25 = vpop.permute.xlu0 %3444  ;;  %v2817_v23 = vmul.f32 %v10106_v59, %v10105_v7  ;;  %v2690_v7 = vld [vmem:[%s8083_s24 + $0xa0] sm:$0xff] }
 0x338   : > { %10095 = vst [vmem:[#allocation34_spill] sm:$0xff] %v8172_v51  ;;  %10096 = vst [vmem:[#allocation165_spill] sm:$0xff] %v8174_v25  ;;  %3893 = vperm.xlu0 %4834, %v2940_v26   ;;  %v2933_v25 = vsub.f32 %v2675_v27, %v2804_v44  ;;  %v10103_v26 = vld [vmem:[#allocation27_spill] sm:$0xff]  ;;  %v2944_v51 = vsub.f32 %v2686_v15, %v2815_v38  ;;  %v10110_v44 = vld [vmem:[#allocation152_spill] sm:$0xff] }
 0x339   : > { %v2806_v24 = vmul.f32 %v10104_v47, %v10103_v26  ;;  %v2679_v38 = vld [vmem:[%s8083_s24 + $0x48] sm:$0xff]  ;;  %v10111_v15 = vld [vmem:[#allocation42_spill] sm:$0xff] }
 0x33a   : > { %v10112_v26 = vld [vmem:[#allocation174_spill] sm:$0xff] }
 0x33b   : > { %3848 = vperm.xlu1 %4835, %v2931_v62   ;;  %v8182_v20 = vpop.permute.xlu1 %3399  ;;  %v8184_v56 = vpop.permute.xlu0 %3454  ;;  %v2819_v47 = vmul.f32 %v10112_v26, %v10111_v15 }
 0x33c   : > { %10101 = vst [vmem:[#allocation23_spill] sm:$0xff] %v8182_v20  ;;  %10102 = vst [vmem:[#allocation151_spill] sm:$0xff] %v8184_v56  ;;  %3903 = vperm.xlu0 %4834, %v2942_v41   ;;  %v2935_v56 = vsub.f32 %v2677_v12, %v2806_v24  ;;  %v10109_v41 = vld [vmem:[#allocation29_spill] sm:$0xff]  ;;  %v2946_v20 = vsub.f32 %v2688_v13, %v2817_v23  ;;  %v10116_v24 = vld [vmem:[#allocation154_spill] sm:$0xff] }
 0x33d   : > { %v2808_v27 = vmul.f32 %v10110_v44, %v10109_v41  ;;  %v2681_v23 = vld [vmem:[%s8083_s24 + $0x58] sm:$0xff]  ;;  %v10117_v13 = vld [vmem:[#allocation44_spill] sm:$0xff] }
 0x33e   : > { %v10118_v41 = vld [vmem:[#allocation177_spill] sm:$0xff] }
 0x33f   : > { %3858 = vperm.xlu1 %4835, %v2933_v25   ;;  %v8192_v9 = vpop.permute.xlu1 %3409  ;;  %v8194_v62 = vpop.permute.xlu0 %3464  ;;  %v2937_v59 = vsub.f32 %v2679_v38, %v2808_v27  ;;  %v2821_v44 = vmul.f32 %v10118_v41, %v10117_v13  ;;  %v10122_v27 = vld [vmem:[#allocation156_spill] sm:$0xff] }
 0x340   : > { %10107 = vst [vmem:[#allocation36_spill] sm:$0xff] %v8192_v9  ;;  %10108 = vst [vmem:[#allocation167_spill] sm:$0xff] %v8194_v62  ;;  %3913 = vperm.xlu0 %4834, %v2944_v51   ;;  %v10115_v51 = vld [vmem:[#allocation31_spill] sm:$0xff]  ;;  %v2948_v62 = vsub.f32 %v2690_v7, %v2819_v47  ;;  %v10123_v7 = vld [vmem:[#allocation46_spill] sm:$0xff] }
 0x341   : > { %v2810_v12 = vmul.f32 %v10116_v24, %v10115_v51  ;;  %v2683_v47 = vld [vmem:[%s8083_s24 + $0x68] sm:$0xff]  ;;  %v10124_v51 = vld [vmem:[#allocation138_spill] sm:$0xff] }
 0x342   : > { %v2823_v24 = vmul.f32 %v10124_v51, %v10123_v7 }
 0x343   : > { %v8202_v22 = vpop.permute.xlu1 %3419  ;;  %3868 = vperm.xlu1 %4835, %v2935_v56   ;;  %v8204_v25 = vpop.permute.xlu0 %3474  ;;  %v2692_v56 = vld [vmem:[%s8083_s24 + $0xb0] sm:$0xff]  ;;  %v2939_v26 = vsub.f32 %v2681_v23, %v2810_v12  ;;  %v10128_v12 = vld [vmem:[#allocation158_spill] sm:$0xff] }
 0x344   : > { %10113 = vst [vmem:[#allocation25_spill] sm:$0xff] %v8202_v22  ;;  %10114 = vst [vmem:[#allocation155_spill] sm:$0xff] %v8204_v25  ;;  %3923 = vperm.xlu0 %4834, %v2946_v20   ;;  %v10121_v20 = vld [vmem:[#allocation33_spill] sm:$0xff]  ;;  %v2950_v25 = vsub.f32 %v2692_v56, %v2821_v44  ;;  %v10129_v56 = vld [vmem:[#allocation48_spill] sm:$0xff] }
 0x345   : > { %v2812_v38 = vmul.f32 %v10122_v27, %v10121_v20  ;;  %v2685_v44 = vld [vmem:[%s8083_s24 + $0x78] sm:$0xff]  ;;  %v10130_v20 = vld [vmem:[#allocation180_spill] sm:$0xff] }
 0x346   : > { %v2825_v27 = vmul.f32 %v10130_v20, %v10129_v56 }
 0x347   : > { %v8212_v9 = vpop.permute.xlu1 %3429  ;;  %3878 = vperm.xlu1 %4835, %v2937_v59   ;;  %v8214_v15 = vpop.permute.xlu0 %3484  ;;  %v2694_v59 = vld [vmem:[%s8083_s24 + $0xc0] sm:$0xff]  ;;  %v2941_v41 = vsub.f32 %v2683_v47, %v2812_v38  ;;  %v10134_v38 = vld [vmem:[#allocation160_spill] sm:$0xff] }
 0x348   : > { %10119 = vst [vmem:[#allocation38_spill] sm:$0xff] %v8212_v9  ;;  %10120 = vst [vmem:[#allocation169_spill] sm:$0xff] %v8214_v15  ;;  %3933 = vperm.xlu0 %4834, %v2948_v62   ;;  %v10127_v62 = vld [vmem:[#allocation35_spill] sm:$0xff]  ;;  %v2952_v15 = vsub.f32 %v2694_v59, %v2823_v24  ;;  %v10135_v59 = vld [vmem:[#allocation50_spill] sm:$0xff] }
 0x349   : > { %v2814_v23 = vmul.f32 %v10128_v12, %v10127_v62  ;;  %v2687_v24 = vld [vmem:[%s8083_s24 + $0x88] sm:$0xff]  ;;  %v10136_v62 = vld [vmem:[#allocation181_spill] sm:$0xff] }
 0x34a   : > { %v2827_v12 = vmul.f32 %v10136_v62, %v10135_v59 }
 0x34b   : > { %v8222_v22 = vpop.permute.xlu1 %3439  ;;  %3888 = vperm.xlu1 %4835, %v2939_v26   ;;  %v8224_v13 = vpop.permute.xlu0 %3494  ;;  %v2696_v26 = vld [vmem:[%s8083_s24 + $0xd0] sm:$0xff]  ;;  %v2943_v51 = vsub.f32 %v2685_v44, %v2814_v23  ;;  %v10140_v23 = vld [vmem:[#allocation162_spill] sm:$0xff] }
 0x34c   : > { %10125 = vst [vmem:[#allocation27_spill] sm:$0xff] %v8222_v22  ;;  %10126 = vst [vmem:[#allocation159_spill] sm:$0xff] %v8224_v13  ;;  %3943 = vperm.xlu0 %4834, %v2950_v25   ;;  %v10133_v25 = vld [vmem:[#allocation37_spill] sm:$0xff]  ;;  %v2954_v13 = vsub.f32 %v2696_v26, %v2825_v27  ;;  %v10141_v26 = vld [vmem:[#allocation52_spill] sm:$0xff] }
 0x34d   : > { %v2816_v47 = vmul.f32 %v10134_v38, %v10133_v25  ;;  %v2689_v27 = vld [vmem:[%s8083_s24 + $0x98] sm:$0xff]  ;;  %v10142_v25 = vld [vmem:[#allocation135_spill] sm:$0xff] }
 0x34e   : > { %v2829_v38 = vmul.f32 %v10142_v25, %v10141_v26 }
 0x34f   : > { %v8232_v9 = vpop.permute.xlu1 %3449  ;;  %3898 = vperm.xlu1 %4835, %v2941_v41   ;;  %v8234_v7 = vpop.permute.xlu0 %3504  ;;  %v2698_v41 = vld [vmem:[%s8083_s24 + $0xe0] sm:$0xff]  ;;  %v2945_v20 = vsub.f32 %v2687_v24, %v2816_v47  ;;  %v10146_v47 = vld [vmem:[#allocation164_spill] sm:$0xff] }
 0x350   : > { %10131 = vst [vmem:[#allocation40_spill] sm:$0xff] %v8232_v9  ;;  %10132 = vst [vmem:[#allocation171_spill] sm:$0xff] %v8234_v7  ;;  %3953 = vperm.xlu0 %4834, %v2952_v15   ;;  %v10139_v15 = vld [vmem:[#allocation39_spill] sm:$0xff]  ;;  %v2956_v7 = vsub.f32 %v2698_v41, %v2827_v12  ;;  %v10147_v41 = vld [vmem:[#allocation54_spill] sm:$0xff] }
 0x351   : > { %v2818_v44 = vmul.f32 %v10140_v23, %v10139_v15  ;;  %v2691_v12 = vld [vmem:[%s8083_s24 + $0xa8] sm:$0xff]  ;;  %v10148_v15 = vld [vmem:[#allocation184_spill] sm:$0xff] }
 0x352   : > { %v2831_v23 = vmul.f32 %v10148_v15, %v10147_v41 }
 0x353   : > { %v8242_v22 = vpop.permute.xlu1 %3459  ;;  %3908 = vperm.xlu1 %4835, %v2943_v51   ;;  %v8244_v56 = vpop.permute.xlu0 %3514  ;;  %v2700_v51 = vld [vmem:[%s8083_s24 + $0xf0] sm:$0xff]  ;;  %v2947_v62 = vsub.f32 %v2689_v27, %v2818_v44  ;;  %v10152_v44 = vld [vmem:[#allocation166_spill] sm:$0xff] }
 0x354   : > { %10137 = vst [vmem:[#allocation29_spill] sm:$0xff] %v8242_v22  ;;  %10138 = vst [vmem:[#allocation152_spill] sm:$0xff] %v8244_v56  ;;  %3963 = vperm.xlu0 %4834, %v2954_v13   ;;  %v10145_v13 = vld [vmem:[#allocation41_spill] sm:$0xff]  ;;  %v2958_v56 = vsub.f32 %v2700_v51, %v2829_v38  ;;  %v10153_v51 = vld [vmem:[#allocation56_spill] sm:$0xff] }
 0x355   : > { %v2820_v24 = vmul.f32 %v10146_v47, %v10145_v13  ;;  %v2693_v38 = vld [vmem:[%s8083_s24 + $0xb8] sm:$0xff]  ;;  %v10154_v13 = vld [vmem:[#allocation186_spill] sm:$0xff] }
 0x356   : > { %v2833_v47 = vmul.f32 %v10154_v13, %v10153_v51 }
 0x357   : > { %v8252_v9 = vpop.permute.xlu1 %3469  ;;  %3918 = vperm.xlu1 %4835, %v2945_v20   ;;  %v8254_v59 = vpop.permute.xlu0 %3524  ;;  %v2702_v20 = vld [vmem:[%s8083_s24 + $0x100] sm:$0xff]  ;;  %v2949_v25 = vsub.f32 %v2691_v12, %v2820_v24  ;;  %v10158_v24 = vld [vmem:[#allocation168_spill] sm:$0xff] }
 0x358   : > { %10143 = vst [vmem:[#allocation42_spill] sm:$0xff] %v8252_v9  ;;  %10144 = vst [vmem:[#allocation174_spill] sm:$0xff] %v8254_v59  ;;  %3973 = vperm.xlu0 %4834, %v2956_v7   ;;  %v10151_v7 = vld [vmem:[#allocation43_spill] sm:$0xff]  ;;  %v2960_v59 = vsub.f32 %v2702_v20, %v2831_v23  ;;  %v10159_v20 = vld [vmem:[#allocation58_spill] sm:$0xff] }
 0x359   : > { %v2822_v27 = vmul.f32 %v10152_v44, %v10151_v7  ;;  %v2695_v23 = vld [vmem:[%s8083_s24 + $0xc8] sm:$0xff]  ;;  %v10160_v7 = vld [vmem:[#allocation188_spill] sm:$0xff] }
 0x35a   : > { %v2835_v44 = vmul.f32 %v10160_v7, %v10159_v20 }
 0x35b   : > { %v8262_v22 = vpop.permute.xlu1 %3479  ;;  %3928 = vperm.xlu1 %4835, %v2947_v62   ;;  %v8264_v26 = vpop.permute.xlu0 %3534  ;;  %v2704_v62 = vld [vmem:[%s8083_s24 + $0x110] sm:$0xff]  ;;  %v2951_v15 = vsub.f32 %v2693_v38, %v2822_v27  ;;  %v10164_v27 = vld [vmem:[#allocation170_spill] sm:$0xff] }
 0x35c   : > { %10149 = vst [vmem:[#allocation31_spill] sm:$0xff] %v8262_v22  ;;  %10150 = vst [vmem:[#allocation154_spill] sm:$0xff] %v8264_v26  ;;  %3983 = vperm.xlu0 %4834, %v2958_v56   ;;  %v10157_v56 = vld [vmem:[#allocation45_spill] sm:$0xff]  ;;  %v2962_v26 = vsub.f32 %v2704_v62, %v2833_v47  ;;  %v10165_v62 = vld [vmem:[#allocation60_spill] sm:$0xff] }
 0x35d   : > { %v2824_v12 = vmul.f32 %v10158_v24, %v10157_v56  ;;  %v2697_v47 = vld [vmem:[%s8083_s24 + $0xd8] sm:$0xff]  ;;  %v10166_v56 = vld [vmem:[#allocation190_spill] sm:$0xff] }
 0x35e   : > { %v2837_v24 = vmul.f32 %v10166_v56, %v10165_v62 }
 0x35f   : > { %v8272_v9 = vpop.permute.xlu1 %3489  ;;  %3938 = vperm.xlu1 %4835, %v2949_v25   ;;  %v8274_v41 = vpop.permute.xlu0 %3544  ;;  %v2706_v25 = vld [vmem:[%s8083_s24 + $0x120] sm:$0xff]  ;;  %v2953_v13 = vsub.f32 %v2695_v23, %v2824_v12  ;;  %v10170_v12 = vld [vmem:[#allocation172_spill] sm:$0xff] }
 0x360   : > { %10155 = vst [vmem:[#allocation44_spill] sm:$0xff] %v8272_v9  ;;  %10156 = vst [vmem:[#allocation177_spill] sm:$0xff] %v8274_v41  ;;  %3993 = vperm.xlu0 %4834, %v2960_v59   ;;  %v10163_v59 = vld [vmem:[#allocation47_spill] sm:$0xff]  ;;  %v2964_v41 = vsub.f32 %v2706_v25, %v2835_v44  ;;  %v10171_v25 = vld [vmem:[#allocation62_spill] sm:$0xff] }
 0x361   : > { %v2826_v38 = vmul.f32 %v10164_v27, %v10163_v59  ;;  %v2699_v44 = vld [vmem:[%s8083_s24 + $0xe8] sm:$0xff]  ;;  %v10172_v59 = vld [vmem:[#allocation192_spill] sm:$0xff] }
 0x362   : > { %v2839_v27 = vmul.f32 %v10172_v59, %v10171_v25 }
 0x363   : > { %v8282_v22 = vpop.permute.xlu1 %3499  ;;  %3948 = vperm.xlu1 %4835, %v2951_v15   ;;  %v8284_v51 = vpop.permute.xlu0 %3554  ;;  %v2708_v15 = vld [vmem:[%s8083_s24 + $0x130] sm:$0xff]  ;;  %v2955_v7 = vsub.f32 %v2697_v47, %v2826_v38  ;;  %v10176_v38 = vld [vmem:[#allocation175_spill] sm:$0xff] }
 0x364   : > { %10161 = vst [vmem:[#allocation33_spill] sm:$0xff] %v8282_v22  ;;  %10162 = vst [vmem:[#allocation156_spill] sm:$0xff] %v8284_v51  ;;  %4003 = vperm.xlu0 %4834, %v2962_v26   ;;  %v10169_v26 = vld [vmem:[#allocation49_spill] sm:$0xff]  ;;  %v2966_v51 = vsub.f32 %v2708_v15, %v2837_v24  ;;  %v10177_v15 = vld [vmem:[#allocation64_spill] sm:$0xff] }
 0x365   : > { %v2828_v23 = vmul.f32 %v10170_v12, %v10169_v26  ;;  %v2701_v24 = vld [vmem:[%s8083_s24 + $0xf8] sm:$0xff]  ;;  %v10178_v26 = vld [vmem:[#allocation194_spill] sm:$0xff] }
 0x366   : > { %v2841_v12 = vmul.f32 %v10178_v26, %v10177_v15 }
 0x367   : > { %v8292_v9 = vpop.permute.xlu1 %3509  ;;  %3958 = vperm.xlu1 %4835, %v2953_v13   ;;  %v8294_v20 = vpop.permute.xlu0 %3564  ;;  %v2710_v13 = vld [vmem:[%s8083_s24 + $0x140] sm:$0xff]  ;;  %v2957_v56 = vsub.f32 %v2699_v44, %v2828_v23 }
 0x368   : > { %10167 = vst [vmem:[#allocation46_spill] sm:$0xff] %v8292_v9  ;;  %10168 = vst [vmem:[#allocation138_spill] sm:$0xff] %v8294_v20  ;;  %4013 = vperm.xlu0 %4834, %v2964_v41   ;;  %v10175_v41 = vld [vmem:[#allocation51_spill] sm:$0xff]  ;;  %v2968_v20 = vsub.f32 %v2710_v13, %v2839_v27  ;;  %v10182_v23 = vld [vmem:[#allocation178_spill] sm:$0xff] }
 0x369   : > { %v2830_v47 = vmul.f32 %v10176_v38, %v10175_v41  ;;  %v2703_v27 = vld [vmem:[%s8083_s24 + $0x108] sm:$0xff]  ;;  %v10183_v13 = vld [vmem:[#allocation66_spill] sm:$0xff]  ;;  %v10184_v41 = vld [vmem:[#allocation197_spill] sm:$0xff] }
 0x36a   : > { %v2843_v38 = vmul.f32 %v10184_v41, %v10183_v13 }
 0x36b   : > { %v8302_v22 = vpop.permute.xlu1 %3519  ;;  %3968 = vperm.xlu1 %4835, %v2955_v7   ;;  %v8304_v62 = vpop.permute.xlu0 %3574  ;;  %v2712_v7 = vld [vmem:[%s8083_s24 + $0x150] sm:$0xff]  ;;  %v2959_v59 = vsub.f32 %v2701_v24, %v2830_v47  ;;  %v10188_v47 = vld [vmem:[#allocation133_spill] sm:$0xff] }
 0x36c   : > { %10173 = vst [vmem:[#allocation35_spill] sm:$0xff] %v8302_v22  ;;  %10174 = vst [vmem:[#allocation158_spill] sm:$0xff] %v8304_v62  ;;  %4023 = vperm.xlu0 %4834, %v2966_v51   ;;  %v10181_v51 = vld [vmem:[#allocation53_spill] sm:$0xff]  ;;  %v2970_v62 = vsub.f32 %v2712_v7, %v2841_v12  ;;  %v10189_v7 = vld [vmem:[#allocation68_spill] sm:$0xff] }
 0x36d   : > { %v2832_v44 = vmul.f32 %v10182_v23, %v10181_v51  ;;  %v2705_v12 = vld [vmem:[%s8083_s24 + $0x118] sm:$0xff]  ;;  %v10190_v51 = vld [vmem:[#allocation199_spill] sm:$0xff] }
 0x36e   : > { %v2845_v23 = vmul.f32 %v10190_v51, %v10189_v7 }
 0x36f   : > { %v8312_v9 = vpop.permute.xlu1 %3529  ;;  %3978 = vperm.xlu1 %4835, %v2957_v56   ;;  %v8314_v25 = vpop.permute.xlu0 %3584  ;;  %v2714_v56 = vld [vmem:[%s8083_s24 + $0x160] sm:$0xff]  ;;  %v2961_v26 = vsub.f32 %v2703_v27, %v2832_v44 }
 0x370   : > { %10179 = vst [vmem:[#allocation48_spill] sm:$0xff] %v8312_v9  ;;  %10180 = vst [vmem:[#allocation180_spill] sm:$0xff] %v8314_v25  ;;  %4033 = vperm.xlu0 %4834, %v2968_v20   ;;  %v10187_v20 = vld [vmem:[#allocation55_spill] sm:$0xff]  ;;  %v2972_v25 = vsub.f32 %v2714_v56, %v2843_v38  ;;  %v10194_v44 = vld [vmem:[#allocation74_spill] sm:$0xff] }
 0x371   : > { %v2834_v24 = vmul.f32 %v10188_v47, %v10187_v20  ;;  %v2707_v38 = vld [vmem:[%s8083_s24 + $0x128] sm:$0xff]  ;;  %v10195_v56 = vld [vmem:[#allocation70_spill] sm:$0xff]  ;;  %v10196_v20 = vld [vmem:[#allocation201_spill] sm:$0xff] }
 0x372   : > { %v2847_v47 = vmul.f32 %v10196_v20, %v10195_v56 }
 0x373   : > { %v8322_v22 = vpop.permute.xlu1 %3539  ;;  %3988 = vperm.xlu1 %4835, %v2959_v59   ;;  %v8324_v15 = vpop.permute.xlu0 %3594  ;;  %v2716_v59 = vld [vmem:[%s8083_s24 + $0x170] sm:$0xff]  ;;  %v2963_v41 = vsub.f32 %v2705_v12, %v2834_v24  ;;  %v10199_v24 = vld [vmem:[#allocation182_spill] sm:$0xff] }
 0x374   : > { %10185 = vst [vmem:[#allocation37_spill] sm:$0xff] %v8322_v22  ;;  %10186 = vst [vmem:[#allocation160_spill] sm:$0xff] %v8324_v15  ;;  %4043 = vperm.xlu0 %4834, %v2970_v62   ;;  %v10193_v62 = vld [vmem:[#allocation57_spill] sm:$0xff]  ;;  %v2974_v15 = vsub.f32 %v2716_v59, %v2845_v23 }
 0x375   : > { %v2836_v27 = vmul.f32 %v10194_v44, %v10193_v62  ;;  %v2709_v23 = vld [vmem:[%s8083_s24 + $0x138] sm:$0xff]  ;;  %v10201_v62 = vld [vmem:[#allocation146_spill] sm:$0xff] }
 0x376   : > { %v10200_v59 = vld [vmem:[#allocation73_spill] sm:$0xff] }
 0x377   : > { %v8332_v9 = vpop.permute.xlu1 %3549  ;;  %3998 = vperm.xlu1 %4835, %v2961_v26   ;;  %v8334_v13 = vpop.permute.xlu0 %3604  ;;  %v2718_v26 = vld [vmem:[%s8083_s24 + $0x180] sm:$0xff]  ;;  %v2965_v51 = vsub.f32 %v2707_v38, %v2836_v27  ;;  %v2849_v44 = vmul.f32 %v10201_v62, %v10200_v59  ;;  %v10205_v27 = vld [vmem:[#allocation183_spill] sm:$0xff] }
 0x378   : > { %10191 = vst [vmem:[#allocation50_spill] sm:$0xff] %v8332_v9  ;;  %10192 = vst [vmem:[#allocation181_spill] sm:$0xff] %v8334_v13  ;;  %4053 = vperm.xlu0 %4834, %v2972_v25   ;;  %v10198_v25 = vld [vmem:[#allocation59_spill] sm:$0xff]  ;;  %v2976_v13 = vsub.f32 %v2718_v26, %v2847_v47 }
 0x379   : > { %v2838_v12 = vmul.f32 %v10199_v24, %v10198_v25  ;;  %v2711_v47 = vld [vmem:[%s8083_s24 + $0x148] sm:$0xff] }
 0x37a   : > { %v10206_v26 = vld [vmem:[#allocation75_spill] sm:$0xff] }
 0x37b   : > { %v8342_v22 = vpop.permute.xlu1 %3559  ;;  %4008 = vperm.xlu1 %4835, %v2963_v41   ;;  %v8344_v7 = vpop.permute.xlu0 %3614  ;;  %v2720_v41 = vld [vmem:[%s8083_s24 + $0x190] sm:$0xff]  ;;  %v2967_v20 = vsub.f32 %v2709_v23, %v2838_v12  ;;  %v2851_v25 = vmul.f32 %v7342_v19, %v10206_v26  ;;  %v10210_v12 = vld [vmem:[#allocation185_spill] sm:$0xff] }
 0x37c   : > { %10197 = vst [vmem:[#allocation39_spill] sm:$0xff] %v8344_v7  ;;  %4063 = vperm.xlu0 %4834, %v2974_v15   ;;  %v10204_v15 = vld [vmem:[#allocation61_spill] sm:$0xff]  ;;  %v2978_v7 = vsub.f32 %v2720_v41, %v2849_v44 }
 0x37d   : > { %v2840_v38 = vmul.f32 %v10205_v27, %v10204_v15  ;;  %v2713_v44 = vld [vmem:[%s8083_s24 + $0x158] sm:$0xff] }
 0x37e   : > { %v10211_v41 = vld [vmem:[#allocation77_spill] sm:$0xff] }
 0x37f   : > { %v8352_v9 = vpop.permute.xlu1 %3569  ;;  %4018 = vperm.xlu1 %4835, %v2965_v51   ;;  %v8354_v56 = vpop.permute.xlu0 %3624  ;;  %v2722_v51 = vld [vmem:[%s8083_s24 + $0x1a0] sm:$0xff]  ;;  %v2969_v62 = vsub.f32 %v2711_v47, %v2840_v38  ;;  %v10212_v15 = vld [vmem:[#allocation205_spill] sm:$0xff] }
 0x380   : > { %10202 = vst [vmem:[#allocation162_spill] sm:$0xff] %v8352_v9  ;;  %10203 = vst [vmem:[#allocation52_spill] sm:$0xff] %v8354_v56  ;;  %4073 = vperm.xlu0 %4834, %v2976_v13   ;;  %v10209_v13 = vld [vmem:[#allocation63_spill] sm:$0xff]  ;;  %v2980_v56 = vsub.f32 %v2722_v51, %v2851_v25  ;;  %v2853_v27 = vmul.f32 %v10212_v15, %v10211_v41  ;;  %v10215_v38 = vld [vmem:[#allocation137_spill] sm:$0xff] }
 0x381   : > { %v2842_v23 = vmul.f32 %v10210_v12, %v10209_v13  ;;  %v2715_v25 = vld [vmem:[%s8083_s24 + $0x168] sm:$0xff] }
 0x382   : > { %v10216_v51 = vld [vmem:[#allocation79_spill] sm:$0xff] }
 0x383   : > { %v8362_v24 = vpop.permute.xlu1 %3579  ;;  %4028 = vperm.xlu1 %4835, %v2967_v20   ;;  %v8364_v59 = vpop.permute.xlu0 %3634  ;;  %v2724_v20 = vld [vmem:[%s8083_s24 + $0x1b0] sm:$0xff]  ;;  %v2971_v26 = vsub.f32 %v2713_v44, %v2842_v23  ;;  %v10217_v13 = vld [vmem:[#allocation207_spill] sm:$0xff]  ;;  %v10220_v23 = vld [vmem:[#allocation189_spill] sm:$0xff] }
 0x384   : > { %10207 = vst [vmem:[#allocation135_spill] sm:$0xff] %v8362_v24  ;;  %10208 = vst [vmem:[#allocation41_spill] sm:$0xff] %v8364_v59  ;;  %4083 = vperm.xlu0 %4834, %v2978_v7   ;;  %v10214_v7 = vld [vmem:[#allocation65_spill] sm:$0xff]  ;;  %v2982_v59 = vsub.f32 %v2724_v20, %v2853_v27  ;;  %v2855_v12 = vmul.f32 %v10217_v13, %v10216_v51 }
 0x385   : > { %v2844_v47 = vmul.f32 %v10215_v38, %v10214_v7  ;;  %v2717_v27 = vld [vmem:[%s8083_s24 + $0x178] sm:$0xff] }
 0x386   : > { %v10221_v20 = vld [vmem:[#allocation81_spill] sm:$0xff] }
 0x387   : > { %v8372_v9 = vpop.permute.xlu1 %3589  ;;  %4038 = vperm.xlu1 %4835, %v2969_v62   ;;  %v8374_v19 = vpop.permute.xlu0 %3644  ;;  %v2726_v62 = vld [vmem:[%s8083_s24 + $0x1c0] sm:$0xff]  ;;  %v2973_v15 = vsub.f32 %v2715_v25, %v2844_v47  ;;  %v2857_v7 = vmul.f32 %v7414_v4, %v10221_v20  ;;  %v10224_v47 = vld [vmem:[#allocation191_spill] sm:$0xff] }
 0x388   : > { %10213 = vst [vmem:[#allocation164_spill] sm:$0xff] %v8374_v19  ;;  %4093 = vperm.xlu0 %4834, %v2980_v56   ;;  %v10219_v56 = vld [vmem:[#allocation67_spill] sm:$0xff]  ;;  %v2984_v19 = vsub.f32 %v2726_v62, %v2855_v12 }
 0x389   : > { %v2846_v44 = vmul.f32 %v10220_v23, %v10219_v56  ;;  %v2719_v12 = vld [vmem:[%s8083_s24 + $0x188] sm:$0xff] }
 0x38a   : > { %v10225_v62 = vld [vmem:[#allocation83_spill] sm:$0xff] }
 0x38b   : > { %v8382_v24 = vpop.permute.xlu1 %3599  ;;  %4048 = vperm.xlu1 %4835, %v2971_v26   ;;  %v8384_v41 = vpop.permute.xlu0 %3654  ;;  %v2728_v26 = vld [vmem:[%s8083_s24 + $0x1d0] sm:$0xff]  ;;  %v2975_v13 = vsub.f32 %v2717_v27, %v2846_v44  ;;  %v2859_v56 = vmul.f32 %v7439_v40, %v10225_v62  ;;  %v10228_v44 = vld [vmem:[#allocation193_spill] sm:$0xff] }
 0x38c   : > { %10218 = vst [vmem:[#allocation54_spill] sm:$0xff] %v8384_v41  ;;  %4103 = vperm.xlu0 %4834, %v2982_v59   ;;  %v10223_v59 = vld [vmem:[#allocation69_spill] sm:$0xff]  ;;  %v2986_v41 = vsub.f32 %v2728_v26, %v2857_v7 }
 0x38d   : > { %v2848_v25 = vmul.f32 %v10224_v47, %v10223_v59  ;;  %v2721_v7 = vld [vmem:[%s8083_s24 + $0x198] sm:$0xff] }
 0x38e   : > { %v10229_v26 = vld [vmem:[#allocation85_spill] sm:$0xff] }
 0x38f   : > { %v8392_v38 = vpop.permute.xlu1 %3609  ;;  %4058 = vperm.xlu1 %4835, %v2973_v15   ;;  %v8394_v51 = vpop.permute.xlu0 %3664  ;;  %v2730_v15 = vld [vmem:[%s8083_s24 + $0x1e0] sm:$0xff]  ;;  %v2977_v20 = vsub.f32 %v2719_v12, %v2848_v25  ;;  %v2861_v59 = vmul.f32 %v7465_v58, %v10229_v26  ;;  %v10231_v25 = vld [vmem:[#allocation140_spill] sm:$0xff]  ;;  %v10232_v12 = vld [vmem:[#allocation195_spill] sm:$0xff] }
 0x390   : > { %10222 = vst [vmem:[#allocation184_spill] sm:$0xff] %v8394_v51  ;;  %4113 = vperm.xlu0 %4834, %v2984_v19   ;;  %v10227_v19 = vld [vmem:[#allocation72_spill] sm:$0xff]  ;;  %v2988_v51 = vsub.f32 %v2730_v15, %v2859_v56  ;;  %v2852_v62 = vmul.f32 %v10232_v12, %v10231_v25  ;;  %v2723_v56 = vld [vmem:[%s8083_s24 + $0x1a8] sm:$0xff]  ;;  %v2734_v26 = vld [vmem:[%s8083_s24 + $0x200] sm:$0xff] }
 0x391   : > { %v2850_v27 = vmul.f32 %v10228_v44, %v10227_v19  ;;  %v10233_v15 = vld [vmem:[#allocation87_spill] sm:$0xff]  ;;  %v5152_v25 = vld [vmem:[%s5324_s18] sm:$0xff]  ;;  %v2725_v12 = vld [vmem:[%s8083_s24 + $0x1b8] sm:$0xff] }
 0x392   : > { %v2863_v44 = vmul.f32 %v7491_v50, %v10233_v15  ;;  %v10237_v50 = vld [vmem:[#allocation89_spill] sm:$0xff] }
 0x393   : > { %v8402_v23 = vpop.permute.xlu1 %3619  ;;  %4068 = vperm.xlu1 %4835, %v2975_v13   ;;  %v8404_v4 = vpop.permute.xlu0 %3674  ;;  %v2732_v13 = vld [vmem:[%s8083_s24 + $0x1f0] sm:$0xff]  ;;  %v2865_v15 = vmul.f32 %v7516_v32, %v10237_v50 }
 0x394   : > { %10226 = vst [vmem:[#allocation43_spill] sm:$0xff] %v8404_v4  ;;  %4123 = vperm.xlu0 %4834, %v2986_v41   ;;  %v2979_v41 = vsub.f32 %v2721_v7, %v2850_v27  ;;  %v2990_v19 = vsub.f32 %v2732_v13, %v2861_v59  ;;  %v10236_v27 = vld [vmem:[#allocation144_spill] sm:$0xff]  ;;  %v3702_v59 = vmul.f32 %v5152_v25, %v7455_v43  ;;  %v10240_v25 = vld [vmem:[#allocation91_spill] sm:$0xff] }
 0x395   : > { %v2992_v13 = vsub.f32 %v2734_v26, %v2863_v44  ;;  %v5153_v32 = vld [vmem:[%s5324_s18 + $0x10] sm:$0xff]  ;;  %v2867_v50 = vmul.f32 %v7541_v37, %v10240_v25  ;;  %v10244_v25 = vld [vmem:[#allocation82_spill] sm:$0xff] }
 0x396   : > { %v3704_v26 = vmul.f32 %v5153_v32, %v7452_v17 }
 0x397   : > { %v8412_v47 = vpop.permute.xlu1 %3629  ;;  %4078 = vperm.xlu1 %4835, %v2977_v20   ;;  %v8414_v40 = vpop.permute.xlu0 %3684 }
 0x398   : > { %10230 = vst [vmem:[#allocation166_spill] sm:$0xff] %v8414_v40  ;;  %4133 = vperm.xlu0 %4834, %v2988_v51   ;;  %v2981_v51 = vsub.f32 %v2723_v56, %v2852_v62  ;;  %v10235_v40 = vld [vmem:[#allocation76_spill] sm:$0xff] }
 0x399   : > { %v2854_v7 = vmul.f32 %v10236_v27, %v10235_v40  ;;  %v10239_v56 = vld [vmem:[#allocation200_spill] sm:$0xff]  ;;  %v2727_v27 = vld [vmem:[%s8083_s24 + $0x1c8] sm:$0xff] }
 0x39b   : > { %v8422_v58 = vpop.permute.xlu1 %3639  ;;  %4088 = vperm.xlu1 %4835, %v2979_v41   ;;  %v8424_v20 = vpop.permute.xlu0 %3694  ;;  %v2736_v41 = vld [vmem:[%s8083_s24 + $0x210] sm:$0xff]  ;;  %v2983_v43 = vsub.f32 %v2725_v12, %v2854_v7 }
 0x39c   : > { %10234 = vst [vmem:[#allocation56_spill] sm:$0xff] %v8424_v20  ;;  %4143 = vperm.xlu0 %4834, %v2990_v19   ;;  %v10238_v19 = vld [vmem:[#allocation78_spill] sm:$0xff] }
 0x39d   : > { %v2856_v44 = vmul.f32 %v10239_v56, %v10238_v19  ;;  %v10242_v19 = vld [vmem:[#allocation202_spill] sm:$0xff] }
 0x39f   : > { %v8434_v4 = vpop.permute.xlu1 %3649  ;;  %4098 = vperm.xlu1 %4835, %v2981_v51   ;;  %v3834_v40 = vpop.permute.xlu0 %3833  ;;  %v2994_v51 = vsub.f32 %v2736_v41, %v2865_v15  ;;  %v2985_v12 = vsub.f32 %v2727_v27, %v2856_v44  ;;  %v2729_v41 = vld [vmem:[%s8083_s24 + $0x1d8] sm:$0xff] }
 0x3a0   : > { %v4476_v62 = vadd.f32 %v3834_v40, %v3702_v59  ;;  %4153 = vperm.xlu0 %4834, %v2992_v13   ;;  %v2738_v59 = vld [vmem:[%s8083_s24 + $0x220] sm:$0xff]  ;;  %v10241_v40 = vld [vmem:[#allocation80_spill] sm:$0xff] }
 0x3a1   : > { %v2858_v17 = vmul.f32 %v10242_v19, %v10241_v40  ;;  %v2996_v37 = vsub.f32 %v2738_v59, %v2867_v50  ;;  %v2731_v59 = vld [vmem:[%s8083_s24 + $0x1e8] sm:$0xff] }
 0x3a2   : > { %4605 = vst.msk [vmem:[%s8440_s27] sm:$0xff] %vm347_vm0, %v4476_v62  ;;  %v5154_v62 = vld [vmem:[%s5324_s18 + $0x20] sm:$0xff] }
 0x3a3   : > { %v8452_v20 = vpop.permute.xlu1 %3659  ;;  %4108 = vperm.xlu1 %4835, %v2983_v43   ;;  %v3844_v7 = vpop.permute.xlu0 %3843  ;;  %v3706_v15 = vmul.f32 %v5154_v62, %v7503_v57  ;;  %v10243_v43 = vld [vmem:[#allocation93_spill] sm:$0xff]  ;;  %v2987_v27 = vsub.f32 %v2729_v41, %v2858_v17  ;;  %v2742_v62 = vld [vmem:[%s8083_s24 + $0x240] sm:$0xff]  ;;  %v10247_v41 = vld [vmem:[#allocation84_spill] sm:$0xff] }
 0x3a4   : > { %v4478_v13 = vadd.f32 %v3844_v7, %v3704_v26  ;;  %4163 = vperm.xlu0 %4834, %v2994_v51   ;;  %v2869_v56 = vmul.f32 %v7567_v5, %v10243_v43  ;;  %v2740_v26 = vld [vmem:[%s8083_s24 + $0x230] sm:$0xff]  ;;  %v10245_v7 = vld [vmem:[#allocation203_spill] sm:$0xff] }
 0x3a5   : > { %v2860_v57 = vmul.f32 %v10245_v7, %v10244_v25  ;;  %v10248_v43 = vld [vmem:[#allocation204_spill] sm:$0xff] }
 0x3a6   : > { %4607 = vst.msk [vmem:[%s8440_s27 + $0x10] sm:$0xff] %vm347_vm0, %v4478_v13  ;;  %v5155_v13 = vld [vmem:[%s5324_s18 + $0x30] sm:$0xff]  ;;  %v2998_v5 = vsub.f32 %v2740_v26, %v2869_v56  ;;  %v2733_v26 = vld [vmem:[%s8083_s24 + $0x1f8] sm:$0xff] }
 0x3a7   : > { %v8464_v32 = vpop.permute.xlu1 %3669  ;;  %4118 = vperm.xlu1 %4835, %v2985_v12   ;;  %v3854_v44 = vpop.permute.xlu0 %3853  ;;  %v3708_v50 = vmul.f32 %v5155_v13, %v7554_v35  ;;  %v10246_v12 = vld [vmem:[#allocation95_spill] sm:$0xff]  ;;  %v2862_v35 = vmul.f32 %v10248_v43, %v10247_v41  ;;  %v2746_v43 = vld [vmem:[%s8083_s24 + $0x260] sm:$0xff] }
 0x3a8   : > { %v4480_v51 = vadd.f32 %v3854_v44, %v3706_v15  ;;  %4173 = vperm.xlu0 %4834, %v2996_v37   ;;  %v2871_v40 = vmul.f32 %v7592_v0, %v10246_v12  ;;  %v2989_v37 = vsub.f32 %v2731_v59, %v2860_v57  ;;  %v5156_v44 = vld [vmem:[%s5324_s18 + $0x40] sm:$0xff]  ;;  %v2744_v57 = vld [vmem:[%s8083_s24 + $0x250] sm:$0xff] }
 0x3a9   : > { %v3710_v56 = vmul.f32 %v5156_v44, %v7606_v46  ;;  %v10251_v59 = vld [vmem:[#allocation206_spill] sm:$0xff]  ;;  %v5157_v12 = vld [vmem:[%s5324_s18 + $0x50] sm:$0xff] }
 0x3aa   : > { %4609 = vst.msk [vmem:[%s8440_s27 + $0x20] sm:$0xff] %vm347_vm0, %v4480_v51  ;;  %v3000_v0 = vsub.f32 %v2742_v62, %v2871_v40  ;;  %v10249_v51 = vld [vmem:[#allocation97_spill] sm:$0xff]  ;;  %v3712_v40 = vmul.f32 %v5157_v12, %v7629_v18  ;;  %v10252_v62 = vld [vmem:[#allocation99_spill] sm:$0xff]  ;;  %v10254_v18 = vld [vmem:[#allocation208_spill] sm:$0xff] }
 0x3ab   : > { %v8476_v19 = vpop.permute.xlu1 %3679  ;;  %4128 = vperm.xlu1 %4835, %v2987_v27   ;;  %v3864_v17 = vpop.permute.xlu0 %3863  ;;  %v2873_v27 = vmul.f32 %v7617_v3, %v10249_v51  ;;  %v10255_v51 = vld [vmem:[#allocation210_spill] sm:$0xff]  ;;  %v2748_v12 = vld [vmem:[%s8083_s24 + $0x270] sm:$0xff] }
 0x3ac   : > { %v4482_v15 = vadd.f32 %v3864_v17, %v3708_v50  ;;  %4183 = vperm.xlu0 %4834, %v2998_v5   ;;  %v2991_v50 = vsub.f32 %v2733_v26, %v2862_v35  ;;  %v10250_v5 = vld [vmem:[#allocation86_spill] sm:$0xff]  ;;  %v2735_v17 = vld [vmem:[%s8083_s24 + $0x208] sm:$0xff] }
 0x3ad   : > { %v2864_v46 = vmul.f32 %v10251_v59, %v10250_v5  ;;  %v3002_v3 = vsub.f32 %v2744_v57, %v2873_v27  ;;  %v5158_v26 = vld [vmem:[%s5324_s18 + $0x8] sm:$0xff] }
 0x3ae   : > { %4611 = vst.msk [vmem:[%s8440_s27 + $0x30] sm:$0xff] %vm347_vm0, %v4482_v15  ;;  %v2875_v15 = vmul.f32 %v7641_v34, %v10252_v62  ;;  %v3703_v27 = vmul.f32 %v5158_v26, %v10255_v51  ;;  %v10258_v62 = vld [vmem:[#allocation209_spill] sm:$0xff]  ;;  %v2739_v26 = vld [vmem:[%s8083_s24 + $0x228] sm:$0xff] }
 0x3af   : > { %v8488_v25 = vpop.permute.xlu1 %3689  ;;  %4138 = vperm.xlu1 %4835, %v2989_v37   ;;  %v3874_v7 = vpop.permute.xlu0 %3873  ;;  %v2993_v44 = vsub.f32 %v2735_v17, %v2864_v46  ;;  %v10257_v17 = vld [vmem:[#allocation90_spill] sm:$0xff]  ;;  %v10261_v51 = vld [vmem:[#allocation103_spill] sm:$0xff] }
 0x3b0   : > { %v4484_v13 = vadd.f32 %v3874_v7, %v3710_v56  ;;  %4193 = vperm.xlu0 %4834, %v3000_v0   ;;  %v10253_v56 = vld [vmem:[#allocation88_spill] sm:$0xff]  ;;  %v5159_v7 = vld [vmem:[%s5324_s18 + $0x60] sm:$0xff]  ;;  %v3004_v34 = vsub.f32 %v2746_v43, %v2875_v15  ;;  %v5160_v15 = vld [vmem:[%s5324_s18 + $0x18] sm:$0xff] }
 0x3b1   : > { %v2866_v0 = vmul.f32 %v10254_v18, %v10253_v56  ;;  %v3714_v57 = vmul.f32 %v5159_v7, %v7654_v8  ;;  %v10259_v43 = vld [vmem:[#allocation213_spill] sm:$0xff]  ;;  %v5161_v56 = vld [vmem:[%s5324_s18 + $0x70] sm:$0xff]  ;;  %v10260_v18 = vld [vmem:[#allocation22_spill] sm:$0xff] }
 0x3b2   : > { %4613 = vst.msk [vmem:[%s8440_s27 + $0x40] sm:$0xff] %vm347_vm0, %v4484_v13  ;;  %v2737_v13 = vld [vmem:[%s8083_s24 + $0x218] sm:$0xff] }
 0x3b3   : > { %v8500_v37 = vpop.permute.xlu1 %3699  ;;  %4148 = vperm.xlu1 %4835, %v2991_v50   ;;  %v3884_v41 = vpop.permute.xlu0 %3883  ;;  %v10256_v50 = vld [vmem:[#allocation101_spill] sm:$0xff]  ;;  %v2995_v8 = vsub.f32 %v2737_v13, %v2866_v0  ;;  %v2879_v0 = vmul.f32 %v7691_v1, %v10261_v51  ;;  %v10268_v51 = vld [vmem:[#allocation212_spill] sm:$0xff] }
 0x3b4   : > { %v4486_v35 = vadd.f32 %v3884_v41, %v3712_v40  ;;  %4203 = vperm.xlu0 %4834, %v3002_v3   ;;  %v2877_v5 = vmul.f32 %v7666_v39, %v10256_v50  ;;  %v2868_v41 = vmul.f32 %v10258_v62, %v10257_v17  ;;  %v3716_v39 = vmul.f32 %v5161_v56, %v10260_v18  ;;  %v5163_v17 = vld [vmem:[%s5324_s18 + $0x80] sm:$0xff]  ;;  %v2741_v62 = vld [vmem:[%s8083_s24 + $0x238] sm:$0xff]  ;;  %v2752_v18 = vld [vmem:[%s8083_s24 + $0x290] sm:$0xff] }
 0x3b5   : > { %v3718_v1 = vmul.f32 %v5163_v17, %v7705_v60 }
 0x3b6   : > { %4615 = vst.msk [vmem:[%s8440_s27 + $0x50] sm:$0xff] %vm347_vm0, %v4486_v35  ;;  %v3705_v35 = vmul.f32 %v5160_v15, %v10259_v43  ;;  %v2997_v50 = vsub.f32 %v2739_v26, %v2868_v41  ;;  %v10265_v15 = vld [vmem:[#allocation105_spill] sm:$0xff]  ;;  %v10266_v41 = vld [vmem:[#allocation232_spill] sm:$0xff]  ;;  %v10267_v26 = vld [vmem:[#allocation94_spill] sm:$0xff] }
 0x3b7   : > { %v3839_v59 = vpop.permute.xlu1 %3838  ;;  %4158 = vperm.xlu1 %4835, %v2993_v44   ;;  %v3894_v46 = vpop.permute.xlu0 %3893  ;;  %v3006_v44 = vsub.f32 %v2748_v12, %v2877_v5  ;;  %v5162_v5 = vld [vmem:[%s5324_s18 + $0x28] sm:$0xff]  ;;  %v10264_v12 = vld [vmem:[#allocation218_spill] sm:$0xff]  ;;  %v2881_v43 = vmul.f32 %v10266_v41, %v10265_v15  ;;  %v10273_v41 = vld [vmem:[#allocation96_spill] sm:$0xff] }
 0x3b8   : > { %v4477_v40 = vadd.f32 %v3839_v59, %v3703_v27  ;;  %v4488_v3 = vadd.f32 %v3894_v46, %v3714_v57  ;;  %4213 = vperm.xlu0 %4834, %v3004_v34   ;;  %v2750_v57 = vld [vmem:[%s8083_s24 + $0x280] sm:$0xff]  ;;  %v10262_v59 = vld [vmem:[#allocation92_spill] sm:$0xff]  ;;  %v10263_v46 = vld [vmem:[#allocation211_spill] sm:$0xff] }
 0x3ba   : > { %4606 = vst.msk [vmem:[%s8440_s27 + $0x8] sm:$0xff] %vm347_vm0, %v4477_v40  ;;  %4617 = vst.msk [vmem:[%s8440_s27 + $0x60] sm:$0xff] %vm347_vm0, %v4488_v3  ;;  %v2870_v40 = vmul.f32 %v10263_v46, %v10262_v59  ;;  %v3707_v3 = vmul.f32 %v5162_v5, %v10264_v12  ;;  %v2743_v46 = vld [vmem:[%s8083_s24 + $0x248] sm:$0xff] }
 0x3bb   : > { %v3849_v27 = vpop.permute.xlu1 %3848  ;;  %4168 = vperm.xlu1 %4835, %v2995_v8   ;;  %v3904_v7 = vpop.permute.xlu0 %3903  ;;  %v3008_v8 = vsub.f32 %v2750_v57, %v2879_v0  ;;  %v5164_v0 = vld [vmem:[%s5324_s18 + $0x38] sm:$0xff]  ;;  %v10271_v5 = vld [vmem:[#allocation107_spill] sm:$0xff] }
 0x3bc   : > { %v4479_v34 = vadd.f32 %v3849_v27, %v3705_v35  ;;  %v4490_v13 = vadd.f32 %v3904_v7, %v3716_v39  ;;  %4223 = vperm.xlu0 %4834, %v3006_v44   ;;  %v2999_v60 = vsub.f32 %v2741_v62, %v2870_v40  ;;  %v2872_v27 = vmul.f32 %v10268_v51, %v10267_v26  ;;  %v10269_v7 = vld [vmem:[#allocation223_spill] sm:$0xff]  ;;  %v10276_v26 = vld [vmem:[#allocation237_spill] sm:$0xff] }
 0x3bd   : > { %v3709_v57 = vmul.f32 %v5164_v0, %v10269_v7  ;;  %v10272_v40 = vld [vmem:[#allocation235_spill] sm:$0xff]  ;;  %v2745_v0 = vld [vmem:[%s8083_s24 + $0x258] sm:$0xff] }
 0x3be   : > { %4608 = vst.msk [vmem:[%s8440_s27 + $0x18] sm:$0xff] %vm347_vm0, %v4479_v34  ;;  %4619 = vst.msk [vmem:[%s8440_s27 + $0x70] sm:$0xff] %vm347_vm0, %v4490_v13  ;;  %v5165_v34 = vld [vmem:[%s5324_s18 + $0x90] sm:$0xff]  ;;  %v10270_v13 = vld [vmem:[#allocation134_spill] sm:$0xff]  ;;  %v2883_v12 = vmul.f32 %v10272_v40, %v10271_v5  ;;  %v3001_v15 = vsub.f32 %v2743_v46, %v2872_v27 }
 0x3bf   : > { %v3859_v35 = vpop.permute.xlu1 %3858  ;;  %4178 = vperm.xlu1 %4835, %v2997_v50   ;;  %v3914_v56 = vpop.permute.xlu0 %3913  ;;  %v3720_v59 = vmul.f32 %v5165_v34, %v10270_v13  ;;  %v3010_v50 = vsub.f32 %v2752_v18, %v2881_v43  ;;  %v5166_v43 = vld [vmem:[%s5324_s18 + $0x48] sm:$0xff]  ;;  %v10275_v18 = vld [vmem:[#allocation214_spill] sm:$0xff]  ;;  %v10277_v7 = vld [vmem:[#allocation109_spill] sm:$0xff] }
 0x3c0   : > { %v4481_v39 = vadd.f32 %v3859_v35, %v3707_v3  ;;  %v4492_v44 = vadd.f32 %v3914_v56, %v3718_v1  ;;  %4233 = vperm.xlu0 %4834, %v3008_v8   ;;  %v2754_v1 = vld [vmem:[%s8083_s24 + $0x2a0] sm:$0xff]  ;;  %v10274_v35 = vld [vmem:[#allocation215_spill] sm:$0xff] }
 0x3c1   : > { %v2874_v56 = vmul.f32 %v10274_v35, %v10273_v41  ;;  %v10278_v27 = vld [vmem:[#allocation239_spill] sm:$0xff]  ;;  %v10279_v40 = vld [vmem:[#allocation98_spill] sm:$0xff]  ;;  %v10282_v41 = vld [vmem:[#allocation240_spill] sm:$0xff] }
 0x3c2   : > { %4610 = vst.msk [vmem:[%s8440_s27 + $0x28] sm:$0xff] %vm347_vm0, %v4481_v39  ;;  %4621 = vst.msk [vmem:[%s8440_s27 + $0x80] sm:$0xff] %vm347_vm0, %v4492_v44  ;;  %v3711_v39 = vmul.f32 %v5166_v43, %v10275_v18  ;;  %v5167_v44 = vld [vmem:[%s5324_s18 + $0xa0] sm:$0xff]  ;;  %v2747_v43 = vld [vmem:[%s8083_s24 + $0x268] sm:$0xff] }
 0x3c3   : > { %v3869_v3 = vpop.permute.xlu1 %3868  ;;  %4188 = vperm.xlu1 %4835, %v2999_v60   ;;  %v3924_v17 = vpop.permute.xlu0 %3923  ;;  %v3722_v51 = vmul.f32 %v5167_v44, %v10276_v26  ;;  %v3012_v60 = vsub.f32 %v2754_v1, %v2883_v12  ;;  %v3003_v5 = vsub.f32 %v2745_v0, %v2874_v56  ;;  %v5168_v12 = vld [vmem:[%s5324_s18 + $0x58] sm:$0xff]  ;;  %v10281_v1 = vld [vmem:[#allocation216_spill] sm:$0xff]  ;;  %v10283_v18 = vld [vmem:[#allocation111_spill] sm:$0xff] }
 0x3c4   : > { %v4483_v8 = vadd.f32 %v3869_v3, %v3709_v57  ;;  %v4494_v62 = vadd.f32 %v3924_v17, %v3720_v59  ;;  %4243 = vperm.xlu0 %4834, %v3010_v50   ;;  %v2885_v57 = vmul.f32 %v10278_v27, %v10277_v7  ;;  %v2756_v59 = vld [vmem:[%s8083_s24 + $0x2b0] sm:$0xff]  ;;  %v10280_v3 = vld [vmem:[#allocation217_spill] sm:$0xff]  ;;  %v2887_v56 = vmul.f32 %v7791_v48, %v10283_v18  ;;  %v2758_v26 = vld [vmem:[%s8083_s24 + $0x2c0] sm:$0xff] }
 0x3c5   : > { %v2876_v17 = vmul.f32 %v10280_v3, %v10279_v40  ;;  %v10284_v7 = vld [vmem:[#allocation100_spill] sm:$0xff]  ;;  %v10287_v40 = vld [vmem:[#allocation113_spill] sm:$0xff] }
 0x3c6   : > { %4612 = vst.msk [vmem:[%s8440_s27 + $0x38] sm:$0xff] %vm347_vm0, %v4483_v8  ;;  %4623 = vst.msk [vmem:[%s8440_s27 + $0x90] sm:$0xff] %vm347_vm0, %v4494_v62  ;;  %v3713_v8 = vmul.f32 %v5168_v12, %v10281_v1  ;;  %v5169_v62 = vld [vmem:[%s5324_s18 + $0xb0] sm:$0xff]  ;;  %v2889_v3 = vmul.f32 %v7816_v33, %v10287_v40  ;;  %v10290_v18 = vld [vmem:[#allocation221_spill] sm:$0xff] }
 0x3c7   : > { %v3879_v34 = vpop.permute.xlu1 %3878  ;;  %4198 = vperm.xlu1 %4835, %v3001_v15   ;;  %v3934_v13 = vpop.permute.xlu0 %3933  ;;  %v3724_v35 = vmul.f32 %v5169_v62, %v10282_v41  ;;  %v3014_v15 = vsub.f32 %v2756_v59, %v2885_v57  ;;  %v3005_v0 = vsub.f32 %v2747_v43, %v2876_v17  ;;  %v10285_v27 = vld [vmem:[#allocation220_spill] sm:$0xff]  ;;  %v5170_v57 = vld [vmem:[%s5324_s18 + $0x68] sm:$0xff]  ;;  %v10288_v41 = vld [vmem:[#allocation102_spill] sm:$0xff] }
 0x3c8   : > { %v4485_v50 = vadd.f32 %v3879_v34, %v3711_v39  ;;  %v4496_v46 = vadd.f32 %v3934_v13, %v3722_v51  ;;  %4253 = vperm.xlu0 %4834, %v3012_v60   ;;  %v2878_v34 = vmul.f32 %v10285_v27, %v10284_v7  ;;  %v10286_v13 = vld [vmem:[#allocation219_spill] sm:$0xff]  ;;  %v2760_v1 = vld [vmem:[%s8083_s24 + $0x2d0] sm:$0xff]  ;;  %v5172_v43 = vld [vmem:[%s5324_s18 + $0x78] sm:$0xff] }
 0x3c9   : > { %v3715_v59 = vmul.f32 %v5170_v57, %v10286_v13  ;;  %v10295_v40 = vld [vmem:[#allocation224_spill] sm:$0xff] }
 0x3ca   : > { %4614 = vst.msk [vmem:[%s8440_s27 + $0x48] sm:$0xff] %vm347_vm0, %v4485_v50  ;;  %4625 = vst.msk [vmem:[%s8440_s27 + $0xa0] sm:$0xff] %vm347_vm0, %v4496_v46  ;;  %v5171_v50 = vld [vmem:[%s5324_s18 + $0xc0] sm:$0xff]  ;;  %v3016_v46 = vsub.f32 %v2758_v26, %v2887_v56  ;;  %v3717_v56 = vmul.f32 %v5172_v43, %v10290_v18  ;;  %v3018_v26 = vsub.f32 %v2760_v1, %v2889_v3  ;;  %v2753_v1 = vld [vmem:[%s8083_s24 + $0x298] sm:$0xff] }
 0x3cb   : > { %v3889_v39 = vpop.permute.xlu1 %3888  ;;  %4208 = vperm.xlu1 %4835, %v3003_v5   ;;  %v3944_v44 = vpop.permute.xlu0 %3943  ;;  %v3726_v48 = vmul.f32 %v5171_v50, %v7804_v21  ;;  %v2749_v5 = vld [vmem:[%s8083_s24 + $0x278] sm:$0xff]  ;;  %v10293_v50 = vld [vmem:[#allocation104_spill] sm:$0xff]  ;;  %v10297_v18 = vld [vmem:[#allocation106_spill] sm:$0xff] }
 0x3cc   : > { %v4487_v51 = vadd.f32 %v3889_v39, %v3713_v8  ;;  %v4498_v60 = vadd.f32 %v3944_v44, %v3724_v35  ;;  %4263 = vperm.xlu0 %4834, %v3014_v15   ;;  %v3007_v21 = vsub.f32 %v2749_v5, %v2878_v34  ;;  %v10289_v35 = vld [vmem:[#allocation222_spill] sm:$0xff]  ;;  %v5173_v39 = vld [vmem:[%s5324_s18 + $0xd0] sm:$0xff]  ;;  %v10291_v44 = vld [vmem:[#allocation243_spill] sm:$0xff] }
 0x3cd   : > { %v2880_v15 = vmul.f32 %v10289_v35, %v10288_v41  ;;  %v3728_v33 = vmul.f32 %v5173_v39, %v10291_v44  ;;  %v2762_v34 = vld [vmem:[%s8083_s24 + $0x2e0] sm:$0xff]  ;;  %v5174_v5 = vld [vmem:[%s5324_s18 + $0x88] sm:$0xff]  ;;  %v2764_v35 = vld [vmem:[%s8083_s24 + $0x2f0] sm:$0xff] }
 0x3ce   : > { %4616 = vst.msk [vmem:[%s8440_s27 + $0x58] sm:$0xff] %vm347_vm0, %v4487_v51  ;;  %4627 = vst.msk [vmem:[%s8440_s27 + $0xb0] sm:$0xff] %vm347_vm0, %v4498_v60  ;;  %v2751_v51 = vld [vmem:[%s8083_s24 + $0x288] sm:$0xff]  ;;  %v3719_v3 = vmul.f32 %v5174_v5, %v10295_v40  ;;  %v5176_v44 = vld [vmem:[%s5324_s18 + $0x98] sm:$0xff] }
 0x3cf   : > { %v3899_v17 = vpop.permute.xlu1 %3898  ;;  %4218 = vperm.xlu1 %4835, %v3005_v0   ;;  %v3954_v12 = vpop.permute.xlu0 %3953  ;;  %v10292_v60 = vld [vmem:[#allocation115_spill] sm:$0xff] }
 0x3d0   : > { %v4489_v8 = vadd.f32 %v3899_v17, %v3715_v59  ;;  %v4500_v62 = vadd.f32 %v3954_v12, %v3726_v48  ;;  %4273 = vperm.xlu0 %4834, %v3016_v46   ;;  %v2891_v0 = vmul.f32 %v7841_v10, %v10292_v60  ;;  %v3009_v59 = vsub.f32 %v2751_v51, %v2880_v15  ;;  %v10294_v48 = vld [vmem:[#allocation225_spill] sm:$0xff]  ;;  %v5175_v17 = vld [vmem:[%s5324_s18 + $0xe0] sm:$0xff]  ;;  %v5177_v51 = vld [vmem:[%s5324_s18 + $0xf0] sm:$0xff] }
 0x3d1   : > { %v2882_v46 = vmul.f32 %v10294_v48, %v10293_v50  ;;  %v3730_v10 = vmul.f32 %v5175_v17, %v7853_v55  ;;  %v10301_v48 = vld [vmem:[#allocation108_spill] sm:$0xff]  ;;  %v5178_v40 = vld [vmem:[%s5324_s18 + $0xa8] sm:$0xff] }
 0x3d2   : > { %4618 = vst.msk [vmem:[%s8440_s27 + $0x68] sm:$0xff] %vm347_vm0, %v4489_v8  ;;  %4629 = vst.msk [vmem:[%s8440_s27 + $0xc0] sm:$0xff] %vm347_vm0, %v4500_v62  ;;  %v3020_v12 = vsub.f32 %v2762_v34, %v2891_v0  ;;  %v10296_v8 = vld [vmem:[#allocation117_spill] sm:$0xff]  ;;  %v2755_v0 = vld [vmem:[%s8083_s24 + $0x2a8] sm:$0xff] }
 0x3d3   : > { %v3909_v7 = vpop.permute.xlu1 %3908  ;;  %4228 = vperm.xlu1 %4835, %v3007_v21   ;;  %v3964_v27 = vpop.permute.xlu0 %3963  ;;  %v2893_v62 = vmul.f32 %v7864_v11, %v10296_v8  ;;  %v3011_v55 = vsub.f32 %v2753_v1, %v2882_v46  ;;  %v3732_v11 = vmul.f32 %v5177_v51, %v7876_v49  ;;  %v10302_v46 = vld [vmem:[#allocation228_spill] sm:$0xff]  ;;  %v2757_v8 = vld [vmem:[%s8083_s24 + $0x2b8] sm:$0xff] }
 0x3d4   : > { %v4491_v57 = vadd.f32 %v3909_v7, %v3717_v56  ;;  %v4502_v13 = vadd.f32 %v3964_v27, %v3728_v33  ;;  %4283 = vperm.xlu0 %4834, %v3018_v26   ;;  %v10298_v56 = vld [vmem:[#allocation173_spill] sm:$0xff]  ;;  %v10299_v33 = vld [vmem:[#allocation226_spill] sm:$0xff]  ;;  %v10300_v7 = vld [vmem:[#allocation119_spill] sm:$0xff]  ;;  %v2886_v5 = vmul.f32 %v10302_v46, %v10301_v48 }
 0x3d5   : > { %v2884_v39 = vmul.f32 %v10298_v56, %v10297_v18  ;;  %v3721_v26 = vmul.f32 %v5176_v44, %v10299_v33  ;;  %v3022_v60 = vsub.f32 %v2764_v35, %v2893_v62  ;;  %v2895_v27 = vmul.f32 %v7884_v31, %v10300_v7  ;;  %v10305_v62 = vld [vmem:[#allocation121_spill] sm:$0xff]  ;;  %v10306_v56 = vld [vmem:[#allocation110_spill] sm:$0xff]  ;;  %v2759_v7 = vld [vmem:[%s8083_s24 + $0x2c8] sm:$0xff] }
 0x3d6   : > { %4620 = vst.msk [vmem:[%s8440_s27 + $0x78] sm:$0xff] %vm347_vm0, %v4491_v57  ;;  %4631 = vst.msk [vmem:[%s8440_s27 + $0xd0] sm:$0xff] %vm347_vm0, %v4502_v13  ;;  %v2766_v13 = vld [vmem:[%s8083_s24 + $0x300] sm:$0xff]  ;;  %v3015_v18 = vsub.f32 %v2757_v8, %v2886_v5  ;;  %v5180_v33 = vld [vmem:[%s5324_s18 + $0xb8] sm:$0xff] }
 0x3d7   : > { %v3919_v21 = vpop.permute.xlu1 %3918  ;;  %4238 = vperm.xlu1 %4835, %v3009_v59   ;;  %v3974_v41 = vpop.permute.xlu0 %3973  ;;  %v3013_v49 = vsub.f32 %v2755_v0, %v2884_v39  ;;  %v3024_v1 = vsub.f32 %v2766_v13, %v2895_v27  ;;  %v10307_v39 = vld [vmem:[#allocation229_spill] sm:$0xff]  ;;  %v10310_v27 = vld [vmem:[#allocation123_spill] sm:$0xff]  ;;  %v10311_v46 = vld [vmem:[#allocation112_spill] sm:$0xff] }
 0x3d8   : > { %v4493_v15 = vadd.f32 %v3919_v21, %v3719_v3  ;;  %v4504_v43 = vadd.f32 %v3974_v41, %v3730_v10  ;;  %4293 = vperm.xlu0 %4834, %v3020_v12   ;;  %v10303_v3 = vld [vmem:[#allocation227_spill] sm:$0xff]  ;;  %v5179_v10 = vld [vmem:[%s5324_s18 + $0x100] sm:$0xff]  ;;  %v2897_v21 = vmul.f32 %v7906_v30, %v10305_v62  ;;  %v2888_v44 = vmul.f32 %v10307_v39, %v10306_v56  ;;  %v2761_v8 = vld [vmem:[%s8083_s24 + $0x2d8] sm:$0xff] }
 0x3d9   : > { %v3723_v17 = vmul.f32 %v5178_v40, %v10303_v3  ;;  %v10304_v12 = vld [vmem:[#allocation247_spill] sm:$0xff]  ;;  %v10315_v62 = vld [vmem:[#allocation125_spill] sm:$0xff]  ;;  %v10316_v56 = vld [vmem:[#allocation114_spill] sm:$0xff] }
 0x3da   : > { %4622 = vst.msk [vmem:[%s8440_s27 + $0x88] sm:$0xff] %vm347_vm0, %v4493_v15  ;;  %4633 = vst.msk [vmem:[%s8440_s27 + $0xe0] sm:$0xff] %vm347_vm0, %v4504_v43  ;;  %v3734_v31 = vmul.f32 %v5179_v10, %v10304_v12  ;;  %v2768_v15 = vld [vmem:[%s8083_s24 + $0x310] sm:$0xff]  ;;  %v3017_v48 = vsub.f32 %v2759_v7, %v2888_v44  ;;  %v10312_v5 = vld [vmem:[#allocation231_spill] sm:$0xff] }
 0x3db   : > { %v3929_v34 = vpop.permute.xlu1 %3928  ;;  %4248 = vperm.xlu1 %4835, %v3011_v55   ;;  %v3984_v57 = vpop.permute.xlu0 %3983  ;;  %v3026_v0 = vsub.f32 %v2768_v15, %v2897_v21  ;;  %v2890_v40 = vmul.f32 %v10312_v5, %v10311_v46  ;;  %v5182_v3 = vld [vmem:[%s5324_s18 + $0xc8] sm:$0xff]  ;;  %v5183_v12 = vld [vmem:[%s5324_s18 + $0x120] sm:$0xff]  ;;  %v2901_v21 = vmul.f32 %v7951_v52, %v10315_v62  ;;  %v2772_v15 = vld [vmem:[%s8083_s24 + $0x330] sm:$0xff] }
 0x3dc   : > { %v4495_v59 = vadd.f32 %v3929_v34, %v3721_v26  ;;  %v4506_v50 = vadd.f32 %v3984_v57, %v3732_v11  ;;  %4303 = vperm.xlu0 %4834, %v3022_v60   ;;  %v10308_v26 = vld [vmem:[#allocation176_spill] sm:$0xff]  ;;  %v10309_v60 = vld [vmem:[#allocation249_spill] sm:$0xff]  ;;  %v2899_v34 = vmul.f32 %v7927_v29, %v10310_v27  ;;  %v10320_v7 = vld [vmem:[#allocation127_spill] sm:$0xff] }
 0x3dd   : > { %v3725_v51 = vmul.f32 %v5180_v33, %v10308_v26  ;;  %v5181_v11 = vld [vmem:[%s5324_s18 + $0x110] sm:$0xff]  ;;  %v10317_v39 = vld [vmem:[#allocation233_spill] sm:$0xff]  ;;  %v10318_v26 = vld [vmem:[#allocation179_spill] sm:$0xff]  ;;  %v2903_v27 = vmul.f32 %v7975_v54, %v10320_v7 }
 0x3de   : > { %4624 = vst.msk [vmem:[%s8440_s27 + $0x98] sm:$0xff] %vm347_vm0, %v4495_v59  ;;  %4635 = vst.msk [vmem:[%s8440_s27 + $0xf0] sm:$0xff] %vm347_vm0, %v4506_v50  ;;  %v3736_v30 = vmul.f32 %v5181_v11, %v10309_v60  ;;  %v2770_v59 = vld [vmem:[%s8083_s24 + $0x320] sm:$0xff]  ;;  %v2892_v44 = vmul.f32 %v10317_v39, %v10316_v56  ;;  %v5184_v33 = vld [vmem:[%s5324_s18 + $0xd8] sm:$0xff] }
 0x3df   : > { %v3939_v41 = vpop.permute.xlu1 %3938  ;;  %4258 = vperm.xlu1 %4835, %v3013_v49   ;;  %v3994_v35 = vpop.permute.xlu0 %3993  ;;  %v5185_v11 = vld [vmem:[%s5324_s18 + $0x130] sm:$0xff]  ;;  %v10319_v60 = vld [vmem:[#allocation253_spill] sm:$0xff]  ;;  %v10327_v56 = vld [vmem:[#allocation238_spill] sm:$0xff] }
 0x3e0   : > { %v4497_v43 = vadd.f32 %v3939_v41, %v3723_v17  ;;  %v4508_v55 = vadd.f32 %v3994_v35, %v3734_v31  ;;  %4313 = vperm.xlu0 %4834, %v3024_v1   ;;  %v10313_v17 = vld [vmem:[#allocation230_spill] sm:$0xff]  ;;  %v10314_v31 = vld [vmem:[#allocation251_spill] sm:$0xff]  ;;  %v3028_v1 = vsub.f32 %v2770_v59, %v2899_v34  ;;  %v3740_v52 = vmul.f32 %v5185_v11, %v10319_v60  ;;  %v10322_v46 = vld [vmem:[#allocation236_spill] sm:$0xff] }
 0x3e1   : > { %v3727_v10 = vmul.f32 %v5182_v3, %v10313_v17  ;;  %v3738_v29 = vmul.f32 %v5183_v12, %v10314_v31  ;;  %v10323_v3 = vld [vmem:[#allocation234_spill] sm:$0xff]  ;;  %v2765_v31 = vld [vmem:[%s8083_s24 + $0x2f8] sm:$0xff] }
 0x3e2   : > { %4626 = vst.msk [vmem:[%s8440_s27 + $0xa8] sm:$0xff] %vm347_vm0, %v4497_v43  ;;  %4637 = vst.msk [vmem:[%s8440_s27 + $0x100] sm:$0xff] %vm347_vm0, %v4508_v55 }
 0x3e3   : > { %v3949_v57 = vpop.permute.xlu1 %3948  ;;  %4268 = vperm.xlu1 %4835, %v3015_v18   ;;  %v4004_v13 = vpop.permute.xlu0 %4003  ;;  %v3019_v18 = vsub.f32 %v2761_v8, %v2890_v40  ;;  %v5186_v40 = vld [vmem:[%s5324_s18 + $0xe8] sm:$0xff] }
 0x3e4   : > { %v4499_v50 = vadd.f32 %v3949_v57, %v3725_v51  ;;  %v4510_v49 = vadd.f32 %v4004_v13, %v3736_v30  ;;  %4323 = vperm.xlu0 %4834, %v3026_v0   ;;  %v3729_v51 = vmul.f32 %v5184_v33, %v10318_v26  ;;  %v3030_v30 = vsub.f32 %v2772_v15, %v2901_v21  ;;  %v2763_v0 = vld [vmem:[%s8083_s24 + $0x2e8] sm:$0xff]  ;;  %v2774_v13 = vld [vmem:[%s8083_s24 + $0x340] sm:$0xff]  ;;  %v2776_v21 = vld [vmem:[%s8083_s24 + $0x350] sm:$0xff] }
 0x3e5   : > { %v3731_v17 = vmul.f32 %v5186_v40, %v10323_v3  ;;  %v3032_v12 = vsub.f32 %v2774_v13, %v2903_v27  ;;  %v10325_v15 = vld [vmem:[#allocation118_spill] sm:$0xff]  ;;  %v2767_v26 = vld [vmem:[%s8083_s24 + $0x308] sm:$0xff]  ;;  %v10329_v27 = vld [vmem:[#allocation120_spill] sm:$0xff] }
 0x3e6   : > { %4628 = vst.msk [vmem:[%s8440_s27 + $0xb8] sm:$0xff] %vm347_vm0, %v4499_v50  ;;  %4639 = vst.msk [vmem:[%s8440_s27 + $0x110] sm:$0xff] %vm347_vm0, %v4510_v49  ;;  %v3021_v49 = vsub.f32 %v2763_v0, %v2892_v44  ;;  %v5189_v44 = vld [vmem:[%s5324_s18 + $0x150] sm:$0xff]  ;;  %v5190_v13 = vld [vmem:[%s5324_s18 + $0x108] sm:$0xff] }
 0x3e7   : > { %v3959_v41 = vpop.permute.xlu1 %3958  ;;  %4278 = vperm.xlu1 %4835, %v3017_v48   ;;  %v4014_v35 = vpop.permute.xlu0 %4013  ;;  %v10321_v48 = vld [vmem:[#allocation116_spill] sm:$0xff] }
 0x3e8   : > { %v4501_v43 = vadd.f32 %v3959_v41, %v3727_v10  ;;  %v4512_v55 = vadd.f32 %v4014_v35, %v3738_v29  ;;  %4333 = vperm.xlu0 %4834, %v3028_v1   ;;  %v2894_v5 = vmul.f32 %v10322_v46, %v10321_v48  ;;  %v5187_v10 = vld [vmem:[%s5324_s18 + $0x140] sm:$0xff]  ;;  %v10324_v29 = vld [vmem:[#allocation129_spill] sm:$0xff] }
 0x3e9   : > { %v3742_v54 = vmul.f32 %v5187_v10, %v7989_v63  ;;  %v2905_v1 = vmul.f32 %v7995_v6, %v10324_v29  ;;  %v3744_v6 = vmul.f32 %v5189_v44, %v8004_v28  ;;  %v2769_v46 = vld [vmem:[%s8083_s24 + $0x318] sm:$0xff]  ;;  %v2780_v10 = vld [vmem:[%s8083_s24 + $0x370] sm:$0xff]  ;;  %v10334_v29 = vld [vmem:[#allocation242_spill] sm:$0xff] }
 0x3ea   : > { %4630 = vst.msk [vmem:[%s8440_s27 + $0xc8] sm:$0xff] %vm347_vm0, %v4501_v43  ;;  %4641 = vst.msk [vmem:[%s8440_s27 + $0x120] sm:$0xff] %vm347_vm0, %v4512_v55  ;;  %v3023_v63 = vsub.f32 %v2765_v31, %v2894_v5  ;;  %v10326_v43 = vld [vmem:[#allocation136_spill] sm:$0xff]  ;;  %v10332_v5 = vld [vmem:[#allocation3_spill] sm:$0xff] }
 0x3eb   : > { %v3969_v34 = vpop.permute.xlu1 %3968  ;;  %4288 = vperm.xlu1 %4835, %v3019_v18   ;;  %v4024_v57 = vpop.permute.xlu0 %4023  ;;  %v2896_v55 = vmul.f32 %v10326_v43, %v10325_v15  ;;  %v5188_v18 = vld [vmem:[%s5324_s18 + $0xf8] sm:$0xff]  ;;  %v3034_v33 = vsub.f32 %v2776_v21, %v2905_v1  ;;  %v2909_v40 = vmul.f32 %v8029_v42, %v10332_v5  ;;  %v10333_v31 = vld [vmem:[#allocation122_spill] sm:$0xff] }
 0x3ec   : > { %v4503_v59 = vadd.f32 %v3969_v34, %v3729_v51  ;;  %v4514_v50 = vadd.f32 %v4024_v57, %v3740_v52  ;;  %4343 = vperm.xlu0 %4834, %v3030_v30   ;;  %v3733_v39 = vmul.f32 %v5188_v18, %v10327_v56  ;;  %v10328_v51 = vld [vmem:[#allocation2_spill] sm:$0xff]  ;;  %v10330_v34 = vld [vmem:[#allocation196_spill] sm:$0xff]  ;;  %v2900_v1 = vmul.f32 %v10334_v29, %v10333_v31  ;;  %v10336_v15 = vld [vmem:[#allocation5_spill] sm:$0xff] }
 0x3ed   : > { %v2907_v11 = vmul.f32 %v8011_v61, %v10328_v51  ;;  %v2778_v30 = vld [vmem:[%s8083_s24 + $0x360] sm:$0xff]  ;;  %v3025_v28 = vsub.f32 %v2767_v26, %v2896_v55  ;;  %v2898_v57 = vmul.f32 %v10330_v34, %v10329_v27  ;;  %v2911_v43 = vmul.f32 %v8047_v36, %v10336_v15  ;;  %v5194_v51 = vld [vmem:[%s5324_s18 + $0x128] sm:$0xff] }
 0x3ee   : > { %4632 = vst.msk [vmem:[%s8440_s27 + $0xd8] sm:$0xff] %vm347_vm0, %v4503_v59  ;;  %4643 = vst.msk [vmem:[%s8440_s27 + $0x130] sm:$0xff] %vm347_vm0, %v4514_v50  ;;  %v10331_v59 = vld [vmem:[#allocation241_spill] sm:$0xff]  ;;  %v2782_v56 = vld [vmem:[%s8083_s24 + $0x380] sm:$0xff] }
 0x3ef   : > { %v3979_v8 = vpop.permute.xlu1 %3978  ;;  %4298 = vperm.xlu1 %4835, %v3021_v49   ;;  %v4034_v62 = vpop.permute.xlu0 %4033  ;;  %v3735_v50 = vmul.f32 %v5190_v13, %v10331_v59  ;;  %v5191_v49 = vld [vmem:[%s5324_s18 + $0x160] sm:$0xff]  ;;  %v3036_v48 = vsub.f32 %v2778_v30, %v2907_v11  ;;  %v10339_v11 = vld [vmem:[#allocation244_spill] sm:$0xff]  ;;  %v3040_v30 = vsub.f32 %v2782_v56, %v2911_v43  ;;  %v10349_v43 = vld [vmem:[#allocation21_spill] sm:$0xff] }
 0x3f0   : > { %v4505_v41 = vadd.f32 %v3979_v8, %v3731_v17  ;;  %v4516_v35 = vadd.f32 %v4034_v62, %v3742_v54  ;;  %4353 = vperm.xlu0 %4834, %v3032_v12   ;;  %v3746_v61 = vmul.f32 %v5191_v49, %v8022_v2  ;;  %v3027_v2 = vsub.f32 %v2769_v46, %v2898_v57  ;;  %v5192_v8 = vld [vmem:[%s5324_s18 + $0x118] sm:$0xff]  ;;  %v10335_v62 = vld [vmem:[#allocation10_spill] sm:$0xff]  ;;  %v2784_v57 = vld [vmem:[%s8083_s24 + $0x390] sm:$0xff] }
 0x3f1   : > { %v3737_v21 = vmul.f32 %v5192_v8, %v10335_v62  ;;  %v10342_v49 = vld [vmem:[#allocation245_spill] sm:$0xff]  ;;  %v10343_v46 = vld [vmem:[#allocation139_spill] sm:$0xff]  ;;  %v2786_v29 = vld [vmem:[%s8083_s24 + $0x3a0] sm:$0xff] }
 0x3f2   : > { %4634 = vst.msk [vmem:[%s8440_s27 + $0xe8] sm:$0xff] %vm347_vm0, %v4505_v41  ;;  %4645 = vst.msk [vmem:[%s8440_s27 + $0x140] sm:$0xff] %vm347_vm0, %v4516_v35  ;;  %v5193_v41 = vld [vmem:[%s5324_s18 + $0x170] sm:$0xff]  ;;  %v3038_v35 = vsub.f32 %v2780_v10, %v2909_v40  ;;  %v10344_v10 = vld [vmem:[#allocation143_spill] sm:$0xff] }
 0x3f3   : > { %v3989_v60 = vpop.permute.xlu1 %3988  ;;  %4308 = vperm.xlu1 %4835, %v3023_v63   ;;  %v4044_v52 = vpop.permute.xlu0 %4043  ;;  %v3748_v42 = vmul.f32 %v5193_v41, %v8040_v53  ;;  %v2771_v63 = vld [vmem:[%s8083_s24 + $0x328] sm:$0xff]  ;;  %v5197_v40 = vld [vmem:[%s5324_s18 + $0x190] sm:$0xff]  ;;  %v5199_v15 = vld [vmem:[%s5324_s18 + $0x1a0] sm:$0xff] }
 0x3f4   : > { %v4507_v0 = vadd.f32 %v3989_v60, %v3733_v39  ;;  %v4518_v7 = vadd.f32 %v4044_v52, %v3744_v6  ;;  %4363 = vperm.xlu0 %4834, %v3034_v33   ;;  %v3029_v53 = vsub.f32 %v2771_v63, %v2900_v1  ;;  %v10337_v6 = vld [vmem:[#allocation124_spill] sm:$0xff]  ;;  %v10338_v33 = vld [vmem:[#allocation187_spill] sm:$0xff]  ;;  %v3739_v60 = vmul.f32 %v5194_v51, %v10339_v11  ;;  %v5195_v52 = vld [vmem:[%s5324_s18 + $0x180] sm:$0xff] }
 0x3f5   : > { %v2902_v26 = vmul.f32 %v10338_v33, %v10337_v6  ;;  %v3750_v36 = vmul.f32 %v5195_v52, %v8058_v14  ;;  %v10346_v62 = vld [vmem:[#allocation128_spill] sm:$0xff]  ;;  %v2777_v56 = vld [vmem:[%s8083_s24 + $0x358] sm:$0xff] }
 0x3f6   : > { %4636 = vst.msk [vmem:[%s8440_s27 + $0xf8] sm:$0xff] %vm347_vm0, %v4507_v0  ;;  %4647 = vst.msk [vmem:[%s8440_s27 + $0x150] sm:$0xff] %vm347_vm0, %v4518_v7  ;;  %v2773_v0 = vld [vmem:[%s8083_s24 + $0x338] sm:$0xff]  ;;  %v10340_v7 = vld [vmem:[#allocation142_spill] sm:$0xff] }
 0x3f7   : > { %v3999_v3 = vpop.permute.xlu1 %3998  ;;  %4318 = vperm.xlu1 %4835, %v3025_v28   ;;  %v4054_v17 = vpop.permute.xlu0 %4053  ;;  %v2913_v28 = vmul.f32 %v8065_v45, %v10340_v7  ;;  %v3031_v14 = vsub.f32 %v2773_v0, %v2902_v26  ;;  %v3752_v45 = vmul.f32 %v5197_v40, %v8073_v16  ;;  %v2788_v26 = vld [vmem:[%s8083_s24 + $0x3b0] sm:$0xff]  ;;  %v5200_v0 = vld [vmem:[%s5324_s18 + $0x158] sm:$0xff] }
 0x3f8   : > { %v4509_v54 = vadd.f32 %v3999_v3, %v3735_v50  ;;  %v4520_v12 = vadd.f32 %v4054_v17, %v3746_v61  ;;  %4373 = vperm.xlu0 %4834, %v3036_v48   ;;  %v10341_v50 = vld [vmem:[#allocation126_spill] sm:$0xff]  ;;  %v5196_v48 = vld [vmem:[%s5324_s18 + $0x138] sm:$0xff]  ;;  %v2775_v17 = vld [vmem:[%s8083_s24 + $0x348] sm:$0xff] }
 0x3f9   : > { %v2904_v61 = vmul.f32 %v10342_v49, %v10341_v50  ;;  %v3741_v5 = vmul.f32 %v5196_v48, %v10343_v46  ;;  %v3042_v3 = vsub.f32 %v2784_v57, %v2913_v28  ;;  %v10352_v52 = vld [vmem:[#allocation4_spill] sm:$0xff]  ;;  %v2790_v46 = vld [vmem:[%s8083_s24 + $0x3c0] sm:$0xff] }
 0x3fa   : > { %4638 = vst.msk [vmem:[%s8440_s27 + $0x108] sm:$0xff] %vm347_vm0, %v4509_v54  ;;  %4649 = vst.msk [vmem:[%s8440_s27 + $0x160] sm:$0xff] %vm347_vm0, %v4520_v12  ;;  %v10345_v54 = vld [vmem:[#allocation265_spill] sm:$0xff]  ;;  %v10354_v7 = vld [vmem:[#allocation248_spill] sm:$0xff] }
 0x3fb   : > { %v4009_v55 = vpop.permute.xlu1 %4008  ;;  %4328 = vperm.xlu1 %4835, %v3027_v2   ;;  %v4064_v18 = vpop.permute.xlu0 %4063  ;;  %v2915_v12 = vmul.f32 %v10345_v54, %v10344_v10  ;;  %v3033_v16 = vsub.f32 %v2775_v17, %v2904_v61  ;;  %v3745_v28 = vmul.f32 %v5200_v0, %v10354_v7  ;;  %v10357_v50 = vld [vmem:[#allocation268_spill] sm:$0xff]  ;;  %v10359_v17 = vld [vmem:[#allocation9_spill] sm:$0xff]  ;;  %v5202_v54 = vld [vmem:[%s5324_s18 + $0x168] sm:$0xff] }
 0x3fc   : > { %v4511_v39 = vadd.f32 %v4009_v55, %v3737_v21  ;;  %v4522_v44 = vadd.f32 %v4064_v18, %v3748_v42  ;;  %4383 = vperm.xlu0 %4834, %v3038_v35   ;;  %v10347_v21 = vld [vmem:[#allocation246_spill] sm:$0xff]  ;;  %v5198_v42 = vld [vmem:[%s5324_s18 + $0x148] sm:$0xff]  ;;  %v10348_v35 = vld [vmem:[#allocation141_spill] sm:$0xff]  ;;  %v3754_v55 = vmul.f32 %v5199_v15, %v10349_v43 }
 0x3fd   : > { %v2906_v41 = vmul.f32 %v10347_v21, %v10346_v62  ;;  %v3743_v63 = vmul.f32 %v5198_v42, %v10348_v35  ;;  %v3044_v18 = vsub.f32 %v2786_v29, %v2915_v12  ;;  %v10360_v12 = vld [vmem:[#allocation250_spill] sm:$0xff]  ;;  %v10363_v21 = vld [vmem:[#allocation269_spill] sm:$0xff] }
 0x3fe   : > { %4640 = vst.msk [vmem:[%s8440_s27 + $0x118] sm:$0xff] %vm347_vm0, %v4511_v39  ;;  %4651 = vst.msk [vmem:[%s8440_s27 + $0x170] sm:$0xff] %vm347_vm0, %v4522_v44  ;;  %v10350_v39 = vld [vmem:[#allocation198_spill] sm:$0xff]  ;;  %v10351_v44 = vld [vmem:[#allocation267_spill] sm:$0xff] }
 0x3ff   : > { %v4019_v27 = vpop.permute.xlu1 %4018  ;;  %4338 = vperm.xlu1 %4835, %v3029_v53   ;;  %v4074_v34 = vpop.permute.xlu0 %4073  ;;  %v2917_v53 = vmul.f32 %v10351_v44, %v10350_v39  ;;  %v10361_v29 = vld [vmem:[#allocation26_spill] sm:$0xff]  ;;  %v5204_v44 = vld [vmem:[%s5324_s18 + $0x178] sm:$0xff] }
 0x400   : > { %v4513_v13 = vadd.f32 %v4019_v27, %v3739_v60  ;;  %v4524_v59 = vadd.f32 %v4074_v34, %v3750_v36  ;;  %4393 = vperm.xlu0 %4834, %v3040_v30   ;;  %v3035_v60 = vsub.f32 %v2777_v56, %v2906_v41  ;;  %v10353_v36 = vld [vmem:[#allocation17_spill] sm:$0xff]  ;;  %v5201_v27 = vld [vmem:[%s5324_s18 + $0x1b0] sm:$0xff]  ;;  %v10362_v62 = vld [vmem:[#allocation130_spill] sm:$0xff] }
 0x401   : > { %v2908_v30 = vmul.f32 %v10353_v36, %v10352_v52  ;;  %v10355_v34 = vld [vmem:[#allocation20_spill] sm:$0xff]  ;;  %v2921_v41 = vmul.f32 %v10363_v21, %v10362_v62  ;;  %v10365_v56 = vld [vmem:[#allocation11_spill] sm:$0xff]  ;;  %v10369_v36 = vld [vmem:[#allocation270_spill] sm:$0xff] }
 0x402   : > { %4642 = vst.msk [vmem:[%s8440_s27 + $0x128] sm:$0xff] %vm347_vm0, %v4513_v13  ;;  %4653 = vst.msk [vmem:[%s8440_s27 + $0x180] sm:$0xff] %vm347_vm0, %v4524_v59  ;;  %v3756_v57 = vmul.f32 %v5201_v27, %v10355_v34  ;;  %v3046_v13 = vsub.f32 %v2788_v26, %v2917_v53  ;;  %v2779_v59 = vld [vmem:[%s8083_s24 + $0x368] sm:$0xff]  ;;  %v10366_v53 = vld [vmem:[#allocation252_spill] sm:$0xff] }
 0x403   : > { %v4029_v2 = vpop.permute.xlu1 %4028  ;;  %4348 = vperm.xlu1 %4835, %v3031_v14   ;;  %v4084_v31 = vpop.permute.xlu0 %4083  ;;  %v10356_v14 = vld [vmem:[#allocation13_spill] sm:$0xff]  ;;  %v10367_v26 = vld [vmem:[#allocation28_spill] sm:$0xff] }
 0x404   : > { %v4515_v1 = vadd.f32 %v4029_v2, %v3741_v5  ;;  %v4526_v8 = vadd.f32 %v4084_v31, %v3752_v45  ;;  %4403 = vperm.xlu0 %4834, %v3042_v3   ;;  %v2919_v49 = vmul.f32 %v10357_v50, %v10356_v14  ;;  %v3037_v45 = vsub.f32 %v2779_v59, %v2908_v30  ;;  %v10358_v3 = vld [vmem:[#allocation6_spill] sm:$0xff]  ;;  %v10368_v52 = vld [vmem:[#allocation148_spill] sm:$0xff]  ;;  %v10371_v59 = vld [vmem:[#allocation145_spill] sm:$0xff] }
 0x405   : > { %v2910_v10 = vmul.f32 %v10359_v17, %v10358_v3  ;;  %v3747_v2 = vmul.f32 %v5202_v54, %v10360_v12  ;;  %v5203_v31 = vld [vmem:[%s5324_s18 + $0x1c0] sm:$0xff]  ;;  %v2923_v30 = vmul.f32 %v10369_v36, %v10368_v52  ;;  %v5206_v50 = vld [vmem:[%s5324_s18 + $0x188] sm:$0xff]  ;;  %v10374_v3 = vld [vmem:[#allocation132_spill] sm:$0xff] }
 0x406   : > { %4644 = vst.msk [vmem:[%s8440_s27 + $0x138] sm:$0xff] %vm347_vm0, %v4515_v1  ;;  %4655 = vst.msk [vmem:[%s8440_s27 + $0x190] sm:$0xff] %vm347_vm0, %v4526_v8  ;;  %v3758_v1 = vmul.f32 %v5203_v31, %v10361_v29  ;;  %v3048_v8 = vsub.f32 %v2790_v46, %v2919_v49  ;;  %v10372_v49 = vld [vmem:[#allocation254_spill] sm:$0xff]  ;;  %v10375_v17 = vld [vmem:[#allocation271_spill] sm:$0xff] }
 0x407   : > { %v4039_v6 = vpop.permute.xlu1 %4038  ;;  %4358 = vperm.xlu1 %4835, %v3033_v16   ;;  %v4094_v33 = vpop.permute.xlu0 %4093  ;;  %v2781_v16 = vld [vmem:[%s8083_s24 + $0x378] sm:$0xff]  ;;  %v10373_v46 = vld [vmem:[#allocation30_spill] sm:$0xff]  ;;  %v5210_v36 = vld [vmem:[%s5324_s18 + $0x1a8] sm:$0xff] }
 0x408   : > { %v4517_v51 = vadd.f32 %v4039_v6, %v3743_v63  ;;  %v4528_v11 = vadd.f32 %v4094_v33, %v3754_v55  ;;  %4413 = vperm.xlu0 %4834, %v3044_v18   ;;  %v2792_v63 = vld [vmem:[%s8083_s24 + $0x3d0] sm:$0xff]  ;;  %v3039_v55 = vsub.f32 %v2781_v16, %v2910_v10  ;;  %v3749_v6 = vmul.f32 %v5204_v44, %v10366_v53  ;;  %v5208_v21 = vld [vmem:[%s5324_s18 + $0x198] sm:$0xff] }
 0x409   : > { %v10364_v18 = vld [vmem:[#allocation8_spill] sm:$0xff]  ;;  %v2925_v10 = vmul.f32 %v10375_v17, %v10374_v3  ;;  %v10389_v17 = vld [vmem:[#allocation34_spill] sm:$0xff] }
 0x40a   : > { %4646 = vst.msk [vmem:[%s8440_s27 + $0x148] sm:$0xff] %vm347_vm0, %v4517_v51  ;;  %4657 = vst.msk [vmem:[%s8440_s27 + $0x1a0] sm:$0xff] %vm347_vm0, %v4528_v11  ;;  %v2912_v39 = vmul.f32 %v10365_v56, %v10364_v18  ;;  %v5205_v33 = vld [vmem:[%s5324_s18 + $0x1d0] sm:$0xff]  ;;  %v3050_v11 = vsub.f32 %v2792_v63, %v2921_v41  ;;  %v10378_v41 = vld [vmem:[#allocation255_spill] sm:$0xff] }
 0x40b   : > { %v4049_v61 = vpop.permute.xlu1 %4048  ;;  %4368 = vperm.xlu1 %4835, %v3035_v60   ;;  %v4104_v48 = vpop.permute.xlu0 %4103  ;;  %v3760_v51 = vmul.f32 %v5205_v33, %v10367_v26  ;;  %v2783_v60 = vld [vmem:[%s8083_s24 + $0x388] sm:$0xff]  ;;  %v10377_v16 = vld [vmem:[#allocation256_spill] sm:$0xff] }
 0x40c   : > { %v4519_v5 = vadd.f32 %v4049_v61, %v3745_v28  ;;  %v4530_v40 = vadd.f32 %v4104_v48, %v3756_v57  ;;  %4423 = vperm.xlu0 %4834, %v3046_v13   ;;  %v2794_v28 = vld [vmem:[%s8083_s24 + $0x3e0] sm:$0xff]  ;;  %v3041_v57 = vsub.f32 %v2783_v60, %v2912_v39  ;;  %v10370_v13 = vld [vmem:[#allocation71_spill] sm:$0xff]  ;;  %v3751_v61 = vmul.f32 %v5206_v50, %v10372_v49  ;;  %v10379_v63 = vld [vmem:[#allocation32_spill] sm:$0xff] }
 0x40d   : > { %v2914_v14 = vmul.f32 %v10371_v59, %v10370_v13  ;;  %v5207_v48 = vld [vmem:[%s5324_s18 + $0x1e0] sm:$0xff]  ;;  %v10380_v18 = vld [vmem:[#allocation19_spill] sm:$0xff]  ;;  %v10381_v56 = vld [vmem:[#allocation272_spill] sm:$0xff] }
 0x40e   : > { %4648 = vst.msk [vmem:[%s8440_s27 + $0x158] sm:$0xff] %vm347_vm0, %v4519_v5  ;;  %4659 = vst.msk [vmem:[%s8440_s27 + $0x1b0] sm:$0xff] %vm347_vm0, %v4530_v40  ;;  %v3762_v5 = vmul.f32 %v5207_v48, %v10373_v46  ;;  %v3052_v40 = vsub.f32 %v2794_v28, %v2923_v30  ;;  %v2927_v39 = vmul.f32 %v10381_v56, %v10380_v18  ;;  %v10383_v60 = vld [vmem:[#allocation131_spill] sm:$0xff]  ;;  %v10384_v30 = vld [vmem:[#allocation257_spill] sm:$0xff] }
 0x40f   : > { %v4059_v42 = vpop.permute.xlu1 %4058  ;;  %4378 = vperm.xlu1 %4835, %v3037_v45   ;;  %v4114_v35 = vpop.permute.xlu0 %4113  ;;  %v2785_v45 = vld [vmem:[%s8083_s24 + $0x398] sm:$0xff]  ;;  %v10385_v28 = vld [vmem:[#allocation24_spill] sm:$0xff]  ;;  %v10387_v48 = vld [vmem:[#allocation259_spill] sm:$0xff] }
 0x410   : > { %v4521_v15 = vadd.f32 %v4059_v42, %v3747_v2  ;;  %v4532_v43 = vadd.f32 %v4114_v35, %v3758_v1  ;;  %4433 = vperm.xlu0 %4834, %v3048_v8   ;;  %v2796_v2 = vld [vmem:[%s8083_s24 + $0x3f0] sm:$0xff]  ;;  %v3043_v1 = vsub.f32 %v2785_v45, %v2914_v14  ;;  %v3753_v42 = vmul.f32 %v5208_v21, %v10378_v41  ;;  %v5214_v21 = vld [vmem:[%s5324_s18 + $0x1c8] sm:$0xff] }
 0x411   : > { %v10376_v8 = vld [vmem:[#allocation12_spill] sm:$0xff] }
 0x412   : > { %4650 = vst.msk [vmem:[%s8440_s27 + $0x168] sm:$0xff] %vm347_vm0, %v4521_v15  ;;  %4661 = vst.msk [vmem:[%s8440_s27 + $0x1c0] sm:$0xff] %vm347_vm0, %v4532_v43  ;;  %v2916_v62 = vmul.f32 %v10377_v16, %v10376_v8  ;;  %v5209_v35 = vld [vmem:[%s5324_s18 + $0x1f0] sm:$0xff]  ;;  %v3054_v43 = vsub.f32 %v2796_v2, %v2925_v10  ;;  %v10391_v16 = vld [vmem:[#allocation261_spill] sm:$0xff] }
 0x413   : > { %v4069_v0 = vpop.permute.xlu1 %4068  ;;  %4388 = vperm.xlu1 %4835, %v3039_v55   ;;  %v4124_v7 = vpop.permute.xlu0 %4123  ;;  %v3764_v15 = vmul.f32 %v5209_v35, %v10379_v63  ;;  %v2787_v55 = vld [vmem:[%s8083_s24 + $0x3a8] sm:$0xff]  ;;  %v5213_v3 = vld [vmem:[%s5324_s18 + $0x210] sm:$0xff]  ;;  %v5215_v35 = vld [vmem:[%s5324_s18 + $0x220] sm:$0xff] }
 0x414   : > { %v4523_v27 = vadd.f32 %v4069_v0, %v3749_v6  ;;  %v4534_v34 = vadd.f32 %v4124_v7, %v3760_v51  ;;  %4443 = vperm.xlu0 %4834, %v3050_v11   ;;  %v2798_v6 = vld [vmem:[%s8083_s24 + $0x400] sm:$0xff]  ;;  %v3045_v51 = vsub.f32 %v2787_v55, %v2916_v62  ;;  %v3755_v0 = vmul.f32 %v5210_v36, %v10384_v30  ;;  %v10390_v8 = vld [vmem:[#allocation16_spill] sm:$0xff]  ;;  %v10393_v63 = vld [vmem:[#allocation23_spill] sm:$0xff] }
 0x415   : > { %v10382_v11 = vld [vmem:[#allocation14_spill] sm:$0xff]  ;;  %v3768_v10 = vmul.f32 %v5213_v3, %v10389_v17  ;;  %v2922_v62 = vmul.f32 %v10391_v16, %v10390_v8  ;;  %v10392_v41 = vld [vmem:[#allocation260_spill] sm:$0xff]  ;;  %v2795_v30 = vld [vmem:[%s8083_s24 + $0x3e8] sm:$0xff] }
 0x416   : > { %4652 = vst.msk [vmem:[%s8440_s27 + $0x178] sm:$0xff] %vm347_vm0, %v4523_v27  ;;  %4663 = vst.msk [vmem:[%s8440_s27 + $0x1d0] sm:$0xff] %vm347_vm0, %v4534_v34  ;;  %v2918_v52 = vmul.f32 %v10383_v60, %v10382_v11  ;;  %v5211_v7 = vld [vmem:[%s5324_s18 + $0x200] sm:$0xff]  ;;  %v3056_v34 = vsub.f32 %v2798_v6, %v2927_v39  ;;  %v10395_v6 = vld [vmem:[#allocation263_spill] sm:$0xff] }
 0x417   : > { %v4079_v54 = vpop.permute.xlu1 %4078  ;;  %4398 = vperm.xlu1 %4835, %v3041_v57   ;;  %v4134_v12 = vpop.permute.xlu0 %4133  ;;  %v3766_v27 = vmul.f32 %v5211_v7, %v10385_v28  ;;  %v2789_v57 = vld [vmem:[%s8083_s24 + $0x3b8] sm:$0xff]  ;;  %v5217_v60 = vld [vmem:[%s5324_s18 + $0x230] sm:$0xff] }
 0x418   : > { %v4525_v31 = vadd.f32 %v4079_v54, %v3751_v61  ;;  %v4536_v29 = vadd.f32 %v4134_v12, %v3762_v5  ;;  %4453 = vperm.xlu0 %4834, %v3052_v40   ;;  %v3047_v49 = vsub.f32 %v2789_v57, %v2918_v52  ;;  %v10386_v61 = vld [vmem:[#allocation15_spill] sm:$0xff]  ;;  %v5212_v5 = vld [vmem:[%s5324_s18 + $0x1b8] sm:$0xff]  ;;  %v10388_v40 = vld [vmem:[#allocation258_spill] sm:$0xff] }
 0x419   : > { %v2920_v46 = vmul.f32 %v10387_v48, %v10386_v61  ;;  %v3757_v45 = vmul.f32 %v5212_v5, %v10388_v40  ;;  %v2791_v54 = vld [vmem:[%s8083_s24 + $0x3c8] sm:$0xff]  ;;  %v10397_v52 = vld [vmem:[#allocation36_spill] sm:$0xff]  ;;  %v10398_v57 = vld [vmem:[#allocation18_spill] sm:$0xff] }
 0x41a   : > { %4654 = vst.msk [vmem:[%s8440_s27 + $0x188] sm:$0xff] %vm347_vm0, %v4525_v31  ;;  %4665 = vst.msk [vmem:[%s8440_s27 + $0x1e0] sm:$0xff] %vm347_vm0, %v4536_v29  ;;  %v3772_v36 = vmul.f32 %v5217_v60, %v10397_v52  ;;  %v5219_v61 = vld [vmem:[%s5324_s18 + $0x240] sm:$0xff]  ;;  %v10401_v48 = vld [vmem:[#allocation25_spill] sm:$0xff] }
 0x41b   : > { %v4089_v44 = vpop.permute.xlu1 %4088  ;;  %4408 = vperm.xlu1 %4835, %v3043_v1   ;;  %v4144_v53 = vpop.permute.xlu0 %4143  ;;  %v3049_v1 = vsub.f32 %v2791_v54, %v2920_v46  ;;  %v3774_v46 = vmul.f32 %v5219_v61, %v10401_v48  ;;  %v2797_v5 = vld [vmem:[%s8083_s24 + $0x3f8] sm:$0xff]  ;;  %v5229_v48 = vld [vmem:[%s5324_s18 + $0x290] sm:$0xff] }
 0x41c   : > { %v4527_v33 = vadd.f32 %v4089_v44, %v3753_v42  ;;  %v4538_v26 = vadd.f32 %v4144_v53, %v3764_v15  ;;  %4463 = vperm.xlu0 %4834, %v3054_v43   ;;  %v3759_v42 = vmul.f32 %v5214_v21, %v10392_v41  ;;  %v3770_v15 = vmul.f32 %v5215_v35, %v10393_v63  ;;  %v2793_v43 = vld [vmem:[%s8083_s24 + $0x3d8] sm:$0xff]  ;;  %v10394_v53 = vld [vmem:[#allocation7_spill] sm:$0xff]  ;;  %v5223_v63 = vld [vmem:[%s5324_s18 + $0x260] sm:$0xff] }
 0x41d   : > { %v3051_v44 = vsub.f32 %v2793_v43, %v2922_v62  ;;  %v5220_v54 = vld [vmem:[%s5324_s18 + $0x1f8] sm:$0xff]  ;;  %v5222_v41 = vld [vmem:[%s5324_s18 + $0x208] sm:$0xff] }
 0x41e   : > { %4656 = vst.msk [vmem:[%s8440_s27 + $0x198] sm:$0xff] %vm347_vm0, %v4527_v33  ;;  %4667 = vst.msk [vmem:[%s8440_s27 + $0x1f0] sm:$0xff] %vm347_vm0, %v4538_v26  ;;  %v2924_v33 = vmul.f32 %v10395_v6, %v10394_v53  ;;  %v5216_v26 = vld [vmem:[%s5324_s18 + $0x1d8] sm:$0xff] }
 0x41f   : > { %v4099_v13 = vpop.permute.xlu1 %4098  ;;  %4418 = vperm.xlu1 %4835, %v3045_v51   ;;  %v4154_v59 = vpop.permute.xlu0 %4153  ;;  %v10396_v51 = vld [vmem:[#allocation262_spill] sm:$0xff]  ;;  %v10406_v53 = vld [vmem:[#allocation153_spill] sm:$0xff] }
 0x420   : > { %v4529_v14 = vadd.f32 %v4099_v13, %v3755_v0  ;;  %v4540_v50 = vadd.f32 %v4154_v59, %v3766_v27  ;;  %4473 = vperm.xlu0 %4834, %v3056_v34   ;;  %v3761_v11 = vmul.f32 %v5216_v26, %v10396_v51  ;;  %v3053_v34 = vsub.f32 %v2795_v30, %v2924_v33  ;;  %v10399_v13 = vld [vmem:[#allocation266_spill] sm:$0xff]  ;;  %v5225_v33 = vld [vmem:[%s5324_s18 + $0x270] sm:$0xff]  ;;  %v5226_v30 = vld [vmem:[%s5324_s18 + $0x228] sm:$0xff] }
 0x421   : > { %v2926_v59 = vmul.f32 %v10399_v13, %v10398_v57  ;;  %v10407_v26 = vld [vmem:[#allocation40_spill] sm:$0xff] }
 0x422   : > { %4658 = vst.msk [vmem:[%s8440_s27 + $0x1a8] sm:$0xff] %vm347_vm0, %v4529_v14  ;;  %4669 = vst.msk [vmem:[%s8440_s27 + $0x200] sm:$0xff] %vm347_vm0, %v4540_v50  ;;  %v5218_v14 = vld [vmem:[%s5324_s18 + $0x1e8] sm:$0xff]  ;;  %v10400_v50 = vld [vmem:[#allocation264_spill] sm:$0xff]  ;;  %v3780_v51 = vmul.f32 %v5225_v33, %v10407_v26 }
 0x423   : > { %v4109_v12 = vpop.permute.xlu1 %4108  ;;  %4428 = vperm.xlu1 %4835, %v3047_v49   ;;  %v4164_v2 = vpop.permute.xlu0 %4163  ;;  %v3763_v49 = vmul.f32 %v5218_v14, %v10400_v50  ;;  %v5228_v50 = vld [vmem:[%s5324_s18 + $0x238] sm:$0xff] }
 0x424   : > { %v4531_v31 = vadd.f32 %v4109_v12, %v3757_v45  ;;  %v4542_v29 = vadd.f32 %v4164_v2, %v3768_v10  ;;  %v3055_v10 = vsub.f32 %v2797_v5, %v2926_v59  ;;  %v10402_v12 = vld [vmem:[#allocation150_spill] sm:$0xff]  ;;  %v10417_v33 = vld [vmem:[#allocation33_spill] sm:$0xff] }
 0x425   : > { %v3765_v2 = vmul.f32 %v5220_v54, %v10402_v12  ;;  %v10412_v54 = vld [vmem:[#allocation163_spill] sm:$0xff] }
 0x426   : > { %4660 = vst.msk [vmem:[%s8440_s27 + $0x1b8] sm:$0xff] %vm347_vm0, %v4531_v31  ;;  %4671 = vst.msk [vmem:[%s8440_s27 + $0x210] sm:$0xff] %vm347_vm0, %v4542_v29  ;;  %v5221_v31 = vld [vmem:[%s5324_s18 + $0x250] sm:$0xff]  ;;  %v10403_v29 = vld [vmem:[#allocation38_spill] sm:$0xff] }
 0x427   : > { %v4119_v55 = vpop.permute.xlu1 %4118  ;;  %4438 = vperm.xlu1 %4835, %v3049_v1   ;;  %v4174_v18 = vpop.permute.xlu0 %4173  ;;  %v3776_v1 = vmul.f32 %v5221_v31, %v10403_v29  ;;  %v10413_v31 = vld [vmem:[#allocation31_spill] sm:$0xff] }
 0x428   : > { %v4533_v56 = vadd.f32 %v4119_v55, %v3759_v42  ;;  %v4544_v39 = vadd.f32 %v4174_v18, %v3770_v15  ;;  %v10404_v42 = vld [vmem:[#allocation149_spill] sm:$0xff]  ;;  %v10405_v15 = vld [vmem:[#allocation27_spill] sm:$0xff] }
 0x429   : > { %v3767_v35 = vmul.f32 %v5222_v41, %v10404_v42  ;;  %v3778_v43 = vmul.f32 %v5223_v63, %v10405_v15  ;;  %v10414_v41 = vld [vmem:[#allocation147_spill] sm:$0xff]  ;;  %v10415_v63 = vld [vmem:[#allocation44_spill] sm:$0xff] }
 0x42a   : > { %4662 = vst.msk [vmem:[%s8440_s27 + $0x1c8] sm:$0xff] %vm347_vm0, %v4533_v56  ;;  %4673 = vst.msk [vmem:[%s8440_s27 + $0x220] sm:$0xff] %vm347_vm0, %v4544_v39 }
 0x42b   : > { %v4129_v0 = vpop.permute.xlu1 %4128  ;;  %4448 = vperm.xlu1 %4835, %v3051_v44   ;;  %v4184_v7 = vpop.permute.xlu0 %4183  ;;  %v5224_v44 = vld [vmem:[%s5324_s18 + $0x218] sm:$0xff] }
 0x42c   : > { %v4535_v28 = vadd.f32 %v4129_v0, %v3761_v11  ;;  %v4546_v27 = vadd.f32 %v4184_v7, %v3772_v36  ;;  %v3769_v6 = vmul.f32 %v5224_v44, %v10406_v53  ;;  %v10408_v0 = vld [vmem:[#allocation157_spill] sm:$0xff] }
 0x42d   : > { %v3771_v7 = vmul.f32 %v5226_v30, %v10408_v0  ;;  %v10416_v44 = vld [vmem:[#allocation165_spill] sm:$0xff]  ;;  %v10418_v30 = vld [vmem:[#allocation151_spill] sm:$0xff] }
 0x42e   : > { %4664 = vst.msk [vmem:[%s8440_s27 + $0x1d8] sm:$0xff] %vm347_vm0, %v4535_v28  ;;  %4675 = vst.msk [vmem:[%s8440_s27 + $0x230] sm:$0xff] %vm347_vm0, %v4546_v27  ;;  %v5227_v28 = vld [vmem:[%s5324_s18 + $0x280] sm:$0xff]  ;;  %v10409_v27 = vld [vmem:[#allocation29_spill] sm:$0xff] }
 0x42f   : > { %v4139_v40 = vpop.permute.xlu1 %4138  ;;  %4458 = vperm.xlu1 %4835, %v3053_v34   ;;  %v4194_v45 = vpop.permute.xlu0 %4193  ;;  %v3782_v34 = vmul.f32 %v5227_v28, %v10409_v27  ;;  %v10419_v28 = vld [vmem:[#allocation46_spill] sm:$0xff] }
 0x430   : > { %v4537_v3 = vadd.f32 %v4139_v40, %v3763_v49  ;;  %v4548_v17 = vadd.f32 %v4194_v45, %v3774_v46  ;;  %v10410_v49 = vld [vmem:[#allocation161_spill] sm:$0xff]  ;;  %v10411_v46 = vld [vmem:[#allocation42_spill] sm:$0xff] }
 0x431   : > { %v3773_v61 = vmul.f32 %v5228_v50, %v10410_v49  ;;  %v3784_v5 = vmul.f32 %v5229_v48, %v10411_v46  ;;  %v10420_v50 = vld [vmem:[#allocation167_spill] sm:$0xff] }
 0x432   : > { %4666 = vst.msk [vmem:[%s8440_s27 + $0x1e8] sm:$0xff] %vm347_vm0, %v4537_v3  ;;  %4677 = vst.msk [vmem:[%s8440_s27 + $0x240] sm:$0xff] %vm347_vm0, %v4548_v17  ;;  %v10421_v48 = vld [vmem:[#allocation35_spill] sm:$0xff] }
 0x433   : > { %v4149_v8 = vpop.permute.xlu1 %4148  ;;  %4468 = vperm.xlu1 %4835, %v3055_v10   ;;  %v4204_v16 = vpop.permute.xlu0 %4203  ;;  %v5230_v10 = vld [vmem:[%s5324_s18 + $0x248] sm:$0xff] }
 0x434   : > { %v4539_v62 = vadd.f32 %v4149_v8, %v3765_v2  ;;  %v4550_v21 = vadd.f32 %v4204_v16, %v3776_v1  ;;  %v3775_v12 = vmul.f32 %v5230_v10, %v10412_v54  ;;  %v5231_v2 = vld [vmem:[%s5324_s18 + $0x2a0] sm:$0xff]  ;;  %v10422_v10 = vld [vmem:[#allocation155_spill] sm:$0xff] }
 0x435   : > { %v3786_v29 = vmul.f32 %v5231_v2, %v10413_v31  ;;  %v10423_v2 = vld [vmem:[#allocation48_spill] sm:$0xff] }
 0x436   : > { %4668 = vst.msk [vmem:[%s8440_s27 + $0x1f8] sm:$0xff] %vm347_vm0, %v4539_v62  ;;  %4679 = vst.msk [vmem:[%s8440_s27 + $0x250] sm:$0xff] %vm347_vm0, %v4550_v21  ;;  %v5232_v21 = vld [vmem:[%s5324_s18 + $0x258] sm:$0xff] }
 0x437   : > { %v4159_v55 = vpop.permute.xlu1 %4158  ;;  %v4214_v18 = vpop.permute.xlu0 %4213  ;;  %v3777_v42 = vmul.f32 %v5232_v21, %v10414_v41  ;;  %v10424_v21 = vld [vmem:[#allocation169_spill] sm:$0xff] }
 0x438   : > { %v4541_v56 = vadd.f32 %v4159_v55, %v3767_v35  ;;  %v4552_v39 = vadd.f32 %v4214_v18, %v3778_v43  ;;  %v5233_v35 = vld [vmem:[%s5324_s18 + $0x2b0] sm:$0xff] }
 0x439   : > { %v3788_v15 = vmul.f32 %v5233_v35, %v10415_v63  ;;  %v10425_v35 = vld [vmem:[#allocation37_spill] sm:$0xff] }
 0x43a   : > { %4670 = vst.msk [vmem:[%s8440_s27 + $0x208] sm:$0xff] %vm347_vm0, %v4541_v56  ;;  %4681 = vst.msk [vmem:[%s8440_s27 + $0x260] sm:$0xff] %vm347_vm0, %v4552_v39  ;;  %v5234_v39 = vld [vmem:[%s5324_s18 + $0x268] sm:$0xff] }
 0x43b   : > { %v4169_v11 = vpop.permute.xlu1 %4168  ;;  %v4224_v60 = vpop.permute.xlu0 %4223  ;;  %v3779_v53 = vmul.f32 %v5234_v39, %v10416_v44  ;;  %v10426_v39 = vld [vmem:[#allocation159_spill] sm:$0xff] }
 0x43c   : > { %v4543_v52 = vadd.f32 %v4169_v11, %v3769_v6  ;;  %v4554_v36 = vadd.f32 %v4224_v60, %v3780_v51  ;;  %v5235_v6 = vld [vmem:[%s5324_s18 + $0x2c0] sm:$0xff] }
 0x43d   : > { %v3790_v26 = vmul.f32 %v5235_v6, %v10417_v33  ;;  %v10427_v6 = vld [vmem:[#allocation50_spill] sm:$0xff] }
 0x43e   : > { %4672 = vst.msk [vmem:[%s8440_s27 + $0x218] sm:$0xff] %vm347_vm0, %v4543_v52  ;;  %4683 = vst.msk [vmem:[%s8440_s27 + $0x270] sm:$0xff] %vm347_vm0, %v4554_v36  ;;  %v5236_v36 = vld [vmem:[%s5324_s18 + $0x278] sm:$0xff] }
 0x43f   : > { %v4179_v57 = vpop.permute.xlu1 %4178  ;;  %v4234_v13 = vpop.permute.xlu0 %4233  ;;  %v3781_v0 = vmul.f32 %v5236_v36, %v10418_v30  ;;  %v10428_v36 = vld [vmem:[#allocation171_spill] sm:$0xff] }
 0x440   : > { %v4545_v59 = vadd.f32 %v4179_v57, %v3771_v7  ;;  %v4556_v14 = vadd.f32 %v4234_v13, %v3782_v34  ;;  %v5237_v7 = vld [vmem:[%s5324_s18 + $0x2d0] sm:$0xff] }
 0x441   : > { %v3792_v27 = vmul.f32 %v5237_v7, %v10419_v28 }
 0x442   : > { %4674 = vst.msk [vmem:[%s8440_s27 + $0x228] sm:$0xff] %vm347_vm0, %v4545_v59  ;;  %4685 = vst.msk [vmem:[%s8440_s27 + $0x280] sm:$0xff] %vm347_vm0, %v4556_v14  ;;  %v5238_v14 = vld [vmem:[%s5324_s18 + $0x288] sm:$0xff] }
 0x443   : > { %v4189_v40 = vpop.permute.xlu1 %4188  ;;  %v4244_v45 = vpop.permute.xlu0 %4243  ;;  %v3783_v49 = vmul.f32 %v5238_v14, %v10420_v50  ;;  %v5249_v50 = vld [vmem:[%s5324_s18 + $0x330] sm:$0xff] }
 0x444   : > { %v4547_v3 = vadd.f32 %v4189_v40, %v3773_v61  ;;  %v4558_v17 = vadd.f32 %v4244_v45, %v3784_v5  ;;  %v5239_v61 = vld [vmem:[%s5324_s18 + $0x2e0] sm:$0xff] }
 0x445   : > { %v3794_v46 = vmul.f32 %v5239_v61, %v10421_v48 }
 0x446   : > { %4676 = vst.msk [vmem:[%s8440_s27 + $0x238] sm:$0xff] %vm347_vm0, %v4547_v3  ;;  %4687 = vst.msk [vmem:[%s8440_s27 + $0x290] sm:$0xff] %vm347_vm0, %v4558_v17  ;;  %v5240_v17 = vld [vmem:[%s5324_s18 + $0x298] sm:$0xff] }
 0x447   : > { %v4199_v1 = vpop.permute.xlu1 %4198  ;;  %v4254_v8 = vpop.permute.xlu0 %4253  ;;  %v3785_v54 = vmul.f32 %v5240_v17, %v10422_v10  ;;  %v5251_v17 = vld [vmem:[%s5324_s18 + $0x340] sm:$0xff]  ;;  %v10432_v10 = vld [vmem:[#allocation135_spill] sm:$0xff] }
 0x448   : > { %v4549_v16 = vadd.f32 %v4199_v1, %v3775_v12  ;;  %v4560_v62 = vadd.f32 %v4254_v8, %v3786_v29  ;;  %v5241_v12 = vld [vmem:[%s5324_s18 + $0x2f0] sm:$0xff] }
 0x449   : > { %v3796_v31 = vmul.f32 %v5241_v12, %v10423_v2 }
 0x44a   : > { %4678 = vst.msk [vmem:[%s8440_s27 + $0x248] sm:$0xff] %vm347_vm0, %v4549_v16  ;;  %4689 = vst.msk [vmem:[%s8440_s27 + $0x2a0] sm:$0xff] %vm347_vm0, %v4560_v62  ;;  %v5242_v62 = vld [vmem:[%s5324_s18 + $0x2a8] sm:$0xff] }
 0x44b   : > { %v4209_v43 = vpop.permute.xlu1 %4208  ;;  %v4264_v55 = vpop.permute.xlu0 %4263  ;;  %v3787_v41 = vmul.f32 %v5242_v62, %v10424_v21  ;;  %v5253_v62 = vld [vmem:[%s5324_s18 + $0x350] sm:$0xff] }
 0x44c   : > { %v4551_v18 = vadd.f32 %v4209_v43, %v3777_v42  ;;  %v4562_v56 = vadd.f32 %v4264_v55, %v3788_v15  ;;  %v5243_v42 = vld [vmem:[%s5324_s18 + $0x300] sm:$0xff]  ;;  %v3808_v21 = vmul.f32 %v5253_v62, %v8372_v9 }
 0x44d   : > { %v3798_v63 = vmul.f32 %v5243_v42, %v10425_v35 }
 0x44e   : > { %4680 = vst.msk [vmem:[%s8440_s27 + $0x258] sm:$0xff] %vm347_vm0, %v4551_v18  ;;  %4691 = vst.msk [vmem:[%s8440_s27 + $0x2b0] sm:$0xff] %vm347_vm0, %v4562_v56  ;;  %v5244_v56 = vld [vmem:[%s5324_s18 + $0x2b8] sm:$0xff] }
 0x44f   : > { %v4219_v51 = vpop.permute.xlu1 %4218  ;;  %v4274_v11 = vpop.permute.xlu0 %4273  ;;  %v3789_v44 = vmul.f32 %v5244_v56, %v10426_v39 }
 0x450   : > { %v4553_v60 = vadd.f32 %v4219_v51, %v3779_v53  ;;  %v4564_v52 = vadd.f32 %v4274_v11, %v3790_v26  ;;  %v5245_v53 = vld [vmem:[%s5324_s18 + $0x310] sm:$0xff] }
 0x451   : > { %v3800_v33 = vmul.f32 %v5245_v53, %v10427_v6  ;;  %v5256_v6 = vld [vmem:[%s5324_s18 + $0x318] sm:$0xff] }
 0x452   : > { %4682 = vst.msk [vmem:[%s8440_s27 + $0x268] sm:$0xff] %vm347_vm0, %v4553_v60  ;;  %4693 = vst.msk [vmem:[%s8440_s27 + $0x2c0] sm:$0xff] %vm347_vm0, %v4564_v52  ;;  %v5246_v52 = vld [vmem:[%s5324_s18 + $0x2c8] sm:$0xff] }
 0x453   : > { %v4229_v34 = vpop.permute.xlu1 %4228  ;;  %v4284_v57 = vpop.permute.xlu0 %4283  ;;  %v3791_v30 = vmul.f32 %v5246_v52, %v10428_v36 }
 0x454   : > { %v4555_v13 = vadd.f32 %v4229_v34, %v3781_v0  ;;  %v4566_v59 = vadd.f32 %v4284_v57, %v3792_v27  ;;  %v5247_v0 = vld [vmem:[%s5324_s18 + $0x320] sm:$0xff] }
 0x455   : > { %v3802_v7 = vmul.f32 %v5247_v0, %v8342_v22  ;;  %v10436_v0 = vld [vmem:[#allocation138_spill] sm:$0xff] }
 0x456   : > { %4684 = vst.msk [vmem:[%s8440_s27 + $0x278] sm:$0xff] %vm347_vm0, %v4555_v13  ;;  %4695 = vst.msk [vmem:[%s8440_s27 + $0x2d0] sm:$0xff] %vm347_vm0, %v4566_v59  ;;  %v5248_v13 = vld [vmem:[%s5324_s18 + $0x2d8] sm:$0xff]  ;;  %v10429_v59 = vld [vmem:[#allocation152_spill] sm:$0xff] }
 0x457   : > { %v4239_v5 = vpop.permute.xlu1 %4238  ;;  %v4294_v40 = vpop.permute.xlu0 %4293  ;;  %v3793_v14 = vmul.f32 %v5248_v13, %v10429_v59  ;;  %v5260_v59 = vld [vmem:[%s5324_s18 + $0x338] sm:$0xff] }
 0x458   : > { %v4557_v45 = vadd.f32 %v4239_v5, %v3783_v49  ;;  %v4568_v3 = vadd.f32 %v4294_v40, %v3794_v46  ;;  %v10430_v49 = vld [vmem:[#allocation162_spill] sm:$0xff]  ;;  %v5250_v40 = vld [vmem:[%s5324_s18 + $0x2e8] sm:$0xff] }
 0x459   : > { %v3804_v61 = vmul.f32 %v5249_v50, %v10430_v49  ;;  %v5261_v49 = vld [vmem:[%s5324_s18 + $0x390] sm:$0xff] }
 0x45a   : > { %4686 = vst.msk [vmem:[%s8440_s27 + $0x288] sm:$0xff] %vm347_vm0, %v4557_v45  ;;  %4697 = vst.msk [vmem:[%s8440_s27 + $0x2e0] sm:$0xff] %vm347_vm0, %v4568_v3  ;;  %v10431_v45 = vld [vmem:[#allocation174_spill] sm:$0xff] }
 0x45b   : > { %v4249_v29 = vpop.permute.xlu1 %4248  ;;  %v4304_v1 = vpop.permute.xlu0 %4303  ;;  %v3795_v3 = vmul.f32 %v5250_v40, %v10431_v45  ;;  %v10438_v40 = vld [vmem:[#allocation180_spill] sm:$0xff] }
 0x45c   : > { %v4559_v8 = vadd.f32 %v4249_v29, %v3785_v54  ;;  %v4570_v16 = vadd.f32 %v4304_v1, %v3796_v31  ;;  %v3806_v54 = vmul.f32 %v5251_v17, %v10432_v10  ;;  %v5252_v1 = vld [vmem:[%s5324_s18 + $0x2f8] sm:$0xff] }
 0x45e   : > { %4688 = vst.msk [vmem:[%s8440_s27 + $0x298] sm:$0xff] %vm347_vm0, %v4559_v8  ;;  %4699 = vst.msk [vmem:[%s8440_s27 + $0x2f0] sm:$0xff] %vm347_vm0, %v4570_v16  ;;  %v10433_v8 = vld [vmem:[#allocation154_spill] sm:$0xff] }
 0x45f   : > { %v4259_v15 = vpop.permute.xlu1 %4258  ;;  %v4314_v43 = vpop.permute.xlu0 %4313  ;;  %v3797_v16 = vmul.f32 %v5252_v1, %v10433_v8  ;;  %v5265_v1 = vld [vmem:[%s5324_s18 + $0x3b0] sm:$0xff] }
 0x460   : > { %v4561_v55 = vadd.f32 %v4259_v15, %v3787_v41  ;;  %v4572_v18 = vadd.f32 %v4314_v43, %v3798_v63  ;;  %v5254_v15 = vld [vmem:[%s5324_s18 + $0x308] sm:$0xff]  ;;  %v10434_v43 = vld [vmem:[#allocation177_spill] sm:$0xff]  ;;  %v3820_v8 = vmul.f32 %v5265_v1, %v8434_v4 }
 0x462   : > { %4690 = vst.msk [vmem:[%s8440_s27 + $0x2a8] sm:$0xff] %vm347_vm0, %v4561_v55  ;;  %4701 = vst.msk [vmem:[%s8440_s27 + $0x300] sm:$0xff] %vm347_vm0, %v4572_v18  ;;  %v3799_v55 = vmul.f32 %v5254_v15, %v10434_v43  ;;  %v5255_v18 = vld [vmem:[%s5324_s18 + $0x360] sm:$0xff] }
 0x463   : > { %v4269_v26 = vpop.permute.xlu1 %4268  ;;  %v4324_v51 = vpop.permute.xlu0 %4323  ;;  %v3810_v56 = vmul.f32 %v5255_v18, %v8382_v24 }
 0x464   : > { %v4563_v11 = vadd.f32 %v4269_v26, %v3789_v44  ;;  %v4574_v60 = vadd.f32 %v4324_v51, %v3800_v33  ;;  %v10435_v33 = vld [vmem:[#allocation156_spill] sm:$0xff] }
 0x465   : > { %v3801_v26 = vmul.f32 %v5256_v6, %v10435_v33  ;;  %v5257_v51 = vld [vmem:[%s5324_s18 + $0x370] sm:$0xff] }
 0x466   : > { %4692 = vst.msk [vmem:[%s8440_s27 + $0x2b8] sm:$0xff] %vm347_vm0, %v4563_v11  ;;  %4703 = vst.msk [vmem:[%s8440_s27 + $0x310] sm:$0xff] %vm347_vm0, %v4574_v60  ;;  %v3812_v11 = vmul.f32 %v5257_v51, %v8392_v38  ;;  %v5270_v51 = vld [vmem:[%s5324_s18 + $0x388] sm:$0xff] }
 0x467   : > { %v4279_v28 = vpop.permute.xlu1 %4278  ;;  %v4334_v27 = vpop.permute.xlu0 %4333 }
 0x468   : > { %v4565_v34 = vadd.f32 %v4279_v28, %v3791_v30  ;;  %v4576_v57 = vadd.f32 %v4334_v27, %v3802_v7  ;;  %v5258_v30 = vld [vmem:[%s5324_s18 + $0x328] sm:$0xff]  ;;  %v5259_v28 = vld [vmem:[%s5324_s18 + $0x380] sm:$0xff] }
 0x469   : > { %v3803_v7 = vmul.f32 %v5258_v30, %v10436_v0  ;;  %v3814_v27 = vmul.f32 %v5259_v28, %v8402_v23  ;;  %v10443_v28 = vld [vmem:[#allocation41_spill] sm:$0xff] }
 0x46a   : > { %4694 = vst.msk [vmem:[%s8440_s27 + $0x2c8] sm:$0xff] %vm347_vm0, %v4565_v34  ;;  %4705 = vst.msk [vmem:[%s8440_s27 + $0x320] sm:$0xff] %vm347_vm0, %v4576_v57 }
 0x46b   : > { %v4289_v22 = vpop.permute.xlu1 %4288  ;;  %v4344_v48 = vpop.permute.xlu0 %4343 }
 0x46c   : > { %v4567_v46 = vadd.f32 %v4289_v22, %v3793_v14  ;;  %v4578_v5 = vadd.f32 %v4344_v48, %v3804_v61  ;;  %v10437_v14 = vld [vmem:[#allocation158_spill] sm:$0xff]  ;;  %v3816_v61 = vmul.f32 %v5261_v49, %v8412_v47 }
 0x46d   : > { %v3805_v50 = vmul.f32 %v5260_v59, %v10437_v14  ;;  %v5274_v14 = vld [vmem:[%s5324_s18 + $0x3a8] sm:$0xff] }
 0x46e   : > { %4696 = vst.msk [vmem:[%s8440_s27 + $0x2d8] sm:$0xff] %vm347_vm0, %v4567_v46  ;;  %4707 = vst.msk [vmem:[%s8440_s27 + $0x330] sm:$0xff] %vm347_vm0, %v4578_v5  ;;  %v5262_v5 = vld [vmem:[%s5324_s18 + $0x348] sm:$0xff] }
 0x46f   : > { %v4299_v12 = vpop.permute.xlu1 %4298  ;;  %v4354_v2 = vpop.permute.xlu0 %4353  ;;  %v3807_v45 = vmul.f32 %v5262_v5, %v10438_v40  ;;  %v5276_v5 = vld [vmem:[%s5324_s18 + $0x3b8] sm:$0xff]  ;;  %v10445_v40 = vld [vmem:[#allocation54_spill] sm:$0xff] }
 0x470   : > { %v4569_v31 = vadd.f32 %v4299_v12, %v3795_v3  ;;  %v4580_v29 = vadd.f32 %v4354_v2, %v3806_v54  ;;  %v5263_v3 = vld [vmem:[%s5324_s18 + $0x3a0] sm:$0xff]  ;;  %v5264_v2 = vld [vmem:[%s5324_s18 + $0x358] sm:$0xff] }
 0x471   : > { %v3818_v17 = vmul.f32 %v5263_v3, %v8422_v58 }
 0x472   : > { %4698 = vst.msk [vmem:[%s8440_s27 + $0x2e8] sm:$0xff] %vm347_vm0, %v4569_v31  ;;  %4709 = vst.msk [vmem:[%s8440_s27 + $0x340] sm:$0xff] %vm347_vm0, %v4580_v29  ;;  %v10439_v31 = vld [vmem:[#allocation160_spill] sm:$0xff] }
 0x473   : > { %v4309_v41 = vpop.permute.xlu1 %4308  ;;  %v4364_v42 = vpop.permute.xlu0 %4363  ;;  %v3809_v29 = vmul.f32 %v5264_v2, %v10439_v31  ;;  %v5278_v2 = vld [vmem:[%s5324_s18 + $0x3d8] sm:$0xff]  ;;  %v10447_v31 = vld [vmem:[#allocation43_spill] sm:$0xff] }
 0x474   : > { %v4571_v35 = vadd.f32 %v4309_v41, %v3797_v16  ;;  %v4582_v63 = vadd.f32 %v4364_v42, %v3808_v21  ;;  %v5266_v41 = vld [vmem:[%s5324_s18 + $0x368] sm:$0xff]  ;;  %v10440_v42 = vld [vmem:[#allocation181_spill] sm:$0xff] }
 0x476   : > { %4700 = vst.msk [vmem:[%s8440_s27 + $0x2f8] sm:$0xff] %vm347_vm0, %v4571_v35  ;;  %4711 = vst.msk [vmem:[%s8440_s27 + $0x350] sm:$0xff] %vm347_vm0, %v4582_v63  ;;  %v3811_v35 = vmul.f32 %v5266_v41, %v10440_v42  ;;  %v5267_v63 = vld [vmem:[%s5324_s18 + $0x3c0] sm:$0xff]  ;;  %v5280_v42 = vld [vmem:[%s5324_s18 + $0x3f8] sm:$0xff] }
 0x477   : > { %v4319_v9 = vpop.permute.xlu1 %4318  ;;  %v4374_v39 = vpop.permute.xlu0 %4373  ;;  %v3822_v15 = vmul.f32 %v5267_v63, %v8452_v20 }
 0x478   : > { %v4573_v44 = vadd.f32 %v4319_v9, %v3799_v55  ;;  %v4584_v53 = vadd.f32 %v4374_v39, %v3810_v56  ;;  %v5268_v56 = vld [vmem:[%s5324_s18 + $0x378] sm:$0xff]  ;;  %v10441_v9 = vld [vmem:[#allocation39_spill] sm:$0xff] }
 0x479   : > { %v3813_v39 = vmul.f32 %v5268_v56, %v10441_v9 }
 0x47a   : > { %4702 = vst.msk [vmem:[%s8440_s27 + $0x308] sm:$0xff] %vm347_vm0, %v4573_v44  ;;  %4713 = vst.msk [vmem:[%s8440_s27 + $0x360] sm:$0xff] %vm347_vm0, %v4584_v53  ;;  %v5269_v44 = vld [vmem:[%s5324_s18 + $0x3d0] sm:$0xff] }
 0x47b   : > { %v4329_v24 = vpop.permute.xlu1 %4328  ;;  %v4384_v60 = vpop.permute.xlu0 %4383  ;;  %v3824_v53 = vmul.f32 %v5269_v44, %v8464_v32 }
 0x47c   : > { %v4575_v52 = vadd.f32 %v4329_v24, %v3801_v26  ;;  %v4586_v36 = vadd.f32 %v4384_v60, %v3812_v11  ;;  %v10442_v11 = vld [vmem:[#allocation52_spill] sm:$0xff]  ;;  %v5271_v60 = vld [vmem:[%s5324_s18 + $0x3e0] sm:$0xff] }
 0x47d   : > { %v3815_v24 = vmul.f32 %v5270_v51, %v10442_v11 }
 0x47e   : > { %4704 = vst.msk [vmem:[%s8440_s27 + $0x318] sm:$0xff] %vm347_vm0, %v4575_v52  ;;  %4715 = vst.msk [vmem:[%s8440_s27 + $0x370] sm:$0xff] %vm347_vm0, %v4586_v36  ;;  %v3826_v52 = vmul.f32 %v5271_v60, %v8476_v19 }
 0x47f   : > { %v4339_v38 = vpop.permute.xlu1 %4338  ;;  %v4394_v34 = vpop.permute.xlu0 %4393 }
 0x480   : > { %v4577_v57 = vadd.f32 %v4339_v38, %v3803_v7  ;;  %v4588_v13 = vadd.f32 %v4394_v34, %v3814_v27  ;;  %v5272_v7 = vld [vmem:[%s5324_s18 + $0x398] sm:$0xff]  ;;  %v5273_v38 = vld [vmem:[%s5324_s18 + $0x3f0] sm:$0xff] }
 0x481   : > { %v3817_v27 = vmul.f32 %v5272_v7, %v10443_v28  ;;  %v3828_v34 = vmul.f32 %v5273_v38, %v8488_v25 }
 0x482   : > { %4706 = vst.msk [vmem:[%s8440_s27 + $0x328] sm:$0xff] %vm347_vm0, %v4577_v57  ;;  %4717 = vst.msk [vmem:[%s8440_s27 + $0x380] sm:$0xff] %vm347_vm0, %v4588_v13 }
 0x483   : > { %v4349_v23 = vpop.permute.xlu1 %4348  ;;  %v4404_v22 = vpop.permute.xlu0 %4403 }
 0x484   : > { %v4579_v48 = vadd.f32 %v4349_v23, %v3805_v50  ;;  %v4590_v46 = vadd.f32 %v4404_v22, %v3816_v61  ;;  %v10444_v50 = vld [vmem:[#allocation164_spill] sm:$0xff]  ;;  %v5275_v61 = vld [vmem:[%s5324_s18 + $0x400] sm:$0xff] }
 0x485   : > { %v3819_v49 = vmul.f32 %v5274_v14, %v10444_v50  ;;  %v3830_v23 = vmul.f32 %v5275_v61, %v8500_v37 }
 0x486   : > { %4708 = vst.msk [vmem:[%s8440_s27 + $0x338] sm:$0xff] %vm347_vm0, %v4579_v48  ;;  %4719 = vst.msk [vmem:[%s8440_s27 + $0x390] sm:$0xff] %vm347_vm0, %v4590_v46 }
 0x487   : > { %v4359_v47 = vpop.permute.xlu1 %4358  ;;  %v4414_v10 = vpop.permute.xlu0 %4413 }
 0x488   : > { %v4581_v54 = vadd.f32 %v4359_v47, %v3807_v45  ;;  %v4592_v12 = vadd.f32 %v4414_v10, %v3818_v17  ;;  %v3821_v45 = vmul.f32 %v5276_v5, %v10445_v40  ;;  %v5277_v17 = vld [vmem:[%s5324_s18 + $0x3c8] sm:$0xff]  ;;  %v10446_v47 = vld [vmem:[#allocation184_spill] sm:$0xff] }
 0x489   : > { %v3823_v10 = vmul.f32 %v5277_v17, %v10446_v47 }
 0x48a   : > { %4710 = vst.msk [vmem:[%s8440_s27 + $0x348] sm:$0xff] %vm347_vm0, %v4581_v54  ;;  %4721 = vst.msk [vmem:[%s8440_s27 + $0x3a0] sm:$0xff] %vm347_vm0, %v4592_v12 }
 0x48b   : > { %v4369_v58 = vpop.permute.xlu1 %4368  ;;  %v4424_v16 = vpop.permute.xlu0 %4423 }
 0x48c   : > { %v4583_v62 = vadd.f32 %v4369_v58, %v3809_v29  ;;  %v4594_v21 = vadd.f32 %v4424_v16, %v3820_v8  ;;  %v3825_v29 = vmul.f32 %v5278_v2, %v10447_v31  ;;  %v5279_v58 = vld [vmem:[%s5324_s18 + $0x3e8] sm:$0xff]  ;;  %v10448_v16 = vld [vmem:[#allocation166_spill] sm:$0xff] }
 0x48e   : > { %4712 = vst.msk [vmem:[%s8440_s27 + $0x358] sm:$0xff] %vm347_vm0, %v4583_v62  ;;  %4723 = vst.msk [vmem:[%s8440_s27 + $0x3b0] sm:$0xff] %vm347_vm0, %v4594_v21  ;;  %v3827_v62 = vmul.f32 %v5279_v58, %v10448_v16 }
 0x48f   : > { %v4379_v4 = vpop.permute.xlu1 %4378  ;;  %v4434_v43 = vpop.permute.xlu0 %4433 }
 0x490   : > { %v4585_v55 = vadd.f32 %v4379_v4, %v3811_v35  ;;  %v4596_v18 = vadd.f32 %v4434_v43, %v3822_v15  ;;  %v10449_v35 = vld [vmem:[#allocation56_spill] sm:$0xff] }
 0x491   : > { %v3829_v63 = vmul.f32 %v5280_v42, %v10449_v35 }
 0x492   : > { %4714 = vst.msk [vmem:[%s8440_s27 + $0x368] sm:$0xff] %vm347_vm0, %v4585_v55  ;;  %4725 = vst.msk [vmem:[%s8440_s27 + $0x3c0] sm:$0xff] %vm347_vm0, %v4596_v18 }
 0x493   : > { %v4389_v20 = vpop.permute.xlu1 %4388  ;;  %v4444_v6 = vpop.permute.xlu0 %4443 }
 0x494   : > { %v4587_v33 = vadd.f32 %v4389_v20, %v3813_v39  ;;  %v4598_v26 = vadd.f32 %v4444_v6, %v3824_v53 }
 0x496   : > { %4716 = vst.msk [vmem:[%s8440_s27 + $0x378] sm:$0xff] %vm347_vm0, %v4587_v33  ;;  %4727 = vst.msk [vmem:[%s8440_s27 + $0x3d0] sm:$0xff] %vm347_vm0, %v4598_v26 }
 0x497   : > { %v4399_v32 = vpop.permute.xlu1 %4398  ;;  %v4454_v36 = vpop.permute.xlu0 %4453 }
 0x498   : > { %v4589_v30 = vadd.f32 %v4399_v32, %v3815_v24  ;;  %v4600_v0 = vadd.f32 %v4454_v36, %v3826_v52 }
 0x49a   : > { %4718 = vst.msk [vmem:[%s8440_s27 + $0x388] sm:$0xff] %vm347_vm0, %v4589_v30  ;;  %4729 = vst.msk [vmem:[%s8440_s27 + $0x3e0] sm:$0xff] %vm347_vm0, %v4600_v0 }
 0x49b   : > { %v4409_v19 = vpop.permute.xlu1 %4408  ;;  %v4464_v57 = vpop.permute.xlu0 %4463 }
 0x49c   : > { %v4591_v13 = vadd.f32 %v4409_v19, %v3817_v27  ;;  %v4602_v59 = vadd.f32 %v4464_v57, %v3828_v34 }
 0x49e   : > { %4720 = vst.msk [vmem:[%s8440_s27 + $0x398] sm:$0xff] %vm347_vm0, %v4591_v13  ;;  %4731 = vst.msk [vmem:[%s8440_s27 + $0x3f0] sm:$0xff] %vm347_vm0, %v4602_v59 }
 0x49f   : > { %v4419_v25 = vpop.permute.xlu1 %4418  ;;  %v4474_v22 = vpop.permute.xlu0 %4473 }
 0x4a0   : > { %v4593_v48 = vadd.f32 %v4419_v25, %v3819_v49  ;;  %v4604_v46 = vadd.f32 %v4474_v22, %v3830_v23 }
 0x4a2   : > { %4722 = vst.msk [vmem:[%s8440_s27 + $0x3a8] sm:$0xff] %vm347_vm0, %v4593_v48  ;;  %4733 = vst.msk [vmem:[%s8440_s27 + $0x400] sm:$0xff] %vm347_vm0, %v4604_v46 }
 0x4a3   : > { %v4429_v37 = vpop.permute.xlu1 %4428 }
 0x4a4   : > { %v4595_v3 = vadd.f32 %v4429_v37, %v3821_v45 }
 0x4a6   : > { %4724 = vst.msk [vmem:[%s8440_s27 + $0x3b8] sm:$0xff] %vm347_vm0, %v4595_v3 }
 0x4a7   : > { %v4439_v54 = vpop.permute.xlu1 %4438 }
 0x4a8   : > { %v4597_v12 = vadd.f32 %v4439_v54, %v3823_v10 }
 0x4aa   : > { %4726 = vst.msk [vmem:[%s8440_s27 + $0x3c8] sm:$0xff] %vm347_vm0, %v4597_v12 }
 0x4ab   : > { %v4449_v1 = vpop.permute.xlu1 %4448 }
 0x4ac   : > { %v4599_v8 = vadd.f32 %v4449_v1, %v3825_v29 }
 0x4ae   : > { %4728 = vst.msk [vmem:[%s8440_s27 + $0x3d8] sm:$0xff] %vm347_vm0, %v4599_v8 }
 0x4af   : > { %v4459_v21 = vpop.permute.xlu1 %4458 }
 0x4b0   : > { %v4601_v41 = vadd.f32 %v4459_v21, %v3827_v62 }
 0x4b2   : > { %4730 = vst.msk [vmem:[%s8440_s27 + $0x3e8] sm:$0xff] %vm347_vm0, %v4601_v41 }
 0x4b3   : > { %v4469_v15 = vpop.permute.xlu1 %4468 }
 0x4b4   : > { %v4603_v4 = vadd.f32 %v4469_v15, %v3829_v63 }
 0x4b6   : > { %4732 = vst.msk [vmem:[%s8440_s27 + $0x3f8] sm:$0xff] %vm347_vm0, %v4603_v4 }
 0x4b7 PF: > { %s13_s12 = sadd.s32 1, %s5287_s12  }
 0x4b8   : > { %p10_p4 = scmp.ge.s32.totalorder %s13_s12, 4  }
 0x4ba   :  { %12 = sbr.rel (!%p10_p4) target bundleno = 1 (0x1), region = 68 }

</bundles_post_ra>
